<compile_context>
chip_gen: v6e
topology: v6e:2x2x1
jax: 0.10.0
libtpu: 0.0.40
codegen_flags: <defaults>
</compile_context>

<pallas_src>
import functools

import jax
import jax.numpy as jnp
from jax.experimental import pallas as pl
from jax.experimental.pallas import tpu as pltpu


_COMPILER_PARAMS = pltpu.CompilerParams(
    dimension_semantics=("parallel",),          # megacore-shard the M axis
    vmem_limit_bytes=32 * 1024 * 1024,          # explicit; tiles stay << this
)


# ---------------------------------------------------------------------------
# Pallas kernels
# ---------------------------------------------------------------------------
def _matmul_bias_kernel(x_ref, w_ref, b_ref, o_ref, *, relu):
    # x:(TM,K) bf16, w:(K,N) bf16 resident, b:(1,N) f32 -> o:(TM,N)
    acc = jnp.dot(x_ref[...], w_ref[...], preferred_element_type=jnp.float32)
    acc = acc + b_ref[...]
    if relu:
        acc = jnp.maximum(acc, 0.0)
    o_ref[...] = acc.astype(o_ref.dtype)


def matmul_bias(x, w, b, *, relu=False, out_dtype=jnp.float32, block_m=1024):
    """Fused (x @ w + b) (+ReLU); M-tiled, double-buffered, weights resident."""
    M, K = x.shape
    _, N = w.shape
    tm = min(block_m, M)          # block_m is a multiple of 8; else tm == full M
    out_bytes = M * N * jnp.dtype(out_dtype).itemsize
    cost = pl.CostEstimate(
        flops=2 * M * K * N,
        transcendentals=0,
        bytes_accessed=2 * (M * K + K * N) + 4 * N + out_bytes,
    )
    kernel = functools.partial(_matmul_bias_kernel, relu=relu)
    return pl.pallas_call(
        kernel,
        out_shape=jax.ShapeDtypeStruct((M, N), out_dtype),
        grid=(pl.cdiv(M, tm),),
        in_specs=[
            pl.BlockSpec((tm, K), lambda i: (i, 0)),
            pl.BlockSpec((K, N), lambda i: (0, 0)),   # resident weights
            pl.BlockSpec((1, N), lambda i: (0, 0)),   # resident bias
        ],
        out_specs=pl.BlockSpec((tm, N), lambda i: (i, 0)),
        compiler_params=_COMPILER_PARAMS,
        cost_estimate=cost,
    )(x.astype(jnp.bfloat16), w, b)


def _mlp_kernel(x_ref, w1_ref, b1_ref, w2_ref, b2_ref, o_ref):
    # Fused fc1 -> ReLU -> fc2 (one pallas_call instead of two).
    h = jnp.dot(x_ref[...], w1_ref[...], preferred_element_type=jnp.float32)
    h = jnp.maximum(h + b1_ref[...], 0.0)
    o = jnp.dot(h.astype(w2_ref.dtype), w2_ref[...],
                preferred_element_type=jnp.float32)
    o_ref[...] = (o + b2_ref[...]).astype(o_ref.dtype)


def mlp_head(x, w1, b1, w2, b2, *, block_m=512):
    M, K = x.shape
    N1 = w1.shape[1]
    N2 = w2.shape[1]
    tm = min(block_m, M)
    cost = pl.CostEstimate(
        flops=2 * M * (K * N1 + N1 * N2),
        transcendentals=0,
        bytes_accessed=2 * (M * K + K * N1 + N1 * N2) + 4 * (N1 + N2 + M * N2),
    )
    return pl.pallas_call(
        _mlp_kernel,
        out_shape=jax.ShapeDtypeStruct((M, N2), jnp.float32),
        grid=(pl.cdiv(M, tm),),
        in_specs=[
            pl.BlockSpec((tm, K), lambda i: (i, 0)),
            pl.BlockSpec((K, N1), lambda i: (0, 0)),
            pl.BlockSpec((1, N1), lambda i: (0, 0)),
            pl.BlockSpec((N1, N2), lambda i: (0, 0)),
            pl.BlockSpec((1, N2), lambda i: (0, 0)),
        ],
        out_specs=pl.BlockSpec((tm, N2), lambda i: (i, 0)),
        compiler_params=_COMPILER_PARAMS,
        cost_estimate=cost,
    )(x.astype(jnp.bfloat16), w1, b1, w2, b2)


def _maxpool_kernel(x_ref, o_ref, *, c):
    v = x_ref[...]                       # (TP, 2, Wo, 2*C), lanes = 2*C
    v = jnp.max(v, axis=1)               # H-window max: outer-dim elementwise
    o_ref[...] = jnp.maximum(v[..., :c], v[..., c:])   # W-window max: lane halves


def maxpool2x2(x_nhwc, *, block_p=512):
    """2x2 max-pool, stride 2 (NHWC); lane-dense single-input kernel."""
    N, H, W, C = x_nhwc.shape
    Ho, Wo = H // 2, W // 2
    P = N * Ho
    xr = x_nhwc.reshape(P, 2, Wo, 2 * C)    # free row-major reshape, no data movement
    tp = min(block_p, P)
    out = pl.pallas_call(
        functools.partial(_maxpool_kernel, c=C),
        out_shape=jax.ShapeDtypeStruct((P, Wo, C), x_nhwc.dtype),
        grid=(pl.cdiv(P, tp),),
        in_specs=[pl.BlockSpec((tp, 2, Wo, 2 * C), lambda i: (i, 0, 0, 0))],
        out_specs=pl.BlockSpec((tp, Wo, C), lambda i: (i, 0, 0)),
        compiler_params=_COMPILER_PARAMS,
    )(xr)
    return out.reshape(N, Ho, Wo, C)


# ---------------------------------------------------------------------------
# Glue: im2col + layer wrappers
# ---------------------------------------------------------------------------
def _im2col(x_nhwc, ksize, pad):
    """(N,H,W,C) -> (N*H*W, KH*KW*C) patches, feature order (kh, kw, ci)."""
    N, H, W, C = x_nhwc.shape
    xp = jnp.pad(x_nhwc, ((0, 0), (pad, pad), (pad, pad), (0, 0)))
    cols = [xp[:, kh:kh + H, kw:kw + W, :]
            for kh in range(ksize) for kw in range(ksize)]
    patches = jnp.concatenate(cols, axis=-1)          # (N,H,W,K*K*C), no transpose
    return patches.reshape(N * H * W, ksize * ksize * C)


def conv2d_relu(x_nhwc, wmat, b, *, ksize=5, pad=2, block_m=1024):
    """'same' conv (stride 1) + bias + ReLU; hot path is the M-tiled Pallas matmul."""
    N, H, W, _ = x_nhwc.shape
    Cout = wmat.shape[1]
    patches = _im2col(x_nhwc, ksize, pad)             # (N*H*W, k*k*Cin) bf16
    y = matmul_bias(patches, wmat, b, relu=True,
                    out_dtype=jnp.bfloat16, block_m=block_m)
    return y.reshape(N, H, W, Cout)


def mnist_cnn_forward(x_nchw, params):
    n = x_nchw.shape[0]
    # NCHW -> NHWC (free for C=1); activations kept in bf16 between kernels.
    x = jnp.transpose(x_nchw, (0, 2, 3, 1)).astype(jnp.bfloat16)   # (N,28,28,1)
    x = conv2d_relu(x, params["conv1_w"], params["conv1_b"])       # (N,28,28,32)
    x = maxpool2x2(x)                                              # (N,14,14,32)
    x = conv2d_relu(x, params["conv2_w"], params["conv2_b"])       # (N,14,14,64)
    x = maxpool2x2(x)                                              # (N,7,7,64)
    # NHWC flatten; fc1_w's input dim was pre-permuted to (h,w,c) order, so no
    # activation transpose is needed here (matches PyTorch's NCHW view()).
    x = x.reshape(n, 7 * 7 * 64)
    return mlp_head(x, params["fc1_w"], params["fc1_b"],
                    params["fc2_w"], params["fc2_b"])              # (N,10) f32


# ---------------------------------------------------------------------------
# Parameters (PyTorch layouts) + one-time layout preparation
# ---------------------------------------------------------------------------
def init_torch_params(key):
    ks = jax.random.split(key, 8)

    def w(k, shape, scale):
        return scale * jax.random.normal(k, shape, dtype=jnp.float32)

    # PyTorch parameter layouts: Conv2d (Cout,Cin,KH,KW), Linear (out,in).
    return {
        "conv1_w": w(ks[0], (32, 1, 5, 5), 0.10),
        "conv1_b": w(ks[1], (32,), 0.10),
        "conv2_w": w(ks[2], (64, 32, 5, 5), 0.05),
        "conv2_b": w(ks[3], (64,), 0.05),
        "fc1_w": w(ks[4], (256, 7 * 7 * 64), 0.02),
        "fc1_b": w(ks[5], (256,), 0.02),
        "fc2_w": w(ks[6], (10, 256), 0.05),
        "fc2_b": w(ks[7], (10,), 0.05),
    }


def prepare_params(p):
    """One-time conversion from PyTorch layouts to kernel-ready layouts."""
    def conv_w(w_oihw):          # (Cout,Cin,KH,KW) -> (KH*KW*Cin, Cout), bf16
        co, ci, kh, kw = w_oihw.shape
        return (jnp.transpose(w_oihw, (2, 3, 1, 0))
                .reshape(kh * kw * ci, co).astype(jnp.bfloat16))

    # fc1 input features are (c,h,w) flattened in PyTorch; permute to (h,w,c)
    # so the forward pass can flatten NHWC directly.
    fc1_w = (p["fc1_w"].reshape(256, 64, 7, 7)
             .transpose(0, 2, 3, 1)
             .reshape(256, 7 * 7 * 64).T)                          # (3136, 256)
    return {
        "conv1_w": conv_w(p["conv1_w"]),
        "conv1_b": p["conv1_b"].reshape(1, -1).astype(jnp.float32),
        "conv2_w": conv_w(p["conv2_w"]),
        "conv2_b": p["conv2_b"].reshape(1, -1).astype(jnp.float32),
        "fc1_w": fc1_w.astype(jnp.bfloat16),
        "fc1_b": p["fc1_b"].reshape(1, -1).astype(jnp.float32),
        "fc2_w": p["fc2_w"].T.astype(jnp.bfloat16),                # (256, 10)
        "fc2_b": p["fc2_b"].reshape(1, -1).astype(jnp.float32),
    }


if __name__ == "__main__":
    key = jax.random.PRNGKey(0)
    kx, kp = jax.random.split(key)
    # MNIST geometry is fixed by the module (fc1 expects 7*7*64): 28x28, Cin=1.
    x = jax.random.normal(kx, (2, 1, 28, 28), dtype=jnp.float32)
    params = prepare_params(init_torch_params(kp))   # weight layouts prepped once

    fwd = jax.jit(mnist_cnn_forward)
    out = jax.block_until_ready(fwd(x, params))
    assert out.shape == (2, 10) and out.dtype == jnp.float32
    print("KERNEL_OK")
</pallas_src>

<mosaic_0001>
module attributes {stable_mosaic.version = 11 : i64} {
  func.func @_matmul_bias_kernel(%arg0: i32, %arg1: memref<1024x25xbf16, #tpu.memory_space<vmem>>, %arg2: memref<25x32xbf16, #tpu.memory_space<vmem>>, %arg3: memref<1x32xf32, #tpu.memory_space<vmem>>, %arg4: memref<1024x32xbf16, #tpu.memory_space<vmem>>) attributes {dimension_semantics = [#tpu.dimension_semantics<parallel>], iteration_bounds = array<i64: 2>, scalar_prefetch = 0 : i64, scratch_operands = 0 : i64, tpu.core_type = #tpu.core_type<tc>, window_params = [{transform_indices = @transform_0, window_bounds = array<i64: 1024, 25>}, {pipeline_mode = #tpu.pipeline_mode<synchronous>, transform_indices = @transform_1, window_bounds = array<i64: 25, 32>}, {pipeline_mode = #tpu.pipeline_mode<synchronous>, transform_indices = @transform_2, window_bounds = array<i64: 1, 32>}, {transform_indices = @transform_3, window_bounds = array<i64: 1024, 32>}]} {
    %c0 = arith.constant 0 : index
    %c0_0 = arith.constant 0 : index
    %0 = vector.load %arg1[%c0, %c0_0] : memref<1024x25xbf16, #tpu.memory_space<vmem>>, vector<1024x25xbf16>
    %c0_1 = arith.constant 0 : index
    %c0_2 = arith.constant 0 : index
    %1 = vector.load %arg2[%c0_1, %c0_2] : memref<25x32xbf16, #tpu.memory_space<vmem>>, vector<25x32xbf16>
    %cst = arith.constant dense<0.000000e+00> : vector<1024x32xf32>
    %2 = tpu.matmul %0, %1, %cst {dimension_numbers = #tpu.dot_dimension_numbers<[1], [0], [0], [1], [0, 0, 1, 1], [], []>} : vector<1024x25xbf16>, vector<25x32xbf16>, vector<1024x32xf32> -> vector<1024x32xf32>
    %c0_3 = arith.constant 0 : index
    %c0_4 = arith.constant 0 : index
    %3 = vector.load %arg3[%c0_3, %c0_4] : memref<1x32xf32, #tpu.memory_space<vmem>>, vector<1x32xf32>
    %4 = vector.broadcast %3 : vector<1x32xf32> to vector<1024x32xf32>
    %5 = arith.addf %2, %4 : vector<1024x32xf32>
    %cst_5 = arith.constant 0.000000e+00 : f32
    %6 = vector.broadcast %cst_5 : f32 to vector<1024x32xf32>
    %7 = arith.maximumf %5, %6 : vector<1024x32xf32>
    %8 = arith.truncf %7 : vector<1024x32xf32> to vector<1024x32xbf16>
    %c0_6 = arith.constant 0 : index
    %c0_7 = arith.constant 0 : index
    %9 = vector.load %arg4[%c0_6, %c0_7] : memref<1024x32xbf16, #tpu.memory_space<vmem>>, vector<1024x32xbf16>
    tpu.vector_store %arg4[%c0_6, %c0_7], %8 {strides = array<i32>} : memref<1024x32xbf16, #tpu.memory_space<vmem>>, vector<1024x32xbf16>,
    return
  }
  func.func @transform_0(%arg0: i32) -> (i32, i32) {
    %c0_i32 = arith.constant 0 : i32
    %c0_i32_0 = arith.constant 0 : i32
    return %arg0, %c0_i32 : i32, i32
  }
  func.func @transform_1(%arg0: i32) -> (i32, i32) {
    %c0_i32 = arith.constant 0 : i32
    %c0_i32_0 = arith.constant 0 : i32
    %c0_i32_1 = arith.constant 0 : i32
    return %c0_i32, %c0_i32_0 : i32, i32
  }
  func.func @transform_2(%arg0: i32) -> (i32, i32) {
    %c0_i32 = arith.constant 0 : i32
    %c0_i32_0 = arith.constant 0 : i32
    %c0_i32_1 = arith.constant 0 : i32
    return %c0_i32, %c0_i32_0 : i32, i32
  }
  func.func @transform_3(%arg0: i32) -> (i32, i32) {
    %c0_i32 = arith.constant 0 : i32
    %c0_i32_0 = arith.constant 0 : i32
    return %arg0, %c0_i32 : i32, i32
  }
}

module attributes {stable_mosaic.version = 11 : i64} {
  func.func @_maxpool_kernel(%arg0: i32, %arg1: memref<28x2x14x64xbf16, #tpu.memory_space<vmem>>, %arg2: memref<28x14x32xbf16, #tpu.memory_space<vmem>>) attributes {dimension_semantics = [#tpu.dimension_semantics<parallel>], iteration_bounds = array<i64: 1>, scalar_prefetch = 0 : i64, scratch_operands = 0 : i64, tpu.core_type = #tpu.core_type<tc>, window_params = [{transform_indices = @transform_0, window_bounds = array<i64: 28, 2, 14, 64>}, {transform_indices = @transform_1, window_bounds = array<i64: 28, 14, 32>}]} {
    %c0 = arith.constant 0 : index
    %c0_0 = arith.constant 0 : index
    %c0_1 = arith.constant 0 : index
    %c0_2 = arith.constant 0 : index
    %0 = vector.load %arg1[%c0, %c0_0, %c0_1, %c0_2] : memref<28x2x14x64xbf16, #tpu.memory_space<vmem>>, vector<28x2x14x64xbf16>
    %cst = arith.constant dense<0xFF80> : vector<28x14x64xbf16>
    %1 = vector.multi_reduction <maximumf>, %0, %cst [1] : vector<28x2x14x64xbf16> to vector<28x14x64xbf16>
    %2 = vector.extract_strided_slice %1 {offsets = [0, 0, 0], sizes = [28, 14, 32], strides = [1, 1, 1]} : vector<28x14x64xbf16> to vector<28x14x32xbf16>
    %3 = vector.extract_strided_slice %1 {offsets = [0, 0, 32], sizes = [28, 14, 32], strides = [1, 1, 1]} : vector<28x14x64xbf16> to vector<28x14x32xbf16>
    %4 = arith.maximumf %2, %3 : vector<28x14x32xbf16>
    %c0_3 = arith.constant 0 : index
    %c0_4 = arith.constant 0 : index
    %c0_5 = arith.constant 0 : index
    %5 = vector.load %arg2[%c0_3, %c0_4, %c0_5] : memref<28x14x32xbf16, #tpu.memory_space<vmem>>, vector<28x14x32xbf16>
    tpu.vector_store %arg2[%c0_3, %c0_4, %c0_5], %4 {strides = array<i32>} : memref<28x14x32xbf16, #tpu.memory_space<vmem>>, vector<28x14x32xbf16>,
    return
  }
  func.func @transform_0(%arg0: i32) -> (i32, i32, i32, i32) {
    %c0_i32 = arith.constant 0 : i32
    %c0_i32_0 = arith.constant 0 : i32
    %c0_i32_1 = arith.constant 0 : i32
    %c0_i32_2 = arith.constant 0 : i32
    return %arg0, %c0_i32, %c0_i32_0, %c0_i32_1 : i32, i32, i32, i32
  }
  func.func @transform_1(%arg0: i32) -> (i32, i32, i32) {
    %c0_i32 = arith.constant 0 : i32
    %c0_i32_0 = arith.constant 0 : i32
    %c0_i32_1 = arith.constant 0 : i32
    return %arg0, %c0_i32, %c0_i32_0 : i32, i32, i32
  }
}

module attributes {stable_mosaic.version = 11 : i64} {
  func.func @_matmul_bias_kernel(%arg0: i32, %arg1: memref<392x800xbf16, #tpu.memory_space<vmem>>, %arg2: memref<800x64xbf16, #tpu.memory_space<vmem>>, %arg3: memref<1x64xf32, #tpu.memory_space<vmem>>, %arg4: memref<392x64xbf16, #tpu.memory_space<vmem>>) attributes {dimension_semantics = [#tpu.dimension_semantics<parallel>], iteration_bounds = array<i64: 1>, scalar_prefetch = 0 : i64, scratch_operands = 0 : i64, tpu.core_type = #tpu.core_type<tc>, window_params = [{transform_indices = @transform_0, window_bounds = array<i64: 392, 800>}, {pipeline_mode = #tpu.pipeline_mode<synchronous>, transform_indices = @transform_1, window_bounds = array<i64: 800, 64>}, {pipeline_mode = #tpu.pipeline_mode<synchronous>, transform_indices = @transform_2, window_bounds = array<i64: 1, 64>}, {transform_indices = @transform_3, window_bounds = array<i64: 392, 64>}]} {
    %c0 = arith.constant 0 : index
    %c0_0 = arith.constant 0 : index
    %0 = vector.load %arg1[%c0, %c0_0] : memref<392x800xbf16, #tpu.memory_space<vmem>>, vector<392x800xbf16>
    %c0_1 = arith.constant 0 : index
    %c0_2 = arith.constant 0 : index
    %1 = vector.load %arg2[%c0_1, %c0_2] : memref<800x64xbf16, #tpu.memory_space<vmem>>, vector<800x64xbf16>
    %cst = arith.constant dense<0.000000e+00> : vector<392x64xf32>
    %2 = tpu.matmul %0, %1, %cst {dimension_numbers = #tpu.dot_dimension_numbers<[1], [0], [0], [1], [0, 0, 1, 1], [], []>} : vector<392x800xbf16>, vector<800x64xbf16>, vector<392x64xf32> -> vector<392x64xf32>
    %c0_3 = arith.constant 0 : index
    %c0_4 = arith.constant 0 : index
    %3 = vector.load %arg3[%c0_3, %c0_4] : memref<1x64xf32, #tpu.memory_space<vmem>>, vector<1x64xf32>
    %4 = vector.broadcast %3 : vector<1x64xf32> to vector<392x64xf32>
    %5 = arith.addf %2, %4 : vector<392x64xf32>
    %cst_5 = arith.constant 0.000000e+00 : f32
    %6 = vector.broadcast %cst_5 : f32 to vector<392x64xf32>
    %7 = arith.maximumf %5, %6 : vector<392x64xf32>
    %8 = arith.truncf %7 : vector<392x64xf32> to vector<392x64xbf16>
    %c0_6 = arith.constant 0 : index
    %c0_7 = arith.constant 0 : index
    %9 = vector.load %arg4[%c0_6, %c0_7] : memref<392x64xbf16, #tpu.memory_space<vmem>>, vector<392x64xbf16>
    tpu.vector_store %arg4[%c0_6, %c0_7], %8 {strides = array<i32>} : memref<392x64xbf16, #tpu.memory_space<vmem>>, vector<392x64xbf16>,
    return
  }
  func.func @transform_0(%arg0: i32) -> (i32, i32) {
    %c0_i32 = arith.constant 0 : i32
    %c0_i32_0 = arith.constant 0 : i32
    return %arg0, %c0_i32 : i32, i32
  }
  func.func @transform_1(%arg0: i32) -> (i32, i32) {
    %c0_i32 = arith.constant 0 : i32
    %c0_i32_0 = arith.constant 0 : i32
    %c0_i32_1 = arith.constant 0 : i32
    return %c0_i32, %c0_i32_0 : i32, i32
  }
  func.func @transform_2(%arg0: i32) -> (i32, i32) {
    %c0_i32 = arith.constant 0 : i32
    %c0_i32_0 = arith.constant 0 : i32
    %c0_i32_1 = arith.constant 0 : i32
    return %c0_i32, %c0_i32_0 : i32, i32
  }
  func.func @transform_3(%arg0: i32) -> (i32, i32) {
    %c0_i32 = arith.constant 0 : i32
    %c0_i32_0 = arith.constant 0 : i32
    return %arg0, %c0_i32 : i32, i32
  }
}

module attributes {stable_mosaic.version = 11 : i64} {
  func.func @_maxpool_kernel(%arg0: i32, %arg1: memref<14x2x7x128xbf16, #tpu.memory_space<vmem>>, %arg2: memref<14x7x64xbf16, #tpu.memory_space<vmem>>) attributes {dimension_semantics = [#tpu.dimension_semantics<parallel>], iteration_bounds = array<i64: 1>, scalar_prefetch = 0 : i64, scratch_operands = 0 : i64, tpu.core_type = #tpu.core_type<tc>, window_params = [{transform_indices = @transform_0, window_bounds = array<i64: 14, 2, 7, 128>}, {transform_indices = @transform_1, window_bounds = array<i64: 14, 7, 64>}]} {
    %c0 = arith.constant 0 : index
    %c0_0 = arith.constant 0 : index
    %c0_1 = arith.constant 0 : index
    %c0_2 = arith.constant 0 : index
    %0 = vector.load %arg1[%c0, %c0_0, %c0_1, %c0_2] : memref<14x2x7x128xbf16, #tpu.memory_space<vmem>>, vector<14x2x7x128xbf16>
    %cst = arith.constant dense<0xFF80> : vector<14x7x128xbf16>
    %1 = vector.multi_reduction <maximumf>, %0, %cst [1] : vector<14x2x7x128xbf16> to vector<14x7x128xbf16>
    %2 = vector.extract_strided_slice %1 {offsets = [0, 0, 0], sizes = [14, 7, 64], strides = [1, 1, 1]} : vector<14x7x128xbf16> to vector<14x7x64xbf16>
    %3 = vector.extract_strided_slice %1 {offsets = [0, 0, 64], sizes = [14, 7, 64], strides = [1, 1, 1]} : vector<14x7x128xbf16> to vector<14x7x64xbf16>
    %4 = arith.maximumf %2, %3 : vector<14x7x64xbf16>
    %c0_3 = arith.constant 0 : index
    %c0_4 = arith.constant 0 : index
    %c0_5 = arith.constant 0 : index
    %5 = vector.load %arg2[%c0_3, %c0_4, %c0_5] : memref<14x7x64xbf16, #tpu.memory_space<vmem>>, vector<14x7x64xbf16>
    tpu.vector_store %arg2[%c0_3, %c0_4, %c0_5], %4 {strides = array<i32>} : memref<14x7x64xbf16, #tpu.memory_space<vmem>>, vector<14x7x64xbf16>,
    return
  }
  func.func @transform_0(%arg0: i32) -> (i32, i32, i32, i32) {
    %c0_i32 = arith.constant 0 : i32
    %c0_i32_0 = arith.constant 0 : i32
    %c0_i32_1 = arith.constant 0 : i32
    %c0_i32_2 = arith.constant 0 : i32
    return %arg0, %c0_i32, %c0_i32_0, %c0_i32_1 : i32, i32, i32, i32
  }
  func.func @transform_1(%arg0: i32) -> (i32, i32, i32) {
    %c0_i32 = arith.constant 0 : i32
    %c0_i32_0 = arith.constant 0 : i32
    %c0_i32_1 = arith.constant 0 : i32
    return %arg0, %c0_i32, %c0_i32_0 : i32, i32, i32
  }
}

module attributes {stable_mosaic.version = 11 : i64} {
  func.func @_mlp_kernel(%arg0: i32, %arg1: memref<2x3136xbf16, #tpu.memory_space<vmem>>, %arg2: memref<3136x256xbf16, #tpu.memory_space<vmem>>, %arg3: memref<1x256xf32, #tpu.memory_space<vmem>>, %arg4: memref<256x10xbf16, #tpu.memory_space<vmem>>, %arg5: memref<1x10xf32, #tpu.memory_space<vmem>>, %arg6: memref<2x10xf32, #tpu.memory_space<vmem>>) attributes {dimension_semantics = [#tpu.dimension_semantics<parallel>], iteration_bounds = array<i64: 1>, scalar_prefetch = 0 : i64, scratch_operands = 0 : i64, tpu.core_type = #tpu.core_type<tc>, window_params = [{transform_indices = @transform_0, window_bounds = array<i64: 2, 3136>}, {pipeline_mode = #tpu.pipeline_mode<synchronous>, transform_indices = @transform_1, window_bounds = array<i64: 3136, 256>}, {pipeline_mode = #tpu.pipeline_mode<synchronous>, transform_indices = @transform_2, window_bounds = array<i64: 1, 256>}, {pipeline_mode = #tpu.pipeline_mode<synchronous>, transform_indices = @transform_3, window_bounds = array<i64: 256, 10>}, {pipeline_mode = #tpu.pipeline_mode<synchronous>, transform_indices = @transform_4, window_bounds = array<i64: 1, 10>}, {transform_indices = @transform_5, window_bounds = array<i64: 2, 10>}]} {
    %c0 = arith.constant 0 : index
    %c0_0 = arith.constant 0 : index
    %0 = vector.load %arg1[%c0, %c0_0] : memref<2x3136xbf16, #tpu.memory_space<vmem>>, vector<2x3136xbf16>
    %c0_1 = arith.constant 0 : index
    %c0_2 = arith.constant 0 : index
    %1 = vector.load %arg2[%c0_1, %c0_2] : memref<3136x256xbf16, #tpu.memory_space<vmem>>, vector<3136x256xbf16>
    %cst = arith.constant dense<0.000000e+00> : vector<2x256xf32>
    %2 = tpu.matmul %0, %1, %cst {dimension_numbers = #tpu.dot_dimension_numbers<[1], [0], [0], [1], [0, 0, 1, 1], [], []>} : vector<2x3136xbf16>, vector<3136x256xbf16>, vector<2x256xf32> -> vector<2x256xf32>
    %c0_3 = arith.constant 0 : index
    %c0_4 = arith.constant 0 : index
    %3 = vector.load %arg3[%c0_3, %c0_4] : memref<1x256xf32, #tpu.memory_space<vmem>>, vector<1x256xf32>
    %4 = vector.broadcast %3 : vector<1x256xf32> to vector<2x256xf32>
    %5 = arith.addf %2, %4 : vector<2x256xf32>
    %cst_5 = arith.constant 0.000000e+00 : f32
    %6 = vector.broadcast %cst_5 : f32 to vector<2x256xf32>
    %7 = arith.maximumf %5, %6 : vector<2x256xf32>
    %8 = arith.truncf %7 : vector<2x256xf32> to vector<2x256xbf16>
    %c0_6 = arith.constant 0 : index
    %c0_7 = arith.constant 0 : index
    %9 = vector.load %arg4[%c0_6, %c0_7] : memref<256x10xbf16, #tpu.memory_space<vmem>>, vector<256x10xbf16>
    %cst_8 = arith.constant dense<0.000000e+00> : vector<2x10xf32>
    %10 = tpu.matmul %8, %9, %cst_8 {dimension_numbers = #tpu.dot_dimension_numbers<[1], [0], [0], [1], [0, 0, 1, 1], [], []>} : vector<2x256xbf16>, vector<256x10xbf16>, vector<2x10xf32> -> vector<2x10xf32>
    %c0_9 = arith.constant 0 : index
    %c0_10 = arith.constant 0 : index
    %11 = vector.load %arg5[%c0_9, %c0_10] : memref<1x10xf32, #tpu.memory_space<vmem>>, vector<1x10xf32>
    %12 = vector.broadcast %11 : vector<1x10xf32> to vector<2x10xf32>
    %13 = arith.addf %10, %12 : vector<2x10xf32>
    %c0_11 = arith.constant 0 : index
    %c0_12 = arith.constant 0 : index
    %14 = vector.load %arg6[%c0_11, %c0_12] : memref<2x10xf32, #tpu.memory_space<vmem>>, vector<2x10xf32>
    tpu.vector_store %arg6[%c0_11, %c0_12], %13 {strides = array<i32>} : memref<2x10xf32, #tpu.memory_space<vmem>>, vector<2x10xf32>,
    return
  }
  func.func @transform_0(%arg0: i32) -> (i32, i32) {
    %c0_i32 = arith.constant 0 : i32
    %c0_i32_0 = arith.constant 0 : i32
    return %arg0, %c0_i32 : i32, i32
  }
  func.func @transform_1(%arg0: i32) -> (i32, i32) {
    %c0_i32 = arith.constant 0 : i32
    %c0_i32_0 = arith.constant 0 : i32
    %c0_i32_1 = arith.constant 0 : i32
    return %c0_i32, %c0_i32_0 : i32, i32
  }
  func.func @transform_2(%arg0: i32) -> (i32, i32) {
    %c0_i32 = arith.constant 0 : i32
    %c0_i32_0 = arith.constant 0 : i32
    %c0_i32_1 = arith.constant 0 : i32
    return %c0_i32, %c0_i32_0 : i32, i32
  }
  func.func @transform_3(%arg0: i32) -> (i32, i32) {
    %c0_i32 = arith.constant 0 : i32
    %c0_i32_0 = arith.constant 0 : i32
    %c0_i32_1 = arith.constant 0 : i32
    return %c0_i32, %c0_i32_0 : i32, i32
  }
  func.func @transform_4(%arg0: i32) -> (i32, i32) {
    %c0_i32 = arith.constant 0 : i32
    %c0_i32_0 = arith.constant 0 : i32
    %c0_i32_1 = arith.constant 0 : i32
    return %c0_i32, %c0_i32_0 : i32, i32
  }
  func.func @transform_5(%arg0: i32) -> (i32, i32) {
    %c0_i32 = arith.constant 0 : i32
    %c0_i32_0 = arith.constant 0 : i32
    return %arg0, %c0_i32 : i32, i32
  }
}

</mosaic_0001>

<bundles_post_ra>
// kernel: mnist_cnn_forward.6
= control target key start
LH: loop header
LB: loop body
LE: loop exit
PB: predicated region body
PF: predicated region fallthrough
CT: control target
= control target key end

     0   :  { %vm121_vm0 = vcmask 519168   ;;  %vm130_vm1 = vcmask 518144   ;;  %s859_s20 = smov 96   ;;  %vm796_vm2 = vcmask 257024   ;;  %vm798_vm3 = vcmask 256000   ;;  %s1822_s0 = inlined_call_operand.vmem [shape: bf16[28,2,14,64], index: 0, kind: input, shape index: {}]   ;;  %s1823_s1 = inlined_call_operand.vmem [shape: bf16[28,14,32], index: 1, kind: output, shape index: {}]  }
   0x1   :  { %v13_v0 = vld [vmem:[%s1822_s0 + $0x10] sm:$0xf]  ;;  %v15_v1 = vld [vmem:[%s1822_s0 + $0x18] sm:$0xf]  ;;  %v9_v2 = vld [vmem:[%s1822_s0] sm:$0xf] }
   0x2   :  { %v139_v3 = vsel %vm121_vm0, %v13_v0, 4286644096  ;;  %v142_v4 = vsel %vm121_vm0, %v15_v1, 4286644096  ;;  %v11_v5 = vld [vmem:[%s1822_s0 + $0x8] sm:$0xf] }
   0x3   :  { %v884_v6 = vmax.bf16 %v142_v4, %v139_v3  ;;  %v124_v7 = vsel %vm121_vm0, %v9_v2, 4286644096  ;;  %v127_v8 = vsel %vm121_vm0, %v11_v5, 4286644096  ;;  %v14_v9 = vld [vmem:[%s1822_s0 + $0x14] sm:$0x7] }
   0x4   :  { %v891_v10 = vmax.bf16 %v127_v8, %v124_v7  ;;  %v16_v11 = vld [vmem:[%s1822_s0 + $0x1c] sm:$0x7]  ;;  %v146_v12 = vsel %vm130_vm1, %v14_v9, 4286644096  ;;  %v10_v13 = vld [vmem:[%s1822_s0 + $0x4] sm:$0x7] }
   0x5   :  { %576 = vrot.lane.b32.xlu1 %v884_v6, %s859_s20  ;;  %v149_v14 = vsel %vm130_vm1, %v16_v11, 4286644096  ;;  %v12_v15 = vld [vmem:[%s1822_s0 + $0xc] sm:$0x7]  ;;  %v132_v16 = vsel %vm130_vm1, %v10_v13, 4286644096 }
   0x6   :  { %572 = vrot.lane.b32.xlu0 %v891_v10, %s859_s20  ;;  %v909_v17 = vmax.bf16 %v149_v14, %v146_v12  ;;  %v135_v18 = vsel %vm130_vm1, %v12_v15, 4286644096  ;;  %v18_v19 = vld [vmem:[%s1822_s0 + $0x24] sm:$0x7]  ;;  %v20_v20 = vld [vmem:[%s1822_s0 + $0x2c] sm:$0x7] }
   0x7   :  { %v918_v21 = vmax.bf16 %v135_v18, %v132_v16  ;;  %v160_v22 = vsel %vm130_vm1, %v18_v19, 4286644096  ;;  %v163_v23 = vsel %vm130_vm1, %v20_v20, 4286644096  ;;  %v17_v24 = vld [vmem:[%s1822_s0 + $0x20] sm:$0xf] }
   0x8   :  { %v19_v25 = vld [vmem:[%s1822_s0 + $0x28] sm:$0xf]  ;;  %v153_v26 = vsel %vm121_vm0, %v17_v24, 4286644096  ;;  %v22_v27 = vld [vmem:[%s1822_s0 + $0x34] sm:$0x7]  ;;  %v934_v28 = vmax.bf16 %v163_v23, %v160_v22 }
   0x9   :  { %578 = vrot.lane.b32.xlu1 %v909_v17, %s859_s20  ;;  %v156_v29 = vsel %vm121_vm0, %v19_v25, 4286644096  ;;  %v24_v30 = vld [vmem:[%s1822_s0 + $0x3c] sm:$0x7]  ;;  %v174_v31 = vsel %vm130_vm1, %v22_v27, 4286644096 }
   0xa   :  { %574 = vrot.lane.b32.xlu0 %v918_v21, %s859_s20  ;;  %v943_v32 = vmax.bf16 %v156_v29, %v153_v26  ;;  %v177_v33 = vsel %vm130_vm1, %v24_v30, 4286644096  ;;  %v21_v34 = vld [vmem:[%s1822_s0 + $0x30] sm:$0xf]  ;;  %v23_v35 = vld [vmem:[%s1822_s0 + $0x38] sm:$0xf] }
   0xb   :  { %v167_v36 = vsel %vm121_vm0, %v21_v34, 4286644096  ;;  %v170_v37 = vsel %vm121_vm0, %v23_v35, 4286644096  ;;  %v26_v38 = vld [vmem:[%s1822_s0 + $0x44] sm:$0x7]  ;;  %v965_v41 = vmax.bf16 %v177_v33, %v174_v31 }
   0xc   :  { %v28_v39 = vld [vmem:[%s1822_s0 + $0x4c] sm:$0x7]  ;;  %v25_v40 = vld [vmem:[%s1822_s0 + $0x40] sm:$0xf]  ;;  %v188_v42 = vsel %vm130_vm1, %v26_v38, 4286644096  ;;  %v973_v44 = vmax.bf16 %v170_v37, %v167_v36 }
   0xd   :  { %582 = vrot.lane.b32.xlu1 %v934_v28, %s859_s20  ;;  %v27_v43 = vld [vmem:[%s1822_s0 + $0x48] sm:$0xf]  ;;  %v191_v45 = vsel %vm130_vm1, %v28_v39, 4286644096  ;;  %v30_v46 = vld [vmem:[%s1822_s0 + $0x54] sm:$0x7] }
   0xe   :  { %580 = vrot.lane.b32.xlu0 %v943_v32, %s859_s20  ;;  %v32_v47 = vld [vmem:[%s1822_s0 + $0x5c] sm:$0x7]  ;;  %v181_v48 = vsel %vm121_vm0, %v25_v40, 4286644096  ;;  %v184_v49 = vsel %vm121_vm0, %v27_v43, 4286644096  ;;  %v992_v52 = vmax.bf16 %v191_v45, %v188_v42 }
   0xf   :  { %v29_v50 = vld [vmem:[%s1822_s0 + $0x50] sm:$0xf]  ;;  %v31_v51 = vld [vmem:[%s1822_s0 + $0x58] sm:$0xf]  ;;  %v202_v53 = vsel %vm130_vm1, %v30_v46, 4286644096  ;;  %v998_v55 = vmax.bf16 %v184_v49, %v181_v48 }
  0x10   :  { %v205_v54 = vsel %vm130_vm1, %v32_v47, 4286644096  ;;  %v195_v56 = vsel %vm121_vm0, %v29_v50, 4286644096  ;;  %v34_v57 = vld [vmem:[%s1822_s0 + $0x64] sm:$0x7] }
  0x11   :  { %586 = vrot.lane.b32.xlu1 %v965_v41, %s859_s20  ;;  %v36_v58 = vld [vmem:[%s1822_s0 + $0x6c] sm:$0x7]  ;;  %v198_v59 = vsel %vm121_vm0, %v31_v51, 4286644096  ;;  %v33_v60 = vld [vmem:[%s1822_s0 + $0x60] sm:$0xf]  ;;  %v1016_v62 = vmax.bf16 %v205_v54, %v202_v53 }
  0x12   :  { %584 = vrot.lane.b32.xlu0 %v973_v44, %s859_s20  ;;  %v35_v61 = vld [vmem:[%s1822_s0 + $0x68] sm:$0xf]  ;;  %v216_v63 = vsel %vm130_vm1, %v34_v57, 4286644096  ;;  %v219_v0 = vsel %vm130_vm1, %v36_v58, 4286644096  ;;  %v1022_v1 = vmax.bf16 %v198_v59, %v195_v56 }
  0x13   :  { %v209_v2 = vsel %vm121_vm0, %v33_v60, 4286644096  ;;  %v212_v3 = vsel %vm121_vm0, %v35_v61, 4286644096  ;;  %v38_v4 = vld [vmem:[%s1822_s0 + $0x74] sm:$0x7]  ;;  %v1040_v9 = vmax.bf16 %v219_v0, %v216_v63 }
  0x14   :  { %v40_v5 = vld [vmem:[%s1822_s0 + $0x7c] sm:$0x7]  ;;  %v37_v7 = vld [vmem:[%s1822_s0 + $0x70] sm:$0xf]  ;;  %v39_v8 = vld [vmem:[%s1822_s0 + $0x78] sm:$0xf]  ;;  %v1045_v12 = vmax.bf16 %v212_v3, %v209_v2 }
  0x15   :  { %590 = vrot.lane.b32.xlu1 %v992_v52, %s859_s20  ;;  %v230_v11 = vsel %vm130_vm1, %v38_v4, 4286644096  ;;  %v233_v13 = vsel %vm130_vm1, %v40_v5, 4286644096  ;;  %v223_v14 = vsel %vm121_vm0, %v37_v7, 4286644096 }
  0x16   :  { %588 = vrot.lane.b32.xlu0 %v998_v55, %s859_s20  ;;  %v226_v15 = vsel %vm121_vm0, %v39_v8, 4286644096  ;;  %v42_v16 = vld [vmem:[%s1822_s0 + $0x84] sm:$0x7]  ;;  %v44_v18 = vld [vmem:[%s1822_s0 + $0x8c] sm:$0x7]  ;;  %v1064_v22 = vmax.bf16 %v233_v13, %v230_v11 }
  0x17   :  { %v41_v19 = vld [vmem:[%s1822_s0 + $0x80] sm:$0xf]  ;;  %v43_v20 = vld [vmem:[%s1822_s0 + $0x88] sm:$0xf]  ;;  %v1068_v23 = vmax.bf16 %v226_v15, %v223_v14  ;;  %v244_v24 = vsel %vm130_vm1, %v42_v16, 4286644096 }
  0x18   :  { %v247_v25 = vsel %vm130_vm1, %v44_v18, 4286644096  ;;  %v237_v26 = vsel %vm121_vm0, %v41_v19, 4286644096  ;;  %v240_v27 = vsel %vm121_vm0, %v43_v20, 4286644096 }
  0x19   :  { %594 = vrot.lane.b32.xlu1 %v1016_v62, %s859_s20  ;;  %v46_v29 = vld [vmem:[%s1822_s0 + $0x94] sm:$0x7]  ;;  %v48_v30 = vld [vmem:[%s1822_s0 + $0x9c] sm:$0x7]  ;;  %v45_v31 = vld [vmem:[%s1822_s0 + $0x90] sm:$0xf]  ;;  %v1088_v34 = vmax.bf16 %v247_v25, %v244_v24  ;;  %v1092_v35 = vmax.bf16 %v240_v27, %v237_v26 }
  0x1a   :  { %592 = vrot.lane.b32.xlu0 %v1022_v1, %s859_s20  ;;  %v47_v33 = vld [vmem:[%s1822_s0 + $0x98] sm:$0xf]  ;;  %v258_v36 = vsel %vm130_vm1, %v46_v29, 4286644096  ;;  %v261_v37 = vsel %vm130_vm1, %v48_v30, 4286644096 }
  0x1b   :  { %v50_v38 = vld [vmem:[%s1822_s0 + $0xa4] sm:$0x7]  ;;  %v251_v39 = vsel %vm121_vm0, %v45_v31, 4286644096  ;;  %v254_v40 = vsel %vm121_vm0, %v47_v33, 4286644096  ;;  %v1112_v46 = vmax.bf16 %v261_v37, %v258_v36 }
  0x1c   :  { %v52_v42 = vld [vmem:[%s1822_s0 + $0xac] sm:$0x7]  ;;  %v49_v43 = vld [vmem:[%s1822_s0 + $0xa0] sm:$0xf]  ;;  %v51_v45 = vld [vmem:[%s1822_s0 + $0xa8] sm:$0xf]  ;;  %v1117_v48 = vmax.bf16 %v254_v40, %v251_v39 }
  0x1d   :  { %598 = vrot.lane.b32.xlu1 %v1040_v9, %s859_s20  ;;  %v272_v47 = vsel %vm130_vm1, %v50_v38, 4286644096  ;;  %v275_v49 = vsel %vm130_vm1, %v52_v42, 4286644096  ;;  %v54_v50 = vld [vmem:[%s1822_s0 + $0xb4] sm:$0x7] }
  0x1e   :  { %596 = vrot.lane.b32.xlu0 %v1045_v12, %s859_s20  ;;  %v56_v51 = vld [vmem:[%s1822_s0 + $0xbc] sm:$0x7]  ;;  %v265_v53 = vsel %vm121_vm0, %v49_v43, 4286644096  ;;  %v268_v54 = vsel %vm121_vm0, %v51_v45, 4286644096  ;;  %v1136_v58 = vmax.bf16 %v275_v49, %v272_v47 }
  0x1f   :  { %v53_v56 = vld [vmem:[%s1822_s0 + $0xb0] sm:$0xf]  ;;  %v55_v57 = vld [vmem:[%s1822_s0 + $0xb8] sm:$0xf]  ;;  %v286_v59 = vsel %vm130_vm1, %v54_v50, 4286644096  ;;  %v1142_v61 = vmax.bf16 %v268_v54, %v265_v53 }
  0x20   :  { %v289_v60 = vsel %vm130_vm1, %v56_v51, 4286644096  ;;  %v279_v63 = vsel %vm121_vm0, %v53_v56, 4286644096  ;;  %v58_v0 = vld [vmem:[%s1822_s0 + $0xc4] sm:$0x7] }
  0x21   :  { %602 = vrot.lane.b32.xlu1 %v1064_v22, %s859_s20  ;;  %v60_v2 = vld [vmem:[%s1822_s0 + $0xcc] sm:$0x7]  ;;  %v282_v3 = vsel %vm121_vm0, %v55_v57, 4286644096  ;;  %v57_v4 = vld [vmem:[%s1822_s0 + $0xc0] sm:$0xf]  ;;  %v1160_v7 = vmax.bf16 %v289_v60, %v286_v59 }
  0x22   :  { %600 = vrot.lane.b32.xlu0 %v1068_v23, %s859_s20  ;;  %v59_v5 = vld [vmem:[%s1822_s0 + $0xc8] sm:$0xf]  ;;  %v300_v8 = vsel %vm130_vm1, %v58_v0, 4286644096  ;;  %v303_v11 = vsel %vm130_vm1, %v60_v2, 4286644096  ;;  %v1166_v13 = vmax.bf16 %v282_v3, %v279_v63 }
  0x23   :  { %v293_v14 = vsel %vm121_vm0, %v57_v4, 4286644096  ;;  %v296_v15 = vsel %vm121_vm0, %v59_v5, 4286644096  ;;  %v62_v16 = vld [vmem:[%s1822_s0 + $0xd4] sm:$0x7]  ;;  %v1184_v24 = vmax.bf16 %v303_v11, %v300_v8 }
  0x24   :  { %v64_v18 = vld [vmem:[%s1822_s0 + $0xdc] sm:$0x7]  ;;  %v61_v19 = vld [vmem:[%s1822_s0 + $0xd0] sm:$0xf]  ;;  %v63_v20 = vld [vmem:[%s1822_s0 + $0xd8] sm:$0xf]  ;;  %v1189_v26 = vmax.bf16 %v296_v15, %v293_v14 }
  0x25   :  { %606 = vrot.lane.b32.xlu1 %v1088_v34, %s859_s20  ;;  %v314_v25 = vsel %vm130_vm1, %v62_v16, 4286644096  ;;  %v317_v27 = vsel %vm130_vm1, %v64_v18, 4286644096  ;;  %v307_v29 = vsel %vm121_vm0, %v61_v19, 4286644096 }
  0x26   :  { %604 = vrot.lane.b32.xlu0 %v1092_v35, %s859_s20  ;;  %v310_v30 = vsel %vm121_vm0, %v63_v20, 4286644096  ;;  %v66_v31 = vld [vmem:[%s1822_s0 + $0xe4] sm:$0x7]  ;;  %v68_v33 = vld [vmem:[%s1822_s0 + $0xec] sm:$0x7]  ;;  %v1208_v38 = vmax.bf16 %v317_v27, %v314_v25 }
  0x27   :  { %v65_v36 = vld [vmem:[%s1822_s0 + $0xe0] sm:$0xf]  ;;  %v67_v37 = vld [vmem:[%s1822_s0 + $0xe8] sm:$0xf]  ;;  %v1212_v39 = vmax.bf16 %v310_v30, %v307_v29  ;;  %v328_v40 = vsel %vm130_vm1, %v66_v31, 4286644096 }
  0x28   :  { %v331_v42 = vsel %vm130_vm1, %v68_v33, 4286644096  ;;  %v321_v43 = vsel %vm121_vm0, %v65_v36, 4286644096  ;;  %v324_v45 = vsel %vm121_vm0, %v67_v37, 4286644096 }
  0x29   :  { %610 = vrot.lane.b32.xlu1 %v1112_v46, %s859_s20  ;;  %v70_v47 = vld [vmem:[%s1822_s0 + $0xf4] sm:$0x7]  ;;  %v72_v49 = vld [vmem:[%s1822_s0 + $0xfc] sm:$0x7]  ;;  %v69_v50 = vld [vmem:[%s1822_s0 + $0xf0] sm:$0xf]  ;;  %v1232_v53 = vmax.bf16 %v331_v42, %v328_v40  ;;  %v1236_v54 = vmax.bf16 %v324_v45, %v321_v43 }
  0x2a   :  { %608 = vrot.lane.b32.xlu0 %v1117_v48, %s859_s20  ;;  %v71_v51 = vld [vmem:[%s1822_s0 + $0xf8] sm:$0xf]  ;;  %v342_v56 = vsel %vm130_vm1, %v70_v47, 4286644096  ;;  %v345_v57 = vsel %vm130_vm1, %v72_v49, 4286644096 }
  0x2b   :  { %v74_v59 = vld [vmem:[%s1822_s0 + $0x104] sm:$0x7]  ;;  %v335_v60 = vsel %vm121_vm0, %v69_v50, 4286644096  ;;  %v338_v63 = vsel %vm121_vm0, %v71_v51, 4286644096  ;;  %v1256_v4 = vmax.bf16 %v345_v57, %v342_v56 }
  0x2c   :  { %v76_v0 = vld [vmem:[%s1822_s0 + $0x10c] sm:$0x7]  ;;  %v73_v2 = vld [vmem:[%s1822_s0 + $0x100] sm:$0xf]  ;;  %v75_v3 = vld [vmem:[%s1822_s0 + $0x108] sm:$0xf]  ;;  %v1261_v8 = vmax.bf16 %v338_v63, %v335_v60 }
  0x2d   :  { %614 = vrot.lane.b32.xlu1 %v1136_v58, %s859_s20  ;;  %v356_v5 = vsel %vm130_vm1, %v74_v59, 4286644096  ;;  %v359_v11 = vsel %vm130_vm1, %v76_v0, 4286644096  ;;  %v78_v14 = vld [vmem:[%s1822_s0 + $0x114] sm:$0x7] }
  0x2e   :  { %612 = vrot.lane.b32.xlu0 %v1142_v61, %s859_s20  ;;  %v80_v15 = vld [vmem:[%s1822_s0 + $0x11c] sm:$0x7]  ;;  %v349_v16 = vsel %vm121_vm0, %v73_v2, 4286644096  ;;  %v352_v18 = vsel %vm121_vm0, %v75_v3, 4286644096  ;;  %v1280_v25 = vmax.bf16 %v359_v11, %v356_v5 }
  0x2f   :  { %v77_v19 = vld [vmem:[%s1822_s0 + $0x110] sm:$0xf]  ;;  %v79_v20 = vld [vmem:[%s1822_s0 + $0x118] sm:$0xf]  ;;  %v370_v27 = vsel %vm130_vm1, %v78_v14, 4286644096  ;;  %v1286_v30 = vmax.bf16 %v352_v18, %v349_v16 }
  0x30   :  { %v373_v29 = vsel %vm130_vm1, %v80_v15, 4286644096  ;;  %v363_v31 = vsel %vm121_vm0, %v77_v19, 4286644096  ;;  %v82_v33 = vld [vmem:[%s1822_s0 + $0x124] sm:$0x7] }
  0x31   :  { %618 = vrot.lane.b32.xlu1 %v1160_v7, %s859_s20  ;;  %v84_v36 = vld [vmem:[%s1822_s0 + $0x12c] sm:$0x7]  ;;  %v366_v37 = vsel %vm121_vm0, %v79_v20, 4286644096  ;;  %v81_v40 = vld [vmem:[%s1822_s0 + $0x120] sm:$0xf]  ;;  %v1304_v43 = vmax.bf16 %v373_v29, %v370_v27 }
  0x32   :  { %616 = vrot.lane.b32.xlu0 %v1166_v13, %s859_s20  ;;  %v83_v42 = vld [vmem:[%s1822_s0 + $0x128] sm:$0xf]  ;;  %v384_v45 = vsel %vm130_vm1, %v82_v33, 4286644096  ;;  %v387_v47 = vsel %vm130_vm1, %v84_v36, 4286644096  ;;  %v1310_v49 = vmax.bf16 %v366_v37, %v363_v31 }
  0x33   :  { %v377_v50 = vsel %vm121_vm0, %v81_v40, 4286644096  ;;  %v380_v51 = vsel %vm121_vm0, %v83_v42, 4286644096  ;;  %v86_v56 = vld [vmem:[%s1822_s0 + $0x134] sm:$0x7]  ;;  %v1328_v63 = vmax.bf16 %v387_v47, %v384_v45 }
  0x34   :  { %v88_v57 = vld [vmem:[%s1822_s0 + $0x13c] sm:$0x7]  ;;  %v85_v59 = vld [vmem:[%s1822_s0 + $0x130] sm:$0xf]  ;;  %v87_v60 = vld [vmem:[%s1822_s0 + $0x138] sm:$0xf]  ;;  %v1333_v2 = vmax.bf16 %v380_v51, %v377_v50 }
  0x35   :  { %622 = vrot.lane.b32.xlu1 %v1184_v24, %s859_s20  ;;  %v398_v0 = vsel %vm130_vm1, %v86_v56, 4286644096  ;;  %v401_v3 = vsel %vm130_vm1, %v88_v57, 4286644096  ;;  %v391_v5 = vsel %vm121_vm0, %v85_v59, 4286644096 }
  0x36   :  { %620 = vrot.lane.b32.xlu0 %v1189_v26, %s859_s20  ;;  %v394_v11 = vsel %vm121_vm0, %v87_v60, 4286644096  ;;  %v90_v14 = vld [vmem:[%s1822_s0 + $0x144] sm:$0x7]  ;;  %v92_v15 = vld [vmem:[%s1822_s0 + $0x14c] sm:$0x7]  ;;  %v1352_v19 = vmax.bf16 %v401_v3, %v398_v0 }
  0x37   :  { %v89_v16 = vld [vmem:[%s1822_s0 + $0x140] sm:$0xf]  ;;  %v91_v18 = vld [vmem:[%s1822_s0 + $0x148] sm:$0xf]  ;;  %v1356_v20 = vmax.bf16 %v394_v11, %v391_v5  ;;  %v412_v27 = vsel %vm130_vm1, %v90_v14, 4286644096 }
  0x38   :  { %v415_v29 = vsel %vm130_vm1, %v92_v15, 4286644096  ;;  %v405_v31 = vsel %vm121_vm0, %v89_v16, 4286644096  ;;  %v408_v33 = vsel %vm121_vm0, %v91_v18, 4286644096 }
  0x39   :  { %626 = vrot.lane.b32.xlu1 %v1208_v38, %s859_s20  ;;  %v94_v36 = vld [vmem:[%s1822_s0 + $0x154] sm:$0x7]  ;;  %v96_v37 = vld [vmem:[%s1822_s0 + $0x15c] sm:$0x7]  ;;  %v93_v40 = vld [vmem:[%s1822_s0 + $0x150] sm:$0xf]  ;;  %v1376_v45 = vmax.bf16 %v415_v29, %v412_v27  ;;  %v1380_v47 = vmax.bf16 %v408_v33, %v405_v31 }
  0x3a   :  { %624 = vrot.lane.b32.xlu0 %v1212_v39, %s859_s20  ;;  %v95_v42 = vld [vmem:[%s1822_s0 + $0x158] sm:$0xf]  ;;  %v426_v50 = vsel %vm130_vm1, %v94_v36, 4286644096  ;;  %v429_v51 = vsel %vm130_vm1, %v96_v37, 4286644096 }
  0x3b   :  { %v98_v56 = vld [vmem:[%s1822_s0 + $0x164] sm:$0x7]  ;;  %v419_v57 = vsel %vm121_vm0, %v93_v40, 4286644096  ;;  %v422_v59 = vsel %vm121_vm0, %v95_v42, 4286644096  ;;  %v1400_v5 = vmax.bf16 %v429_v51, %v426_v50 }
  0x3c   :  { %v100_v60 = vld [vmem:[%s1822_s0 + $0x16c] sm:$0x7]  ;;  %v97_v0 = vld [vmem:[%s1822_s0 + $0x160] sm:$0xf]  ;;  %v99_v3 = vld [vmem:[%s1822_s0 + $0x168] sm:$0xf]  ;;  %v1405_v14 = vmax.bf16 %v422_v59, %v419_v57 }
  0x3d   :  { %630 = vrot.lane.b32.xlu1 %v1232_v53, %s859_s20  ;;  %v440_v11 = vsel %vm130_vm1, %v98_v56, 4286644096  ;;  %v443_v15 = vsel %vm130_vm1, %v100_v60, 4286644096  ;;  %v102_v16 = vld [vmem:[%s1822_s0 + $0x174] sm:$0x7] }
  0x3e   :  { %628 = vrot.lane.b32.xlu0 %v1236_v54, %s859_s20  ;;  %v104_v18 = vld [vmem:[%s1822_s0 + $0x17c] sm:$0x7]  ;;  %v433_v27 = vsel %vm121_vm0, %v97_v0, 4286644096  ;;  %v436_v29 = vsel %vm121_vm0, %v99_v3, 4286644096  ;;  %v1424_v36 = vmax.bf16 %v443_v15, %v440_v11 }
  0x3f   :  { %v101_v31 = vld [vmem:[%s1822_s0 + $0x170] sm:$0xf]  ;;  %v103_v33 = vld [vmem:[%s1822_s0 + $0x178] sm:$0xf]  ;;  %v454_v37 = vsel %vm130_vm1, %v102_v16, 4286644096  ;;  %v1430_v42 = vmax.bf16 %v436_v29, %v433_v27 }
  0x40   :  { %v457_v40 = vsel %vm130_vm1, %v104_v18, 4286644096  ;;  %v447_v50 = vsel %vm121_vm0, %v101_v31, 4286644096  ;;  %v106_v51 = vld [vmem:[%s1822_s0 + $0x184] sm:$0x7] }
  0x41   :  { %634 = vrot.lane.b32.xlu1 %v1256_v4, %s859_s20  ;;  %v108_v56 = vld [vmem:[%s1822_s0 + $0x18c] sm:$0x7]  ;;  %v450_v57 = vsel %vm121_vm0, %v103_v33, 4286644096  ;;  %v105_v59 = vld [vmem:[%s1822_s0 + $0x180] sm:$0xf]  ;;  %v1448_v0 = vmax.bf16 %v457_v40, %v454_v37 }
  0x42   :  { %632 = vrot.lane.b32.xlu0 %v1261_v8, %s859_s20  ;;  %v107_v60 = vld [vmem:[%s1822_s0 + $0x188] sm:$0xf]  ;;  %v468_v3 = vsel %vm130_vm1, %v106_v51, 4286644096  ;;  %v471_v11 = vsel %vm130_vm1, %v108_v56, 4286644096  ;;  %v1454_v15 = vmax.bf16 %v450_v57, %v447_v50 }
  0x43   :  { %v461_v16 = vsel %vm121_vm0, %v105_v59, 4286644096  ;;  %v464_v18 = vsel %vm121_vm0, %v107_v60, 4286644096  ;;  %v110_v27 = vld [vmem:[%s1822_s0 + $0x194] sm:$0x7]  ;;  %v1472_v37 = vmax.bf16 %v471_v11, %v468_v3 }
  0x44   :  { %1827 = vst [vmem:[#allocation2_spill] sm:$0xff] %v1454_v15  ;;  %v112_v29 = vld [vmem:[%s1822_s0 + $0x19c] sm:$0x7]  ;;  %v109_v31 = vld [vmem:[%s1822_s0 + $0x190] sm:$0xf]  ;;  %v1477_v50 = vmax.bf16 %v464_v18, %v461_v16 }
  0x45   :  { %638 = vrot.lane.b32.xlu1 %v1280_v25, %s859_s20  ;;  %v111_v33 = vld [vmem:[%s1822_s0 + $0x198] sm:$0xf]  ;;  %1828 = vst [vmem:[#allocation3_spill] sm:$0xff] %v1472_v37  ;;  %v482_v40 = vsel %vm130_vm1, %v110_v27, 4286644096 }
  0x46   :  { %636 = vrot.lane.b32.xlu0 %v1286_v30, %s859_s20  ;;  %1829 = vst [vmem:[#allocation4_spill] sm:$0xff] %v1477_v50  ;;  %v485_v51 = vsel %vm130_vm1, %v112_v29, 4286644096  ;;  %v475_v56 = vsel %vm121_vm0, %v109_v31, 4286644096 }
  0x47   :  { %v478_v57 = vsel %vm121_vm0, %v111_v33, 4286644096  ;;  %v114_v59 = vld [vmem:[%s1822_s0 + $0x1a4] sm:$0x7]  ;;  %v116_v60 = vld [vmem:[%s1822_s0 + $0x1ac] sm:$0x7]  ;;  %v1496_v16 = vmax.bf16 %v485_v51, %v482_v40 }
  0x48   :  { %v113_v3 = vld [vmem:[%s1822_s0 + $0x1a0] sm:$0xf]  ;;  %v115_v11 = vld [vmem:[%s1822_s0 + $0x1a8] sm:$0xf]  ;;  %v1500_v18 = vmax.bf16 %v478_v57, %v475_v56  ;;  %v496_v27 = vsel %vm130_vm1, %v114_v59, 4286644096 }
  0x49   :  { %642 = vrot.lane.b32.xlu1 %v1304_v43, %s859_s20  ;;  %v499_v29 = vsel %vm130_vm1, %v116_v60, 4286644096  ;;  %v489_v31 = vsel %vm121_vm0, %v113_v3, 4286644096  ;;  %v492_v33 = vsel %vm121_vm0, %v115_v11, 4286644096 }
  0x4a   :  { %640 = vrot.lane.b32.xlu0 %v1310_v49, %s859_s20  ;;  %v120_v40 = vld [vmem:[%s1822_s0 + $0x1bc] sm:$0x7]  ;;  %v117_v51 = vld [vmem:[%s1822_s0 + $0x1b0] sm:$0xf]  ;;  %v119_v56 = vld [vmem:[%s1822_s0 + $0x1b8] sm:$0xf]  ;;  %v1520_v57 = vmax.bf16 %v499_v29, %v496_v27  ;;  %v1524_v59 = vmax.bf16 %v492_v33, %v489_v31 }
  0x4b   :  { %v513_v3 = vsel %vm130_vm1, %v120_v40, 4286644096  ;;  %v503_v11 = vsel %vm121_vm0, %v117_v51, 4286644096 }
  0x4d   :  { %646 = vrot.lane.b32.xlu1 %v1328_v63, %s859_s20 }
  0x4e   :  { %644 = vrot.lane.b32.xlu0 %v1333_v2, %s859_s20 }
  0x51   :  { %650 = vrot.lane.b32.xlu1 %v1352_v19, %s859_s20 }
  0x52   :  { %648 = vrot.lane.b32.xlu0 %v1356_v20, %s859_s20 }
  0x55   :  { %654 = vrot.lane.b32.xlu1 %v1376_v45, %s859_s20 }
  0x56   :  { %652 = vrot.lane.b32.xlu0 %v1380_v47, %s859_s20 }
  0x59   :  { %658 = vrot.lane.b32.xlu1 %v1400_v5, %s859_s20 }
  0x5a   :  { %656 = vrot.lane.b32.xlu0 %v1405_v14, %s859_s20 }
  0x5d   :  { %662 = vrot.lane.b32.xlu1 %v1424_v36, %s859_s20 }
  0x5e   :  { %660 = vrot.lane.b32.xlu0 %v1430_v42, %s859_s20 }
  0x61   :  { %666 = vrot.lane.b32.xlu1 %v1448_v0, %s859_s20 }
  0x62   :  { %664 = vrot.lane.b32.xlu0 %v1454_v15, %s859_s20  ;;  %v118_v15 = vld [vmem:[%s1822_s0 + $0x1b4] sm:$0x7] }
  0x63   :  { %v510_v60 = vsel %vm130_vm1, %v118_v15, 4286644096 }
  0x65   :  { %670 = vrot.lane.b32.xlu1 %v1472_v37, %s859_s20  ;;  %v1532_v37 = vmax.bf16 %v513_v3, %v510_v60 }
  0x66   :  { %668 = vrot.lane.b32.xlu0 %v1477_v50, %s859_s20  ;;  %v506_v50 = vsel %vm121_vm0, %v119_v56, 4286644096 }
  0x67   :  { %v1536_v27 = vmax.bf16 %v506_v50, %v503_v11 }
  0x69   :  { %674 = vrot.lane.b32.xlu1 %v1496_v16, %s859_s20 }
  0x6a   :  { %672 = vrot.lane.b32.xlu0 %v1500_v18, %s859_s20 }
  0x6d   :  { %678 = vrot.lane.b32.xlu1 %v1520_v57, %s859_s20 }
  0x6e   :  { %676 = vrot.lane.b32.xlu0 %v1524_v59, %s859_s20 }
  0x71   :  { %682 = vrot.lane.b32.xlu1 %v1532_v37, %s859_s20 }
  0x72   :  { %680 = vrot.lane.b32.xlu0 %v1536_v27, %s859_s20 }
  0x77   :  { %v577_v15 = vpop.permute.xlu1 %576 }
  0x78   :  { %v742_v29 = vmax.bf16 %v577_v15, %v884_v6  ;;  %v573_v31 = vpop.permute.xlu0 %572 }
  0x79   :  { %v740_v33 = vmax.bf16 %v573_v31, %v891_v10 }
  0x7a   :  { %800 = vst.msk [vmem:[%s1823_s1 + $0x8] sm:$0xf] %vm796_vm2, %v742_v29 }
  0x7b   :  { %797 = vst.msk [vmem:[%s1823_s1] sm:$0xf] %vm796_vm2, %v740_v33  ;;  %v579_v50 = vpop.permute.xlu1 %578 }
  0x7c   :  { %v743_v40 = vmax.bf16 %v579_v50, %v909_v17  ;;  %v575_v51 = vpop.permute.xlu0 %574 }
  0x7d   :  { %v741_v6 = vmax.bf16 %v575_v51, %v918_v21 }
  0x7e   :  { %801 = vst.msk [vmem:[%s1823_s1 + $0xc] sm:$0x7] %vm798_vm3, %v743_v40 }
  0x7f   :  { %799 = vst.msk [vmem:[%s1823_s1 + $0x4] sm:$0x7] %vm798_vm3, %v741_v6  ;;  %v583_v10 = vpop.permute.xlu1 %582 }
  0x80   :  { %v745_v56 = vmax.bf16 %v583_v10, %v934_v28  ;;  %v581_v60 = vpop.permute.xlu0 %580 }
  0x81   :  { %v744_v3 = vmax.bf16 %v581_v60, %v943_v32 }
  0x82   :  { %803 = vst.msk [vmem:[%s1823_s1 + $0x14] sm:$0x7] %vm798_vm3, %v745_v56 }
  0x83   :  { %802 = vst.msk [vmem:[%s1823_s1 + $0x10] sm:$0xf] %vm796_vm2, %v744_v3  ;;  %v587_v17 = vpop.permute.xlu1 %586 }
  0x84   :  { %v747_v21 = vmax.bf16 %v587_v17, %v965_v41  ;;  %v585_v11 = vpop.permute.xlu0 %584 }
  0x85   :  { %v746_v15 = vmax.bf16 %v585_v11, %v973_v44 }
  0x86   :  { %805 = vst.msk [vmem:[%s1823_s1 + $0x1c] sm:$0x7] %vm798_vm3, %v747_v21 }
  0x87   :  { %804 = vst.msk [vmem:[%s1823_s1 + $0x18] sm:$0xf] %vm796_vm2, %v746_v15  ;;  %v591_v28 = vpop.permute.xlu1 %590 }
  0x88   :  { %v749_v32 = vmax.bf16 %v591_v28, %v992_v52  ;;  %v589_v29 = vpop.permute.xlu0 %588 }
  0x89   :  { %v748_v31 = vmax.bf16 %v589_v29, %v998_v55 }
  0x8a   :  { %807 = vst.msk [vmem:[%s1823_s1 + $0x24] sm:$0x7] %vm798_vm3, %v749_v32 }
  0x8b   :  { %806 = vst.msk [vmem:[%s1823_s1 + $0x20] sm:$0xf] %vm796_vm2, %v748_v31  ;;  %v595_v41 = vpop.permute.xlu1 %594 }
  0x8c   :  { %v751_v44 = vmax.bf16 %v595_v41, %v1016_v62  ;;  %v593_v33 = vpop.permute.xlu0 %592 }
  0x8d   :  { %v750_v50 = vmax.bf16 %v593_v33, %v1022_v1 }
  0x8e   :  { %809 = vst.msk [vmem:[%s1823_s1 + $0x2c] sm:$0x7] %vm798_vm3, %v751_v44 }
  0x8f   :  { %808 = vst.msk [vmem:[%s1823_s1 + $0x28] sm:$0xf] %vm796_vm2, %v750_v50  ;;  %v599_v52 = vpop.permute.xlu1 %598 }
  0x90   :  { %v753_v55 = vmax.bf16 %v599_v52, %v1040_v9  ;;  %v597_v40 = vpop.permute.xlu0 %596 }
  0x91   :  { %v752_v51 = vmax.bf16 %v597_v40, %v1045_v12 }
  0x92   :  { %811 = vst.msk [vmem:[%s1823_s1 + $0x34] sm:$0x7] %vm798_vm3, %v753_v55 }
  0x93   :  { %810 = vst.msk [vmem:[%s1823_s1 + $0x30] sm:$0xf] %vm796_vm2, %v752_v51  ;;  %v603_v62 = vpop.permute.xlu1 %602 }
  0x94   :  { %v755_v1 = vmax.bf16 %v603_v62, %v1064_v22  ;;  %v601_v6 = vpop.permute.xlu0 %600 }
  0x95   :  { %v754_v10 = vmax.bf16 %v601_v6, %v1068_v23 }
  0x96   :  { %813 = vst.msk [vmem:[%s1823_s1 + $0x3c] sm:$0x7] %vm798_vm3, %v755_v1 }
  0x97   :  { %812 = vst.msk [vmem:[%s1823_s1 + $0x38] sm:$0xf] %vm796_vm2, %v754_v10  ;;  %v607_v9 = vpop.permute.xlu1 %606 }
  0x98   :  { %v757_v12 = vmax.bf16 %v607_v9, %v1088_v34  ;;  %v605_v56 = vpop.permute.xlu0 %604 }
  0x99   :  { %v756_v60 = vmax.bf16 %v605_v56, %v1092_v35 }
  0x9a   :  { %815 = vst.msk [vmem:[%s1823_s1 + $0x44] sm:$0x7] %vm798_vm3, %v757_v12 }
  0x9b   :  { %814 = vst.msk [vmem:[%s1823_s1 + $0x40] sm:$0xf] %vm796_vm2, %v756_v60  ;;  %v611_v22 = vpop.permute.xlu1 %610 }
  0x9c   :  { %v759_v23 = vmax.bf16 %v611_v22, %v1112_v46  ;;  %v609_v3 = vpop.permute.xlu0 %608 }
  0x9d   :  { %v758_v17 = vmax.bf16 %v609_v3, %v1117_v48 }
  0x9e   :  { %817 = vst.msk [vmem:[%s1823_s1 + $0x4c] sm:$0x7] %vm798_vm3, %v759_v23 }
  0x9f   :  { %816 = vst.msk [vmem:[%s1823_s1 + $0x48] sm:$0xf] %vm796_vm2, %v758_v17  ;;  %v615_v34 = vpop.permute.xlu1 %614 }
  0xa0   :  { %v761_v35 = vmax.bf16 %v615_v34, %v1136_v58  ;;  %v613_v21 = vpop.permute.xlu0 %612  ;;  %v1830_v34 = vld [vmem:[#allocation2_spill] sm:$0xff] }
  0xa1   :  { %v760_v11 = vmax.bf16 %v613_v21, %v1142_v61 }
  0xa2   :  { %819 = vst.msk [vmem:[%s1823_s1 + $0x54] sm:$0x7] %vm798_vm3, %v761_v35 }
  0xa3   :  { %818 = vst.msk [vmem:[%s1823_s1 + $0x50] sm:$0xf] %vm796_vm2, %v760_v11  ;;  %v619_v46 = vpop.permute.xlu1 %618 }
  0xa4   :  { %v763_v48 = vmax.bf16 %v619_v46, %v1160_v7  ;;  %v617_v15 = vpop.permute.xlu0 %616  ;;  %v1832_v46 = vld [vmem:[#allocation4_spill] sm:$0xff] }
  0xa5   :  { %v762_v28 = vmax.bf16 %v617_v15, %v1166_v13 }
  0xa6   :  { %821 = vst.msk [vmem:[%s1823_s1 + $0x5c] sm:$0x7] %vm798_vm3, %v763_v48 }
  0xa7   :  { %820 = vst.msk [vmem:[%s1823_s1 + $0x58] sm:$0xf] %vm796_vm2, %v762_v28  ;;  %v623_v58 = vpop.permute.xlu1 %622 }
  0xa8   :  { %v765_v61 = vmax.bf16 %v623_v58, %v1184_v24  ;;  %v621_v32 = vpop.permute.xlu0 %620 }
  0xa9   :  { %v764_v29 = vmax.bf16 %v621_v32, %v1189_v26 }
  0xaa   :  { %823 = vst.msk [vmem:[%s1823_s1 + $0x64] sm:$0x7] %vm798_vm3, %v765_v61 }
  0xab   :  { %822 = vst.msk [vmem:[%s1823_s1 + $0x60] sm:$0xf] %vm796_vm2, %v764_v29  ;;  %v627_v7 = vpop.permute.xlu1 %626 }
  0xac   :  { %v767_v13 = vmax.bf16 %v627_v7, %v1208_v38  ;;  %v625_v31 = vpop.permute.xlu0 %624 }
  0xad   :  { %v766_v41 = vmax.bf16 %v625_v31, %v1212_v39 }
  0xae   :  { %825 = vst.msk [vmem:[%s1823_s1 + $0x6c] sm:$0x7] %vm798_vm3, %v767_v13 }
  0xaf   :  { %824 = vst.msk [vmem:[%s1823_s1 + $0x68] sm:$0xf] %vm796_vm2, %v766_v41  ;;  %v631_v24 = vpop.permute.xlu1 %630 }
  0xb0   :  { %v769_v26 = vmax.bf16 %v631_v24, %v1232_v53  ;;  %v629_v44 = vpop.permute.xlu0 %628 }
  0xb1   :  { %v768_v33 = vmax.bf16 %v629_v44, %v1236_v54 }
  0xb2   :  { %827 = vst.msk [vmem:[%s1823_s1 + $0x74] sm:$0x7] %vm798_vm3, %v769_v26 }
  0xb3   :  { %826 = vst.msk [vmem:[%s1823_s1 + $0x70] sm:$0xf] %vm796_vm2, %v768_v33  ;;  %v635_v38 = vpop.permute.xlu1 %634 }
  0xb4   :  { %v771_v39 = vmax.bf16 %v635_v38, %v1256_v4  ;;  %v633_v50 = vpop.permute.xlu0 %632 }
  0xb5   :  { %v770_v52 = vmax.bf16 %v633_v50, %v1261_v8 }
  0xb6   :  { %829 = vst.msk [vmem:[%s1823_s1 + $0x7c] sm:$0x7] %vm798_vm3, %v771_v39 }
  0xb7   :  { %828 = vst.msk [vmem:[%s1823_s1 + $0x78] sm:$0xf] %vm796_vm2, %v770_v52  ;;  %v639_v53 = vpop.permute.xlu1 %638 }
  0xb8   :  { %v773_v54 = vmax.bf16 %v639_v53, %v1280_v25  ;;  %v637_v55 = vpop.permute.xlu0 %636 }
  0xb9   :  { %v772_v40 = vmax.bf16 %v637_v55, %v1286_v30 }
  0xba   :  { %831 = vst.msk [vmem:[%s1823_s1 + $0x84] sm:$0x7] %vm798_vm3, %v773_v54 }
  0xbb   :  { %830 = vst.msk [vmem:[%s1823_s1 + $0x80] sm:$0xf] %vm796_vm2, %v772_v40  ;;  %v643_v4 = vpop.permute.xlu1 %642 }
  0xbc   :  { %v775_v8 = vmax.bf16 %v643_v4, %v1304_v43  ;;  %v641_v51 = vpop.permute.xlu0 %640 }
  0xbd   :  { %v774_v62 = vmax.bf16 %v641_v51, %v1310_v49 }
  0xbe   :  { %833 = vst.msk [vmem:[%s1823_s1 + $0x8c] sm:$0x7] %vm798_vm3, %v775_v8 }
  0xbf   :  { %832 = vst.msk [vmem:[%s1823_s1 + $0x88] sm:$0xf] %vm796_vm2, %v774_v62  ;;  %v647_v25 = vpop.permute.xlu1 %646 }
  0xc0   :  { %v777_v30 = vmax.bf16 %v647_v25, %v1328_v63  ;;  %v645_v1 = vpop.permute.xlu0 %644 }
  0xc1   :  { %v776_v6 = vmax.bf16 %v645_v1, %v1333_v2 }
  0xc2   :  { %835 = vst.msk [vmem:[%s1823_s1 + $0x94] sm:$0x7] %vm798_vm3, %v777_v30 }
  0xc3   :  { %834 = vst.msk [vmem:[%s1823_s1 + $0x90] sm:$0xf] %vm796_vm2, %v776_v6  ;;  %v651_v43 = vpop.permute.xlu1 %650 }
  0xc4   :  { %v779_v49 = vmax.bf16 %v651_v43, %v1352_v19  ;;  %v649_v10 = vpop.permute.xlu0 %648 }
  0xc5   :  { %v778_v9 = vmax.bf16 %v649_v10, %v1356_v20 }
  0xc6   :  { %837 = vst.msk [vmem:[%s1823_s1 + $0x9c] sm:$0x7] %vm798_vm3, %v779_v49 }
  0xc7   :  { %836 = vst.msk [vmem:[%s1823_s1 + $0x98] sm:$0xf] %vm796_vm2, %v778_v9  ;;  %v655_v63 = vpop.permute.xlu1 %654 }
  0xc8   :  { %v781_v2 = vmax.bf16 %v655_v63, %v1376_v45  ;;  %v653_v12 = vpop.permute.xlu0 %652 }
  0xc9   :  { %v780_v56 = vmax.bf16 %v653_v12, %v1380_v47 }
  0xca   :  { %839 = vst.msk [vmem:[%s1823_s1 + $0xa4] sm:$0x7] %vm798_vm3, %v781_v2 }
  0xcb   :  { %838 = vst.msk [vmem:[%s1823_s1 + $0xa0] sm:$0xf] %vm796_vm2, %v780_v56  ;;  %v659_v19 = vpop.permute.xlu1 %658 }
  0xcc   :  { %v783_v20 = vmax.bf16 %v659_v19, %v1400_v5  ;;  %v657_v60 = vpop.permute.xlu0 %656 }
  0xcd   :  { %v782_v22 = vmax.bf16 %v657_v60, %v1405_v14 }
  0xce   :  { %841 = vst.msk [vmem:[%s1823_s1 + $0xac] sm:$0x7] %vm798_vm3, %v783_v20 }
  0xcf   :  { %840 = vst.msk [vmem:[%s1823_s1 + $0xa8] sm:$0xf] %vm796_vm2, %v782_v22  ;;  %v663_v45 = vpop.permute.xlu1 %662 }
  0xd0   :  { %v785_v47 = vmax.bf16 %v663_v45, %v1424_v36  ;;  %v661_v23 = vpop.permute.xlu0 %660 }
  0xd1   :  { %v784_v3 = vmax.bf16 %v661_v23, %v1430_v42  ;;  %v1831_v42 = vld [vmem:[#allocation3_spill] sm:$0xff] }
  0xd2   :  { %843 = vst.msk [vmem:[%s1823_s1 + $0xb4] sm:$0x7] %vm798_vm3, %v785_v47 }
  0xd3   :  { %842 = vst.msk [vmem:[%s1823_s1 + $0xb0] sm:$0xf] %vm796_vm2, %v784_v3  ;;  %v667_v5 = vpop.permute.xlu1 %666 }
  0xd4   :  { %v787_v14 = vmax.bf16 %v667_v5, %v1448_v0  ;;  %v665_v17 = vpop.permute.xlu0 %664 }
  0xd5   :  { %v786_v35 = vmax.bf16 %v665_v17, %v1830_v34 }
  0xd6   :  { %845 = vst.msk [vmem:[%s1823_s1 + $0xbc] sm:$0x7] %vm798_vm3, %v787_v14 }
  0xd7   :  { %844 = vst.msk [vmem:[%s1823_s1 + $0xb8] sm:$0xf] %vm796_vm2, %v786_v35  ;;  %v671_v36 = vpop.permute.xlu1 %670 }
  0xd8   :  { %v789_v21 = vmax.bf16 %v671_v36, %v1831_v42  ;;  %v669_v11 = vpop.permute.xlu0 %668 }
  0xd9   :  { %v788_v48 = vmax.bf16 %v669_v11, %v1832_v46 }
  0xda   :  { %847 = vst.msk [vmem:[%s1823_s1 + $0xc4] sm:$0x7] %vm798_vm3, %v789_v21 }
  0xdb   :  { %846 = vst.msk [vmem:[%s1823_s1 + $0xc0] sm:$0xf] %vm796_vm2, %v788_v48  ;;  %v675_v0 = vpop.permute.xlu1 %674 }
  0xdc   :  { %v791_v15 = vmax.bf16 %v675_v0, %v1496_v16  ;;  %v673_v28 = vpop.permute.xlu0 %672 }
  0xdd   :  { %v790_v58 = vmax.bf16 %v673_v28, %v1500_v18 }
  0xde   :  { %849 = vst.msk [vmem:[%s1823_s1 + $0xcc] sm:$0x7] %vm798_vm3, %v791_v15 }
  0xdf   :  { %848 = vst.msk [vmem:[%s1823_s1 + $0xc8] sm:$0xf] %vm796_vm2, %v790_v58  ;;  %v679_v61 = vpop.permute.xlu1 %678 }
  0xe0   :  { %v793_v32 = vmax.bf16 %v679_v61, %v1520_v57  ;;  %v677_v29 = vpop.permute.xlu0 %676 }
  0xe1   :  { %v792_v7 = vmax.bf16 %v677_v29, %v1524_v59 }
  0xe2   :  { %851 = vst.msk [vmem:[%s1823_s1 + $0xd4] sm:$0x7] %vm798_vm3, %v793_v32 }
  0xe3   :  { %850 = vst.msk [vmem:[%s1823_s1 + $0xd0] sm:$0xf] %vm796_vm2, %v792_v7  ;;  %v683_v16 = vpop.permute.xlu1 %682 }
  0xe4   :  { %v795_v18 = vmax.bf16 %v683_v16, %v1532_v37  ;;  %v681_v13 = vpop.permute.xlu0 %680 }
  0xe5   :  { %v794_v31 = vmax.bf16 %v681_v13, %v1536_v27 }
  0xe6   :  { %853 = vst.msk [vmem:[%s1823_s1 + $0xdc] sm:$0x7] %vm798_vm3, %v795_v18 }
  0xe7   :  { %852 = vst.msk [vmem:[%s1823_s1 + $0xd8] sm:$0xf] %vm796_vm2, %v794_v31 }

// kernel: mnist_cnn_forward.5
= control target key start
LH: loop header
LB: loop body
LE: loop exit
PB: predicated region body
PF: predicated region fallthrough
CT: control target
= control target key end

     0   :  { %s3526_s12 = smov 0   ;;  %s3528_s13 = smov 0   ;;  %s4295_s0 = inlined_call_operand.vmem [shape: bf16[1568,25], index: 0, kind: input, shape index: {}]   ;;  %s4296_s1 = inlined_call_operand.vmem [shape: bf16[25,32], index: 1, kind: input, shape index: {}]   ;;  %s4297_s2 = inlined_call_operand.vmem [shape: f32[1,32], index: 2, kind: input, shape index: {}]   ;;  %s4298_s3 = inlined_call_operand.vmem [shape: bf16[1568,32], index: 3, kind: output, shape index: {}]  }
   0x1   :  { %s3530_s14 = smov 0  }
   0x2 LB: > { %s3539_s15 = sadd.s32 4294967295, %s3471_s14   ;;  %s3541_s16 = sadd.s32 1, %s3471_s14   ;;  %s3471_s14 = sphi %s3530_s14, %s4305_s14   ;;  %s3467_s13 = sphi %s3528_s13, %s4304_s13   ;;  %s3463_s12 = sphi %s3526_s12, %s4303_s12  }
   0x3   : > { %s85_s17 = ssub.s32 %s3471_s14, %s3541_s16  ;;  %s88_s18 = sadd.s32 1, %s3467_s13 }
   0x4   : > { %p86_p0 = scmp.eq.s32.totalorder %s85_s17, 0  ;;  %p98_p1 = scmp.ne.s32.totalorder %s3467_s13, %s3463_s12 }
   0x5   : > { %p99_p2 = scmp.eq.s32.totalorder %s3539_s15, 1  ;;  %p2648_p3 = scmp.ge.s32.totalorder %s3471_s14, 1 }
   0x6   : > { %s3549_s19 = scalar_select %p86_p0, %s3467_s13, %s88_s18  }
   0x7   : > { %p3551_p4 = por %p99_p2, %p98_p1  ;;  %p146_p5 = scmp.lt.s32.totalorder %s3471_s14, 3 }
   0x9   : > { %p147_p6 = pnand %p2648_p3, %p146_p5 }
   0xa   : > { %s3559_s23 = sshll.u32 (!%p147_p6), %s3539_s15, 7  ;;  %s170_s4 = sand.u32 (!%p147_p6), 1, %s3463_s12  }
   0xb   : > { %150 = sbr.rel (%p147_p6) target bundleno = 437 (0x1b5), region = 32  ;;  %p178_p7 = scmp.lt.s32.totalorder (!%p147_p6), %s3559_s23, 195 }
   0xc   : > { %s2649_s7 = sshll.u32 (!%p147_p6), %s170_s4, 9 }
   0xd   : > { %s3711_s8 = scalar_lea.vmem (!%p147_p6), [#allocation2], %s2649_s7  }
  0x10   : > { %v3350_v0 = vld [vmem:[%s4296_s1 + $0x8] sm:$0x1f]   ;;  %vm856_vm0 = vcmask 1043456   ;;  %vm857_vm1 = vcmask 1044480   ;;  %v3505_v1 = vmov 65535   ;;  %v3351_v5 = vld [vmem:[%s4296_s1] sm:$0xff]  }
  0x11   : > { %v858_v2 = vsel %vm856_vm0, 4294967295, %v3505_v1  ;;  %s179_s26 = scalar_select %p178_p7, %s3559_s23, 195  ;;  %vm663_vm2 = vcmask 203776   ;;  %vm2048_vm3 = vcmask 257024  }
  0x12   : > { %v859_v3 = vsel %vm857_vm1, %v858_v2, 0  ;;  %s2185_s11 = ssub.s32 (%p3551_p4), 196, %s3559_s23  ;;  %s3056_s12 = sshll.u32 (%p3551_p4), %s3539_s15, 9 }
  0x13   : > { %v861_v4 = vand.u32 %v3350_v0, %v859_v3  ;;  %s2651_s27 = sshll.u32 %s179_s26, 2  ;;  %p2186_p8 = scmp.lt.s32.totalorder (%p3551_p4), %s2185_s11, 128 }
  0x14   : > { %s3569_s30 = scalar_lea.vmem %s4295_s0, %s2651_s27  ;;  %s4103_s18 = scalar_lea.vmem (%p3551_p4), %s4298_s3, %s3056_s12  }
  0x15   : > { %3125 = vmatprep.subr.bf16.mxu0 %v861_v4  ;;  %3257 = vmatprep.subr.bf16.mxu1 %v861_v4  ;;  %v3352_v6 = vld [vmem:[%s3569_s30] sm:$0xff]   ;;  %v3354_v8 = vld [vmem:[%s3569_s30 + $0x8] sm:$0xff]   ;;  %v3356_v10 = vld [vmem:[%s3569_s30 + $0x10] sm:$0xff]  }
  0x16   : > { %3126 = vmatpush3.bf16.msra.mxu0 %v861_v4  ;;  %3259 = vmatpush3.bf16.msra.mxu1 %v861_v4  ;;  %v3353_v7 = vld [vmem:[%s3569_s30 + $0x100] sm:$0xff]   ;;  %v3355_v9 = vld [vmem:[%s3569_s30 + $0x108] sm:$0xff]   ;;  %v3357_v11 = vld [vmem:[%s3569_s30 + $0x110] sm:$0xff]  }
  0x17   : > { %3127 = vmatprep.subr.bf16.mxu0 %v3351_v5  ;;  %3258 = vmatprep.subr.bf16.mxu1 %v3351_v5  ;;  %v3358_v12 = vld [vmem:[%s3569_s30 + $0x18] sm:$0xff]   ;;  %v3360_v14 = vld [vmem:[%s3569_s30 + $0x20] sm:$0xff]   ;;  %v3362_v16 = vld [vmem:[%s3569_s30 + $0x28] sm:$0xff]  }
  0x18   : > { %3129 = vmatprep.mubr.msk.bf16.mxu0 %vm663_vm2, %v3352_v6  ;;  %3193 = vmatprep.mubr.msk.bf16.mxu1 %vm663_vm2, %v3353_v7  ;;  %v3359_v13 = vld [vmem:[%s3569_s30 + $0x118] sm:$0xff]   ;;  %v3361_v15 = vld [vmem:[%s3569_s30 + $0x120] sm:$0xff]   ;;  %v3363_v17 = vld [vmem:[%s3569_s30 + $0x128] sm:$0xff]  }
  0x19   : > { %v3364_v18 = vld [vmem:[%s3569_s30 + $0x30] sm:$0xff]   ;;  %v3366_v20 = vld [vmem:[%s3569_s30 + $0x38] sm:$0xff]   ;;  %v3368_v22 = vld [vmem:[%s3569_s30 + $0x40] sm:$0xff]  }
  0x1a   : > { %3128 = vmatpush3.bf16.msra.mxu0 %v3351_v5  ;;  %3260 = vmatpush3.bf16.msra.mxu1 %v3351_v5  ;;  %v3365_v19 = vld [vmem:[%s3569_s30 + $0x130] sm:$0xff]   ;;  %v3367_v21 = vld [vmem:[%s3569_s30 + $0x138] sm:$0xff]   ;;  %v3369_v23 = vld [vmem:[%s3569_s30 + $0x140] sm:$0xff]  }
  0x1b   : > { %v3370_v24 = vld [vmem:[%s3569_s30 + $0x48] sm:$0xff]   ;;  %v3372_v26 = vld [vmem:[%s3569_s30 + $0x50] sm:$0xff]   ;;  %v3374_v28 = vld [vmem:[%s3569_s30 + $0x58] sm:$0xff]  }
  0x1c   : > { %v3371_v25 = vld [vmem:[%s3569_s30 + $0x148] sm:$0xff]   ;;  %v3373_v27 = vld [vmem:[%s3569_s30 + $0x150] sm:$0xff]   ;;  %v3375_v29 = vld [vmem:[%s3569_s30 + $0x158] sm:$0xff]  }
  0x1d   : > { %3130 = vmatmul.mubr.msk.bf16.vlgmr.msra.gmra.mxu0 %vm663_vm2, %v3354_v8  ;;  %3194 = vmatmul.mubr.msk.bf16.vlgmr.msra.gmra.mxu1 %vm663_vm2, %v3355_v9  ;;  %v3376_v30 = vld [vmem:[%s3569_s30 + $0x60] sm:$0xff]   ;;  %v3378_v32 = vld [vmem:[%s3569_s30 + $0x68] sm:$0xff]   ;;  %v3380_v34 = vld [vmem:[%s3569_s30 + $0x70] sm:$0xff]  }
  0x1e   : > { %3133 = vmatprep.mubr.msk.bf16.mxu0 %vm663_vm2, %v3356_v10  ;;  %3197 = vmatprep.mubr.msk.bf16.mxu1 %vm663_vm2, %v3357_v11  ;;  %v3377_v31 = vld [vmem:[%s3569_s30 + $0x160] sm:$0xff]   ;;  %v3379_v33 = vld [vmem:[%s3569_s30 + $0x168] sm:$0xff]   ;;  %v3381_v35 = vld [vmem:[%s3569_s30 + $0x170] sm:$0xff]  }
  0x1f   : > { %v3382_v36 = vld [vmem:[%s3569_s30 + $0x78] sm:$0xff]   ;;  %v3384_v38 = vld [vmem:[%s3569_s30 + $0x80] sm:$0xff]   ;;  %v3386_v40 = vld [vmem:[%s3569_s30 + $0x88] sm:$0xff]  }
  0x20   : > { %v3383_v37 = vld [vmem:[%s3569_s30 + $0x178] sm:$0xff]   ;;  %v3385_v39 = vld [vmem:[%s3569_s30 + $0x180] sm:$0xff]   ;;  %v3387_v41 = vld [vmem:[%s3569_s30 + $0x188] sm:$0xff]  }
  0x21   : > { %v3388_v42 = vld [vmem:[%s3569_s30 + $0x90] sm:$0xff]   ;;  %v3390_v44 = vld [vmem:[%s3569_s30 + $0x98] sm:$0xff]   ;;  %v3392_v46 = vld [vmem:[%s3569_s30 + $0xa0] sm:$0xff]  }
  0x22   : > { %v3389_v43 = vld [vmem:[%s3569_s30 + $0x190] sm:$0xff]   ;;  %v3391_v45 = vld [vmem:[%s3569_s30 + $0x198] sm:$0xff]   ;;  %v3393_v47 = vld [vmem:[%s3569_s30 + $0x1a0] sm:$0xff]  }
  0x23   : > { %v3394_v48 = vld [vmem:[%s3569_s30 + $0xa8] sm:$0xff]   ;;  %v3396_v50 = vld [vmem:[%s3569_s30 + $0xb0] sm:$0xff]   ;;  %v3398_v52 = vld [vmem:[%s3569_s30 + $0xb8] sm:$0xff]  }
  0x24   : > { %v3395_v49 = vld [vmem:[%s3569_s30 + $0x1a8] sm:$0xff]   ;;  %v3397_v51 = vld [vmem:[%s3569_s30 + $0x1b0] sm:$0xff]   ;;  %v3399_v53 = vld [vmem:[%s3569_s30 + $0x1b8] sm:$0xff]  }
  0x25   : > { %3134 = vmatmul.mubr.msk.bf16.gmra.mxu0 %vm663_vm2, %v3358_v12  ;;  %3198 = vmatmul.mubr.msk.bf16.gmra.mxu1 %vm663_vm2, %v3359_v13  ;;  %v3400_v54 = vld [vmem:[%s3569_s30 + $0xc0] sm:$0xff]   ;;  %v3402_v56 = vld [vmem:[%s3569_s30 + $0xc8] sm:$0xff]   ;;  %v3404_v58 = vld [vmem:[%s3569_s30 + $0xd0] sm:$0xff]  }
  0x26   : > { %3137 = vmatprep.mubr.msk.bf16.mxu0 %vm663_vm2, %v3360_v14  ;;  %3201 = vmatprep.mubr.msk.bf16.mxu1 %vm663_vm2, %v3361_v15  ;;  %v3401_v55 = vld [vmem:[%s3569_s30 + $0x1c0] sm:$0xff]   ;;  %v3403_v57 = vld [vmem:[%s3569_s30 + $0x1c8] sm:$0xff]   ;;  %v3405_v59 = vld [vmem:[%s3569_s30 + $0x1d0] sm:$0xff]  }
  0x27   : > { %v3406_v60 = vld [vmem:[%s3569_s30 + $0xd8] sm:$0xff]   ;;  %v3408_v62 = vld [vmem:[%s3569_s30 + $0xe0] sm:$0xff]   ;;  %v3410_v0 = vld [vmem:[%s3569_s30 + $0xe8] sm:$0xff]  }
  0x28   : > { %v3407_v61 = vld [vmem:[%s3569_s30 + $0x1d8] sm:$0xff]   ;;  %v3409_v63 = vld [vmem:[%s3569_s30 + $0x1e0] sm:$0xff]   ;;  %v3411_v1 = vld [vmem:[%s3569_s30 + $0x1e8] sm:$0xff]  }
  0x29   : > { %v3412_v2 = vld [vmem:[%s3569_s30 + $0xf0] sm:$0xff]   ;;  %v3414_v4 = vld [vmem:[%s3569_s30 + $0xf8] sm:$0xff]   ;;  %v3703_v6 = vld [vmem:[%s4297_s2] ss:$0 sm:$0xff] }
  0x2a   : > { %v3413_v3 = vld [vmem:[%s3569_s30 + $0x1f0] sm:$0xff]   ;;  %v3415_v5 = vld [vmem:[%s3569_s30 + $0x1f8] sm:$0xff]  }
  0x2d   : > { %3138 = vmatmul.mubr.msk.bf16.gmra.mxu0 %vm663_vm2, %v3362_v16  ;;  %3202 = vmatmul.mubr.msk.bf16.gmra.mxu1 %vm663_vm2, %v3363_v17 }
  0x2e   : > { %3141 = vmatprep.mubr.msk.bf16.mxu0 %vm663_vm2, %v3364_v18  ;;  %3205 = vmatprep.mubr.msk.bf16.mxu1 %vm663_vm2, %v3365_v19 }
  0x35   : > { %3142 = vmatmul.mubr.msk.bf16.gmra.mxu0 %vm663_vm2, %v3366_v20  ;;  %3206 = vmatmul.mubr.msk.bf16.gmra.mxu1 %vm663_vm2, %v3367_v21 }
  0x36   : > { %3145 = vmatprep.mubr.msk.bf16.mxu0 %vm663_vm2, %v3368_v22  ;;  %3209 = vmatprep.mubr.msk.bf16.mxu1 %vm663_vm2, %v3369_v23 }
  0x3d   : > { %3146 = vmatmul.mubr.msk.bf16.gmra.mxu0 %vm663_vm2, %v3370_v24  ;;  %3210 = vmatmul.mubr.msk.bf16.gmra.mxu1 %vm663_vm2, %v3371_v25 }
  0x3e   : > { %3149 = vmatprep.mubr.msk.bf16.mxu0 %vm663_vm2, %v3372_v26  ;;  %3213 = vmatprep.mubr.msk.bf16.mxu1 %vm663_vm2, %v3373_v27 }
  0x45   : > { %3150 = vmatmul.mubr.msk.bf16.gmra.mxu0 %vm663_vm2, %v3374_v28  ;;  %3214 = vmatmul.mubr.msk.bf16.gmra.mxu1 %vm663_vm2, %v3375_v29 }
  0x46   : > { %3153 = vmatprep.mubr.msk.bf16.mxu0 %vm663_vm2, %v3376_v30  ;;  %3217 = vmatprep.mubr.msk.bf16.mxu1 %vm663_vm2, %v3377_v31 }
  0x4d   : > { %3154 = vmatmul.mubr.msk.bf16.gmra.mxu0 %vm663_vm2, %v3378_v32  ;;  %3218 = vmatmul.mubr.msk.bf16.gmra.mxu1 %vm663_vm2, %v3379_v33 }
  0x4e   : > { %3157 = vmatprep.mubr.msk.bf16.mxu0 %vm663_vm2, %v3380_v34  ;;  %3221 = vmatprep.mubr.msk.bf16.mxu1 %vm663_vm2, %v3381_v35 }
  0x55   : > { %3158 = vmatmul.mubr.msk.bf16.gmra.mxu0 %vm663_vm2, %v3382_v36  ;;  %3222 = vmatmul.mubr.msk.bf16.gmra.mxu1 %vm663_vm2, %v3383_v37 }
  0x56   : > { %3161 = vmatprep.mubr.msk.bf16.mxu0 %vm663_vm2, %v3384_v38  ;;  %3225 = vmatprep.mubr.msk.bf16.mxu1 %vm663_vm2, %v3385_v39 }
  0x5d   : > { %3162 = vmatmul.mubr.msk.bf16.gmra.mxu0 %vm663_vm2, %v3386_v40  ;;  %3226 = vmatmul.mubr.msk.bf16.gmra.mxu1 %vm663_vm2, %v3387_v41 }
  0x5e   : > { %3165 = vmatprep.mubr.msk.bf16.mxu0 %vm663_vm2, %v3388_v42  ;;  %3229 = vmatprep.mubr.msk.bf16.mxu1 %vm663_vm2, %v3389_v43 }
  0x65   : > { %3166 = vmatmul.mubr.msk.bf16.gmra.mxu0 %vm663_vm2, %v3390_v44  ;;  %3230 = vmatmul.mubr.msk.bf16.gmra.mxu1 %vm663_vm2, %v3391_v45 }
  0x66   : > { %3169 = vmatprep.mubr.msk.bf16.mxu0 %vm663_vm2, %v3392_v46  ;;  %3233 = vmatprep.mubr.msk.bf16.mxu1 %vm663_vm2, %v3393_v47 }
  0x6d   : > { %3170 = vmatmul.mubr.msk.bf16.gmra.mxu0 %vm663_vm2, %v3394_v48  ;;  %3234 = vmatmul.mubr.msk.bf16.gmra.mxu1 %vm663_vm2, %v3395_v49 }
  0x6e   : > { %3173 = vmatprep.mubr.msk.bf16.mxu0 %vm663_vm2, %v3396_v50  ;;  %3237 = vmatprep.mubr.msk.bf16.mxu1 %vm663_vm2, %v3397_v51 }
  0x75   : > { %3174 = vmatmul.mubr.msk.bf16.gmra.mxu0 %vm663_vm2, %v3398_v52  ;;  %3238 = vmatmul.mubr.msk.bf16.gmra.mxu1 %vm663_vm2, %v3399_v53 }
  0x76   : > { %3177 = vmatprep.mubr.msk.bf16.mxu0 %vm663_vm2, %v3400_v54  ;;  %3241 = vmatprep.mubr.msk.bf16.mxu1 %vm663_vm2, %v3401_v55 }
  0x7d   : > { %3178 = vmatmul.mubr.msk.bf16.gmra.mxu0 %vm663_vm2, %v3402_v56  ;;  %3242 = vmatmul.mubr.msk.bf16.gmra.mxu1 %vm663_vm2, %v3403_v57 }
  0x7e   : > { %3181 = vmatprep.mubr.msk.bf16.mxu0 %vm663_vm2, %v3404_v58  ;;  %3245 = vmatprep.mubr.msk.bf16.mxu1 %vm663_vm2, %v3405_v59 }
  0x85   : > { %3182 = vmatmul.mubr.msk.bf16.gmra.mxu0 %vm663_vm2, %v3406_v60  ;;  %3246 = vmatmul.mubr.msk.bf16.gmra.mxu1 %vm663_vm2, %v3407_v61 }
  0x86   : > { %3185 = vmatprep.mubr.msk.bf16.mxu0 %vm663_vm2, %v3408_v62  ;;  %3249 = vmatprep.mubr.msk.bf16.mxu1 %vm663_vm2, %v3409_v63 }
  0x8d   : > { %3186 = vmatmul.mubr.msk.bf16.gmra.mxu0 %vm663_vm2, %v3410_v0  ;;  %3250 = vmatmul.mubr.msk.bf16.gmra.mxu1 %vm663_vm2, %v3411_v1 }
  0x8e   : > { %3189 = vmatprep.mubr.msk.bf16.mxu0 %vm663_vm2, %v3412_v2  ;;  %3253 = vmatprep.mubr.msk.bf16.mxu1 %vm663_vm2, %v3413_v3 }
  0x95   : > { %3190 = vmatmul.mubr.msk.bf16.gmra.mxu0 %vm663_vm2, %v3414_v4  ;;  %3254 = vmatmul.mubr.msk.bf16.gmra.mxu1 %vm663_vm2, %v3415_v5 }
  0xdd   : > { %v3131_v7 = vpop.f32.mrf.mxu0  ;;  %v3195_v8 = vpop.f32.mrf.mxu1 }
  0xde   : > { %v906_v9 = vadd.f32 %v3131_v7, %v3703_v6  ;;  %v1162_v10 = vadd.f32 %v3195_v8, %v3703_v6 }
  0xdf   : > { %v897_v11 = vpop.f32.mrf.mxu0  ;;  %v1153_v12 = vpop.f32.mrf.mxu1 }
  0xe0   : > { %v1410_v13 = vmax.f32 %v906_v9, 0.0  ;;  %v1474_v14 = vmax.f32 %v1162_v10, 0.0  ;;  %v898_v15 = vadd.f32 %v3703_v6, %v897_v11  ;;  %v1154_v16 = vadd.f32 %v3703_v6, %v1153_v12 }
  0xe1   : > { %v3132_v17 = vpop.f32.mrf.mxu0  ;;  %v3196_v18 = vpop.f32.mrf.mxu1 }
  0xe2   : > { %v2930_v19 = vpack.c.bf16 %v1410_v13, %v1410_v13  ;;  %v2994_v20 = vpack.c.bf16 %v1474_v14, %v1474_v14  ;;  %v1408_v21 = vmax.f32 %v898_v15, 0.0  ;;  %v1472_v22 = vmax.f32 %v1154_v16, 0.0 }
  0xe3   : > { %v909_v23 = vadd.f32 %v3132_v17, %v3703_v6  ;;  %v1165_v24 = vadd.f32 %v3196_v18, %v3703_v6  ;;  %v900_v25 = vpop.f32.mrf.mxu0  ;;  %v1156_v26 = vpop.f32.mrf.mxu1 }
  0xe4   : > { %2051 = vst.msk [vmem:[%s3711_s8 + $0x8] sm:$0xf] %vm2048_vm3, %v2930_v19  ;;  %2115 = vst.msk [vmem:[%s3711_s8 + $0x108] sm:$0xf] %vm2048_vm3, %v2994_v20  ;;  %v2928_v27 = vpack.c.bf16 %v1408_v21, %v1408_v21  ;;  %v2992_v28 = vpack.c.bf16 %v1472_v22, %v1472_v22  ;;  %v901_v29 = vadd.f32 %v3703_v6, %v900_v25 }
  0xe5   : > { %v1157_v30 = vadd.f32 %v3703_v6, %v1156_v26  ;;  %v1411_v31 = vmax.f32 %v909_v23, 0.0  ;;  %v1475_v32 = vmax.f32 %v1165_v24, 0.0  ;;  %v3135_v33 = vpop.f32.mrf.mxu0  ;;  %v3199_v34 = vpop.f32.mrf.mxu1 }
  0xe6   : > { %2049 = vst.msk [vmem:[%s3711_s8] sm:$0xf] %vm2048_vm3, %v2928_v27  ;;  %2113 = vst.msk [vmem:[%s3711_s8 + $0x100] sm:$0xf] %vm2048_vm3, %v2992_v28  ;;  %v1409_v35 = vmax.f32 %v901_v29, 0.0  ;;  %v922_v37 = vadd.f32 %v3135_v33, %v3703_v6  ;;  %v1178_v38 = vadd.f32 %v3199_v34, %v3703_v6 }
  0xe7   : > { %v1473_v36 = vmax.f32 %v1157_v30, 0.0  ;;  %v2931_v39 = vpack.c.bf16 %v1411_v31, %v1411_v31  ;;  %v2995_v40 = vpack.c.bf16 %v1475_v32, %v1475_v32  ;;  %v913_v41 = vpop.f32.mrf.mxu0  ;;  %v1169_v42 = vpop.f32.mrf.mxu1 }
  0xe8   : > { %v2929_v43 = vpack.c.bf16 %v1409_v35, %v1409_v35  ;;  %v1414_v45 = vmax.f32 %v922_v37, 0.0  ;;  %v1478_v46 = vmax.f32 %v1178_v38, 0.0  ;;  %v914_v47 = vadd.f32 %v3703_v6, %v913_v41 }
  0xe9   : > { %v2993_v44 = vpack.c.bf16 %v1473_v36, %v1473_v36  ;;  %2052 = vst.msk [vmem:[%s3711_s8 + $0xc] sm:$0xf] %vm2048_vm3, %v2931_v39  ;;  %2116 = vst.msk [vmem:[%s3711_s8 + $0x10c] sm:$0xf] %vm2048_vm3, %v2995_v40  ;;  %v1170_v48 = vadd.f32 %v3703_v6, %v1169_v42  ;;  %v3136_v49 = vpop.f32.mrf.mxu0  ;;  %v3200_v50 = vpop.f32.mrf.mxu1 }
  0xea   : > { %2050 = vst.msk [vmem:[%s3711_s8 + $0x4] sm:$0xf] %vm2048_vm3, %v2929_v43  ;;  %v2934_v51 = vpack.c.bf16 %v1414_v45, %v1414_v45  ;;  %v2998_v52 = vpack.c.bf16 %v1478_v46, %v1478_v46  ;;  %v925_v53 = vadd.f32 %v3136_v49, %v3703_v6  ;;  %v1181_v54 = vadd.f32 %v3200_v50, %v3703_v6 }
  0xeb   : > { %2114 = vst.msk [vmem:[%s3711_s8 + $0x104] sm:$0xf] %vm2048_vm3, %v2993_v44  ;;  %v1412_v55 = vmax.f32 %v914_v47, 0.0  ;;  %v1476_v56 = vmax.f32 %v1170_v48, 0.0  ;;  %v916_v57 = vpop.f32.mrf.mxu0  ;;  %v1172_v58 = vpop.f32.mrf.mxu1 }
  0xec   : > { %2055 = vst.msk [vmem:[%s3711_s8 + $0x18] sm:$0xf] %vm2048_vm3, %v2934_v51  ;;  %2119 = vst.msk [vmem:[%s3711_s8 + $0x118] sm:$0xf] %vm2048_vm3, %v2998_v52  ;;  %v1415_v59 = vmax.f32 %v925_v53, 0.0  ;;  %v1479_v60 = vmax.f32 %v1181_v54, 0.0  ;;  %v917_v61 = vadd.f32 %v3703_v6, %v916_v57  ;;  %v1173_v62 = vadd.f32 %v3703_v6, %v1172_v58 }
  0xed   : > { %v2932_v63 = vpack.c.bf16 %v1412_v55, %v1412_v55  ;;  %v2996_v0 = vpack.c.bf16 %v1476_v56, %v1476_v56  ;;  %v3139_v1 = vpop.f32.mrf.mxu0  ;;  %v3203_v2 = vpop.f32.mrf.mxu1 }
  0xee   : > { %v2935_v3 = vpack.c.bf16 %v1415_v59, %v1415_v59  ;;  %v2999_v4 = vpack.c.bf16 %v1479_v60, %v1479_v60  ;;  %v1413_v5 = vmax.f32 %v917_v61, 0.0  ;;  %v1477_v7 = vmax.f32 %v1173_v62, 0.0 }
  0xef   : > { %2053 = vst.msk [vmem:[%s3711_s8 + $0x10] sm:$0xf] %vm2048_vm3, %v2932_v63  ;;  %2117 = vst.msk [vmem:[%s3711_s8 + $0x110] sm:$0xf] %vm2048_vm3, %v2996_v0  ;;  %v938_v8 = vadd.f32 %v3139_v1, %v3703_v6  ;;  %v1194_v9 = vadd.f32 %v3203_v2, %v3703_v6  ;;  %v929_v10 = vpop.f32.mrf.mxu0  ;;  %v1185_v11 = vpop.f32.mrf.mxu1 }
  0xf0   : > { %2056 = vst.msk [vmem:[%s3711_s8 + $0x1c] sm:$0xf] %vm2048_vm3, %v2935_v3  ;;  %2120 = vst.msk [vmem:[%s3711_s8 + $0x11c] sm:$0xf] %vm2048_vm3, %v2999_v4  ;;  %v2933_v12 = vpack.c.bf16 %v1413_v5, %v1413_v5  ;;  %v2997_v13 = vpack.c.bf16 %v1477_v7, %v1477_v7  ;;  %v930_v14 = vadd.f32 %v3703_v6, %v929_v10 }
  0xf1   : > { %v1186_v15 = vadd.f32 %v3703_v6, %v1185_v11  ;;  %v1418_v16 = vmax.f32 %v938_v8, 0.0  ;;  %v1482_v17 = vmax.f32 %v1194_v9, 0.0  ;;  %v3140_v18 = vpop.f32.mrf.mxu0  ;;  %v3204_v19 = vpop.f32.mrf.mxu1 }
  0xf2   : > { %2054 = vst.msk [vmem:[%s3711_s8 + $0x14] sm:$0xf] %vm2048_vm3, %v2933_v12  ;;  %2118 = vst.msk [vmem:[%s3711_s8 + $0x114] sm:$0xf] %vm2048_vm3, %v2997_v13  ;;  %v1416_v20 = vmax.f32 %v930_v14, 0.0  ;;  %v941_v22 = vadd.f32 %v3140_v18, %v3703_v6  ;;  %v1197_v23 = vadd.f32 %v3204_v19, %v3703_v6 }
  0xf3   : > { %v1480_v21 = vmax.f32 %v1186_v15, 0.0  ;;  %v2938_v24 = vpack.c.bf16 %v1418_v16, %v1418_v16  ;;  %v3002_v25 = vpack.c.bf16 %v1482_v17, %v1482_v17  ;;  %v932_v26 = vpop.f32.mrf.mxu0  ;;  %v1188_v27 = vpop.f32.mrf.mxu1 }
  0xf4   : > { %v2936_v28 = vpack.c.bf16 %v1416_v20, %v1416_v20  ;;  %v1419_v30 = vmax.f32 %v941_v22, 0.0  ;;  %v1483_v31 = vmax.f32 %v1197_v23, 0.0  ;;  %v933_v32 = vadd.f32 %v3703_v6, %v932_v26 }
  0xf5   : > { %v3000_v29 = vpack.c.bf16 %v1480_v21, %v1480_v21  ;;  %2059 = vst.msk [vmem:[%s3711_s8 + $0x28] sm:$0xf] %vm2048_vm3, %v2938_v24  ;;  %2123 = vst.msk [vmem:[%s3711_s8 + $0x128] sm:$0xf] %vm2048_vm3, %v3002_v25  ;;  %v1189_v33 = vadd.f32 %v3703_v6, %v1188_v27  ;;  %v3143_v34 = vpop.f32.mrf.mxu0  ;;  %v3207_v35 = vpop.f32.mrf.mxu1 }
  0xf6   : > { %2057 = vst.msk [vmem:[%s3711_s8 + $0x20] sm:$0xf] %vm2048_vm3, %v2936_v28  ;;  %v2939_v36 = vpack.c.bf16 %v1419_v30, %v1419_v30  ;;  %v3003_v37 = vpack.c.bf16 %v1483_v31, %v1483_v31  ;;  %v954_v38 = vadd.f32 %v3143_v34, %v3703_v6  ;;  %v1210_v39 = vadd.f32 %v3207_v35, %v3703_v6 }
  0xf7   : > { %2121 = vst.msk [vmem:[%s3711_s8 + $0x120] sm:$0xf] %vm2048_vm3, %v3000_v29  ;;  %v1417_v40 = vmax.f32 %v933_v32, 0.0  ;;  %v1481_v41 = vmax.f32 %v1189_v33, 0.0  ;;  %v945_v42 = vpop.f32.mrf.mxu0  ;;  %v1201_v43 = vpop.f32.mrf.mxu1 }
  0xf8   : > { %2060 = vst.msk [vmem:[%s3711_s8 + $0x2c] sm:$0xf] %vm2048_vm3, %v2939_v36  ;;  %2124 = vst.msk [vmem:[%s3711_s8 + $0x12c] sm:$0xf] %vm2048_vm3, %v3003_v37  ;;  %v1422_v44 = vmax.f32 %v954_v38, 0.0  ;;  %v1486_v45 = vmax.f32 %v1210_v39, 0.0  ;;  %v946_v46 = vadd.f32 %v3703_v6, %v945_v42  ;;  %v1202_v47 = vadd.f32 %v3703_v6, %v1201_v43 }
  0xf9   : > { %v2937_v48 = vpack.c.bf16 %v1417_v40, %v1417_v40  ;;  %v3001_v49 = vpack.c.bf16 %v1481_v41, %v1481_v41  ;;  %v3144_v50 = vpop.f32.mrf.mxu0  ;;  %v3208_v51 = vpop.f32.mrf.mxu1 }
  0xfa   : > { %v2942_v52 = vpack.c.bf16 %v1422_v44, %v1422_v44  ;;  %v3006_v53 = vpack.c.bf16 %v1486_v45, %v1486_v45  ;;  %v1420_v54 = vmax.f32 %v946_v46, 0.0  ;;  %v1484_v55 = vmax.f32 %v1202_v47, 0.0 }
  0xfb   : > { %2058 = vst.msk [vmem:[%s3711_s8 + $0x24] sm:$0xf] %vm2048_vm3, %v2937_v48  ;;  %2122 = vst.msk [vmem:[%s3711_s8 + $0x124] sm:$0xf] %vm2048_vm3, %v3001_v49  ;;  %v957_v56 = vadd.f32 %v3144_v50, %v3703_v6  ;;  %v1213_v57 = vadd.f32 %v3208_v51, %v3703_v6  ;;  %v948_v58 = vpop.f32.mrf.mxu0  ;;  %v1204_v59 = vpop.f32.mrf.mxu1 }
  0xfc   : > { %2063 = vst.msk [vmem:[%s3711_s8 + $0x38] sm:$0xf] %vm2048_vm3, %v2942_v52  ;;  %2127 = vst.msk [vmem:[%s3711_s8 + $0x138] sm:$0xf] %vm2048_vm3, %v3006_v53  ;;  %v2940_v60 = vpack.c.bf16 %v1420_v54, %v1420_v54  ;;  %v3004_v61 = vpack.c.bf16 %v1484_v55, %v1484_v55  ;;  %v949_v62 = vadd.f32 %v3703_v6, %v948_v58 }
  0xfd   : > { %v1205_v63 = vadd.f32 %v3703_v6, %v1204_v59  ;;  %v1423_v0 = vmax.f32 %v957_v56, 0.0  ;;  %v1487_v1 = vmax.f32 %v1213_v57, 0.0  ;;  %v3147_v2 = vpop.f32.mrf.mxu0  ;;  %v3211_v3 = vpop.f32.mrf.mxu1 }
  0xfe   : > { %2061 = vst.msk [vmem:[%s3711_s8 + $0x30] sm:$0xf] %vm2048_vm3, %v2940_v60  ;;  %2125 = vst.msk [vmem:[%s3711_s8 + $0x130] sm:$0xf] %vm2048_vm3, %v3004_v61  ;;  %v1421_v4 = vmax.f32 %v949_v62, 0.0  ;;  %v970_v7 = vadd.f32 %v3147_v2, %v3703_v6  ;;  %v1226_v8 = vadd.f32 %v3211_v3, %v3703_v6 }
  0xff   : > { %v1485_v5 = vmax.f32 %v1205_v63, 0.0  ;;  %v2943_v9 = vpack.c.bf16 %v1423_v0, %v1423_v0  ;;  %v3007_v10 = vpack.c.bf16 %v1487_v1, %v1487_v1  ;;  %v961_v11 = vpop.f32.mrf.mxu0  ;;  %v1217_v12 = vpop.f32.mrf.mxu1 }
 0x100   : > { %v2941_v13 = vpack.c.bf16 %v1421_v4, %v1421_v4  ;;  %v1426_v15 = vmax.f32 %v970_v7, 0.0  ;;  %v1490_v16 = vmax.f32 %v1226_v8, 0.0  ;;  %v962_v17 = vadd.f32 %v3703_v6, %v961_v11 }
 0x101   : > { %v3005_v14 = vpack.c.bf16 %v1485_v5, %v1485_v5  ;;  %2064 = vst.msk [vmem:[%s3711_s8 + $0x3c] sm:$0xf] %vm2048_vm3, %v2943_v9  ;;  %2128 = vst.msk [vmem:[%s3711_s8 + $0x13c] sm:$0xf] %vm2048_vm3, %v3007_v10  ;;  %v1218_v18 = vadd.f32 %v3703_v6, %v1217_v12  ;;  %v3148_v19 = vpop.f32.mrf.mxu0  ;;  %v3212_v20 = vpop.f32.mrf.mxu1 }
 0x102   : > { %2062 = vst.msk [vmem:[%s3711_s8 + $0x34] sm:$0xf] %vm2048_vm3, %v2941_v13  ;;  %v2946_v21 = vpack.c.bf16 %v1426_v15, %v1426_v15  ;;  %v3010_v22 = vpack.c.bf16 %v1490_v16, %v1490_v16  ;;  %v973_v23 = vadd.f32 %v3148_v19, %v3703_v6  ;;  %v1229_v24 = vadd.f32 %v3212_v20, %v3703_v6 }
 0x103   : > { %2126 = vst.msk [vmem:[%s3711_s8 + $0x134] sm:$0xf] %vm2048_vm3, %v3005_v14  ;;  %v1424_v25 = vmax.f32 %v962_v17, 0.0  ;;  %v1488_v26 = vmax.f32 %v1218_v18, 0.0  ;;  %v964_v27 = vpop.f32.mrf.mxu0  ;;  %v1220_v28 = vpop.f32.mrf.mxu1 }
 0x104   : > { %2067 = vst.msk [vmem:[%s3711_s8 + $0x48] sm:$0xf] %vm2048_vm3, %v2946_v21  ;;  %2131 = vst.msk [vmem:[%s3711_s8 + $0x148] sm:$0xf] %vm2048_vm3, %v3010_v22  ;;  %v1427_v29 = vmax.f32 %v973_v23, 0.0  ;;  %v1491_v30 = vmax.f32 %v1229_v24, 0.0  ;;  %v965_v31 = vadd.f32 %v3703_v6, %v964_v27  ;;  %v1221_v32 = vadd.f32 %v3703_v6, %v1220_v28 }
 0x105   : > { %v2944_v33 = vpack.c.bf16 %v1424_v25, %v1424_v25  ;;  %v3008_v34 = vpack.c.bf16 %v1488_v26, %v1488_v26  ;;  %v3151_v35 = vpop.f32.mrf.mxu0  ;;  %v3215_v36 = vpop.f32.mrf.mxu1 }
 0x106   : > { %v2947_v37 = vpack.c.bf16 %v1427_v29, %v1427_v29  ;;  %v3011_v38 = vpack.c.bf16 %v1491_v30, %v1491_v30  ;;  %v1425_v39 = vmax.f32 %v965_v31, 0.0  ;;  %v1489_v40 = vmax.f32 %v1221_v32, 0.0 }
 0x107   : > { %2065 = vst.msk [vmem:[%s3711_s8 + $0x40] sm:$0xf] %vm2048_vm3, %v2944_v33  ;;  %2129 = vst.msk [vmem:[%s3711_s8 + $0x140] sm:$0xf] %vm2048_vm3, %v3008_v34  ;;  %v986_v41 = vadd.f32 %v3151_v35, %v3703_v6  ;;  %v1242_v42 = vadd.f32 %v3215_v36, %v3703_v6  ;;  %v977_v43 = vpop.f32.mrf.mxu0  ;;  %v1233_v44 = vpop.f32.mrf.mxu1 }
 0x108   : > { %2068 = vst.msk [vmem:[%s3711_s8 + $0x4c] sm:$0xf] %vm2048_vm3, %v2947_v37  ;;  %2132 = vst.msk [vmem:[%s3711_s8 + $0x14c] sm:$0xf] %vm2048_vm3, %v3011_v38  ;;  %v2945_v45 = vpack.c.bf16 %v1425_v39, %v1425_v39  ;;  %v3009_v46 = vpack.c.bf16 %v1489_v40, %v1489_v40  ;;  %v978_v47 = vadd.f32 %v3703_v6, %v977_v43 }
 0x109   : > { %v1234_v48 = vadd.f32 %v3703_v6, %v1233_v44  ;;  %v1430_v49 = vmax.f32 %v986_v41, 0.0  ;;  %v1494_v50 = vmax.f32 %v1242_v42, 0.0  ;;  %v3152_v51 = vpop.f32.mrf.mxu0  ;;  %v3216_v52 = vpop.f32.mrf.mxu1 }
 0x10a   : > { %2066 = vst.msk [vmem:[%s3711_s8 + $0x44] sm:$0xf] %vm2048_vm3, %v2945_v45  ;;  %2130 = vst.msk [vmem:[%s3711_s8 + $0x144] sm:$0xf] %vm2048_vm3, %v3009_v46  ;;  %v1428_v53 = vmax.f32 %v978_v47, 0.0  ;;  %v989_v55 = vadd.f32 %v3152_v51, %v3703_v6  ;;  %v1245_v56 = vadd.f32 %v3216_v52, %v3703_v6 }
 0x10b   : > { %v1492_v54 = vmax.f32 %v1234_v48, 0.0  ;;  %v2950_v57 = vpack.c.bf16 %v1430_v49, %v1430_v49  ;;  %v3014_v58 = vpack.c.bf16 %v1494_v50, %v1494_v50  ;;  %v980_v59 = vpop.f32.mrf.mxu0  ;;  %v1236_v60 = vpop.f32.mrf.mxu1 }
 0x10c   : > { %v2948_v61 = vpack.c.bf16 %v1428_v53, %v1428_v53  ;;  %v1431_v63 = vmax.f32 %v989_v55, 0.0  ;;  %v1495_v0 = vmax.f32 %v1245_v56, 0.0  ;;  %v981_v1 = vadd.f32 %v3703_v6, %v980_v59 }
 0x10d   : > { %v3012_v62 = vpack.c.bf16 %v1492_v54, %v1492_v54  ;;  %2071 = vst.msk [vmem:[%s3711_s8 + $0x58] sm:$0xf] %vm2048_vm3, %v2950_v57  ;;  %2135 = vst.msk [vmem:[%s3711_s8 + $0x158] sm:$0xf] %vm2048_vm3, %v3014_v58  ;;  %v1237_v2 = vadd.f32 %v3703_v6, %v1236_v60  ;;  %v3155_v3 = vpop.f32.mrf.mxu0  ;;  %v3219_v4 = vpop.f32.mrf.mxu1 }
 0x10e   : > { %2069 = vst.msk [vmem:[%s3711_s8 + $0x50] sm:$0xf] %vm2048_vm3, %v2948_v61  ;;  %v2951_v5 = vpack.c.bf16 %v1431_v63, %v1431_v63  ;;  %v3015_v7 = vpack.c.bf16 %v1495_v0, %v1495_v0  ;;  %v1002_v8 = vadd.f32 %v3155_v3, %v3703_v6  ;;  %v1258_v9 = vadd.f32 %v3219_v4, %v3703_v6 }
 0x10f   : > { %2133 = vst.msk [vmem:[%s3711_s8 + $0x150] sm:$0xf] %vm2048_vm3, %v3012_v62  ;;  %v1429_v10 = vmax.f32 %v981_v1, 0.0  ;;  %v1493_v11 = vmax.f32 %v1237_v2, 0.0  ;;  %v993_v12 = vpop.f32.mrf.mxu0  ;;  %v1249_v13 = vpop.f32.mrf.mxu1 }
 0x110   : > { %2072 = vst.msk [vmem:[%s3711_s8 + $0x5c] sm:$0xf] %vm2048_vm3, %v2951_v5  ;;  %2136 = vst.msk [vmem:[%s3711_s8 + $0x15c] sm:$0xf] %vm2048_vm3, %v3015_v7  ;;  %v1434_v14 = vmax.f32 %v1002_v8, 0.0  ;;  %v1498_v15 = vmax.f32 %v1258_v9, 0.0  ;;  %v994_v16 = vadd.f32 %v3703_v6, %v993_v12  ;;  %v1250_v17 = vadd.f32 %v3703_v6, %v1249_v13 }
 0x111   : > { %v2949_v18 = vpack.c.bf16 %v1429_v10, %v1429_v10  ;;  %v3013_v19 = vpack.c.bf16 %v1493_v11, %v1493_v11  ;;  %v3156_v20 = vpop.f32.mrf.mxu0  ;;  %v3220_v21 = vpop.f32.mrf.mxu1 }
 0x112   : > { %v2954_v22 = vpack.c.bf16 %v1434_v14, %v1434_v14  ;;  %v3018_v23 = vpack.c.bf16 %v1498_v15, %v1498_v15  ;;  %v1432_v24 = vmax.f32 %v994_v16, 0.0  ;;  %v1496_v25 = vmax.f32 %v1250_v17, 0.0 }
 0x113   : > { %2070 = vst.msk [vmem:[%s3711_s8 + $0x54] sm:$0xf] %vm2048_vm3, %v2949_v18  ;;  %2134 = vst.msk [vmem:[%s3711_s8 + $0x154] sm:$0xf] %vm2048_vm3, %v3013_v19  ;;  %v1005_v26 = vadd.f32 %v3156_v20, %v3703_v6  ;;  %v1261_v27 = vadd.f32 %v3220_v21, %v3703_v6  ;;  %v996_v28 = vpop.f32.mrf.mxu0  ;;  %v1252_v29 = vpop.f32.mrf.mxu1 }
 0x114   : > { %2075 = vst.msk [vmem:[%s3711_s8 + $0x68] sm:$0xf] %vm2048_vm3, %v2954_v22  ;;  %2139 = vst.msk [vmem:[%s3711_s8 + $0x168] sm:$0xf] %vm2048_vm3, %v3018_v23  ;;  %v2952_v30 = vpack.c.bf16 %v1432_v24, %v1432_v24  ;;  %v3016_v31 = vpack.c.bf16 %v1496_v25, %v1496_v25  ;;  %v997_v32 = vadd.f32 %v3703_v6, %v996_v28 }
 0x115   : > { %v1253_v33 = vadd.f32 %v3703_v6, %v1252_v29  ;;  %v1435_v34 = vmax.f32 %v1005_v26, 0.0  ;;  %v1499_v35 = vmax.f32 %v1261_v27, 0.0  ;;  %v3159_v36 = vpop.f32.mrf.mxu0  ;;  %v3223_v37 = vpop.f32.mrf.mxu1 }
 0x116   : > { %2073 = vst.msk [vmem:[%s3711_s8 + $0x60] sm:$0xf] %vm2048_vm3, %v2952_v30  ;;  %2137 = vst.msk [vmem:[%s3711_s8 + $0x160] sm:$0xf] %vm2048_vm3, %v3016_v31  ;;  %v1433_v38 = vmax.f32 %v997_v32, 0.0  ;;  %v1018_v40 = vadd.f32 %v3159_v36, %v3703_v6  ;;  %v1274_v41 = vadd.f32 %v3223_v37, %v3703_v6 }
 0x117   : > { %v1497_v39 = vmax.f32 %v1253_v33, 0.0  ;;  %v2955_v42 = vpack.c.bf16 %v1435_v34, %v1435_v34  ;;  %v3019_v43 = vpack.c.bf16 %v1499_v35, %v1499_v35  ;;  %v1009_v44 = vpop.f32.mrf.mxu0  ;;  %v1265_v45 = vpop.f32.mrf.mxu1 }
 0x118   : > { %v2953_v46 = vpack.c.bf16 %v1433_v38, %v1433_v38  ;;  %v1438_v48 = vmax.f32 %v1018_v40, 0.0  ;;  %v1502_v49 = vmax.f32 %v1274_v41, 0.0  ;;  %v1010_v50 = vadd.f32 %v3703_v6, %v1009_v44 }
 0x119   : > { %v3017_v47 = vpack.c.bf16 %v1497_v39, %v1497_v39  ;;  %2076 = vst.msk [vmem:[%s3711_s8 + $0x6c] sm:$0xf] %vm2048_vm3, %v2955_v42  ;;  %2140 = vst.msk [vmem:[%s3711_s8 + $0x16c] sm:$0xf] %vm2048_vm3, %v3019_v43  ;;  %v1266_v51 = vadd.f32 %v3703_v6, %v1265_v45  ;;  %v3160_v52 = vpop.f32.mrf.mxu0  ;;  %v3224_v53 = vpop.f32.mrf.mxu1 }
 0x11a   : > { %2074 = vst.msk [vmem:[%s3711_s8 + $0x64] sm:$0xf] %vm2048_vm3, %v2953_v46  ;;  %v2958_v54 = vpack.c.bf16 %v1438_v48, %v1438_v48  ;;  %v3022_v55 = vpack.c.bf16 %v1502_v49, %v1502_v49  ;;  %v1021_v56 = vadd.f32 %v3160_v52, %v3703_v6  ;;  %v1277_v57 = vadd.f32 %v3224_v53, %v3703_v6 }
 0x11b   : > { %2138 = vst.msk [vmem:[%s3711_s8 + $0x164] sm:$0xf] %vm2048_vm3, %v3017_v47  ;;  %v1436_v58 = vmax.f32 %v1010_v50, 0.0  ;;  %v1500_v59 = vmax.f32 %v1266_v51, 0.0  ;;  %v1012_v60 = vpop.f32.mrf.mxu0  ;;  %v1268_v61 = vpop.f32.mrf.mxu1 }
 0x11c   : > { %2079 = vst.msk [vmem:[%s3711_s8 + $0x78] sm:$0xf] %vm2048_vm3, %v2958_v54  ;;  %2143 = vst.msk [vmem:[%s3711_s8 + $0x178] sm:$0xf] %vm2048_vm3, %v3022_v55  ;;  %v1439_v62 = vmax.f32 %v1021_v56, 0.0  ;;  %v1503_v63 = vmax.f32 %v1277_v57, 0.0  ;;  %v1013_v0 = vadd.f32 %v3703_v6, %v1012_v60  ;;  %v1269_v1 = vadd.f32 %v3703_v6, %v1268_v61 }
 0x11d   : > { %v2956_v2 = vpack.c.bf16 %v1436_v58, %v1436_v58  ;;  %v3020_v3 = vpack.c.bf16 %v1500_v59, %v1500_v59  ;;  %v3163_v4 = vpop.f32.mrf.mxu0  ;;  %v3227_v5 = vpop.f32.mrf.mxu1 }
 0x11e   : > { %v2959_v7 = vpack.c.bf16 %v1439_v62, %v1439_v62  ;;  %v3023_v8 = vpack.c.bf16 %v1503_v63, %v1503_v63  ;;  %v1437_v9 = vmax.f32 %v1013_v0, 0.0  ;;  %v1501_v10 = vmax.f32 %v1269_v1, 0.0 }
 0x11f   : > { %2077 = vst.msk [vmem:[%s3711_s8 + $0x70] sm:$0xf] %vm2048_vm3, %v2956_v2  ;;  %2141 = vst.msk [vmem:[%s3711_s8 + $0x170] sm:$0xf] %vm2048_vm3, %v3020_v3  ;;  %v1034_v11 = vadd.f32 %v3163_v4, %v3703_v6  ;;  %v1290_v12 = vadd.f32 %v3227_v5, %v3703_v6  ;;  %v1025_v13 = vpop.f32.mrf.mxu0  ;;  %v1281_v14 = vpop.f32.mrf.mxu1 }
 0x120   : > { %2080 = vst.msk [vmem:[%s3711_s8 + $0x7c] sm:$0xf] %vm2048_vm3, %v2959_v7  ;;  %2144 = vst.msk [vmem:[%s3711_s8 + $0x17c] sm:$0xf] %vm2048_vm3, %v3023_v8  ;;  %v2957_v15 = vpack.c.bf16 %v1437_v9, %v1437_v9  ;;  %v3021_v16 = vpack.c.bf16 %v1501_v10, %v1501_v10  ;;  %v1026_v17 = vadd.f32 %v3703_v6, %v1025_v13 }
 0x121   : > { %v1282_v18 = vadd.f32 %v3703_v6, %v1281_v14  ;;  %v1442_v19 = vmax.f32 %v1034_v11, 0.0  ;;  %v1506_v20 = vmax.f32 %v1290_v12, 0.0  ;;  %v3164_v21 = vpop.f32.mrf.mxu0  ;;  %v3228_v22 = vpop.f32.mrf.mxu1 }
 0x122   : > { %2078 = vst.msk [vmem:[%s3711_s8 + $0x74] sm:$0xf] %vm2048_vm3, %v2957_v15  ;;  %2142 = vst.msk [vmem:[%s3711_s8 + $0x174] sm:$0xf] %vm2048_vm3, %v3021_v16  ;;  %v1440_v23 = vmax.f32 %v1026_v17, 0.0  ;;  %v1037_v25 = vadd.f32 %v3164_v21, %v3703_v6  ;;  %v1293_v26 = vadd.f32 %v3228_v22, %v3703_v6 }
 0x123   : > { %v1504_v24 = vmax.f32 %v1282_v18, 0.0  ;;  %v2962_v27 = vpack.c.bf16 %v1442_v19, %v1442_v19  ;;  %v3026_v28 = vpack.c.bf16 %v1506_v20, %v1506_v20  ;;  %v1028_v29 = vpop.f32.mrf.mxu0  ;;  %v1284_v30 = vpop.f32.mrf.mxu1 }
 0x124   : > { %v2960_v31 = vpack.c.bf16 %v1440_v23, %v1440_v23  ;;  %v1443_v33 = vmax.f32 %v1037_v25, 0.0  ;;  %v1507_v34 = vmax.f32 %v1293_v26, 0.0  ;;  %v1029_v35 = vadd.f32 %v3703_v6, %v1028_v29 }
 0x125   : > { %v3024_v32 = vpack.c.bf16 %v1504_v24, %v1504_v24  ;;  %2083 = vst.msk [vmem:[%s3711_s8 + $0x88] sm:$0xf] %vm2048_vm3, %v2962_v27  ;;  %2147 = vst.msk [vmem:[%s3711_s8 + $0x188] sm:$0xf] %vm2048_vm3, %v3026_v28  ;;  %v1285_v36 = vadd.f32 %v3703_v6, %v1284_v30  ;;  %v3167_v37 = vpop.f32.mrf.mxu0  ;;  %v3231_v38 = vpop.f32.mrf.mxu1 }
 0x126   : > { %2081 = vst.msk [vmem:[%s3711_s8 + $0x80] sm:$0xf] %vm2048_vm3, %v2960_v31  ;;  %v2963_v39 = vpack.c.bf16 %v1443_v33, %v1443_v33  ;;  %v3027_v40 = vpack.c.bf16 %v1507_v34, %v1507_v34  ;;  %v1050_v41 = vadd.f32 %v3167_v37, %v3703_v6  ;;  %v1306_v42 = vadd.f32 %v3231_v38, %v3703_v6 }
 0x127   : > { %2145 = vst.msk [vmem:[%s3711_s8 + $0x180] sm:$0xf] %vm2048_vm3, %v3024_v32  ;;  %v1441_v43 = vmax.f32 %v1029_v35, 0.0  ;;  %v1505_v44 = vmax.f32 %v1285_v36, 0.0  ;;  %v1041_v45 = vpop.f32.mrf.mxu0  ;;  %v1297_v46 = vpop.f32.mrf.mxu1 }
 0x128   : > { %2084 = vst.msk [vmem:[%s3711_s8 + $0x8c] sm:$0xf] %vm2048_vm3, %v2963_v39  ;;  %2148 = vst.msk [vmem:[%s3711_s8 + $0x18c] sm:$0xf] %vm2048_vm3, %v3027_v40  ;;  %v1446_v47 = vmax.f32 %v1050_v41, 0.0  ;;  %v1510_v48 = vmax.f32 %v1306_v42, 0.0  ;;  %v1042_v49 = vadd.f32 %v3703_v6, %v1041_v45  ;;  %v1298_v50 = vadd.f32 %v3703_v6, %v1297_v46 }
 0x129   : > { %v2961_v51 = vpack.c.bf16 %v1441_v43, %v1441_v43  ;;  %v3025_v52 = vpack.c.bf16 %v1505_v44, %v1505_v44  ;;  %v3168_v53 = vpop.f32.mrf.mxu0  ;;  %v3232_v54 = vpop.f32.mrf.mxu1 }
 0x12a   : > { %v2966_v55 = vpack.c.bf16 %v1446_v47, %v1446_v47  ;;  %v3030_v56 = vpack.c.bf16 %v1510_v48, %v1510_v48  ;;  %v1444_v57 = vmax.f32 %v1042_v49, 0.0  ;;  %v1508_v58 = vmax.f32 %v1298_v50, 0.0 }
 0x12b   : > { %2082 = vst.msk [vmem:[%s3711_s8 + $0x84] sm:$0xf] %vm2048_vm3, %v2961_v51  ;;  %2146 = vst.msk [vmem:[%s3711_s8 + $0x184] sm:$0xf] %vm2048_vm3, %v3025_v52  ;;  %v1053_v59 = vadd.f32 %v3168_v53, %v3703_v6  ;;  %v1309_v60 = vadd.f32 %v3232_v54, %v3703_v6  ;;  %v1044_v61 = vpop.f32.mrf.mxu0  ;;  %v1300_v62 = vpop.f32.mrf.mxu1 }
 0x12c   : > { %2087 = vst.msk [vmem:[%s3711_s8 + $0x98] sm:$0xf] %vm2048_vm3, %v2966_v55  ;;  %2151 = vst.msk [vmem:[%s3711_s8 + $0x198] sm:$0xf] %vm2048_vm3, %v3030_v56  ;;  %v2964_v63 = vpack.c.bf16 %v1444_v57, %v1444_v57  ;;  %v3028_v0 = vpack.c.bf16 %v1508_v58, %v1508_v58  ;;  %v1045_v1 = vadd.f32 %v3703_v6, %v1044_v61 }
 0x12d   : > { %v1301_v2 = vadd.f32 %v3703_v6, %v1300_v62  ;;  %v1447_v3 = vmax.f32 %v1053_v59, 0.0  ;;  %v1511_v4 = vmax.f32 %v1309_v60, 0.0  ;;  %v3171_v5 = vpop.f32.mrf.mxu0  ;;  %v3235_v7 = vpop.f32.mrf.mxu1 }
 0x12e   : > { %2085 = vst.msk [vmem:[%s3711_s8 + $0x90] sm:$0xf] %vm2048_vm3, %v2964_v63  ;;  %2149 = vst.msk [vmem:[%s3711_s8 + $0x190] sm:$0xf] %vm2048_vm3, %v3028_v0  ;;  %v1445_v8 = vmax.f32 %v1045_v1, 0.0  ;;  %v1066_v10 = vadd.f32 %v3171_v5, %v3703_v6  ;;  %v1322_v11 = vadd.f32 %v3235_v7, %v3703_v6 }
 0x12f   : > { %v1509_v9 = vmax.f32 %v1301_v2, 0.0  ;;  %v2967_v12 = vpack.c.bf16 %v1447_v3, %v1447_v3  ;;  %v3031_v13 = vpack.c.bf16 %v1511_v4, %v1511_v4  ;;  %v1057_v14 = vpop.f32.mrf.mxu0  ;;  %v1313_v15 = vpop.f32.mrf.mxu1 }
 0x130   : > { %v2965_v16 = vpack.c.bf16 %v1445_v8, %v1445_v8  ;;  %v1450_v18 = vmax.f32 %v1066_v10, 0.0  ;;  %v1514_v19 = vmax.f32 %v1322_v11, 0.0  ;;  %v1058_v20 = vadd.f32 %v3703_v6, %v1057_v14 }
 0x131   : > { %v3029_v17 = vpack.c.bf16 %v1509_v9, %v1509_v9  ;;  %2088 = vst.msk [vmem:[%s3711_s8 + $0x9c] sm:$0xf] %vm2048_vm3, %v2967_v12  ;;  %2152 = vst.msk [vmem:[%s3711_s8 + $0x19c] sm:$0xf] %vm2048_vm3, %v3031_v13  ;;  %v1314_v21 = vadd.f32 %v3703_v6, %v1313_v15  ;;  %v3172_v22 = vpop.f32.mrf.mxu0  ;;  %v3236_v23 = vpop.f32.mrf.mxu1 }
 0x132   : > { %2086 = vst.msk [vmem:[%s3711_s8 + $0x94] sm:$0xf] %vm2048_vm3, %v2965_v16  ;;  %v2970_v24 = vpack.c.bf16 %v1450_v18, %v1450_v18  ;;  %v3034_v25 = vpack.c.bf16 %v1514_v19, %v1514_v19  ;;  %v1069_v26 = vadd.f32 %v3172_v22, %v3703_v6  ;;  %v1325_v27 = vadd.f32 %v3236_v23, %v3703_v6 }
 0x133   : > { %2150 = vst.msk [vmem:[%s3711_s8 + $0x194] sm:$0xf] %vm2048_vm3, %v3029_v17  ;;  %v1448_v28 = vmax.f32 %v1058_v20, 0.0  ;;  %v1512_v29 = vmax.f32 %v1314_v21, 0.0  ;;  %v1060_v30 = vpop.f32.mrf.mxu0  ;;  %v1316_v31 = vpop.f32.mrf.mxu1 }
 0x134   : > { %2091 = vst.msk [vmem:[%s3711_s8 + $0xa8] sm:$0xf] %vm2048_vm3, %v2970_v24  ;;  %2155 = vst.msk [vmem:[%s3711_s8 + $0x1a8] sm:$0xf] %vm2048_vm3, %v3034_v25  ;;  %v1451_v32 = vmax.f32 %v1069_v26, 0.0  ;;  %v1515_v33 = vmax.f32 %v1325_v27, 0.0  ;;  %v1061_v34 = vadd.f32 %v3703_v6, %v1060_v30  ;;  %v1317_v35 = vadd.f32 %v3703_v6, %v1316_v31 }
 0x135   : > { %v2968_v36 = vpack.c.bf16 %v1448_v28, %v1448_v28  ;;  %v3032_v37 = vpack.c.bf16 %v1512_v29, %v1512_v29  ;;  %v3175_v38 = vpop.f32.mrf.mxu0  ;;  %v3239_v39 = vpop.f32.mrf.mxu1 }
 0x136   : > { %v2971_v40 = vpack.c.bf16 %v1451_v32, %v1451_v32  ;;  %v3035_v41 = vpack.c.bf16 %v1515_v33, %v1515_v33  ;;  %v1449_v42 = vmax.f32 %v1061_v34, 0.0  ;;  %v1513_v43 = vmax.f32 %v1317_v35, 0.0 }
 0x137   : > { %2089 = vst.msk [vmem:[%s3711_s8 + $0xa0] sm:$0xf] %vm2048_vm3, %v2968_v36  ;;  %2153 = vst.msk [vmem:[%s3711_s8 + $0x1a0] sm:$0xf] %vm2048_vm3, %v3032_v37  ;;  %v1082_v44 = vadd.f32 %v3175_v38, %v3703_v6  ;;  %v1338_v45 = vadd.f32 %v3239_v39, %v3703_v6  ;;  %v1073_v46 = vpop.f32.mrf.mxu0  ;;  %v1329_v47 = vpop.f32.mrf.mxu1 }
 0x138   : > { %2092 = vst.msk [vmem:[%s3711_s8 + $0xac] sm:$0xf] %vm2048_vm3, %v2971_v40  ;;  %2156 = vst.msk [vmem:[%s3711_s8 + $0x1ac] sm:$0xf] %vm2048_vm3, %v3035_v41  ;;  %v2969_v48 = vpack.c.bf16 %v1449_v42, %v1449_v42  ;;  %v3033_v49 = vpack.c.bf16 %v1513_v43, %v1513_v43  ;;  %v1074_v50 = vadd.f32 %v3703_v6, %v1073_v46  ;;  %v4014_v43 = vld [vmem:[%s4297_s2] ss:$0 sm:$0xff] }
 0x139   : > { %v1330_v51 = vadd.f32 %v3703_v6, %v1329_v47  ;;  %v1454_v52 = vmax.f32 %v1082_v44, 0.0  ;;  %v1518_v53 = vmax.f32 %v1338_v45, 0.0  ;;  %v3176_v54 = vpop.f32.mrf.mxu0  ;;  %v3240_v55 = vpop.f32.mrf.mxu1 }
 0x13a   : > { %2090 = vst.msk [vmem:[%s3711_s8 + $0xa4] sm:$0xf] %vm2048_vm3, %v2969_v48  ;;  %2154 = vst.msk [vmem:[%s3711_s8 + $0x1a4] sm:$0xf] %vm2048_vm3, %v3033_v49  ;;  %v1452_v56 = vmax.f32 %v1074_v50, 0.0  ;;  %v1085_v58 = vadd.f32 %v3176_v54, %v3703_v6  ;;  %v1341_v59 = vadd.f32 %v3240_v55, %v3703_v6 }
 0x13b   : > { %v1516_v57 = vmax.f32 %v1330_v51, 0.0  ;;  %v2974_v60 = vpack.c.bf16 %v1454_v52, %v1454_v52  ;;  %v3038_v61 = vpack.c.bf16 %v1518_v53, %v1518_v53  ;;  %v1076_v62 = vpop.f32.mrf.mxu0  ;;  %v1332_v63 = vpop.f32.mrf.mxu1 }
 0x13c   : > { %v2972_v0 = vpack.c.bf16 %v1452_v56, %v1452_v56  ;;  %v1455_v2 = vmax.f32 %v1085_v58, 0.0  ;;  %v1519_v3 = vmax.f32 %v1341_v59, 0.0  ;;  %v1077_v4 = vadd.f32 %v3703_v6, %v1076_v62 }
 0x13d   : > { %v3036_v1 = vpack.c.bf16 %v1516_v57, %v1516_v57  ;;  %2095 = vst.msk [vmem:[%s3711_s8 + $0xb8] sm:$0xf] %vm2048_vm3, %v2974_v60  ;;  %2159 = vst.msk [vmem:[%s3711_s8 + $0x1b8] sm:$0xf] %vm2048_vm3, %v3038_v61  ;;  %v1333_v5 = vadd.f32 %v3703_v6, %v1332_v63  ;;  %v3179_v7 = vpop.f32.mrf.mxu0  ;;  %v3243_v8 = vpop.f32.mrf.mxu1 }
 0x13e   : > { %2093 = vst.msk [vmem:[%s3711_s8 + $0xb0] sm:$0xf] %vm2048_vm3, %v2972_v0  ;;  %v2975_v9 = vpack.c.bf16 %v1455_v2, %v1455_v2  ;;  %v3039_v10 = vpack.c.bf16 %v1519_v3, %v1519_v3  ;;  %v1098_v11 = vadd.f32 %v3179_v7, %v3703_v6  ;;  %v1354_v12 = vadd.f32 %v3243_v8, %v3703_v6 }
 0x13f   : > { %2157 = vst.msk [vmem:[%s3711_s8 + $0x1b0] sm:$0xf] %vm2048_vm3, %v3036_v1  ;;  %v1453_v13 = vmax.f32 %v1077_v4, 0.0  ;;  %v1517_v14 = vmax.f32 %v1333_v5, 0.0  ;;  %v1089_v15 = vpop.f32.mrf.mxu0  ;;  %v1345_v16 = vpop.f32.mrf.mxu1 }
 0x140   : > { %2096 = vst.msk [vmem:[%s3711_s8 + $0xbc] sm:$0xf] %vm2048_vm3, %v2975_v9  ;;  %2160 = vst.msk [vmem:[%s3711_s8 + $0x1bc] sm:$0xf] %vm2048_vm3, %v3039_v10  ;;  %v1458_v17 = vmax.f32 %v1098_v11, 0.0  ;;  %v1522_v18 = vmax.f32 %v1354_v12, 0.0  ;;  %v1090_v19 = vadd.f32 %v3703_v6, %v1089_v15  ;;  %v1346_v20 = vadd.f32 %v3703_v6, %v1345_v16 }
 0x141   : > { %v2973_v21 = vpack.c.bf16 %v1453_v13, %v1453_v13  ;;  %v3037_v22 = vpack.c.bf16 %v1517_v14, %v1517_v14  ;;  %v3180_v23 = vpop.f32.mrf.mxu0  ;;  %v3244_v24 = vpop.f32.mrf.mxu1 }
 0x142   : > { %v2978_v25 = vpack.c.bf16 %v1458_v17, %v1458_v17  ;;  %v3042_v26 = vpack.c.bf16 %v1522_v18, %v1522_v18  ;;  %v1456_v27 = vmax.f32 %v1090_v19, 0.0  ;;  %v1520_v28 = vmax.f32 %v1346_v20, 0.0 }
 0x143   : > { %2094 = vst.msk [vmem:[%s3711_s8 + $0xb4] sm:$0xf] %vm2048_vm3, %v2973_v21  ;;  %2158 = vst.msk [vmem:[%s3711_s8 + $0x1b4] sm:$0xf] %vm2048_vm3, %v3037_v22  ;;  %v1101_v29 = vadd.f32 %v3180_v23, %v3703_v6  ;;  %v1357_v30 = vadd.f32 %v3244_v24, %v3703_v6  ;;  %v1092_v31 = vpop.f32.mrf.mxu0  ;;  %v1348_v32 = vpop.f32.mrf.mxu1 }
 0x144   : > { %2099 = vst.msk [vmem:[%s3711_s8 + $0xc8] sm:$0xf] %vm2048_vm3, %v2978_v25  ;;  %2163 = vst.msk [vmem:[%s3711_s8 + $0x1c8] sm:$0xf] %vm2048_vm3, %v3042_v26  ;;  %v2976_v33 = vpack.c.bf16 %v1456_v27, %v1456_v27  ;;  %v3040_v34 = vpack.c.bf16 %v1520_v28, %v1520_v28  ;;  %v1093_v35 = vadd.f32 %v3703_v6, %v1092_v31 }
 0x145   : > { %v1349_v36 = vadd.f32 %v3703_v6, %v1348_v32  ;;  %v1459_v37 = vmax.f32 %v1101_v29, 0.0  ;;  %v1523_v38 = vmax.f32 %v1357_v30, 0.0  ;;  %v3183_v39 = vpop.f32.mrf.mxu0  ;;  %v3247_v40 = vpop.f32.mrf.mxu1 }
 0x146   : > { %2097 = vst.msk [vmem:[%s3711_s8 + $0xc0] sm:$0xf] %vm2048_vm3, %v2976_v33  ;;  %2161 = vst.msk [vmem:[%s3711_s8 + $0x1c0] sm:$0xf] %vm2048_vm3, %v3040_v34  ;;  %v1457_v41 = vmax.f32 %v1093_v35, 0.0  ;;  %v1114_v44 = vadd.f32 %v4014_v43, %v3183_v39  ;;  %v1370_v6 = vadd.f32 %v4014_v43, %v3247_v40 }
 0x147   : > { %v1521_v42 = vmax.f32 %v1349_v36, 0.0  ;;  %v2979_v45 = vpack.c.bf16 %v1459_v37, %v1459_v37  ;;  %v3043_v46 = vpack.c.bf16 %v1523_v38, %v1523_v38  ;;  %v1105_v47 = vpop.f32.mrf.mxu0  ;;  %v1361_v48 = vpop.f32.mrf.mxu1 }
 0x148   : > { %v2977_v49 = vpack.c.bf16 %v1457_v41, %v1457_v41  ;;  %v1462_v51 = vmax.f32 %v1114_v44, 0.0  ;;  %v1526_v52 = vmax.f32 %v1370_v6, 0.0  ;;  %v1106_v53 = vadd.f32 %v4014_v43, %v1105_v47 }
 0x149   : > { %v3041_v50 = vpack.c.bf16 %v1521_v42, %v1521_v42  ;;  %2100 = vst.msk [vmem:[%s3711_s8 + $0xcc] sm:$0xf] %vm2048_vm3, %v2979_v45  ;;  %2164 = vst.msk [vmem:[%s3711_s8 + $0x1cc] sm:$0xf] %vm2048_vm3, %v3043_v46  ;;  %v1362_v54 = vadd.f32 %v4014_v43, %v1361_v48  ;;  %v3184_v55 = vpop.f32.mrf.mxu0  ;;  %v3248_v56 = vpop.f32.mrf.mxu1 }
 0x14a   : > { %2098 = vst.msk [vmem:[%s3711_s8 + $0xc4] sm:$0xf] %vm2048_vm3, %v2977_v49  ;;  %v2982_v57 = vpack.c.bf16 %v1462_v51, %v1462_v51  ;;  %v3046_v58 = vpack.c.bf16 %v1526_v52, %v1526_v52  ;;  %v1117_v59 = vadd.f32 %v4014_v43, %v3184_v55  ;;  %v1373_v60 = vadd.f32 %v4014_v43, %v3248_v56 }
 0x14b   : > { %2162 = vst.msk [vmem:[%s3711_s8 + $0x1c4] sm:$0xf] %vm2048_vm3, %v3041_v50  ;;  %v1460_v61 = vmax.f32 %v1106_v53, 0.0  ;;  %v1524_v62 = vmax.f32 %v1362_v54, 0.0  ;;  %v1108_v63 = vpop.f32.mrf.mxu0  ;;  %v1364_v0 = vpop.f32.mrf.mxu1 }
 0x14c   : > { %2103 = vst.msk [vmem:[%s3711_s8 + $0xd8] sm:$0xf] %vm2048_vm3, %v2982_v57  ;;  %2167 = vst.msk [vmem:[%s3711_s8 + $0x1d8] sm:$0xf] %vm2048_vm3, %v3046_v58  ;;  %v1463_v1 = vmax.f32 %v1117_v59, 0.0  ;;  %v1527_v2 = vmax.f32 %v1373_v60, 0.0  ;;  %v1109_v3 = vadd.f32 %v4014_v43, %v1108_v63  ;;  %v1365_v4 = vadd.f32 %v4014_v43, %v1364_v0 }
 0x14d   : > { %v2980_v5 = vpack.c.bf16 %v1460_v61, %v1460_v61  ;;  %v3044_v7 = vpack.c.bf16 %v1524_v62, %v1524_v62  ;;  %v3187_v8 = vpop.f32.mrf.mxu0  ;;  %v3251_v9 = vpop.f32.mrf.mxu1 }
 0x14e   : > { %v2983_v10 = vpack.c.bf16 %v1463_v1, %v1463_v1  ;;  %v3047_v11 = vpack.c.bf16 %v1527_v2, %v1527_v2  ;;  %v1461_v12 = vmax.f32 %v1109_v3, 0.0  ;;  %v1525_v13 = vmax.f32 %v1365_v4, 0.0 }
 0x14f   : > { %2101 = vst.msk [vmem:[%s3711_s8 + $0xd0] sm:$0xf] %vm2048_vm3, %v2980_v5  ;;  %2165 = vst.msk [vmem:[%s3711_s8 + $0x1d0] sm:$0xf] %vm2048_vm3, %v3044_v7  ;;  %v1130_v14 = vadd.f32 %v4014_v43, %v3187_v8  ;;  %v1386_v15 = vadd.f32 %v4014_v43, %v3251_v9  ;;  %v1121_v16 = vpop.f32.mrf.mxu0  ;;  %v1377_v17 = vpop.f32.mrf.mxu1 }
 0x150   : > { %2104 = vst.msk [vmem:[%s3711_s8 + $0xdc] sm:$0xf] %vm2048_vm3, %v2983_v10  ;;  %2168 = vst.msk [vmem:[%s3711_s8 + $0x1dc] sm:$0xf] %vm2048_vm3, %v3047_v11  ;;  %v2981_v18 = vpack.c.bf16 %v1461_v12, %v1461_v12  ;;  %v3045_v19 = vpack.c.bf16 %v1525_v13, %v1525_v13  ;;  %v1122_v20 = vadd.f32 %v4014_v43, %v1121_v16 }
 0x151   : > { %v1378_v21 = vadd.f32 %v4014_v43, %v1377_v17  ;;  %v1466_v22 = vmax.f32 %v1130_v14, 0.0  ;;  %v1530_v23 = vmax.f32 %v1386_v15, 0.0  ;;  %v3188_v24 = vpop.f32.mrf.mxu0  ;;  %v3252_v25 = vpop.f32.mrf.mxu1 }
 0x152   : > { %2102 = vst.msk [vmem:[%s3711_s8 + $0xd4] sm:$0xf] %vm2048_vm3, %v2981_v18  ;;  %2166 = vst.msk [vmem:[%s3711_s8 + $0x1d4] sm:$0xf] %vm2048_vm3, %v3045_v19  ;;  %v1464_v26 = vmax.f32 %v1122_v20, 0.0  ;;  %v1133_v28 = vadd.f32 %v4014_v43, %v3188_v24  ;;  %v1389_v29 = vadd.f32 %v4014_v43, %v3252_v25 }
 0x153   : > { %v1528_v27 = vmax.f32 %v1378_v21, 0.0  ;;  %v2986_v30 = vpack.c.bf16 %v1466_v22, %v1466_v22  ;;  %v3050_v31 = vpack.c.bf16 %v1530_v23, %v1530_v23  ;;  %v1124_v32 = vpop.f32.mrf.mxu0  ;;  %v1380_v33 = vpop.f32.mrf.mxu1 }
 0x154   : > { %v2984_v34 = vpack.c.bf16 %v1464_v26, %v1464_v26  ;;  %v1467_v36 = vmax.f32 %v1133_v28, 0.0  ;;  %v1531_v37 = vmax.f32 %v1389_v29, 0.0  ;;  %v1125_v38 = vadd.f32 %v4014_v43, %v1124_v32 }
 0x155   : > { %v3048_v35 = vpack.c.bf16 %v1528_v27, %v1528_v27  ;;  %2107 = vst.msk [vmem:[%s3711_s8 + $0xe8] sm:$0xf] %vm2048_vm3, %v2986_v30  ;;  %2171 = vst.msk [vmem:[%s3711_s8 + $0x1e8] sm:$0xf] %vm2048_vm3, %v3050_v31  ;;  %v1381_v39 = vadd.f32 %v4014_v43, %v1380_v33  ;;  %v3191_v40 = vpop.f32.mrf.mxu0  ;;  %v3255_v41 = vpop.f32.mrf.mxu1 }
 0x156   : > { %2105 = vst.msk [vmem:[%s3711_s8 + $0xe0] sm:$0xf] %vm2048_vm3, %v2984_v34  ;;  %v2987_v42 = vpack.c.bf16 %v1467_v36, %v1467_v36  ;;  %v3051_v44 = vpack.c.bf16 %v1531_v37, %v1531_v37  ;;  %v1146_v6 = vadd.f32 %v4014_v43, %v3191_v40  ;;  %v1402_v45 = vadd.f32 %v4014_v43, %v3255_v41 }
 0x157   : > { %2169 = vst.msk [vmem:[%s3711_s8 + $0x1e0] sm:$0xf] %vm2048_vm3, %v3048_v35  ;;  %v1465_v46 = vmax.f32 %v1125_v38, 0.0  ;;  %v1529_v47 = vmax.f32 %v1381_v39, 0.0  ;;  %v1137_v48 = vpop.f32.mrf.mxu0  ;;  %v1393_v49 = vpop.f32.mrf.mxu1 }
 0x158   : > { %2108 = vst.msk [vmem:[%s3711_s8 + $0xec] sm:$0xf] %vm2048_vm3, %v2987_v42  ;;  %2172 = vst.msk [vmem:[%s3711_s8 + $0x1ec] sm:$0xf] %vm2048_vm3, %v3051_v44  ;;  %v1470_v50 = vmax.f32 %v1146_v6, 0.0  ;;  %v1534_v51 = vmax.f32 %v1402_v45, 0.0  ;;  %v1138_v52 = vadd.f32 %v4014_v43, %v1137_v48  ;;  %v1394_v53 = vadd.f32 %v4014_v43, %v1393_v49 }
 0x159   : > { %v2985_v54 = vpack.c.bf16 %v1465_v46, %v1465_v46  ;;  %v3049_v55 = vpack.c.bf16 %v1529_v47, %v1529_v47  ;;  %v3192_v56 = vpop.f32.mrf.mxu0  ;;  %v3256_v57 = vpop.f32.mrf.mxu1 }
 0x15a   : > { %v2990_v58 = vpack.c.bf16 %v1470_v50, %v1470_v50  ;;  %v3054_v59 = vpack.c.bf16 %v1534_v51, %v1534_v51  ;;  %v1468_v60 = vmax.f32 %v1138_v52, 0.0  ;;  %v1532_v61 = vmax.f32 %v1394_v53, 0.0 }
 0x15b   : > { %2106 = vst.msk [vmem:[%s3711_s8 + $0xe4] sm:$0xf] %vm2048_vm3, %v2985_v54  ;;  %2170 = vst.msk [vmem:[%s3711_s8 + $0x1e4] sm:$0xf] %vm2048_vm3, %v3049_v55  ;;  %v1149_v62 = vadd.f32 %v4014_v43, %v3192_v56  ;;  %v1405_v63 = vadd.f32 %v4014_v43, %v3256_v57  ;;  %v1140_v0 = vpop.f32.mrf.mxu0  ;;  %v1396_v1 = vpop.f32.mrf.mxu1 }
 0x15c   : > { %2111 = vst.msk [vmem:[%s3711_s8 + $0xf8] sm:$0xf] %vm2048_vm3, %v2990_v58  ;;  %2175 = vst.msk [vmem:[%s3711_s8 + $0x1f8] sm:$0xf] %vm2048_vm3, %v3054_v59  ;;  %v2988_v2 = vpack.c.bf16 %v1468_v60, %v1468_v60  ;;  %v3052_v3 = vpack.c.bf16 %v1532_v61, %v1532_v61  ;;  %v1141_v4 = vadd.f32 %v4014_v43, %v1140_v0 }
 0x15d   : > { %v1397_v5 = vadd.f32 %v4014_v43, %v1396_v1  ;;  %v1471_v7 = vmax.f32 %v1149_v62, 0.0  ;;  %v1535_v8 = vmax.f32 %v1405_v63, 0.0 }
 0x15e   : > { %2109 = vst.msk [vmem:[%s3711_s8 + $0xf0] sm:$0xf] %vm2048_vm3, %v2988_v2  ;;  %2173 = vst.msk [vmem:[%s3711_s8 + $0x1f0] sm:$0xf] %vm2048_vm3, %v3052_v3  ;;  %v1469_v9 = vmax.f32 %v1141_v4, 0.0 }
 0x15f   : > { %v1533_v10 = vmax.f32 %v1397_v5, 0.0  ;;  %v2991_v11 = vpack.c.bf16 %v1471_v7, %v1471_v7  ;;  %v3055_v12 = vpack.c.bf16 %v1535_v8, %v1535_v8  ;;  %2183 = sbr.rel (!%p3551_p4) target bundleno = 437 (0x1b5), region = 36 }
 0x160   : > { %v2989_v13 = vpack.c.bf16 %v1469_v9, %v1469_v9 }
 0x161   : > { %v3053_v14 = vpack.c.bf16 %v1533_v10, %v1533_v10  ;;  %2112 = vst.msk [vmem:[%s3711_s8 + $0xfc] sm:$0xf] %vm2048_vm3, %v2991_v11  ;;  %2176 = vst.msk [vmem:[%s3711_s8 + $0x1fc] sm:$0xf] %vm2048_vm3, %v3055_v12 }
 0x162   : > { %2110 = vst.msk [vmem:[%s3711_s8 + $0xf4] sm:$0xf] %vm2048_vm3, %v2989_v13 }
 0x163   : > { %2174 = vst.msk [vmem:[%s3711_s8 + $0x1f4] sm:$0xf] %vm2048_vm3, %v3053_v14 }
 0x164   : > { %s4307_s11 = smov (!%p2186_p8, %s2185_s11), 128 }
 0x165   : > { %s2913_s21 = sshll.u32 %s4307_s11, 6 }
 0x166   : > { %p2916_p9 = scmp.eq.s32.totalorder %s2913_s21, 0 }
 0x167   : > { %s4109_s22 = sshrl.u32 (!%p2916_p9), %s4307_s11, 6 }
 0x168   : > { %2194 = sbr.rel (%p2916_p9) target bundleno = 437 (0x1b5), region = 40  ;;  %p2917_p10 = scmp.le.s32.totalorder (!%p2916_p9), %s4109_s22, 0 }
 0x16d   : > { %2601 = sbr.rel (%p2917_p10) target bundleno = 420 (0x1a4), region = 112  ;;  %s4300_s15 = smov (!%p2917_p10), %s4103_s18 }
 0x16e   : > { %s4301_s20 = smov (!%p2917_p10), %s3711_s8  ;;  %s4118_s23 = smov (!%p2917_p10), 0  }
 0x16f   : > { %s4120_s24 = smov (!%p2917_p10), 0  }
 0x172 LB: >> { %v2211_v43 = vld [vmem:[%s3479_s20] sm:$0xf]  ;;  %v2213_v15 = vld [vmem:[%s3479_s20 + $0x4] sm:$0xf]  ;;  %v2215_v16 = vld [vmem:[%s3479_s20 + $0x8] sm:$0xf]  ;;  %s3487_s24 = sphi %s4120_s24, %s2205_s24   ;;  %s3483_s23 = sphi %s4118_s23, %s4302_s23   ;;  %s3479_s20 = sphi %s4301_s20, %s2344_s20   ;;  %s3475_s15 = sphi %s4300_s15, %s2345_s15  }
 0x173   : >> { %2212 = vst [vmem:[%s3475_s15] sm:$0xf] %v2211_v43  ;;  %2214 = vst [vmem:[%s3475_s15 + $0x4] sm:$0xf] %v2213_v15  ;;  %v2217_v17 = vld [vmem:[%s3479_s20 + $0xc] sm:$0xf]  ;;  %s2339_s25 = sadd.s32 1, %s3483_s23 }
 0x174   : >> { %2216 = vst [vmem:[%s3475_s15 + $0x8] sm:$0xf] %v2215_v16  ;;  %v2219_v18 = vld [vmem:[%s3479_s20 + $0x10] sm:$0xf]  ;;  %v2221_v19 = vld [vmem:[%s3479_s20 + $0x14] sm:$0xf]  ;;  %p2340_p11 = scmp.ge.s32.totalorder %s2339_s25, %s4109_s22 }
 0x175   : >> { %2218 = vst [vmem:[%s3475_s15 + $0xc] sm:$0xf] %v2217_v17  ;;  %2220 = vst [vmem:[%s3475_s15 + $0x10] sm:$0xf] %v2219_v18  ;;  %v2223_v20 = vld [vmem:[%s3479_s20 + $0x18] sm:$0xf] }
 0x176   : >> { %2222 = vst [vmem:[%s3475_s15 + $0x14] sm:$0xf] %v2221_v19  ;;  %v2225_v21 = vld [vmem:[%s3479_s20 + $0x1c] sm:$0xf]  ;;  %v2227_v22 = vld [vmem:[%s3479_s20 + $0x20] sm:$0xf] }
 0x177   : >> { %2224 = vst [vmem:[%s3475_s15 + $0x18] sm:$0xf] %v2223_v20  ;;  %2226 = vst [vmem:[%s3475_s15 + $0x1c] sm:$0xf] %v2225_v21  ;;  %v2229_v23 = vld [vmem:[%s3479_s20 + $0x24] sm:$0xf] }
 0x178   : >> { %2228 = vst [vmem:[%s3475_s15 + $0x20] sm:$0xf] %v2227_v22  ;;  %v2231_v24 = vld [vmem:[%s3479_s20 + $0x28] sm:$0xf]  ;;  %v2233_v25 = vld [vmem:[%s3479_s20 + $0x2c] sm:$0xf] }
 0x179   : >> { %2230 = vst [vmem:[%s3475_s15 + $0x24] sm:$0xf] %v2229_v23  ;;  %2232 = vst [vmem:[%s3475_s15 + $0x28] sm:$0xf] %v2231_v24  ;;  %v2235_v26 = vld [vmem:[%s3479_s20 + $0x30] sm:$0xf] }
 0x17a   : >> { %2234 = vst [vmem:[%s3475_s15 + $0x2c] sm:$0xf] %v2233_v25  ;;  %v2237_v27 = vld [vmem:[%s3479_s20 + $0x34] sm:$0xf]  ;;  %v2239_v28 = vld [vmem:[%s3479_s20 + $0x38] sm:$0xf] }
 0x17b   : >> { %2236 = vst [vmem:[%s3475_s15 + $0x30] sm:$0xf] %v2235_v26  ;;  %2238 = vst [vmem:[%s3475_s15 + $0x34] sm:$0xf] %v2237_v27  ;;  %v2241_v29 = vld [vmem:[%s3479_s20 + $0x3c] sm:$0xf] }
 0x17c   : >> { %2240 = vst [vmem:[%s3475_s15 + $0x38] sm:$0xf] %v2239_v28  ;;  %v2243_v30 = vld [vmem:[%s3479_s20 + $0x40] sm:$0xf]  ;;  %v2245_v31 = vld [vmem:[%s3479_s20 + $0x44] sm:$0xf] }
 0x17d   : >> { %2242 = vst [vmem:[%s3475_s15 + $0x3c] sm:$0xf] %v2241_v29  ;;  %2244 = vst [vmem:[%s3475_s15 + $0x40] sm:$0xf] %v2243_v30  ;;  %v2247_v32 = vld [vmem:[%s3479_s20 + $0x48] sm:$0xf] }
 0x17e   : >> { %2246 = vst [vmem:[%s3475_s15 + $0x44] sm:$0xf] %v2245_v31  ;;  %v2249_v33 = vld [vmem:[%s3479_s20 + $0x4c] sm:$0xf]  ;;  %v2251_v34 = vld [vmem:[%s3479_s20 + $0x50] sm:$0xf] }
 0x17f   : >> { %2248 = vst [vmem:[%s3475_s15 + $0x48] sm:$0xf] %v2247_v32  ;;  %2250 = vst [vmem:[%s3475_s15 + $0x4c] sm:$0xf] %v2249_v33  ;;  %v2253_v35 = vld [vmem:[%s3479_s20 + $0x54] sm:$0xf] }
 0x180   : >> { %2252 = vst [vmem:[%s3475_s15 + $0x50] sm:$0xf] %v2251_v34  ;;  %v2255_v36 = vld [vmem:[%s3479_s20 + $0x58] sm:$0xf]  ;;  %v2257_v37 = vld [vmem:[%s3479_s20 + $0x5c] sm:$0xf] }
 0x181   : >> { %2254 = vst [vmem:[%s3475_s15 + $0x54] sm:$0xf] %v2253_v35  ;;  %2256 = vst [vmem:[%s3475_s15 + $0x58] sm:$0xf] %v2255_v36  ;;  %v2259_v38 = vld [vmem:[%s3479_s20 + $0x60] sm:$0xf] }
 0x182   : >> { %2258 = vst [vmem:[%s3475_s15 + $0x5c] sm:$0xf] %v2257_v37  ;;  %v2261_v39 = vld [vmem:[%s3479_s20 + $0x64] sm:$0xf]  ;;  %v2263_v40 = vld [vmem:[%s3479_s20 + $0x68] sm:$0xf] }
 0x183   : >> { %2260 = vst [vmem:[%s3475_s15 + $0x60] sm:$0xf] %v2259_v38  ;;  %2262 = vst [vmem:[%s3475_s15 + $0x64] sm:$0xf] %v2261_v39  ;;  %v2265_v41 = vld [vmem:[%s3479_s20 + $0x6c] sm:$0xf] }
 0x184   : >> { %2264 = vst [vmem:[%s3475_s15 + $0x68] sm:$0xf] %v2263_v40  ;;  %v2267_v42 = vld [vmem:[%s3479_s20 + $0x70] sm:$0xf]  ;;  %v2269_v44 = vld [vmem:[%s3479_s20 + $0x74] sm:$0xf] }
 0x185   : >> { %2266 = vst [vmem:[%s3475_s15 + $0x6c] sm:$0xf] %v2265_v41  ;;  %2268 = vst [vmem:[%s3475_s15 + $0x70] sm:$0xf] %v2267_v42  ;;  %v2271_v6 = vld [vmem:[%s3479_s20 + $0x78] sm:$0xf] }
 0x186   : >> { %2270 = vst [vmem:[%s3475_s15 + $0x74] sm:$0xf] %v2269_v44  ;;  %v2273_v45 = vld [vmem:[%s3479_s20 + $0x7c] sm:$0xf]  ;;  %v2275_v46 = vld [vmem:[%s3479_s20 + $0x80] sm:$0xf] }
 0x187   : >> { %2272 = vst [vmem:[%s3475_s15 + $0x78] sm:$0xf] %v2271_v6  ;;  %2274 = vst [vmem:[%s3475_s15 + $0x7c] sm:$0xf] %v2273_v45  ;;  %v2277_v47 = vld [vmem:[%s3479_s20 + $0x84] sm:$0xf] }
 0x188   : >> { %2276 = vst [vmem:[%s3475_s15 + $0x80] sm:$0xf] %v2275_v46  ;;  %v2279_v48 = vld [vmem:[%s3479_s20 + $0x88] sm:$0xf]  ;;  %v2281_v49 = vld [vmem:[%s3479_s20 + $0x8c] sm:$0xf] }
 0x189   : >> { %2278 = vst [vmem:[%s3475_s15 + $0x84] sm:$0xf] %v2277_v47  ;;  %2280 = vst [vmem:[%s3475_s15 + $0x88] sm:$0xf] %v2279_v48  ;;  %v2283_v50 = vld [vmem:[%s3479_s20 + $0x90] sm:$0xf] }
 0x18a   : >> { %2282 = vst [vmem:[%s3475_s15 + $0x8c] sm:$0xf] %v2281_v49  ;;  %v2285_v51 = vld [vmem:[%s3479_s20 + $0x94] sm:$0xf]  ;;  %v2287_v52 = vld [vmem:[%s3479_s20 + $0x98] sm:$0xf] }
 0x18b   : >> { %2284 = vst [vmem:[%s3475_s15 + $0x90] sm:$0xf] %v2283_v50  ;;  %2286 = vst [vmem:[%s3475_s15 + $0x94] sm:$0xf] %v2285_v51  ;;  %v2289_v53 = vld [vmem:[%s3479_s20 + $0x9c] sm:$0xf] }
 0x18c   : >> { %2288 = vst [vmem:[%s3475_s15 + $0x98] sm:$0xf] %v2287_v52  ;;  %v2291_v54 = vld [vmem:[%s3479_s20 + $0xa0] sm:$0xf]  ;;  %v2293_v55 = vld [vmem:[%s3479_s20 + $0xa4] sm:$0xf] }
 0x18d   : >> { %2290 = vst [vmem:[%s3475_s15 + $0x9c] sm:$0xf] %v2289_v53  ;;  %2292 = vst [vmem:[%s3475_s15 + $0xa0] sm:$0xf] %v2291_v54  ;;  %v2295_v56 = vld [vmem:[%s3479_s20 + $0xa8] sm:$0xf] }
 0x18e   : >> { %2294 = vst [vmem:[%s3475_s15 + $0xa4] sm:$0xf] %v2293_v55  ;;  %v2297_v57 = vld [vmem:[%s3479_s20 + $0xac] sm:$0xf]  ;;  %v2299_v58 = vld [vmem:[%s3479_s20 + $0xb0] sm:$0xf] }
 0x18f   : >> { %2296 = vst [vmem:[%s3475_s15 + $0xa8] sm:$0xf] %v2295_v56  ;;  %2298 = vst [vmem:[%s3475_s15 + $0xac] sm:$0xf] %v2297_v57  ;;  %v2301_v59 = vld [vmem:[%s3479_s20 + $0xb4] sm:$0xf] }
 0x190   : >> { %2300 = vst [vmem:[%s3475_s15 + $0xb0] sm:$0xf] %v2299_v58  ;;  %v2303_v60 = vld [vmem:[%s3479_s20 + $0xb8] sm:$0xf]  ;;  %v2305_v61 = vld [vmem:[%s3479_s20 + $0xbc] sm:$0xf] }
 0x191   : >> { %2302 = vst [vmem:[%s3475_s15 + $0xb4] sm:$0xf] %v2301_v59  ;;  %2304 = vst [vmem:[%s3475_s15 + $0xb8] sm:$0xf] %v2303_v60  ;;  %v2307_v62 = vld [vmem:[%s3479_s20 + $0xc0] sm:$0xf] }
 0x192   : >> { %2306 = vst [vmem:[%s3475_s15 + $0xbc] sm:$0xf] %v2305_v61  ;;  %v2309_v63 = vld [vmem:[%s3479_s20 + $0xc4] sm:$0xf]  ;;  %v2311_v0 = vld [vmem:[%s3479_s20 + $0xc8] sm:$0xf] }
 0x193   : >> { %2308 = vst [vmem:[%s3475_s15 + $0xc0] sm:$0xf] %v2307_v62  ;;  %2310 = vst [vmem:[%s3475_s15 + $0xc4] sm:$0xf] %v2309_v63  ;;  %v2313_v1 = vld [vmem:[%s3479_s20 + $0xcc] sm:$0xf] }
 0x194   : >> { %2312 = vst [vmem:[%s3475_s15 + $0xc8] sm:$0xf] %v2311_v0  ;;  %v2315_v2 = vld [vmem:[%s3479_s20 + $0xd0] sm:$0xf]  ;;  %v2317_v3 = vld [vmem:[%s3479_s20 + $0xd4] sm:$0xf] }
 0x195   : >> { %2314 = vst [vmem:[%s3475_s15 + $0xcc] sm:$0xf] %v2313_v1  ;;  %2316 = vst [vmem:[%s3475_s15 + $0xd0] sm:$0xf] %v2315_v2  ;;  %v2319_v4 = vld [vmem:[%s3479_s20 + $0xd8] sm:$0xf] }
 0x196   : >> { %2318 = vst [vmem:[%s3475_s15 + $0xd4] sm:$0xf] %v2317_v3  ;;  %v2321_v5 = vld [vmem:[%s3479_s20 + $0xdc] sm:$0xf]  ;;  %v2323_v7 = vld [vmem:[%s3479_s20 + $0xe0] sm:$0xf] }
 0x197   : >> { %2320 = vst [vmem:[%s3475_s15 + $0xd8] sm:$0xf] %v2319_v4  ;;  %2322 = vst [vmem:[%s3475_s15 + $0xdc] sm:$0xf] %v2321_v5  ;;  %v2325_v8 = vld [vmem:[%s3479_s20 + $0xe4] sm:$0xf] }
 0x198   : >> { %2324 = vst [vmem:[%s3475_s15 + $0xe0] sm:$0xf] %v2323_v7  ;;  %v2327_v9 = vld [vmem:[%s3479_s20 + $0xe8] sm:$0xf]  ;;  %v2329_v10 = vld [vmem:[%s3479_s20 + $0xec] sm:$0xf] }
 0x199   : >> { %2326 = vst [vmem:[%s3475_s15 + $0xe4] sm:$0xf] %v2325_v8  ;;  %2328 = vst [vmem:[%s3475_s15 + $0xe8] sm:$0xf] %v2327_v9  ;;  %v2331_v11 = vld [vmem:[%s3479_s20 + $0xf0] sm:$0xf] }
 0x19a   : >> { %2330 = vst [vmem:[%s3475_s15 + $0xec] sm:$0xf] %v2329_v10  ;;  %v2333_v12 = vld [vmem:[%s3479_s20 + $0xf4] sm:$0xf]  ;;  %v2335_v13 = vld [vmem:[%s3479_s20 + $0xf8] sm:$0xf] }
 0x19b   : >> { %2332 = vst [vmem:[%s3475_s15 + $0xf0] sm:$0xf] %v2331_v11  ;;  %2334 = vst [vmem:[%s3475_s15 + $0xf4] sm:$0xf] %v2333_v12  ;;  %v2337_v14 = vld [vmem:[%s3479_s20 + $0xfc] sm:$0xf] }
 0x19c   : >> { %2336 = vst [vmem:[%s3475_s15 + $0xf8] sm:$0xf] %v2335_v13  ;;  %2338 = vst [vmem:[%s3475_s15 + $0xfc] sm:$0xf] %v2337_v14  ;;  %s4309_s25 = smov (%p2340_p11, %s2339_s25), 0  ;;  %s2205_s24 = sadd.s32 1, %s3487_s24  }
 0x19d   : >> { %s2918_s26 = sshll.u32 %s4309_s25, 8  ;;  %p2204_p12 = scmp.ge.s32.totalorder %s2205_s24, %s4109_s22 }
 0x19e   : >> { %s2344_s20 = scalar_lea.vmem %s3711_s8, %s2918_s26 [#allocation2]   ;;  %s2345_s15 = scalar_lea.vmem %s4103_s18, %s2918_s26  }
 0x19f   : >> { %s4302_s23 = smov %s4309_s25  ;;  %2207 = sbr.rel (!%p2204_p12) target bundleno = 370 (0x172), region = 118 }
 0x1a4 PF: > { %s4277_s27 = sand.u32 63, %s4307_s11   ;;  %s3057_s28 = sshll.u32 %s4109_s22, 8 }
 0x1a5   : > { %s2350_s29 = scalar_lea.vmem %s3711_s8, %s3057_s28 [#allocation2]   ;;  %s2352_s30 = scalar_lea.vmem %s4103_s18, %s3057_s28  }
 0x1a6   : > { %p2923_p13 = scmp.le.s32.totalorder %s4277_s27, 0 }
 0x1a7   : > { %s3489_s4 = smov (!%p2923_p13), %s2352_s30   ;;  %s3493_s5 = smov (!%p2923_p13), %s2350_s29  }
 0x1a8   : > { %2615 = sbr.rel (%p2923_p13) target bundleno = 437 (0x1b5), region = 123  ;;  %s3497_s6 = smov (!%p2923_p13), 0  }
 0x1a9   : > { %s3501_s7 = smov (!%p2923_p13), 0  }
 0x1ad LB: >> { %v2362_v43 = vld [vmem:[%s3495_s5] sm:$0xf]  ;;  %s2364_s9 = sadd.s32 1, %s3499_s6  ;;  %s2356_s7 = sadd.s32 1, %s3503_s7   ;;  %s3503_s7 = sphi %s3501_s7, %s2356_s7   ;;  %s3499_s6 = sphi %s3497_s6, %s3498_s6   ;;  %s3495_s5 = sphi %s3493_s5, %s2369_s5   ;;  %s3491_s4 = sphi %s3489_s4, %s2370_s4  }
 0x1ae   : >> { %2363 = vst [vmem:[%s3491_s4] sm:$0xf] %v2362_v43  ;;  %p2365_p0 = scmp.ge.s32.totalorder %s2364_s9, %s4277_s27  ;;  %p2355_p1 = scmp.ge.s32.totalorder %s2356_s7, %s4277_s27 }
 0x1b0   : >> { %s4311_s9 = smov (%p2365_p0, %s2364_s9), 0  ;;  %2358 = sbr.rel (!%p2355_p1) target bundleno = 429 (0x1ad), region = 129 }
 0x1b1   : >> { %s2924_s8 = sshll.u32 %s4311_s9, 2  ;;  %s3498_s6 = smov %s4311_s9  }
 0x1b2   : >> { %s2369_s5 = scalar_lea.vmem %s2350_s29, %s2924_s8 [#allocation2]   ;;  %s2370_s4 = scalar_lea.vmem %s2352_s30, %s2924_s8  }
 0x1b5 PF: > { %p10_p2 = scmp.ge.s32.totalorder %s3541_s16, 4   ;;  %s4303_s12 = smov %s3467_s13 }
 0x1b6   : > { %s4304_s13 = smov %s3549_s19  ;;  %s4305_s14 = smov %s3541_s16 }
 0x1b7   :  { %12 = sbr.rel (!%p10_p2) target bundleno = 2 (0x2), region = 140 }

// kernel: mnist_cnn_forward.8
= control target key start
LH: loop header
LB: loop body
LE: loop exit
PB: predicated region body
PF: predicated region fallthrough
CT: control target
= control target key end

     0   :  { %vm37_vm0 = vcmask 1043456   ;;  %vm38_vm1 = vsmask.f32 3328  ;;  %s201_s18 = smov 64   ;;  %vm152_vm3 = vcmask 519168   ;;  %s544_s0 = inlined_call_operand.vmem [shape: bf16[14,2,7,128], index: 0, kind: input, shape index: {}]   ;;  %s545_s1 = inlined_call_operand.vmem [shape: bf16[14,7,64], index: 1, kind: output, shape index: {}]  }
   0x1   :  { %v13_v0 = vld [vmem:[%s544_s0 + $0x10] sm:$0xf]  ;;  %v14_v1 = vld [vmem:[%s544_s0 + $0x14] sm:$0xf]  ;;  %vm219_vm2 = vmand %vm37_vm0, %vm38_vm1 }
   0x2   :  { %v46_v3 = vsel %vm219_vm2, %v13_v0, 4286644096  ;;  %v47_v4 = vsel %vm219_vm2, %v14_v1, 4286644096  ;;  %v9_v5 = vld [vmem:[%s544_s0] sm:$0xf]  ;;  %vm414_vm4 = vmand %vm152_vm3, %vm38_vm1 }
   0x3   :  { %v230_v6 = vmax.bf16 %v47_v4, %v46_v3  ;;  %v10_v7 = vld [vmem:[%s544_s0 + $0x4] sm:$0xf]  ;;  %v40_v8 = vsel %vm219_vm2, %v9_v5, 4286644096  ;;  %v15_v9 = vld [vmem:[%s544_s0 + $0x18] sm:$0xf] }
   0x4   :  { %v41_v10 = vsel %vm219_vm2, %v10_v7, 4286644096  ;;  %v16_v11 = vld [vmem:[%s544_s0 + $0x1c] sm:$0xf]  ;;  %v49_v12 = vsel %vm219_vm2, %v15_v9, 4286644096 }
   0x5   :  { %100 = vrot.lane.b32.xlu1 %v230_v6, %s201_s18  ;;  %v249_v13 = vmax.bf16 %v41_v10, %v40_v8  ;;  %v50_v14 = vsel %vm219_vm2, %v16_v11, 4286644096  ;;  %v11_v15 = vld [vmem:[%s544_s0 + $0x8] sm:$0xf]  ;;  %v12_v16 = vld [vmem:[%s544_s0 + $0xc] sm:$0xf] }
   0x6   :  { %v259_v17 = vmax.bf16 %v50_v14, %v49_v12  ;;  %v43_v18 = vsel %vm219_vm2, %v11_v15, 4286644096  ;;  %v44_v19 = vsel %vm219_vm2, %v12_v16, 4286644096  ;;  %v19_v20 = vld [vmem:[%s544_s0 + $0x28] sm:$0xf] }
   0x7   :  { %96 = vrot.lane.b32.xlu0 %v249_v13, %s201_s18  ;;  %v270_v21 = vmax.bf16 %v44_v19, %v43_v18  ;;  %v20_v22 = vld [vmem:[%s544_s0 + $0x2c] sm:$0xf]  ;;  %v55_v23 = vsel %vm219_vm2, %v19_v20, 4286644096  ;;  %v17_v24 = vld [vmem:[%s544_s0 + $0x20] sm:$0xf] }
   0x8   :  { %v56_v25 = vsel %vm219_vm2, %v20_v22, 4286644096  ;;  %v18_v26 = vld [vmem:[%s544_s0 + $0x24] sm:$0xf]  ;;  %v52_v27 = vsel %vm219_vm2, %v17_v24, 4286644096 }
   0x9   :  { %102 = vrot.lane.b32.xlu1 %v259_v17, %s201_s18  ;;  %v289_v28 = vmax.bf16 %v56_v25, %v55_v23  ;;  %v53_v29 = vsel %vm219_vm2, %v18_v26, 4286644096  ;;  %v23_v30 = vld [vmem:[%s544_s0 + $0x38] sm:$0xf]  ;;  %v24_v31 = vld [vmem:[%s544_s0 + $0x3c] sm:$0xf] }
   0xa   :  { %v61_v32 = vsel %vm219_vm2, %v23_v30, 4286644096  ;;  %v62_v33 = vsel %vm219_vm2, %v24_v31, 4286644096  ;;  %v21_v34 = vld [vmem:[%s544_s0 + $0x30] sm:$0xf]  ;;  %v308_v35 = vmax.bf16 %v53_v29, %v52_v27 }
   0xb   :  { %98 = vrot.lane.b32.xlu0 %v270_v21, %s201_s18  ;;  %v22_v36 = vld [vmem:[%s544_s0 + $0x34] sm:$0xf]  ;;  %v27_v37 = vld [vmem:[%s544_s0 + $0x48] sm:$0xf]  ;;  %v58_v38 = vsel %vm219_vm2, %v21_v34, 4286644096  ;;  %v325_v41 = vmax.bf16 %v62_v33, %v61_v32 }
   0xc   :  { %v59_v39 = vsel %vm219_vm2, %v22_v36, 4286644096  ;;  %v28_v40 = vld [vmem:[%s544_s0 + $0x4c] sm:$0xf]  ;;  %v25_v42 = vld [vmem:[%s544_s0 + $0x40] sm:$0xf] }
   0xd   :  { %106 = vrot.lane.b32.xlu1 %v289_v28, %s201_s18  ;;  %v26_v43 = vld [vmem:[%s544_s0 + $0x44] sm:$0xf]  ;;  %v67_v44 = vsel %vm219_vm2, %v27_v37, 4286644096  ;;  %v68_v45 = vsel %vm219_vm2, %v28_v40, 4286644096  ;;  %v339_v46 = vmax.bf16 %v59_v39, %v58_v38 }
   0xe   :  { %v31_v47 = vld [vmem:[%s544_s0 + $0x58] sm:$0xf]  ;;  %v32_v48 = vld [vmem:[%s544_s0 + $0x5c] sm:$0xf]  ;;  %v64_v49 = vsel %vm219_vm2, %v25_v42, 4286644096  ;;  %v353_v51 = vmax.bf16 %v68_v45, %v67_v44 }
   0xf   :  { %104 = vrot.lane.b32.xlu0 %v308_v35, %s201_s18  ;;  %v65_v50 = vsel %vm219_vm2, %v26_v43, 4286644096  ;;  %v29_v52 = vld [vmem:[%s544_s0 + $0x50] sm:$0xf]  ;;  %v30_v53 = vld [vmem:[%s544_s0 + $0x54] sm:$0xf] }
  0x10   :  { %v73_v54 = vsel %vm219_vm2, %v31_v47, 4286644096  ;;  %v74_v55 = vsel %vm219_vm2, %v32_v48, 4286644096  ;;  %v367_v56 = vmax.bf16 %v65_v50, %v64_v49  ;;  %v35_v57 = vld [vmem:[%s544_s0 + $0x68] sm:$0xf] }
  0x11   :  { %110 = vrot.lane.b32.xlu1 %v325_v41, %s201_s18  ;;  %v36_v58 = vld [vmem:[%s544_s0 + $0x6c] sm:$0xf]  ;;  %v70_v59 = vsel %vm219_vm2, %v29_v52, 4286644096  ;;  %v71_v60 = vsel %vm219_vm2, %v30_v53, 4286644096  ;;  %v381_v61 = vmax.bf16 %v74_v55, %v73_v54 }
  0x12   :  { %v33_v62 = vld [vmem:[%s544_s0 + $0x60] sm:$0xf]  ;;  %v34_v63 = vld [vmem:[%s544_s0 + $0x64] sm:$0xf]  ;;  %v79_v0 = vsel %vm219_vm2, %v35_v57, 4286644096  ;;  %v395_v3 = vmax.bf16 %v71_v60, %v70_v59 }
  0x13   :  { %108 = vrot.lane.b32.xlu0 %v339_v46, %s201_s18  ;;  %v80_v1 = vsel %vm219_vm2, %v36_v58, 4286644096  ;;  %v76_v4 = vsel %vm219_vm2, %v33_v62, 4286644096  ;;  %v77_v5 = vsel %vm219_vm2, %v34_v63, 4286644096 }
  0x14   :  { %v403_v7 = vmax.bf16 %v80_v1, %v79_v0  ;;  %v407_v8 = vmax.bf16 %v77_v5, %v76_v4  ;;  %v160_v9 = vld [vmem:[%s545_s1 + $0x8] sm:$0xf]  ;;  %v154_v12 = vld [vmem:[%s545_s1] sm:$0xf]  ;;  %v163_v18 = vld [vmem:[%s545_s1 + $0xc] sm:$0xf] }
  0x15   :  { %114 = vrot.lane.b32.xlu1 %v353_v51, %s201_s18  ;;  %v181_v39 = vld [vmem:[%s545_s1 + $0x24] sm:$0xf]  ;;  %v178_v43 = vld [vmem:[%s545_s1 + $0x20] sm:$0xf]  ;;  %v187_v47 = vld [vmem:[%s545_s1 + $0x2c] sm:$0xf] }
  0x16   :  { %v193_v55 = vld [vmem:[%s545_s1 + $0x34] sm:$0xf]  ;;  %v190_v59 = vld [vmem:[%s545_s1 + $0x30] sm:$0xf] }
  0x17   :  { %112 = vrot.lane.b32.xlu0 %v367_v56, %s201_s18 }
  0x19   :  { %118 = vrot.lane.b32.xlu1 %v381_v61, %s201_s18 }
  0x1b   :  { %116 = vrot.lane.b32.xlu0 %v395_v3, %s201_s18 }
  0x1d   :  { %122 = vrot.lane.b32.xlu1 %v403_v7, %s201_s18 }
  0x1f   :  { %120 = vrot.lane.b32.xlu0 %v407_v8, %s201_s18 }
  0x77   :  { %v101_v10 = vpop.permute.xlu1 %100 }
  0x78   :  { %v140_v11 = vmax.bf16 %v101_v10, %v230_v6 }
  0x79   :  { %v97_v14 = vpop.permute.xlu0 %96 }
  0x7a   :  { %v161_v15 = vsel %vm414_vm4, %v140_v11, %v160_v9  ;;  %v138_v16 = vmax.bf16 %v97_v14, %v249_v13  ;;  %v157_v13 = vld [vmem:[%s545_s1 + $0x4] sm:$0xf] }
  0x7b   :  { %162 = vst [vmem:[%s545_s1 + $0x8] sm:$0xf] %v161_v15  ;;  %v103_v19 = vpop.permute.xlu1 %102 }
  0x7c   :  { %v155_v6 = vsel %vm414_vm4, %v138_v16, %v154_v12  ;;  %v141_v20 = vmax.bf16 %v103_v19, %v259_v17  ;;  %v169_v17 = vld [vmem:[%s545_s1 + $0x14] sm:$0xf] }
  0x7d   :  { %156 = vst [vmem:[%s545_s1] sm:$0xf] %v155_v6  ;;  %v99_v22 = vpop.permute.xlu0 %98 }
  0x7e   :  { %v164_v23 = vsel %vm414_vm4, %v141_v20, %v163_v18  ;;  %v139_v24 = vmax.bf16 %v99_v22, %v270_v21  ;;  %v166_v21 = vld [vmem:[%s545_s1 + $0x10] sm:$0xf] }
  0x7f   :  { %165 = vst [vmem:[%s545_s1 + $0xc] sm:$0xf] %v164_v23  ;;  %v107_v25 = vpop.permute.xlu1 %106 }
  0x80   :  { %v158_v26 = vsel %vm414_vm4, %v139_v24, %v157_v13  ;;  %v143_v27 = vmax.bf16 %v107_v25, %v289_v28  ;;  %v175_v28 = vld [vmem:[%s545_s1 + $0x1c] sm:$0xf] }
  0x81   :  { %159 = vst [vmem:[%s545_s1 + $0x4] sm:$0xf] %v158_v26  ;;  %v105_v29 = vpop.permute.xlu0 %104 }
  0x82   :  { %v170_v30 = vsel %vm414_vm4, %v143_v27, %v169_v17  ;;  %v142_v31 = vmax.bf16 %v105_v29, %v308_v35  ;;  %v172_v35 = vld [vmem:[%s545_s1 + $0x18] sm:$0xf] }
  0x83   :  { %171 = vst [vmem:[%s545_s1 + $0x14] sm:$0xf] %v170_v30  ;;  %v111_v32 = vpop.permute.xlu1 %110 }
  0x84   :  { %v167_v33 = vsel %vm414_vm4, %v142_v31, %v166_v21  ;;  %v145_v34 = vmax.bf16 %v111_v32, %v325_v41 }
  0x85   :  { %168 = vst [vmem:[%s545_s1 + $0x10] sm:$0xf] %v167_v33  ;;  %v109_v36 = vpop.permute.xlu0 %108 }
  0x86   :  { %v176_v37 = vsel %vm414_vm4, %v145_v34, %v175_v28  ;;  %v144_v38 = vmax.bf16 %v109_v36, %v339_v46 }
  0x87   :  { %177 = vst [vmem:[%s545_s1 + $0x1c] sm:$0xf] %v176_v37  ;;  %v115_v40 = vpop.permute.xlu1 %114 }
  0x88   :  { %v173_v41 = vsel %vm414_vm4, %v144_v38, %v172_v35  ;;  %v147_v42 = vmax.bf16 %v115_v40, %v353_v51  ;;  %v184_v51 = vld [vmem:[%s545_s1 + $0x28] sm:$0xf] }
  0x89   :  { %174 = vst [vmem:[%s545_s1 + $0x18] sm:$0xf] %v173_v41  ;;  %v113_v44 = vpop.permute.xlu0 %112 }
  0x8a   :  { %v182_v45 = vsel %vm414_vm4, %v147_v42, %v181_v39  ;;  %v146_v46 = vmax.bf16 %v113_v44, %v367_v56 }
  0x8b   :  { %183 = vst [vmem:[%s545_s1 + $0x24] sm:$0xf] %v182_v45  ;;  %v119_v48 = vpop.permute.xlu1 %118 }
  0x8c   :  { %v179_v49 = vsel %vm414_vm4, %v146_v46, %v178_v43  ;;  %v149_v50 = vmax.bf16 %v119_v48, %v381_v61 }
  0x8d   :  { %180 = vst [vmem:[%s545_s1 + $0x20] sm:$0xf] %v179_v49  ;;  %v117_v52 = vpop.permute.xlu0 %116 }
  0x8e   :  { %v188_v53 = vsel %vm414_vm4, %v149_v50, %v187_v47  ;;  %v148_v54 = vmax.bf16 %v117_v52, %v395_v3 }
  0x8f   :  { %189 = vst [vmem:[%s545_s1 + $0x2c] sm:$0xf] %v188_v53  ;;  %v123_v56 = vpop.permute.xlu1 %122 }
  0x90   :  { %v185_v57 = vsel %vm414_vm4, %v148_v54, %v184_v51  ;;  %v151_v58 = vmax.bf16 %v123_v56, %v403_v7 }
  0x91   :  { %186 = vst [vmem:[%s545_s1 + $0x28] sm:$0xf] %v185_v57  ;;  %v121_v60 = vpop.permute.xlu0 %120 }
  0x92   :  { %v194_v61 = vsel %vm414_vm4, %v151_v58, %v193_v55  ;;  %v150_v62 = vmax.bf16 %v121_v60, %v407_v8 }
  0x93   :  { %195 = vst [vmem:[%s545_s1 + $0x34] sm:$0xf] %v194_v61 }
  0x94   :  { %v191_v63 = vsel %vm414_vm4, %v150_v62, %v190_v59 }
  0x95   :  { %192 = vst [vmem:[%s545_s1 + $0x30] sm:$0xf] %v191_v63 }

// kernel: mnist_cnn_forward.7
= control target key start
LH: loop header
LB: loop body
LE: loop exit
PB: predicated region body
PF: predicated region fallthrough
CT: control target
= control target key end

     0   :  { %v3566_v0 = vmov 0   ;;  %v3567_v40 = vmov 0.0   ;;  %vm3568_vm0 = vmmov 0   ;;  %vm1482_vm1 = vcmask 261120   ;;  %s4777_s1 = inlined_call_operand.vmem [shape: bf16[800,64], index: 1, kind: input, shape index: {}]   ;;  %s4778_s0 = inlined_call_operand.vmem [shape: bf16[392,800], index: 0, kind: input, shape index: {}]   ;;  %s4779_s2 = inlined_call_operand.vmem [shape: f32[1,64], index: 2, kind: input, shape index: {}]   ;;  %s4780_s3 = inlined_call_operand.vmem [shape: bf16[392,64], index: 3, kind: output, shape index: {}]  }
   0x1   :  { %1558 = vmatprep.subr.bf16.mxu0 %v3566_v0  ;;  %1790 = vmatprep.subr.bf16.mxu1 %v3566_v0  ;;  %v3269_v1 = vld [vmem:[%s4777_s1 + $0x38] sm:$0xff]   ;;  %v3271_v3 = vld [vmem:[%s4777_s1 + $0x30] sm:$0xff]   ;;  %v3273_v5 = vld [vmem:[%s4777_s1 + $0x28] sm:$0xff]   ;;  %vm2732_vm2 = vcmask 519168  }
   0x2   :  { %v3270_v2 = vld [vmem:[%s4777_s1 + $0xb8] sm:$0xff]   ;;  %1559 = vmatpush1.bf16.msra.mxu0 %v3269_v1  ;;  %v3272_v4 = vld [vmem:[%s4777_s1 + $0xb0] sm:$0xff]   ;;  %v3274_v6 = vld [vmem:[%s4777_s1 + $0xa8] sm:$0xff]  }
   0x3   :  { %1791 = vmatpush1.bf16.msra.mxu1 %v3270_v2  ;;  %1560 = vmatprep.subr.bf16.mxu0 %v3566_v0  ;;  %v3275_v7 = vld [vmem:[%s4777_s1 + $0x20] sm:$0xff]   ;;  %v3277_v9 = vld [vmem:[%s4777_s1 + $0x18] sm:$0xff]   ;;  %v3279_v11 = vld [vmem:[%s4777_s1 + $0x10] sm:$0xff]  }
   0x4   :  { %1792 = vmatprep.subr.bf16.mxu1 %v3566_v0  ;;  %v3276_v8 = vld [vmem:[%s4777_s1 + $0xa0] sm:$0xff]   ;;  %v3278_v10 = vld [vmem:[%s4777_s1 + $0x98] sm:$0xff]   ;;  %v3280_v12 = vld [vmem:[%s4777_s1 + $0x90] sm:$0xff]  }
   0x5   :  { %v3281_v13 = vld [vmem:[%s4777_s1 + $0x8] sm:$0xff]   ;;  %v3283_v15 = vld [vmem:[%s4777_s1] sm:$0xff]   ;;  %v3285_v17 = vld [vmem:[%s4777_s1 + $0x78] sm:$0xff]  }
   0x6   :  { %1561 = vmatpush1.bf16.msra.mxu0 %v3271_v3  ;;  %v3282_v14 = vld [vmem:[%s4777_s1 + $0x88] sm:$0xff]   ;;  %v3284_v16 = vld [vmem:[%s4777_s1 + $0x80] sm:$0xff]   ;;  %v3286_v18 = vld [vmem:[%s4777_s1 + $0xf8] sm:$0xff]  }
   0x7   :  { %1793 = vmatpush1.bf16.msra.mxu1 %v3272_v4  ;;  %1562 = vmatprep.subr.bf16.mxu0 %v3566_v0  ;;  %v3303_v19 = vld [vmem:[%s4778_s0 + $0x4] ss:$28 sps:$4 sm:$0xff]   ;;  %v3287_v20 = vld [vmem:[%s4777_s1 + $0x70] sm:$0xff]   ;;  %v3306_v21 = vld [vmem:[%s4778_s0 + $0xc] ss:$28 sps:$4 sm:$0xff]  }
   0x8   :  { %1794 = vmatprep.subr.bf16.mxu1 %v3566_v0  ;;  %v3288_v22 = vld [vmem:[%s4777_s1 + $0xf0] sm:$0xff]   ;;  %1590 = vmatprep.mubr.bf16.mxu0 %v3303_v19  ;;  %v3289_v23 = vld [vmem:[%s4777_s1 + $0x68] sm:$0xff]   ;;  %v3291_v25 = vld [vmem:[%s4777_s1 + $0x60] sm:$0xff]  }
   0x9   :  { %1822 = vmatprep.mubr.bf16.mxu1 %v3306_v21  ;;  %v3290_v24 = vld [vmem:[%s4777_s1 + $0xe8] sm:$0xff]   ;;  %v3292_v26 = vld [vmem:[%s4777_s1 + $0xe0] sm:$0xff]   ;;  %v3293_v27 = vld [vmem:[%s4777_s1 + $0x58] sm:$0xff]  }
   0xa   :  { %1563 = vmatpush1.bf16.msra.mxu0 %v3273_v5  ;;  %v3294_v28 = vld [vmem:[%s4777_s1 + $0xd8] sm:$0xff]   ;;  %v3295_v29 = vld [vmem:[%s4777_s1 + $0x50] sm:$0xff]   ;;  %v3297_v31 = vld [vmem:[%s4777_s1 + $0x48] sm:$0xff]  }
   0xb   :  { %1795 = vmatpush1.bf16.msra.mxu1 %v3274_v6  ;;  %1564 = vmatprep.subr.bf16.mxu0 %v3566_v0  ;;  %v3296_v30 = vld [vmem:[%s4777_s1 + $0xd0] sm:$0xff]   ;;  %v3298_v32 = vld [vmem:[%s4777_s1 + $0xc8] sm:$0xff]   ;;  %v3299_v33 = vld [vmem:[%s4777_s1 + $0x40] sm:$0xff]  }
   0xc   :  { %1796 = vmatprep.subr.bf16.mxu1 %v3566_v0  ;;  %v3300_v34 = vld [vmem:[%s4777_s1 + $0xc0] sm:$0xff]   ;;  %v3307_v37 = vld [vmem:[%s4777_s1 + $0x138] sm:$0xff]   ;;  %v3308_v38 = vld [vmem:[%s4777_s1 + $0x188] sm:$0xff]  }
   0xd   :  { %v3301_v35 = vld [vmem:[%s4778_s0] ss:$28 sps:$4 sm:$0xff]   ;;  %v3304_v36 = vld [vmem:[%s4778_s0 + $0x8] ss:$28 sps:$4 sm:$0xff]   ;;  %v3315_v42 = vld [vmem:[%s4777_s1 + $0x130] sm:$0xff]  }
   0xe   :  { %1565 = vmatpush1.bf16.msra.mxu0 %v3275_v7  ;;  %v3309_v39 = vld [vmem:[%s4778_s0 + $0x3c] ss:$28 sps:$4 sm:$0xff]   ;;  %v3311_v41 = vld [vmem:[%s4778_s0 + $0x44] ss:$28 sps:$4 sm:$0xff]   ;;  %v3316_v45 = vld [vmem:[%s4778_s0 + $0x74] ss:$28 sps:$4 sm:$0xff]  }
   0xf   :  { %1797 = vmatpush1.bf16.msra.mxu1 %v3276_v8  ;;  %1566 = vmatprep.subr.bf16.mxu0 %v3566_v0  ;;  %v3313_v43 = vld [vmem:[%s4778_s0 + $0x38] ss:$28 sps:$4 sm:$0xff]   ;;  %v3314_v44 = vld [vmem:[%s4778_s0 + $0x40] ss:$28 sps:$4 sm:$0xff]   ;;  %v3328_v47 = vld [vmem:[%s4777_s1 + $0x128] sm:$0xff]  }
  0x10   :  { %1798 = vmatprep.subr.bf16.mxu1 %v3566_v0  ;;  %v3318_v46 = vld [vmem:[%s4778_s0 + $0x7c] ss:$28 sps:$4 sm:$0xff]   ;;  %v3320_v48 = vld [vmem:[%s4778_s0 + $0x70] ss:$28 sps:$4 sm:$0xff]   ;;  %v3339_v49 = vld [vmem:[%s4777_s1 + $0x120] sm:$0xff]  }
  0x11   :  { %v3321_v50 = vld [vmem:[%s4778_s0 + $0x78] ss:$28 sps:$4 sm:$0xff]   ;;  %v3322_v51 = vld [vmem:[%s4778_s0 + $0xac] ss:$28 sps:$4 sm:$0xff]   ;;  %v3393_v54 = vld [vmem:[%s4777_s1 + $0x180] sm:$0xff]  }
  0x12   :  { %1567 = vmatpush1.bf16.msra.mxu0 %v3277_v9  ;;  %v3324_v52 = vld [vmem:[%s4778_s0 + $0xb4] ss:$28 sps:$4 sm:$0xff]   ;;  %v3348_v53 = vld [vmem:[%s4777_s1 + $0x118] sm:$0xff]   ;;  %v3326_v56 = vld [vmem:[%s4778_s0 + $0xa8] ss:$28 sps:$4 sm:$0xff]  }
  0x13   :  { %1799 = vmatpush1.bf16.msra.mxu1 %v3278_v10  ;;  %1568 = vmatprep.subr.bf16.mxu0 %v3566_v0  ;;  %v3361_v55 = vld [vmem:[%s4777_s1 + $0x110] sm:$0xff]   ;;  %v3329_v58 = vld [vmem:[%s4778_s0 + $0xe4] ss:$28 sps:$4 sm:$0xff]   ;;  %v3331_v59 = vld [vmem:[%s4778_s0 + $0xec] ss:$28 sps:$4 sm:$0xff]  }
  0x14   :  { %1800 = vmatprep.subr.bf16.mxu1 %v3566_v0  ;;  %v3327_v57 = vld [vmem:[%s4778_s0 + $0xb0] ss:$28 sps:$4 sm:$0xff]   ;;  %v3381_v61 = vld [vmem:[%s4777_s1 + $0x100] sm:$0xff]   ;;  %v3335_v1 = vld [vmem:[%s4778_s0 + $0x11c] ss:$28 sps:$4 sm:$0xff]  }
  0x15   :  { %v3368_v60 = vld [vmem:[%s4777_s1 + $0x108] sm:$0xff]   ;;  %v3333_v62 = vld [vmem:[%s4778_s0 + $0xe0] ss:$28 sps:$4 sm:$0xff]   ;;  %v3402_v4 = vld [vmem:[%s4777_s1 + $0x170] sm:$0xff]  }
  0x16   :  { %1569 = vmatpush1.bf16.msra.mxu0 %v3279_v11  ;;  %v3334_v63 = vld [vmem:[%s4778_s0 + $0xe8] ss:$28 sps:$4 sm:$0xff]   ;;  %v3388_v3 = vld [vmem:[%s4777_s1 + $0x178] sm:$0xff]   ;;  %v3342_v7 = vld [vmem:[%s4778_s0 + $0x154] ss:$28 sps:$4 sm:$0xff]  }
  0x17   :  { %1801 = vmatpush1.bf16.msra.mxu1 %v3280_v12  ;;  %1570 = vmatprep.subr.bf16.mxu0 %v3566_v0  ;;  %v3337_v2 = vld [vmem:[%s4778_s0 + $0x124] ss:$28 sps:$4 sm:$0xff]   ;;  %v3340_v5 = vld [vmem:[%s4778_s0 + $0x118] ss:$28 sps:$4 sm:$0xff]   ;;  %v3409_v9 = vld [vmem:[%s4777_s1 + $0x168] sm:$0xff]  }
  0x18   :  { %1802 = vmatprep.subr.bf16.mxu1 %v3566_v0  ;;  %v3341_v6 = vld [vmem:[%s4778_s0 + $0x120] ss:$28 sps:$4 sm:$0xff]   ;;  %v3346_v10 = vld [vmem:[%s4778_s0 + $0x150] ss:$28 sps:$4 sm:$0xff]   ;;  %v3347_v12 = vld [vmem:[%s4778_s0 + $0x158] ss:$28 sps:$4 sm:$0xff]  }
  0x19   :  { %v3344_v8 = vld [vmem:[%s4778_s0 + $0x15c] ss:$28 sps:$4 sm:$0xff]   ;;  %v3422_v11 = vld [vmem:[%s4777_s1 + $0x160] sm:$0xff]   ;;  %v3455_v21 = vld [vmem:[%s4777_s1 + $0x148] sm:$0xff]  }
  0x1a   :  { %1571 = vmatpush1.bf16.msra.mxu0 %v3281_v13  ;;  %v3349_v13 = vld [vmem:[%s4778_s0 + $0x18c] ss:$28 sps:$4 sm:$0xff]   ;;  %v3355_v19 = vld [vmem:[%s4778_s0 + $0x1c4] ss:$28 sps:$4 sm:$0xff]  }
  0x1b   :  { %1803 = vmatpush1.bf16.msra.mxu1 %v3282_v14  ;;  %1572 = vmatprep.subr.bf16.mxu0 %v3566_v0  ;;  %v3351_v14 = vld [vmem:[%s4778_s0 + $0x194] ss:$28 sps:$4 sm:$0xff]  }
  0x1c   :  { %1804 = vmatprep.subr.bf16.mxu1 %v3566_v0 }
  0x1e   :  { %1573 = vmatpush1.bf16.msra.mxu0 %v3283_v15  ;;  %v3433_v15 = vld [vmem:[%s4777_s1 + $0x158] sm:$0xff]  }
  0x1f   :  { %1805 = vmatpush1.bf16.msra.mxu1 %v3284_v16  ;;  %1574 = vmatprep.subr.bf16.mxu0 %v3566_v0  ;;  %v3353_v16 = vld [vmem:[%s4778_s0 + $0x188] ss:$28 sps:$4 sm:$0xff]  }
  0x20   :  { %1806 = vmatprep.subr.bf16.mxu1 %v3566_v0 }
  0x22   :  { %1575 = vmatpush2.bf16.msra.mxu0 %v3285_v17  ;;  %v3442_v17 = vld [vmem:[%s4777_s1 + $0x150] sm:$0xff]  }
  0x23   :  { %1807 = vmatpush2.bf16.msra.mxu1 %v3286_v18  ;;  %1576 = vmatprep.subr.bf16.mxu0 %v3566_v0  ;;  %v3354_v18 = vld [vmem:[%s4778_s0 + $0x190] ss:$28 sps:$4 sm:$0xff]  }
  0x24   :  { %1808 = vmatprep.subr.bf16.mxu1 %v3566_v0 }
  0x26   :  { %1577 = vmatpush2.bf16.msra.mxu0 %v3287_v20  ;;  %v3357_v20 = vld [vmem:[%s4778_s0 + $0x1cc] ss:$28 sps:$4 sm:$0xff]  }
  0x27   :  { %1809 = vmatpush2.bf16.msra.mxu1 %v3288_v22  ;;  %1578 = vmatprep.subr.bf16.mxu0 %v3566_v0  ;;  %v3462_v22 = vld [vmem:[%s4777_s1 + $0x140] sm:$0xff]  }
  0x28   :  { %1810 = vmatprep.subr.bf16.mxu1 %v3566_v0 }
  0x2a   :  { %1579 = vmatpush2.bf16.msra.mxu0 %v3289_v23  ;;  %v3359_v23 = vld [vmem:[%s4778_s0 + $0x1c0] ss:$28 sps:$4 sm:$0xff]  }
  0x2b   :  { %1811 = vmatpush2.bf16.msra.mxu1 %v3290_v24  ;;  %1580 = vmatprep.subr.bf16.mxu0 %v3566_v0  ;;  %v3360_v24 = vld [vmem:[%s4778_s0 + $0x1c8] ss:$28 sps:$4 sm:$0xff]  }
  0x2c   :  { %1812 = vmatprep.subr.bf16.mxu1 %v3566_v0 }
  0x2e   :  { %1581 = vmatpush2.bf16.msra.mxu0 %v3291_v25  ;;  %v3362_v25 = vld [vmem:[%s4778_s0 + $0x1fc] ss:$28 sps:$4 sm:$0xff]  }
  0x2f   :  { %1813 = vmatpush2.bf16.msra.mxu1 %v3292_v26  ;;  %1582 = vmatprep.subr.bf16.mxu0 %v3566_v0  ;;  %v3364_v26 = vld [vmem:[%s4778_s0 + $0x204] ss:$28 sps:$4 sm:$0xff]  }
  0x30   :  { %1814 = vmatprep.subr.bf16.mxu1 %v3566_v0 }
  0x32   :  { %1583 = vmatpush2.bf16.msra.mxu0 %v3293_v27  ;;  %v3366_v27 = vld [vmem:[%s4778_s0 + $0x1f8] ss:$28 sps:$4 sm:$0xff]  }
  0x33   :  { %1815 = vmatpush2.bf16.msra.mxu1 %v3294_v28  ;;  %1584 = vmatprep.subr.bf16.mxu0 %v3566_v0  ;;  %v3367_v28 = vld [vmem:[%s4778_s0 + $0x200] ss:$28 sps:$4 sm:$0xff]  }
  0x34   :  { %1816 = vmatprep.subr.bf16.mxu1 %v3566_v0 }
  0x36   :  { %1585 = vmatpush2.bf16.msra.mxu0 %v3295_v29  ;;  %v3371_v29 = vld [vmem:[%s4778_s0 + $0x23c] ss:$28 sps:$4 sm:$0xff]  }
  0x37   :  { %1817 = vmatpush2.bf16.msra.mxu1 %v3296_v30  ;;  %1586 = vmatprep.subr.bf16.mxu0 %v3566_v0  ;;  %v3373_v30 = vld [vmem:[%s4778_s0 + $0x230] ss:$28 sps:$4 sm:$0xff]  }
  0x38   :  { %1818 = vmatprep.subr.bf16.mxu1 %v3566_v0 }
  0x3a   :  { %1587 = vmatpush2.bf16.msra.mxu0 %v3297_v31  ;;  %v3374_v31 = vld [vmem:[%s4778_s0 + $0x238] ss:$28 sps:$4 sm:$0xff]  }
  0x3b   :  { %1819 = vmatpush2.bf16.msra.mxu1 %v3298_v32  ;;  %1588 = vmatprep.subr.bf16.mxu0 %v3566_v0  ;;  %v3375_v32 = vld [vmem:[%s4778_s0 + $0x26c] ss:$28 sps:$4 sm:$0xff]  }
  0x3c   :  { %1820 = vmatprep.subr.bf16.mxu1 %v3566_v0 }
  0x3e   :  { %1589 = vmatpush2.bf16.msra.mxu0 %v3299_v33  ;;  %v3377_v33 = vld [vmem:[%s4778_s0 + $0x274] ss:$28 sps:$4 sm:$0xff]  }
  0x3f   :  { %1821 = vmatpush2.bf16.msra.mxu1 %v3300_v34  ;;  %2022 = vmatprep.subr.bf16.mxu0 %v3566_v0  ;;  %v3379_v34 = vld [vmem:[%s4778_s0 + $0x268] ss:$28 sps:$4 sm:$0xff]  }
  0x40   :  { %3162 = vmatprep.subr.bf16.mxu1 %v3567_v40 }
  0x41   :  { %1591 = vmatmul.mubr.bf16.vlgmr.msra.gmra.mxu0 %v3301_v35  ;;  %v3380_v35 = vld [vmem:[%s4778_s0 + $0x270] ss:$28 sps:$4 sm:$0xff]  }
  0x42   :  { %1823 = vmatmul.mubr.bf16.vlgmr.msra.gmra.mxu1 %v3304_v36  ;;  %2023 = vmatpush1.bf16.msra.mxu0 %v3307_v37  ;;  %v3382_v36 = vld [vmem:[%s4778_s0 + $0x2a4] ss:$28 sps:$4 sm:$0xff]   ;;  %v3384_v37 = vld [vmem:[%s4778_s0 + $0x2ac] ss:$28 sps:$4 sm:$0xff]  }
  0x43   :  { %3163 = vmatpush3.bf16.msra.mxu1 %v3308_v38  ;;  %1598 = vmatprep.mubr.bf16.mxu0 %v3309_v39  ;;  %v3386_v38 = vld [vmem:[%s4778_s0 + $0x2a0] ss:$28 sps:$4 sm:$0xff]   ;;  %v3387_v39 = vld [vmem:[%s4778_s0 + $0x2a8] ss:$28 sps:$4 sm:$0xff]  }
  0x44   :  { %1830 = vmatprep.mubr.bf16.mxu1 %v3311_v41  ;;  %2024 = vmatprep.subr.bf16.mxu0 %v3566_v0  ;;  %v3389_v41 = vld [vmem:[%s4778_s0 + $0x2dc] ss:$28 sps:$4 sm:$0xff]  }
  0x45   :  { %3164 = vmatprep.subr.bf16.mxu1 %v3567_v40 }
  0x46   :  { %2025 = vmatpush1.bf16.msra.mxu0 %v3315_v42  ;;  %v3391_v42 = vld [vmem:[%s4778_s0 + $0x2e4] ss:$28 sps:$4 sm:$0xff]  }
  0x47   :  { %2026 = vmatprep.subr.bf16.mxu0 %v3566_v0  ;;  %3165 = vmatpush3.bf16.msra.mxu1 %v3393_v54  ;;  %v3412_v54 = vld [vmem:[%s4778_s0 + $0x38c] ss:$28 sps:$4 sm:$0xff]  }
  0x49   :  { %1599 = vmatmul.mubr.bf16.gmra.mxu0 %v3313_v43  ;;  %v3394_v43 = vld [vmem:[%s4778_s0 + $0x2d8] ss:$28 sps:$4 sm:$0xff]  }
  0x4a   :  { %1831 = vmatmul.mubr.bf16.gmra.mxu1 %v3314_v44  ;;  %1606 = vmatprep.mubr.bf16.mxu0 %v3316_v45  ;;  %v3395_v44 = vld [vmem:[%s4778_s0 + $0x2e0] ss:$28 sps:$4 sm:$0xff]   ;;  %v3396_v45 = vld [vmem:[%s4778_s0 + $0x314] ss:$28 sps:$4 sm:$0xff]  }
  0x4b   :  { %1838 = vmatprep.mubr.bf16.mxu1 %v3318_v46  ;;  %2027 = vmatpush1.bf16.msra.mxu0 %v3328_v47  ;;  %v3398_v46 = vld [vmem:[%s4778_s0 + $0x31c] ss:$28 sps:$4 sm:$0xff]   ;;  %v3400_v47 = vld [vmem:[%s4778_s0 + $0x310] ss:$28 sps:$4 sm:$0xff]  }
  0x4c   :  { %2028 = vmatprep.subr.bf16.mxu0 %v3566_v0 }
  0x4f   :  { %2029 = vmatpush1.bf16.msra.mxu0 %v3339_v49  ;;  %v3403_v49 = vld [vmem:[%s4778_s0 + $0x34c] ss:$28 sps:$4 sm:$0xff]  }
  0x50   :  { %2030 = vmatprep.subr.bf16.mxu0 %v3566_v0 }
  0x51   :  { %1607 = vmatmul.mubr.bf16.gmra.mxu0 %v3320_v48  ;;  %v3401_v48 = vld [vmem:[%s4778_s0 + $0x318] ss:$28 sps:$4 sm:$0xff]  }
  0x52   :  { %1839 = vmatmul.mubr.bf16.gmra.mxu1 %v3321_v50  ;;  %1614 = vmatprep.mubr.bf16.mxu0 %v3322_v51  ;;  %v3405_v50 = vld [vmem:[%s4778_s0 + $0x354] ss:$28 sps:$4 sm:$0xff]   ;;  %v3407_v51 = vld [vmem:[%s4778_s0 + $0x348] ss:$28 sps:$4 sm:$0xff]  }
  0x53   :  { %1846 = vmatprep.mubr.bf16.mxu1 %v3324_v52  ;;  %2031 = vmatpush1.bf16.msra.mxu0 %v3348_v53  ;;  %v3408_v52 = vld [vmem:[%s4778_s0 + $0x350] ss:$28 sps:$4 sm:$0xff]   ;;  %v3410_v53 = vld [vmem:[%s4778_s0 + $0x384] ss:$28 sps:$4 sm:$0xff]  }
  0x54   :  { %2032 = vmatprep.subr.bf16.mxu0 %v3566_v0 }
  0x57   :  { %2033 = vmatpush1.bf16.msra.mxu0 %v3361_v55  ;;  %v3414_v55 = vld [vmem:[%s4778_s0 + $0x380] ss:$28 sps:$4 sm:$0xff]  }
  0x58   :  { %2034 = vmatprep.subr.bf16.mxu0 %v3566_v0 }
  0x59   :  { %1615 = vmatmul.mubr.bf16.gmra.mxu0 %v3326_v56  ;;  %v3415_v56 = vld [vmem:[%s4778_s0 + $0x388] ss:$28 sps:$4 sm:$0xff]  }
  0x5a   :  { %1847 = vmatmul.mubr.bf16.gmra.mxu1 %v3327_v57  ;;  %1622 = vmatprep.mubr.bf16.mxu0 %v3329_v58  ;;  %v3416_v57 = vld [vmem:[%s4778_s0 + $0x3bc] ss:$28 sps:$4 sm:$0xff]   ;;  %v3418_v58 = vld [vmem:[%s4778_s0 + $0x3c4] ss:$28 sps:$4 sm:$0xff]  }
  0x5b   :  { %1854 = vmatprep.mubr.bf16.mxu1 %v3331_v59  ;;  %2035 = vmatpush1.bf16.msra.mxu0 %v3368_v60  ;;  %v3420_v59 = vld [vmem:[%s4778_s0 + $0x3b8] ss:$28 sps:$4 sm:$0xff]   ;;  %v3421_v60 = vld [vmem:[%s4778_s0 + $0x3c0] ss:$28 sps:$4 sm:$0xff]  }
  0x5c   :  { %2036 = vmatprep.subr.bf16.mxu0 %v3566_v0 }
  0x5f   :  { %2037 = vmatpush1.bf16.msra.mxu0 %v3381_v61  ;;  %v3423_v61 = vld [vmem:[%s4778_s0 + $0x3f4] ss:$28 sps:$4 sm:$0xff]  }
  0x60   :  { %2038 = vmatprep.subr.bf16.mxu0 %v3566_v0 }
  0x61   :  { %1623 = vmatmul.mubr.bf16.gmra.mxu0 %v3333_v62  ;;  %v3425_v62 = vld [vmem:[%s4778_s0 + $0x3fc] ss:$28 sps:$4 sm:$0xff]  }
  0x62   :  { %1855 = vmatmul.mubr.bf16.gmra.mxu1 %v3334_v63  ;;  %1630 = vmatprep.mubr.bf16.mxu0 %v3335_v1  ;;  %v3427_v63 = vld [vmem:[%s4778_s0 + $0x3f0] ss:$28 sps:$4 sm:$0xff]   ;;  %v3428_v1 = vld [vmem:[%s4778_s0 + $0x3f8] ss:$28 sps:$4 sm:$0xff]  }
  0x63   :  { %1862 = vmatprep.mubr.bf16.mxu1 %v3337_v2  ;;  %2039 = vmatpush2.bf16.msra.mxu0 %v3388_v3  ;;  %v3429_v2 = vld [vmem:[%s4778_s0 + $0x42c] ss:$28 sps:$4 sm:$0xff]   ;;  %v3431_v3 = vld [vmem:[%s4778_s0 + $0x434] ss:$28 sps:$4 sm:$0xff]  }
  0x64   :  { %2040 = vmatprep.subr.bf16.mxu0 %v3566_v0 }
  0x67   :  { %2041 = vmatpush2.bf16.msra.mxu0 %v3402_v4  ;;  %v3434_v4 = vld [vmem:[%s4778_s0 + $0x428] ss:$28 sps:$4 sm:$0xff]  }
  0x68   :  { %2042 = vmatprep.subr.bf16.mxu0 %v3566_v0 }
  0x69   :  { %1631 = vmatmul.mubr.bf16.gmra.mxu0 %v3340_v5  ;;  %v3435_v5 = vld [vmem:[%s4778_s0 + $0x430] ss:$28 sps:$4 sm:$0xff]  }
  0x6a   :  { %1863 = vmatmul.mubr.bf16.gmra.mxu1 %v3341_v6  ;;  %1638 = vmatprep.mubr.bf16.mxu0 %v3342_v7  ;;  %v3436_v6 = vld [vmem:[%s4778_s0 + $0x464] ss:$28 sps:$4 sm:$0xff]   ;;  %v3438_v7 = vld [vmem:[%s4778_s0 + $0x46c] ss:$28 sps:$4 sm:$0xff]  }
  0x6b   :  { %1870 = vmatprep.mubr.bf16.mxu1 %v3344_v8  ;;  %2043 = vmatpush2.bf16.msra.mxu0 %v3409_v9  ;;  %v3440_v8 = vld [vmem:[%s4778_s0 + $0x460] ss:$28 sps:$4 sm:$0xff]   ;;  %v3441_v9 = vld [vmem:[%s4778_s0 + $0x468] ss:$28 sps:$4 sm:$0xff]  }
  0x6c   :  { %2044 = vmatprep.subr.bf16.mxu0 %v3566_v0 }
  0x6f   :  { %2045 = vmatpush2.bf16.msra.mxu0 %v3422_v11  ;;  %v3445_v11 = vld [vmem:[%s4778_s0 + $0x4a4] ss:$28 sps:$4 sm:$0xff]  }
  0x70   :  { %2046 = vmatprep.subr.bf16.mxu0 %v3566_v0 }
  0x71   :  { %1639 = vmatmul.mubr.bf16.gmra.mxu0 %v3346_v10  ;;  %v3443_v10 = vld [vmem:[%s4778_s0 + $0x49c] ss:$28 sps:$4 sm:$0xff]  }
  0x72   :  { %1871 = vmatmul.mubr.bf16.gmra.mxu1 %v3347_v12  ;;  %1646 = vmatprep.mubr.bf16.mxu0 %v3349_v13  ;;  %v3447_v12 = vld [vmem:[%s4778_s0 + $0x498] ss:$28 sps:$4 sm:$0xff]   ;;  %v3448_v13 = vld [vmem:[%s4778_s0 + $0x4a0] ss:$28 sps:$4 sm:$0xff]  }
  0x73   :  { %1878 = vmatprep.mubr.bf16.mxu1 %v3351_v14  ;;  %2047 = vmatpush2.bf16.msra.mxu0 %v3433_v15  ;;  %v3449_v14 = vld [vmem:[%s4778_s0 + $0x4d4] ss:$28 sps:$4 sm:$0xff]   ;;  %v3451_v15 = vld [vmem:[%s4778_s0 + $0x4dc] ss:$28 sps:$4 sm:$0xff]  }
  0x74   :  { %2048 = vmatprep.subr.bf16.mxu0 %v3566_v0 }
  0x77   :  { %2049 = vmatpush2.bf16.msra.mxu0 %v3442_v17  ;;  %v3454_v17 = vld [vmem:[%s4778_s0 + $0x4d8] ss:$28 sps:$4 sm:$0xff]  }
  0x78   :  { %2050 = vmatprep.subr.bf16.mxu0 %v3566_v0 }
  0x79   :  { %1647 = vmatmul.mubr.bf16.gmra.mxu0 %v3353_v16  ;;  %v3453_v16 = vld [vmem:[%s4778_s0 + $0x4d0] ss:$28 sps:$4 sm:$0xff]  }
  0x7a   :  { %1879 = vmatmul.mubr.bf16.gmra.mxu1 %v3354_v18  ;;  %1654 = vmatprep.mubr.bf16.mxu0 %v3355_v19  ;;  %v3456_v18 = vld [vmem:[%s4778_s0 + $0x50c] ss:$28 sps:$4 sm:$0xff]   ;;  %v3458_v19 = vld [vmem:[%s4778_s0 + $0x514] ss:$28 sps:$4 sm:$0xff]  }
  0x7b   :  { %1886 = vmatprep.mubr.bf16.mxu1 %v3357_v20  ;;  %2051 = vmatpush2.bf16.msra.mxu0 %v3455_v21  ;;  %v207_v20 = vld [vmem:[%s4778_s0 + $0x540] sm:$0xff]  ;;  %v208_v21 = vld [vmem:[%s4778_s0 + $0x548] sm:$0xff] }
  0x7c   :  { %2052 = vmatprep.subr.bf16.mxu0 %v3566_v0  ;;  %v3369_v0 = vld [vmem:[%s4778_s0 + $0x234] ss:$28 sps:$4 sm:$0xff]  }
  0x7f   :  { %2053 = vmatpush2.bf16.msra.mxu0 %v3462_v22  ;;  %v3460_v22 = vld [vmem:[%s4778_s0 + $0x508] ss:$28 sps:$4 sm:$0xff]  }
  0x81   :  { %1655 = vmatmul.mubr.bf16.gmra.mxu0 %v3359_v23  ;;  %v3461_v23 = vld [vmem:[%s4778_s0 + $0x510] ss:$28 sps:$4 sm:$0xff]  }
  0x82   :  { %1887 = vmatmul.mubr.bf16.gmra.mxu1 %v3360_v24  ;;  %1662 = vmatprep.mubr.bf16.mxu0 %v3362_v25  ;;  %v2956_v24 = vcombine.high %v207_v20, %v207_v20  ;;  %v2958_v25 = vcombine.high %v208_v21, %v208_v21 }
  0x83   :  { %1894 = vmatprep.mubr.bf16.mxu1 %v3364_v26  ;;  %v2955_v26 = vcombine.low %v207_v20, %v207_v20 }
  0x89   :  { %1663 = vmatmul.mubr.bf16.gmra.mxu0 %v3366_v27  ;;  %v2957_v27 = vcombine.low %v208_v21, %v208_v21 }
  0x8a   :  { %1895 = vmatmul.mubr.bf16.gmra.mxu1 %v3367_v28  ;;  %1670 = vmatprep.mubr.bf16.mxu0 %v3369_v0  ;;  %v3469_v28 = vld [vmem:[%s4778_s0 + $0x14] ss:$28 sps:$4 sm:$0xff]   ;;  %v4089_v0 = vld [vmem:[%s4779_s2] ss:$0 sm:$0xff] }
  0x8b   :  { %1902 = vmatprep.mubr.bf16.mxu1 %v3371_v29 }
  0x91   :  { %1671 = vmatmul.mubr.bf16.gmra.mxu0 %v3373_v30 }
  0x92   :  { %1903 = vmatmul.mubr.bf16.gmra.mxu1 %v3374_v31  ;;  %1678 = vmatprep.mubr.bf16.mxu0 %v3375_v32 }
  0x93   :  { %1910 = vmatprep.mubr.bf16.mxu1 %v3377_v33 }
  0x99   :  { %1679 = vmatmul.mubr.bf16.gmra.mxu0 %v3379_v34 }
  0x9a   :  { %1911 = vmatmul.mubr.bf16.gmra.mxu1 %v3380_v35  ;;  %1686 = vmatprep.mubr.bf16.mxu0 %v3382_v36  ;;  %v3467_v36 = vld [vmem:[%s4778_s0 + $0x10] ss:$28 sps:$4 sm:$0xff]  }
  0x9b   :  { %1918 = vmatprep.mubr.bf16.mxu1 %v3384_v37 }
  0xa1   :  { %1687 = vmatmul.mubr.bf16.gmra.mxu0 %v3386_v38 }
  0xa2   :  { %1919 = vmatmul.mubr.bf16.gmra.mxu1 %v3387_v39  ;;  %1694 = vmatprep.mubr.bf16.mxu0 %v3389_v41  ;;  %v3470_v39 = vld [vmem:[%s4778_s0 + $0x18] ss:$28 sps:$4 sm:$0xff]   ;;  %v3471_v41 = vld [vmem:[%s4778_s0 + $0x4c] ss:$28 sps:$4 sm:$0xff]  }
  0xa3   :  { %1926 = vmatprep.mubr.bf16.mxu1 %v3391_v42 }
  0xa9   :  { %1695 = vmatmul.mubr.bf16.gmra.mxu0 %v3394_v43 }
  0xaa   :  { %1927 = vmatmul.mubr.bf16.gmra.mxu1 %v3395_v44  ;;  %1702 = vmatprep.mubr.bf16.mxu0 %v3396_v45 }
  0xab   :  { %1934 = vmatprep.mubr.bf16.mxu1 %v3398_v46 }
  0xb1   :  { %1703 = vmatmul.mubr.bf16.gmra.mxu0 %v3400_v47 }
  0xb2   :  { %1935 = vmatmul.mubr.bf16.gmra.mxu1 %v3401_v48  ;;  %1710 = vmatprep.mubr.bf16.mxu0 %v3403_v49 }
  0xb3   :  { %1942 = vmatprep.mubr.bf16.mxu1 %v3405_v50 }
  0xb9   :  { %1711 = vmatmul.mubr.bf16.gmra.mxu0 %v3407_v51 }
  0xba   :  { %1943 = vmatmul.mubr.bf16.gmra.mxu1 %v3408_v52  ;;  %1718 = vmatprep.mubr.bf16.mxu0 %v3410_v53  ;;  %v3473_v52 = vld [vmem:[%s4778_s0 + $0x48] ss:$28 sps:$4 sm:$0xff]  }
  0xbb   :  { %1950 = vmatprep.mubr.bf16.mxu1 %v3412_v54 }
  0xc1   :  { %1719 = vmatmul.mubr.bf16.gmra.mxu0 %v3414_v55  ;;  %v3474_v55 = vld [vmem:[%s4778_s0 + $0x50] ss:$28 sps:$4 sm:$0xff]  }
  0xc2   :  { %1951 = vmatmul.mubr.bf16.gmra.mxu1 %v3415_v56  ;;  %1726 = vmatprep.mubr.bf16.mxu0 %v3416_v57  ;;  %v3475_v56 = vld [vmem:[%s4778_s0 + $0x84] ss:$28 sps:$4 sm:$0xff]  }
  0xc3   :  { %1958 = vmatprep.mubr.bf16.mxu1 %v3418_v58 }
  0xc9   :  { %1727 = vmatmul.mubr.bf16.gmra.mxu0 %v3420_v59 }
  0xca   :  { %1959 = vmatmul.mubr.bf16.gmra.mxu1 %v3421_v60  ;;  %1734 = vmatprep.mubr.bf16.mxu0 %v3423_v61 }
  0xcb   :  { %1966 = vmatprep.mubr.bf16.mxu1 %v3425_v62 }
  0xd1   :  { %1735 = vmatmul.mubr.bf16.gmra.mxu0 %v3427_v63 }
  0xd2   :  { %1967 = vmatmul.mubr.bf16.gmra.mxu1 %v3428_v1  ;;  %1742 = vmatprep.mubr.bf16.mxu0 %v3429_v2 }
  0xd3   :  { %1974 = vmatprep.mubr.bf16.mxu1 %v3431_v3 }
  0xd9   :  { %1743 = vmatmul.mubr.bf16.gmra.mxu0 %v3434_v4  ;;  %v3477_v4 = vld [vmem:[%s4778_s0 + $0x80] ss:$28 sps:$4 sm:$0xff]  }
  0xda   :  { %1975 = vmatmul.mubr.bf16.gmra.mxu1 %v3435_v5  ;;  %1750 = vmatprep.mubr.bf16.mxu0 %v3436_v6 }
  0xdb   :  { %1982 = vmatprep.mubr.bf16.mxu1 %v3438_v7  ;;  %v3478_v7 = vld [vmem:[%s4778_s0 + $0x88] ss:$28 sps:$4 sm:$0xff]  }
  0xe1   :  { %1751 = vmatmul.mubr.bf16.gmra.mxu0 %v3440_v8  ;;  %v3481_v8 = vld [vmem:[%s4778_s0 + $0xbc] ss:$28 sps:$4 sm:$0xff]  }
  0xe2   :  { %1983 = vmatmul.mubr.bf16.gmra.mxu1 %v3441_v9  ;;  %1758 = vmatprep.mubr.bf16.mxu0 %v3443_v10 }
  0xe3   :  { %1990 = vmatprep.mubr.bf16.mxu1 %v3445_v11 }
  0xe9   :  { %1759 = vmatmul.mubr.bf16.gmra.mxu0 %v3447_v12 }
  0xea   :  { %1991 = vmatmul.mubr.bf16.gmra.mxu1 %v3448_v13  ;;  %1766 = vmatprep.mubr.bf16.mxu0 %v3449_v14 }
  0xeb   :  { %1998 = vmatprep.mubr.bf16.mxu1 %v3451_v15 }
  0xf1   :  { %1767 = vmatmul.mubr.bf16.gmra.mxu0 %v3453_v16 }
  0xf2   :  { %1999 = vmatmul.mubr.bf16.gmra.mxu1 %v3454_v17  ;;  %1774 = vmatprep.mubr.bf16.mxu0 %v3456_v18 }
  0xf3   :  { %2006 = vmatprep.mubr.bf16.mxu1 %v3458_v19  ;;  %v3479_v19 = vld [vmem:[%s4778_s0 + $0xb8] ss:$28 sps:$4 sm:$0xff]  }
  0xf9   :  { %1775 = vmatmul.mubr.bf16.gmra.mxu0 %v3460_v22  ;;  %v3482_v22 = vld [vmem:[%s4778_s0 + $0xc0] ss:$28 sps:$4 sm:$0xff]  }
  0xfa   :  { %2007 = vmatmul.mubr.bf16.gmra.mxu1 %v3461_v23  ;;  %1782 = vmatprep.mubr.bf16.mxu0 %v2956_v24  ;;  %v3485_v23 = vld [vmem:[%s4778_s0 + $0xf4] ss:$28 sps:$4 sm:$0xff]  }
  0xfb   :  { %2014 = vmatprep.mubr.bf16.mxu1 %v2958_v25 }
 0x101   :  { %v1592_v29 = vpop.f32.mrf.mxu0  ;;  %1783 = vmatmul.mubr.bf16.gmra.mxu0 %v2955_v26 }
 0x102   :  { %v1593_v30 = vadd.f32 %v4089_v0, %v1592_v29  ;;  %v1824_v31 = vpop.f32.mrf.mxu1  ;;  %2015 = vmatmul.mubr.bf16.gmra.mxu1 %v2957_v27  ;;  %2054 = vmatprep.mubr.bf16.mxu0 %v3469_v28 }
 0x103   :  { %v1594_v32 = vpop.f32.mrf.mxu0  ;;  %3166 = vmatprep.mubr.msk.bf16.mxu1 %vm3568_vm0, %v3567_v40 }
 0x104   :  { %v4094_v33 = vadd.f32 %v1824_v31, %v1593_v30  ;;  %v1826_v34 = vpop.f32.mrf.mxu1 }
 0x105   :  { %v1595_v35 = vpop.f32.mrf.mxu0 }
 0x106   :  { %v1596_v37 = vadd.f32 %v4089_v0, %v1595_v35  ;;  %v1827_v38 = vpop.f32.mrf.mxu1  ;;  %v3483_v35 = vld [vmem:[%s4778_s0 + $0xf0] ss:$28 sps:$4 sm:$0xff]  }
 0x107   :  { %v1597_v42 = vpop.f32.mrf.mxu0 }
 0x108   :  { %v4106_v43 = vadd.f32 %v1827_v38, %v1596_v37  ;;  %v1829_v44 = vpop.f32.mrf.mxu1  ;;  %v3486_v38 = vld [vmem:[%s4778_s0 + $0xf8] ss:$28 sps:$4 sm:$0xff]  }
 0x109   :  { %v1600_v45 = vpop.f32.mrf.mxu0  ;;  %2055 = vmatmul.mubr.bf16.vlgmr.msra.gmra.mxu0 %v3467_v36 }
 0x10a   :  { %v1601_v46 = vadd.f32 %v4089_v0, %v1600_v45  ;;  %v1832_v47 = vpop.f32.mrf.mxu1  ;;  %3167 = vmatmul.mubr.msk.bf16.vlgmr.msra.gmra.mxu1 %vm1482_vm1, %v3470_v39  ;;  %2062 = vmatprep.mubr.bf16.mxu0 %v3471_v41  ;;  %v3489_v39 = vld [vmem:[%s4778_s0 + $0x12c] ss:$28 sps:$4 sm:$0xff]  }
 0x10b   :  { %v1602_v48 = vpop.f32.mrf.mxu0  ;;  %3170 = vmatprep.mubr.msk.bf16.mxu1 %vm3568_vm0, %v3567_v40 }
 0x10c   :  { %v4112_v49 = vadd.f32 %v1832_v47, %v1601_v46  ;;  %v1834_v50 = vpop.f32.mrf.mxu1 }
 0x10d   :  { %v1603_v51 = vpop.f32.mrf.mxu0 }
 0x10e   :  { %v1604_v53 = vadd.f32 %v4089_v0, %v1603_v51  ;;  %v1835_v54 = vpop.f32.mrf.mxu1 }
 0x10f   :  { %v1605_v57 = vpop.f32.mrf.mxu0 }
 0x110   :  { %v4124_v58 = vadd.f32 %v1835_v54, %v1604_v53  ;;  %v1837_v59 = vpop.f32.mrf.mxu1  ;;  %v3487_v53 = vld [vmem:[%s4778_s0 + $0x128] ss:$28 sps:$4 sm:$0xff]  }
 0x111   :  { %v1608_v60 = vpop.f32.mrf.mxu0  ;;  %2063 = vmatmul.mubr.bf16.gmra.mxu0 %v3473_v52  ;;  %v3493_v57 = vld [vmem:[%s4778_s0 + $0x164] ss:$28 sps:$4 sm:$0xff]  }
 0x112   :  { %v1609_v61 = vadd.f32 %v4089_v0, %v1608_v60  ;;  %v1840_v62 = vpop.f32.mrf.mxu1  ;;  %3171 = vmatmul.mubr.msk.bf16.gmra.mxu1 %vm1482_vm1, %v3474_v55  ;;  %2070 = vmatprep.mubr.bf16.mxu0 %v3475_v56  ;;  %v3490_v56 = vld [vmem:[%s4778_s0 + $0x130] ss:$28 sps:$4 sm:$0xff]  }
 0x113   :  { %v1610_v63 = vpop.f32.mrf.mxu0  ;;  %3174 = vmatprep.mubr.msk.bf16.mxu1 %vm3568_vm0, %v3567_v40 }
 0x114   :  { %v4130_v1 = vadd.f32 %v1840_v62, %v1609_v61  ;;  %v1842_v2 = vpop.f32.mrf.mxu1 }
 0x115   :  { %v1611_v3 = vpop.f32.mrf.mxu0 }
 0x116   :  { %v1612_v5 = vadd.f32 %v4089_v0, %v1611_v3  ;;  %v1843_v6 = vpop.f32.mrf.mxu1 }
 0x117   :  { %v1613_v9 = vpop.f32.mrf.mxu0 }
 0x118   :  { %v4142_v10 = vadd.f32 %v1843_v6, %v1612_v5  ;;  %v1845_v11 = vpop.f32.mrf.mxu1 }
 0x119   :  { %v1616_v12 = vpop.f32.mrf.mxu0  ;;  %2071 = vmatmul.mubr.bf16.gmra.mxu0 %v3477_v4  ;;  %v3494_v11 = vld [vmem:[%s4778_s0 + $0x168] ss:$28 sps:$4 sm:$0xff]  }
 0x11a   :  { %v1617_v13 = vadd.f32 %v4089_v0, %v1616_v12  ;;  %v1848_v14 = vpop.f32.mrf.mxu1  ;;  %3175 = vmatmul.mubr.msk.bf16.gmra.mxu1 %vm1482_vm1, %v3478_v7  ;;  %2078 = vmatprep.mubr.bf16.mxu0 %v3481_v8  ;;  %v3491_v7 = vld [vmem:[%s4778_s0 + $0x160] ss:$28 sps:$4 sm:$0xff]  }
 0x11b   :  { %v1618_v15 = vpop.f32.mrf.mxu0  ;;  %3178 = vmatprep.mubr.msk.bf16.mxu1 %vm3568_vm0, %v3567_v40  ;;  %v3497_v12 = vld [vmem:[%s4778_s0 + $0x19c] ss:$28 sps:$4 sm:$0xff]  }
 0x11c   :  { %v4148_v16 = vadd.f32 %v1848_v14, %v1617_v13  ;;  %v1850_v17 = vpop.f32.mrf.mxu1 }
 0x11d   :  { %v1619_v18 = vpop.f32.mrf.mxu0 }
 0x11e   :  { %v1620_v20 = vadd.f32 %v4089_v0, %v1619_v18  ;;  %v1851_v21 = vpop.f32.mrf.mxu1 }
 0x11f   :  { %v1621_v24 = vpop.f32.mrf.mxu0 }
 0x120   :  { %v4160_v25 = vadd.f32 %v1851_v21, %v1620_v20  ;;  %v1853_v26 = vpop.f32.mrf.mxu1  ;;  %v3495_v24 = vld [vmem:[%s4778_s0 + $0x198] ss:$28 sps:$4 sm:$0xff]  }
 0x121   :  { %v1624_v27 = vpop.f32.mrf.mxu0  ;;  %2079 = vmatmul.mubr.bf16.gmra.mxu0 %v3479_v19 }
 0x122   :  { %v1625_v28 = vadd.f32 %v4089_v0, %v1624_v27  ;;  %v1856_v29 = vpop.f32.mrf.mxu1  ;;  %3179 = vmatmul.mubr.msk.bf16.gmra.mxu1 %vm1482_vm1, %v3482_v22  ;;  %2086 = vmatprep.mubr.bf16.mxu0 %v3485_v23 }
 0x123   :  { %v1626_v30 = vpop.f32.mrf.mxu0  ;;  %3182 = vmatprep.mubr.msk.bf16.mxu1 %vm3568_vm0, %v3567_v40 }
 0x124   :  { %v4166_v31 = vadd.f32 %v1856_v29, %v1625_v28  ;;  %v1858_v32 = vpop.f32.mrf.mxu1  ;;  %v3498_v28 = vld [vmem:[%s4778_s0 + $0x1a0] ss:$28 sps:$4 sm:$0xff]   ;;  %v3501_v29 = vld [vmem:[%s4778_s0 + $0x1d4] ss:$28 sps:$4 sm:$0xff]  }
 0x125   :  { %v1627_v34 = vpop.f32.mrf.mxu0 }
 0x126   :  { %v1628_v36 = vadd.f32 %v4089_v0, %v1627_v34  ;;  %v1859_v37 = vpop.f32.mrf.mxu1 }
 0x127   :  { %v1629_v41 = vpop.f32.mrf.mxu0 }
 0x128   :  { %v4178_v42 = vadd.f32 %v1859_v37, %v1628_v36  ;;  %v1861_v44 = vpop.f32.mrf.mxu1 }
 0x129   :  { %v1632_v45 = vpop.f32.mrf.mxu0  ;;  %2087 = vmatmul.mubr.bf16.gmra.mxu0 %v3483_v35 }
 0x12a   :  { %v1633_v46 = vadd.f32 %v4089_v0, %v1632_v45  ;;  %v1864_v47 = vpop.f32.mrf.mxu1  ;;  %3183 = vmatmul.mubr.msk.bf16.gmra.mxu1 %vm1482_vm1, %v3486_v38  ;;  %2094 = vmatprep.mubr.bf16.mxu0 %v3489_v39  ;;  %v3499_v45 = vld [vmem:[%s4778_s0 + $0x1d0] ss:$28 sps:$4 sm:$0xff]  }
 0x12b   :  { %v1634_v48 = vpop.f32.mrf.mxu0  ;;  %3186 = vmatprep.mubr.msk.bf16.mxu1 %vm3568_vm0, %v3567_v40 }
 0x12c   :  { %v4184_v50 = vadd.f32 %v1864_v47, %v1633_v46  ;;  %v1866_v51 = vpop.f32.mrf.mxu1  ;;  %v3502_v48 = vld [vmem:[%s4778_s0 + $0x1d8] ss:$28 sps:$4 sm:$0xff]  }
 0x12d   :  { %v1635_v52 = vpop.f32.mrf.mxu0  ;;  %v3505_v51 = vld [vmem:[%s4778_s0 + $0x20c] ss:$28 sps:$4 sm:$0xff]  }
 0x12e   :  { %v1636_v54 = vadd.f32 %v4089_v0, %v1635_v52  ;;  %v1867_v55 = vpop.f32.mrf.mxu1 }
 0x12f   :  { %v1637_v59 = vpop.f32.mrf.mxu0 }
 0x130   :  { %v4196_v60 = vadd.f32 %v1867_v55, %v1636_v54  ;;  %v1869_v61 = vpop.f32.mrf.mxu1 }
 0x131   :  { %v1640_v62 = vpop.f32.mrf.mxu0  ;;  %2095 = vmatmul.mubr.bf16.gmra.mxu0 %v3487_v53 }
 0x132   :  { %v1641_v63 = vadd.f32 %v4089_v0, %v1640_v62  ;;  %v1872_v2 = vpop.f32.mrf.mxu1  ;;  %3187 = vmatmul.mubr.msk.bf16.gmra.mxu1 %vm1482_vm1, %v3490_v56  ;;  %2102 = vmatprep.mubr.bf16.mxu0 %v3493_v57 }
 0x133   :  { %v1642_v3 = vpop.f32.mrf.mxu0  ;;  %3190 = vmatprep.mubr.msk.bf16.mxu1 %vm3568_vm0, %v3567_v40 }
 0x134   :  { %v4202_v4 = vadd.f32 %v1872_v2, %v1641_v63  ;;  %v1874_v5 = vpop.f32.mrf.mxu1  ;;  %v3503_v2 = vld [vmem:[%s4778_s0 + $0x208] ss:$28 sps:$4 sm:$0xff]  }
 0x135   :  { %v1643_v6 = vpop.f32.mrf.mxu0 }
 0x136   :  { %v1644_v8 = vadd.f32 %v4089_v0, %v1643_v6  ;;  %v1875_v9 = vpop.f32.mrf.mxu1  ;;  %v3506_v6 = vld [vmem:[%s4778_s0 + $0x210] ss:$28 sps:$4 sm:$0xff]  }
 0x137   :  { %v1645_v13 = vpop.f32.mrf.mxu0 }
 0x138   :  { %v4214_v14 = vadd.f32 %v1875_v9, %v1644_v8  ;;  %v1877_v15 = vpop.f32.mrf.mxu1 }
 0x139   :  { %v1648_v17 = vpop.f32.mrf.mxu0  ;;  %2103 = vmatmul.mubr.bf16.gmra.mxu0 %v3491_v7  ;;  %v3509_v7 = vld [vmem:[%s4778_s0 + $0x244] ss:$28 sps:$4 sm:$0xff]  }
 0x13a   :  { %v1649_v18 = vadd.f32 %v4089_v0, %v1648_v17  ;;  %v1880_v19 = vpop.f32.mrf.mxu1  ;;  %3191 = vmatmul.mubr.msk.bf16.gmra.mxu1 %vm1482_vm1, %v3494_v11  ;;  %2110 = vmatprep.mubr.bf16.mxu0 %v3497_v12 }
 0x13b   :  { %v1650_v20 = vpop.f32.mrf.mxu0  ;;  %3194 = vmatprep.mubr.msk.bf16.mxu1 %vm3568_vm0, %v3567_v40 }
 0x13c   :  { %v4220_v21 = vadd.f32 %v1880_v19, %v1649_v18  ;;  %v1882_v22 = vpop.f32.mrf.mxu1 }
 0x13d   :  { %v1651_v23 = vpop.f32.mrf.mxu0  ;;  %v3507_v22 = vld [vmem:[%s4778_s0 + $0x240] ss:$28 sps:$4 sm:$0xff]  }
 0x13e   :  { %v1652_v26 = vadd.f32 %v4089_v0, %v1651_v23  ;;  %v1883_v27 = vpop.f32.mrf.mxu1 }
 0x13f   :  { %v1653_v30 = vpop.f32.mrf.mxu0 }
 0x140   :  { %v4232_v32 = vadd.f32 %v1883_v27, %v1652_v26  ;;  %v1885_v34 = vpop.f32.mrf.mxu1  ;;  %v3510_v26 = vld [vmem:[%s4778_s0 + $0x248] ss:$28 sps:$4 sm:$0xff]   ;;  %v3513_v27 = vld [vmem:[%s4778_s0 + $0x27c] ss:$28 sps:$4 sm:$0xff]  }
 0x141   :  { %v1656_v35 = vpop.f32.mrf.mxu0  ;;  %2111 = vmatmul.mubr.bf16.gmra.mxu0 %v3495_v24 }
 0x142   :  { %v1657_v36 = vadd.f32 %v4089_v0, %v1656_v35  ;;  %v1888_v37 = vpop.f32.mrf.mxu1  ;;  %3195 = vmatmul.mubr.msk.bf16.gmra.mxu1 %vm1482_vm1, %v3498_v28  ;;  %2118 = vmatprep.mubr.bf16.mxu0 %v3501_v29 }
 0x143   :  { %v1658_v38 = vpop.f32.mrf.mxu0  ;;  %3198 = vmatprep.mubr.msk.bf16.mxu1 %vm3568_vm0, %v3567_v40 }
 0x144   :  { %v4238_v39 = vadd.f32 %v1888_v37, %v1657_v36  ;;  %v1890_v41 = vpop.f32.mrf.mxu1 }
 0x145   :  { %v1659_v44 = vpop.f32.mrf.mxu0 }
 0x146   :  { %v1660_v46 = vadd.f32 %v4089_v0, %v1659_v44  ;;  %v1891_v47 = vpop.f32.mrf.mxu1 }
 0x147   :  { %v1661_v52 = vpop.f32.mrf.mxu0 }
 0x148   :  { %v4250_v53 = vadd.f32 %v1891_v47, %v1660_v46  ;;  %v1893_v54 = vpop.f32.mrf.mxu1 }
 0x149   :  { %v1664_v55 = vpop.f32.mrf.mxu0  ;;  %2119 = vmatmul.mubr.bf16.gmra.mxu0 %v3499_v45  ;;  %v3511_v45 = vld [vmem:[%s4778_s0 + $0x278] ss:$28 sps:$4 sm:$0xff]  }
 0x14a   :  { %v1665_v56 = vadd.f32 %v4089_v0, %v1664_v55  ;;  %v1896_v57 = vpop.f32.mrf.mxu1  ;;  %3199 = vmatmul.mubr.msk.bf16.gmra.mxu1 %vm1482_vm1, %v3502_v48  ;;  %2126 = vmatprep.mubr.bf16.mxu0 %v3505_v51  ;;  %v3514_v48 = vld [vmem:[%s4778_s0 + $0x280] ss:$28 sps:$4 sm:$0xff]   ;;  %v3517_v51 = vld [vmem:[%s4778_s0 + $0x2b4] ss:$28 sps:$4 sm:$0xff]  }
 0x14b   :  { %v1666_v59 = vpop.f32.mrf.mxu0  ;;  %3202 = vmatprep.mubr.msk.bf16.mxu1 %vm3568_vm0, %v3567_v40 }
 0x14c   :  { %v4256_v61 = vadd.f32 %v1896_v57, %v1665_v56  ;;  %v1898_v62 = vpop.f32.mrf.mxu1 }
 0x14d   :  { %v1667_v63 = vpop.f32.mrf.mxu0 }
 0x14e   :  { %v1668_v3 = vadd.f32 %v4089_v0, %v1667_v63  ;;  %v1899_v5 = vpop.f32.mrf.mxu1 }
 0x14f   :  { %v1669_v8 = vpop.f32.mrf.mxu0 }
 0x150   :  { %v4268_v9 = vadd.f32 %v1899_v5, %v1668_v3  ;;  %v1901_v11 = vpop.f32.mrf.mxu1  ;;  %v3515_v5 = vld [vmem:[%s4778_s0 + $0x2b0] ss:$28 sps:$4 sm:$0xff]   ;;  %v3518_v8 = vld [vmem:[%s4778_s0 + $0x2b8] ss:$28 sps:$4 sm:$0xff]  }
 0x151   :  { %v1672_v12 = vpop.f32.mrf.mxu0  ;;  %2127 = vmatmul.mubr.bf16.gmra.mxu0 %v3503_v2  ;;  %v3521_v11 = vld [vmem:[%s4778_s0 + $0x2ec] ss:$28 sps:$4 sm:$0xff]  }
 0x152   :  { %v1673_v13 = vadd.f32 %v4089_v0, %v1672_v12  ;;  %v1904_v15 = vpop.f32.mrf.mxu1  ;;  %3203 = vmatmul.mubr.msk.bf16.gmra.mxu1 %vm1482_vm1, %v3506_v6  ;;  %2134 = vmatprep.mubr.bf16.mxu0 %v3509_v7 }
 0x153   :  { %v1674_v17 = vpop.f32.mrf.mxu0  ;;  %3206 = vmatprep.mubr.msk.bf16.mxu1 %vm3568_vm0, %v3567_v40 }
 0x154   :  { %v4274_v18 = vadd.f32 %v1904_v15, %v1673_v13  ;;  %v1906_v19 = vpop.f32.mrf.mxu1 }
 0x155   :  { %v1675_v20 = vpop.f32.mrf.mxu0 }
 0x156   :  { %v1676_v23 = vadd.f32 %v4089_v0, %v1675_v20  ;;  %v1907_v24 = vpop.f32.mrf.mxu1 }
 0x157   :  { %v1677_v28 = vpop.f32.mrf.mxu0 }
 0x158   :  { %v4286_v29 = vadd.f32 %v1907_v24, %v1676_v23  ;;  %v1909_v30 = vpop.f32.mrf.mxu1 }
 0x159   :  { %v1680_v34 = vpop.f32.mrf.mxu0  ;;  %2135 = vmatmul.mubr.bf16.gmra.mxu0 %v3507_v22 }
 0x15a   :  { %v1681_v35 = vadd.f32 %v4089_v0, %v1680_v34  ;;  %v1912_v36 = vpop.f32.mrf.mxu1  ;;  %3207 = vmatmul.mubr.msk.bf16.gmra.mxu1 %vm1482_vm1, %v3510_v26  ;;  %2142 = vmatprep.mubr.bf16.mxu0 %v3513_v27  ;;  %v3519_v27 = vld [vmem:[%s4778_s0 + $0x2e8] ss:$28 sps:$4 sm:$0xff]   ;;  %v3522_v34 = vld [vmem:[%s4778_s0 + $0x2f0] ss:$28 sps:$4 sm:$0xff]  }
 0x15b   :  { %v1682_v37 = vpop.f32.mrf.mxu0  ;;  %3210 = vmatprep.mubr.msk.bf16.mxu1 %vm3568_vm0, %v3567_v40 }
 0x15c   :  { %v4292_v38 = vadd.f32 %v1912_v36, %v1681_v35  ;;  %v1914_v41 = vpop.f32.mrf.mxu1  ;;  %v3525_v35 = vld [vmem:[%s4778_s0 + $0x324] ss:$28 sps:$4 sm:$0xff]  }
 0x15d   :  { %v1683_v44 = vpop.f32.mrf.mxu0 }
 0x15e   :  { %v1684_v46 = vadd.f32 %v4089_v0, %v1683_v44  ;;  %v1915_v47 = vpop.f32.mrf.mxu1 }
 0x15f   :  { %v1685_v52 = vpop.f32.mrf.mxu0 }
 0x160   :  { %v4304_v54 = vadd.f32 %v1915_v47, %v1684_v46  ;;  %v1917_v55 = vpop.f32.mrf.mxu1 }
 0x161   :  { %v1688_v56 = vpop.f32.mrf.mxu0  ;;  %2143 = vmatmul.mubr.bf16.gmra.mxu0 %v3511_v45  ;;  %v3523_v55 = vld [vmem:[%s4778_s0 + $0x320] ss:$28 sps:$4 sm:$0xff]  }
 0x162   :  { %v1689_v57 = vadd.f32 %v4089_v0, %v1688_v56  ;;  %v1920_v59 = vpop.f32.mrf.mxu1  ;;  %3211 = vmatmul.mubr.msk.bf16.gmra.mxu1 %vm1482_vm1, %v3514_v48  ;;  %2150 = vmatprep.mubr.bf16.mxu0 %v3517_v51 }
 0x163   :  { %v1690_v62 = vpop.f32.mrf.mxu0  ;;  %3214 = vmatprep.mubr.msk.bf16.mxu1 %vm3568_vm0, %v3567_v40 }
 0x164   :  { %v4310_v63 = vadd.f32 %v1920_v59, %v1689_v57  ;;  %v1922_v2 = vpop.f32.mrf.mxu1  ;;  %v3526_v59 = vld [vmem:[%s4778_s0 + $0x328] ss:$28 sps:$4 sm:$0xff]   ;;  %v3529_v62 = vld [vmem:[%s4778_s0 + $0x35c] ss:$28 sps:$4 sm:$0xff]  }
 0x165   :  { %v1691_v3 = vpop.f32.mrf.mxu0 }
 0x166   :  { %v1692_v6 = vadd.f32 %v4089_v0, %v1691_v3  ;;  %v1923_v7 = vpop.f32.mrf.mxu1 }
 0x167   :  { %v1693_v12 = vpop.f32.mrf.mxu0 }
 0x168   :  { %v4322_v13 = vadd.f32 %v1923_v7, %v1692_v6  ;;  %v1925_v15 = vpop.f32.mrf.mxu1 }
 0x169   :  { %v1696_v17 = vpop.f32.mrf.mxu0  ;;  %2151 = vmatmul.mubr.bf16.gmra.mxu0 %v3515_v5 }
 0x16a   :  { %v1697_v19 = vadd.f32 %v4089_v0, %v1696_v17  ;;  %v1928_v20 = vpop.f32.mrf.mxu1  ;;  %3215 = vmatmul.mubr.msk.bf16.gmra.mxu1 %vm1482_vm1, %v3518_v8  ;;  %2158 = vmatprep.mubr.bf16.mxu0 %v3521_v11 }
 0x16b   :  { %v1698_v22 = vpop.f32.mrf.mxu0  ;;  %3218 = vmatprep.mubr.msk.bf16.mxu1 %vm3568_vm0, %v3567_v40 }
 0x16c   :  { %v4328_v23 = vadd.f32 %v1928_v20, %v1697_v19  ;;  %v1930_v24 = vpop.f32.mrf.mxu1  ;;  %v3527_v19 = vld [vmem:[%s4778_s0 + $0x358] ss:$28 sps:$4 sm:$0xff]  }
 0x16d   :  { %v1699_v26 = vpop.f32.mrf.mxu0  ;;  %v3530_v24 = vld [vmem:[%s4778_s0 + $0x360] ss:$28 sps:$4 sm:$0xff]  }
 0x16e   :  { %v1700_v28 = vadd.f32 %v4089_v0, %v1699_v26  ;;  %v1931_v30 = vpop.f32.mrf.mxu1  ;;  %v3533_v26 = vld [vmem:[%s4778_s0 + $0x394] ss:$28 sps:$4 sm:$0xff]  }
 0x16f   :  { %v1701_v36 = vpop.f32.mrf.mxu0 }
 0x170   :  { %v4340_v37 = vadd.f32 %v1931_v30, %v1700_v28  ;;  %v1933_v41 = vpop.f32.mrf.mxu1 }
 0x171   :  { %v1704_v44 = vpop.f32.mrf.mxu0  ;;  %2159 = vmatmul.mubr.bf16.gmra.mxu0 %v3519_v27 }
 0x172   :  { %v1705_v45 = vadd.f32 %v4089_v0, %v1704_v44  ;;  %v1936_v46 = vpop.f32.mrf.mxu1  ;;  %3219 = vmatmul.mubr.msk.bf16.gmra.mxu1 %vm1482_vm1, %v3522_v34  ;;  %2166 = vmatprep.mubr.bf16.mxu0 %v3525_v35 }
 0x173   :  { %v1706_v47 = vpop.f32.mrf.mxu0  ;;  %3222 = vmatprep.mubr.msk.bf16.mxu1 %vm3568_vm0, %v3567_v40 }
 0x174   :  { %v4346_v48 = vadd.f32 %v1936_v46, %v1705_v45  ;;  %v1938_v51 = vpop.f32.mrf.mxu1  ;;  %v3531_v47 = vld [vmem:[%s4778_s0 + $0x390] ss:$28 sps:$4 sm:$0xff]  }
 0x175   :  { %v1707_v52 = vpop.f32.mrf.mxu0 }
 0x176   :  { %v1708_v56 = vadd.f32 %v4089_v0, %v1707_v52  ;;  %v1939_v57 = vpop.f32.mrf.mxu1 }
 0x177   :  { %v1709_v2 = vpop.f32.mrf.mxu0 }
 0x178   :  { %v4358_v3 = vadd.f32 %v1939_v57, %v1708_v56  ;;  %v1941_v5 = vpop.f32.mrf.mxu1  ;;  %v3537_v56 = vld [vmem:[%s4778_s0 + $0x3cc] ss:$28 sps:$4 sm:$0xff]  }
 0x179   :  { %v1712_v6 = vpop.f32.mrf.mxu0  ;;  %2167 = vmatmul.mubr.bf16.gmra.mxu0 %v3523_v55  ;;  %v3534_v55 = vld [vmem:[%s4778_s0 + $0x398] ss:$28 sps:$4 sm:$0xff]  }
 0x17a   :  { %v1713_v7 = vadd.f32 %v4089_v0, %v1712_v6  ;;  %v1944_v8 = vpop.f32.mrf.mxu1  ;;  %3223 = vmatmul.mubr.msk.bf16.gmra.mxu1 %vm1482_vm1, %v3526_v59  ;;  %2174 = vmatprep.mubr.bf16.mxu0 %v3529_v62 }
 0x17b   :  { %v1714_v11 = vpop.f32.mrf.mxu0  ;;  %3226 = vmatprep.mubr.msk.bf16.mxu1 %vm3568_vm0, %v3567_v40 }
 0x17c   :  { %v4364_v12 = vadd.f32 %v1944_v8, %v1713_v7  ;;  %v1946_v15 = vpop.f32.mrf.mxu1 }
 0x17d   :  { %v1715_v17 = vpop.f32.mrf.mxu0 }
 0x17e   :  { %v1716_v20 = vadd.f32 %v4089_v0, %v1715_v17  ;;  %v1947_v22 = vpop.f32.mrf.mxu1  ;;  %v3535_v17 = vld [vmem:[%s4778_s0 + $0x3c8] ss:$28 sps:$4 sm:$0xff]  }
 0x17f   :  { %v1717_v27 = vpop.f32.mrf.mxu0 }
 0x180   :  { %v4376_v28 = vadd.f32 %v1947_v22, %v1716_v20  ;;  %v1949_v30 = vpop.f32.mrf.mxu1  ;;  %v3538_v22 = vld [vmem:[%s4778_s0 + $0x3d0] ss:$28 sps:$4 sm:$0xff]  }
 0x181   :  { %v1720_v34 = vpop.f32.mrf.mxu0  ;;  %2175 = vmatmul.mubr.bf16.gmra.mxu0 %v3527_v19 }
 0x182   :  { %v1721_v35 = vadd.f32 %v4089_v0, %v1720_v34  ;;  %v1952_v36 = vpop.f32.mrf.mxu1  ;;  %3227 = vmatmul.mubr.msk.bf16.gmra.mxu1 %vm1482_vm1, %v3530_v24  ;;  %2182 = vmatprep.mubr.bf16.mxu0 %v3533_v26  ;;  %v3541_v24 = vld [vmem:[%s4778_s0 + $0x404] ss:$28 sps:$4 sm:$0xff]  }
 0x183   :  { %v1722_v41 = vpop.f32.mrf.mxu0  ;;  %3230 = vmatprep.mubr.msk.bf16.mxu1 %vm3568_vm0, %v3567_v40 }
 0x184   :  { %v4382_v44 = vadd.f32 %v1952_v36, %v1721_v35  ;;  %v1954_v45 = vpop.f32.mrf.mxu1 }
 0x185   :  { %v1723_v46 = vpop.f32.mrf.mxu0 }
 0x186   :  { %v1724_v51 = vadd.f32 %v4089_v0, %v1723_v46  ;;  %v1955_v52 = vpop.f32.mrf.mxu1 }
 0x187   :  { %v1725_v57 = vpop.f32.mrf.mxu0 }
 0x188   :  { %v4394_v59 = vadd.f32 %v1955_v52, %v1724_v51  ;;  %v1957_v62 = vpop.f32.mrf.mxu1  ;;  %v3539_v51 = vld [vmem:[%s4778_s0 + $0x400] ss:$28 sps:$4 sm:$0xff]  }
 0x189   :  { %v1728_v2 = vpop.f32.mrf.mxu0  ;;  %2183 = vmatmul.mubr.bf16.gmra.mxu0 %v3531_v47  ;;  %v3545_v57 = vld [vmem:[%s4778_s0 + $0x43c] ss:$28 sps:$4 sm:$0xff]  }
 0x18a   :  { %v1729_v5 = vadd.f32 %v4089_v0, %v1728_v2  ;;  %v1960_v6 = vpop.f32.mrf.mxu1  ;;  %3231 = vmatmul.mubr.msk.bf16.gmra.mxu1 %vm1482_vm1, %v3534_v55  ;;  %2190 = vmatprep.mubr.bf16.mxu0 %v3537_v56  ;;  %v3542_v56 = vld [vmem:[%s4778_s0 + $0x408] ss:$28 sps:$4 sm:$0xff]  }
 0x18b   :  { %v1730_v7 = vpop.f32.mrf.mxu0  ;;  %3234 = vmatprep.mubr.msk.bf16.mxu1 %vm3568_vm0, %v3567_v40 }
 0x18c   :  { %v4400_v8 = vadd.f32 %v1960_v6, %v1729_v5  ;;  %v1962_v11 = vpop.f32.mrf.mxu1 }
 0x18d   :  { %v1731_v15 = vpop.f32.mrf.mxu0 }
 0x18e   :  { %v1732_v19 = vadd.f32 %v4089_v0, %v1731_v15  ;;  %v1963_v20 = vpop.f32.mrf.mxu1 }
 0x18f   :  { %v1733_v26 = vpop.f32.mrf.mxu0 }
 0x190   :  { %v4412_v27 = vadd.f32 %v1963_v20, %v1732_v19  ;;  %v1965_v30 = vpop.f32.mrf.mxu1 }
 0x191   :  { %v1736_v34 = vpop.f32.mrf.mxu0  ;;  %2191 = vmatmul.mubr.bf16.gmra.mxu0 %v3535_v17  ;;  %v3546_v30 = vld [vmem:[%s4778_s0 + $0x440] ss:$28 sps:$4 sm:$0xff]  }
 0x192   :  { %v1737_v35 = vadd.f32 %v4089_v0, %v1736_v34  ;;  %v1968_v36 = vpop.f32.mrf.mxu1  ;;  %3235 = vmatmul.mubr.msk.bf16.gmra.mxu1 %vm1482_vm1, %v3538_v22  ;;  %2198 = vmatprep.mubr.bf16.mxu0 %v3541_v24  ;;  %v3543_v22 = vld [vmem:[%s4778_s0 + $0x438] ss:$28 sps:$4 sm:$0xff]  }
 0x193   :  { %v1738_v41 = vpop.f32.mrf.mxu0  ;;  %3238 = vmatprep.mubr.msk.bf16.mxu1 %vm3568_vm0, %v3567_v40  ;;  %v3549_v34 = vld [vmem:[%s4778_s0 + $0x474] ss:$28 sps:$4 sm:$0xff]  }
 0x194   :  { %v4418_v45 = vadd.f32 %v1968_v36, %v1737_v35  ;;  %v1970_v46 = vpop.f32.mrf.mxu1 }
 0x195   :  { %v1739_v47 = vpop.f32.mrf.mxu0 }
 0x196   :  { %v1740_v52 = vadd.f32 %v4089_v0, %v1739_v47  ;;  %v1971_v55 = vpop.f32.mrf.mxu1 }
 0x197   :  { %v1741_v62 = vpop.f32.mrf.mxu0 }
 0x198   :  { %v4430_v2 = vadd.f32 %v1971_v55, %v1740_v52  ;;  %v1973_v5 = vpop.f32.mrf.mxu1  ;;  %v3547_v62 = vld [vmem:[%s4778_s0 + $0x470] ss:$28 sps:$4 sm:$0xff]  }
 0x199   :  { %v1744_v6 = vpop.f32.mrf.mxu0  ;;  %2199 = vmatmul.mubr.bf16.gmra.mxu0 %v3539_v51 }
 0x19a   :  { %v1745_v7 = vadd.f32 %v4089_v0, %v1744_v6  ;;  %v1976_v11 = vpop.f32.mrf.mxu1  ;;  %3239 = vmatmul.mubr.msk.bf16.gmra.mxu1 %vm1482_vm1, %v3542_v56  ;;  %2206 = vmatprep.mubr.bf16.mxu0 %v3545_v57 }
 0x19b   :  { %v1746_v15 = vpop.f32.mrf.mxu0  ;;  %3242 = vmatprep.mubr.msk.bf16.mxu1 %vm3568_vm0, %v3567_v40 }
 0x19c   :  { %v4436_v17 = vadd.f32 %v1976_v11, %v1745_v7  ;;  %v1978_v19 = vpop.f32.mrf.mxu1  ;;  %v3550_v7 = vld [vmem:[%s4778_s0 + $0x478] ss:$28 sps:$4 sm:$0xff]   ;;  %v3553_v11 = vld [vmem:[%s4778_s0 + $0x4ac] ss:$28 sps:$4 sm:$0xff]  }
 0x19d   :  { %v1747_v20 = vpop.f32.mrf.mxu0 }
 0x19e   :  { %v1748_v24 = vadd.f32 %v4089_v0, %v1747_v20  ;;  %v1979_v26 = vpop.f32.mrf.mxu1 }
 0x19f   :  { %v1749_v35 = vpop.f32.mrf.mxu0 }
 0x1a0   :  { %v4448_v36 = vadd.f32 %v1979_v26, %v1748_v24  ;;  %v1981_v41 = vpop.f32.mrf.mxu1 }
 0x1a1   :  { %v1752_v46 = vpop.f32.mrf.mxu0  ;;  %2207 = vmatmul.mubr.bf16.gmra.mxu0 %v3543_v22 }
 0x1a2   :  { %v1753_v47 = vadd.f32 %v4089_v0, %v1752_v46  ;;  %v1984_v51 = vpop.f32.mrf.mxu1  ;;  %3243 = vmatmul.mubr.msk.bf16.gmra.mxu1 %vm1482_vm1, %v3546_v30  ;;  %2214 = vmatprep.mubr.bf16.mxu0 %v3549_v34  ;;  %v3551_v46 = vld [vmem:[%s4778_s0 + $0x4a8] ss:$28 sps:$4 sm:$0xff]  }
 0x1a3   :  { %v1754_v52 = vpop.f32.mrf.mxu0  ;;  %3246 = vmatprep.mubr.msk.bf16.mxu1 %vm3568_vm0, %v3567_v40 }
 0x1a4   :  { %v4454_v55 = vadd.f32 %v1984_v51, %v1753_v47  ;;  %v1986_v56 = vpop.f32.mrf.mxu1  ;;  %v3554_v52 = vld [vmem:[%s4778_s0 + $0x4b0] ss:$28 sps:$4 sm:$0xff]  }
 0x1a5   :  { %v1755_v57 = vpop.f32.mrf.mxu0  ;;  %v3557_v56 = vld [vmem:[%s4778_s0 + $0x4e4] ss:$28 sps:$4 sm:$0xff]  }
 0x1a6   :  { %v1756_v5 = vadd.f32 %v4089_v0, %v1755_v57  ;;  %v1987_v6 = vpop.f32.mrf.mxu1 }
 0x1a7   :  { %v1757_v15 = vpop.f32.mrf.mxu0 }
 0x1a8   :  { %v4466_v19 = vadd.f32 %v1987_v6, %v1756_v5  ;;  %v1989_v20 = vpop.f32.mrf.mxu1 }
 0x1a9   :  { %v1760_v22 = vpop.f32.mrf.mxu0  ;;  %2215 = vmatmul.mubr.bf16.gmra.mxu0 %v3547_v62 }
 0x1aa   :  { %v1761_v24 = vadd.f32 %v4089_v0, %v1760_v22  ;;  %v1992_v26 = vpop.f32.mrf.mxu1  ;;  %3247 = vmatmul.mubr.msk.bf16.gmra.mxu1 %vm1482_vm1, %v3550_v7  ;;  %2222 = vmatprep.mubr.bf16.mxu0 %v3553_v11 }
 0x1ab   :  { %v1762_v30 = vpop.f32.mrf.mxu0  ;;  %3250 = vmatprep.mubr.msk.bf16.mxu1 %vm3568_vm0, %v3567_v40 }
 0x1ac   :  { %v4472_v34 = vadd.f32 %v1992_v26, %v1761_v24  ;;  %v1994_v35 = vpop.f32.mrf.mxu1  ;;  %v3555_v26 = vld [vmem:[%s4778_s0 + $0x4e0] ss:$28 sps:$4 sm:$0xff]  }
 0x1ad   :  { %v1763_v41 = vpop.f32.mrf.mxu0 }
 0x1ae   :  { %v1764_v47 = vadd.f32 %v4089_v0, %v1763_v41  ;;  %v1995_v51 = vpop.f32.mrf.mxu1  ;;  %v3558_v41 = vld [vmem:[%s4778_s0 + $0x4e8] ss:$28 sps:$4 sm:$0xff]  }
 0x1af   :  { %v1765_v57 = vpop.f32.mrf.mxu0 }
 0x1b0   :  { %v4484_v62 = vadd.f32 %v1995_v51, %v1764_v47  ;;  %v1997_v5 = vpop.f32.mrf.mxu1 }
 0x1b1   :  { %v1768_v6 = vpop.f32.mrf.mxu0  ;;  %2223 = vmatmul.mubr.bf16.gmra.mxu0 %v3551_v46  ;;  %v3561_v46 = vld [vmem:[%s4778_s0 + $0x51c] ss:$28 sps:$4 sm:$0xff]  }
 0x1b2   :  { %v1769_v7 = vadd.f32 %v4089_v0, %v1768_v6  ;;  %v2000_v11 = vpop.f32.mrf.mxu1  ;;  %3251 = vmatmul.mubr.msk.bf16.gmra.mxu1 %vm1482_vm1, %v3554_v52  ;;  %2230 = vmatprep.mubr.bf16.mxu0 %v3557_v56 }
 0x1b3   :  { %v1770_v15 = vpop.f32.mrf.mxu0  ;;  %3254 = vmatprep.mubr.msk.bf16.mxu1 %vm3568_vm0, %v3567_v40 }
 0x1b4   :  { %v4490_v20 = vadd.f32 %v2000_v11, %v1769_v7  ;;  %v2002_v22 = vpop.f32.mrf.mxu1  ;;  %v209_v7 = vld [vmem:[%s4778_s0 + $0x550] sm:$0xff] }
 0x1b5   :  { %v1771_v24 = vpop.f32.mrf.mxu0 }
 0x1b6   :  { %v1772_v30 = vadd.f32 %v4089_v0, %v1771_v24  ;;  %v2003_v35 = vpop.f32.mrf.mxu1  ;;  %v3559_v24 = vld [vmem:[%s4778_s0 + $0x518] ss:$28 sps:$4 sm:$0xff]  }
 0x1b7   :  { %v1773_v47 = vpop.f32.mrf.mxu0 }
 0x1b8   :  { %v4502_v51 = vadd.f32 %v2003_v35, %v1772_v30  ;;  %v2005_v52 = vpop.f32.mrf.mxu1  ;;  %v3562_v35 = vld [vmem:[%s4778_s0 + $0x520] ss:$28 sps:$4 sm:$0xff]  }
 0x1b9   :  { %v1776_v56 = vpop.f32.mrf.mxu0  ;;  %2231 = vmatmul.mubr.bf16.gmra.mxu0 %v3555_v26 }
 0x1ba   :  { %v1777_v57 = vadd.f32 %v4089_v0, %v1776_v56  ;;  %v2008_v5 = vpop.f32.mrf.mxu1  ;;  %3255 = vmatmul.mubr.msk.bf16.gmra.mxu1 %vm1482_vm1, %v3558_v41  ;;  %2238 = vmatprep.mubr.bf16.mxu0 %v3561_v46  ;;  %v2960_v41 = vcombine.high %v209_v7, %v209_v7 }
 0x1bb   :  { %v1778_v6 = vpop.f32.mrf.mxu0  ;;  %3258 = vmatprep.mubr.msk.bf16.mxu1 %vm3568_vm0, %v3567_v40 }
 0x1bc   :  { %v4511_v11 = vadd.f32 %v2008_v5, %v1777_v57  ;;  %v2010_v15 = vpop.f32.mrf.mxu1 }
 0x1bd   :  { %v1779_v22 = vpop.f32.mrf.mxu0 }
 0x1be   :  { %4781 = vst [vmem:[#allocation2_spill] sm:$0xff] %v4511_v11  ;;  %v1780_v26 = vadd.f32 %v4089_v0, %v1779_v22  ;;  %v2011_v30 = vpop.f32.mrf.mxu1 }
 0x1bf   :  { %v1781_v46 = vpop.f32.mrf.mxu0 }
 0x1c0   :  { %v4520_v47 = vadd.f32 %v2011_v30, %v1780_v26  ;;  %v2013_v52 = vpop.f32.mrf.mxu1  ;;  %v2959_v46 = vcombine.low %v209_v7, %v209_v7 }
 0x1c1   :  { %v1784_v56 = vpop.f32.mrf.mxu0  ;;  %2239 = vmatmul.mubr.bf16.gmra.mxu0 %v3559_v24  ;;  %v3565_v24 = vld [vmem:[%s4778_s0 + $0x558] ss:$0 sps:$4 sm:$0xff]  }
 0x1c2   :  { %v1785_v57 = vadd.f32 %v4089_v0, %v1784_v56  ;;  %v2016_v5 = vpop.f32.mrf.mxu1  ;;  %3259 = vmatmul.mubr.msk.bf16.gmra.mxu1 %vm1482_vm1, %v3562_v35  ;;  %2246 = vmatprep.mubr.bf16.mxu0 %v2960_v41 }
 0x1c3   :  { %v1786_v6 = vpop.f32.mrf.mxu0  ;;  %3262 = vmatprep.mubr.msk.bf16.mxu1 %vm3568_vm0, %v3567_v40 }
 0x1c4   :  { %v4526_v15 = vadd.f32 %v2016_v5, %v1785_v57  ;;  %v2018_v22 = vpop.f32.mrf.mxu1 }
 0x1c5   :  { %v1787_v11 = vpop.f32.mrf.mxu0 }
 0x1c6   :  { %4782 = vst [vmem:[#allocation3_spill] sm:$0xff] %v4526_v15  ;;  %v2019_v26 = vpop.f32.mrf.mxu1 }
 0x1c7   :  { %v1788_v30 = vpop.f32.mrf.mxu0 }
 0x1c8   :  { %v2020_v0 = vpop.f32.mrf.mxu1 }
 0x1c9   :  { %v2056_v52 = vpop.f32.mrf.mxu0  ;;  %2247 = vmatmul.mubr.bf16.gmra.mxu0 %v2959_v46 }
 0x1ca   :  { %v2057_v35 = vadd.f32 %v2056_v52, %v4094_v33  ;;  %v2288_v41 = vpop.f32.mrf.mxu1  ;;  %3263 = vmatmul.mubr.msk.bf16.gmra.mxu1 %vm1482_vm1, %v3565_v24 }
 0x1cb   :  { %v2058_v40 = vpop.f32.mrf.mxu0 }
 0x1cc   :  { %v2289_v56 = vadd.f32 %v2288_v41, %v2057_v35  ;;  %v3168_v57 = vpop.f32.mrf.mxu1 }
 0x1cd   :  { %v2059_v5 = vpop.f32.mrf.mxu0 }
 0x1ce   :  { %v2486_v11 = vmax.f32 %v2289_v56, 0.0  ;;  %v2060_v7 = vadd.f32 %v2059_v5, %v4106_v43  ;;  %v2291_v6 = vpop.f32.mrf.mxu1 }
 0x1cf   :  { %v2061_v22 = vpop.f32.mrf.mxu0 }
 0x1d0   :  { %v3086_v26 = vpack.c.bf16 %v2486_v11, %v2486_v11  ;;  %v2292_v30 = vadd.f32 %v2291_v6, %v2060_v7  ;;  %v3169_v0 = vpop.f32.mrf.mxu1 }
 0x1d1   :  { %v2064_v15 = vpop.f32.mrf.mxu0 }
 0x1d2   :  { %2733 = vst.msk [vmem:[%s4780_s3] sm:$0xf] %vm2732_vm2, %v3086_v26  ;;  %v2487_v33 = vmax.f32 %v2292_v30, 0.0  ;;  %v2065_v46 = vadd.f32 %v2064_v15, %v4112_v49  ;;  %v2296_v24 = vpop.f32.mrf.mxu1 }
 0x1d3   :  { %v2066_v52 = vpop.f32.mrf.mxu0 }
 0x1d4   :  { %v3087_v35 = vpack.c.bf16 %v2487_v33, %v2487_v33  ;;  %v2297_v41 = vadd.f32 %v2296_v24, %v2065_v46  ;;  %v3172_v43 = vpop.f32.mrf.mxu1 }
 0x1d5   :  { %v2067_v40 = vpop.f32.mrf.mxu0 }
 0x1d6   :  { %2734 = vst.msk [vmem:[%s4780_s3 + $0x4] sm:$0xf] %vm2732_vm2, %v3087_v35  ;;  %v2488_v56 = vmax.f32 %v2297_v41, 0.0  ;;  %v2068_v57 = vadd.f32 %v2067_v40, %v4124_v58  ;;  %v2299_v5 = vpop.f32.mrf.mxu1 }
 0x1d7   :  { %v2069_v11 = vpop.f32.mrf.mxu0 }
 0x1d8   :  { %v3088_v7 = vpack.c.bf16 %v2488_v56, %v2488_v56  ;;  %v2300_v6 = vadd.f32 %v2299_v5, %v2068_v57  ;;  %v3173_v22 = vpop.f32.mrf.mxu1 }
 0x1d9   :  { %v2072_v49 = vpop.f32.mrf.mxu0 }
 0x1da   :  { %2735 = vst.msk [vmem:[%s4780_s3 + $0x8] sm:$0xf] %vm2732_vm2, %v3088_v7  ;;  %v2489_v15 = vmax.f32 %v2300_v6, 0.0  ;;  %v2073_v26 = vadd.f32 %v2072_v49, %v4130_v1  ;;  %v2304_v30 = vpop.f32.mrf.mxu1 }
 0x1db   :  { %v2074_v0 = vpop.f32.mrf.mxu0 }
 0x1dc   :  { %v3089_v33 = vpack.c.bf16 %v2489_v15, %v2489_v15  ;;  %v2305_v46 = vadd.f32 %v2304_v30, %v2073_v26  ;;  %v3176_v24 = vpop.f32.mrf.mxu1 }
 0x1dd   :  { %v2075_v58 = vpop.f32.mrf.mxu0 }
 0x1de   :  { %2736 = vst.msk [vmem:[%s4780_s3 + $0xc] sm:$0xf] %vm2732_vm2, %v3089_v33  ;;  %v2490_v52 = vmax.f32 %v2305_v46, 0.0  ;;  %v2076_v35 = vadd.f32 %v2075_v58, %v4142_v10  ;;  %v2307_v41 = vpop.f32.mrf.mxu1 }
 0x1df   :  { %v2077_v43 = vpop.f32.mrf.mxu0 }
 0x1e0   :  { %v3090_v40 = vpack.c.bf16 %v2490_v52, %v2490_v52  ;;  %v2308_v56 = vadd.f32 %v2307_v41, %v2076_v35  ;;  %v3177_v57 = vpop.f32.mrf.mxu1 }
 0x1e1   :  { %v2080_v1 = vpop.f32.mrf.mxu0 }
 0x1e2   :  { %2737 = vst.msk [vmem:[%s4780_s3 + $0x10] sm:$0xf] %vm2732_vm2, %v3090_v40  ;;  %v2491_v5 = vmax.f32 %v2308_v56, 0.0  ;;  %v2081_v11 = vadd.f32 %v2080_v1, %v4148_v16  ;;  %v2312_v7 = vpop.f32.mrf.mxu1 }
 0x1e3   :  { %v2082_v6 = vpop.f32.mrf.mxu0 }
 0x1e4   :  { %v3091_v22 = vpack.c.bf16 %v2491_v5, %v2491_v5  ;;  %v2313_v49 = vadd.f32 %v2312_v7, %v2081_v11  ;;  %v3180_v15 = vpop.f32.mrf.mxu1 }
 0x1e5   :  { %v2083_v10 = vpop.f32.mrf.mxu0 }
 0x1e6   :  { %2738 = vst.msk [vmem:[%s4780_s3 + $0x14] sm:$0xf] %vm2732_vm2, %v3091_v22  ;;  %v2492_v26 = vmax.f32 %v2313_v49, 0.0  ;;  %v2084_v30 = vadd.f32 %v2083_v10, %v4160_v25  ;;  %v2315_v0 = vpop.f32.mrf.mxu1 }
 0x1e7   :  { %v2085_v33 = vpop.f32.mrf.mxu0 }
 0x1e8   :  { %v3092_v46 = vpack.c.bf16 %v2492_v26, %v2492_v26  ;;  %v2316_v24 = vadd.f32 %v2315_v0, %v2084_v30  ;;  %v3181_v58 = vpop.f32.mrf.mxu1 }
 0x1e9   :  { %v2088_v16 = vpop.f32.mrf.mxu0 }
 0x1ea   :  { %2739 = vst.msk [vmem:[%s4780_s3 + $0x18] sm:$0xf] %vm2732_vm2, %v3092_v46  ;;  %v2493_v52 = vmax.f32 %v2316_v24, 0.0  ;;  %v2089_v35 = vadd.f32 %v2088_v16, %v4166_v31  ;;  %v2320_v41 = vpop.f32.mrf.mxu1 }
 0x1eb   :  { %v2090_v43 = vpop.f32.mrf.mxu0 }
 0x1ec   :  { %v3093_v40 = vpack.c.bf16 %v2493_v52, %v2493_v52  ;;  %v2321_v56 = vadd.f32 %v2320_v41, %v2089_v35  ;;  %v3184_v57 = vpop.f32.mrf.mxu1 }
 0x1ed   :  { %v2091_v25 = vpop.f32.mrf.mxu0 }
 0x1ee   :  { %2740 = vst.msk [vmem:[%s4780_s3 + $0x1c] sm:$0xf] %vm2732_vm2, %v3093_v40  ;;  %v2494_v1 = vmax.f32 %v2321_v56, 0.0  ;;  %v2092_v5 = vadd.f32 %v2091_v25, %v4178_v42  ;;  %v2323_v11 = vpop.f32.mrf.mxu1 }
 0x1ef   :  { %v2093_v7 = vpop.f32.mrf.mxu0 }
 0x1f0   :  { %v3094_v6 = vpack.c.bf16 %v2494_v1, %v2494_v1  ;;  %v2324_v22 = vadd.f32 %v2323_v11, %v2092_v5  ;;  %v3185_v49 = vpop.f32.mrf.mxu1 }
 0x1f1   :  { %v2096_v31 = vpop.f32.mrf.mxu0 }
 0x1f2   :  { %2741 = vst.msk [vmem:[%s4780_s3 + $0x20] sm:$0xf] %vm2732_vm2, %v3094_v6  ;;  %v2495_v15 = vmax.f32 %v2324_v22, 0.0  ;;  %v2097_v10 = vadd.f32 %v2096_v31, %v4184_v50  ;;  %v2328_v26 = vpop.f32.mrf.mxu1 }
 0x1f3   :  { %v2098_v30 = vpop.f32.mrf.mxu0 }
 0x1f4   :  { %v3095_v0 = vpack.c.bf16 %v2495_v15, %v2495_v15  ;;  %v2329_v33 = vadd.f32 %v2328_v26, %v2097_v10  ;;  %v3188_v46 = vpop.f32.mrf.mxu1 }
 0x1f5   :  { %v2099_v42 = vpop.f32.mrf.mxu0 }
 0x1f6   :  { %2742 = vst.msk [vmem:[%s4780_s3 + $0x24] sm:$0xf] %vm2732_vm2, %v3095_v0  ;;  %v2496_v24 = vmax.f32 %v2329_v33, 0.0  ;;  %v2100_v58 = vadd.f32 %v2099_v42, %v4196_v60  ;;  %v2331_v16 = vpop.f32.mrf.mxu1 }
 0x1f7   :  { %v2101_v52 = vpop.f32.mrf.mxu0 }
 0x1f8   :  { %v3096_v35 = vpack.c.bf16 %v2496_v24, %v2496_v24  ;;  %v2332_v41 = vadd.f32 %v2331_v16, %v2100_v58  ;;  %v3189_v43 = vpop.f32.mrf.mxu1 }
 0x1f9   :  { %v2104_v50 = vpop.f32.mrf.mxu0 }
 0x1fa   :  { %2743 = vst.msk [vmem:[%s4780_s3 + $0x28] sm:$0xf] %vm2732_vm2, %v3096_v35  ;;  %v2497_v40 = vmax.f32 %v2332_v41, 0.0  ;;  %v2105_v56 = vadd.f32 %v2104_v50, %v4202_v4  ;;  %v2336_v57 = vpop.f32.mrf.mxu1 }
 0x1fb   :  { %v2106_v25 = vpop.f32.mrf.mxu0 }
 0x1fc   :  { %v3097_v1 = vpack.c.bf16 %v2497_v40, %v2497_v40  ;;  %v2337_v5 = vadd.f32 %v2336_v57, %v2105_v56  ;;  %v3192_v11 = vpop.f32.mrf.mxu1 }
 0x1fd   :  { %v2107_v60 = vpop.f32.mrf.mxu0 }
 0x1fe   :  { %2744 = vst.msk [vmem:[%s4780_s3 + $0x2c] sm:$0xf] %vm2732_vm2, %v3097_v1  ;;  %v2498_v7 = vmax.f32 %v2337_v5, 0.0  ;;  %v2108_v6 = vadd.f32 %v2107_v60, %v4214_v14  ;;  %v2339_v22 = vpop.f32.mrf.mxu1 }
 0x1ff   :  { %v2109_v49 = vpop.f32.mrf.mxu0 }
 0x200   :  { %v3098_v31 = vpack.c.bf16 %v2498_v7, %v2498_v7  ;;  %v2340_v15 = vadd.f32 %v2339_v22, %v2108_v6  ;;  %v3193_v10 = vpop.f32.mrf.mxu1 }
 0x201   :  { %v2112_v4 = vpop.f32.mrf.mxu0 }
 0x202   :  { %2745 = vst.msk [vmem:[%s4780_s3 + $0x30] sm:$0xf] %vm2732_vm2, %v3098_v31  ;;  %v2499_v26 = vmax.f32 %v2340_v15, 0.0  ;;  %v2113_v30 = vadd.f32 %v2112_v4, %v4220_v21  ;;  %v2344_v0 = vpop.f32.mrf.mxu1 }
 0x203   :  { %v2114_v33 = vpop.f32.mrf.mxu0 }
 0x204   :  { %v3099_v46 = vpack.c.bf16 %v2499_v26, %v2499_v26  ;;  %v2345_v42 = vadd.f32 %v2344_v0, %v2113_v30  ;;  %v3196_v24 = vpop.f32.mrf.mxu1 }
 0x205   :  { %v2115_v14 = vpop.f32.mrf.mxu0 }
 0x206   :  { %2746 = vst.msk [vmem:[%s4780_s3 + $0x34] sm:$0xf] %vm2732_vm2, %v3099_v46  ;;  %v2500_v58 = vmax.f32 %v2345_v42, 0.0  ;;  %v2116_v16 = vadd.f32 %v2115_v14, %v4232_v32  ;;  %v2347_v52 = vpop.f32.mrf.mxu1 }
 0x207   :  { %v2117_v35 = vpop.f32.mrf.mxu0 }
 0x208   :  { %v3100_v41 = vpack.c.bf16 %v2500_v58, %v2500_v58  ;;  %v2348_v43 = vadd.f32 %v2347_v52, %v2116_v16  ;;  %v3197_v50 = vpop.f32.mrf.mxu1 }
 0x209   :  { %v2120_v21 = vpop.f32.mrf.mxu0 }
 0x20a   :  { %2747 = vst.msk [vmem:[%s4780_s3 + $0x38] sm:$0xf] %vm2732_vm2, %v3100_v41  ;;  %v2501_v40 = vmax.f32 %v2348_v43, 0.0  ;;  %v2121_v56 = vadd.f32 %v2120_v21, %v4238_v39  ;;  %v2352_v57 = vpop.f32.mrf.mxu1 }
 0x20b   :  { %v2122_v25 = vpop.f32.mrf.mxu0 }
 0x20c   :  { %v3101_v1 = vpack.c.bf16 %v2501_v40, %v2501_v40  ;;  %v2353_v5 = vadd.f32 %v2352_v57, %v2121_v56  ;;  %v3200_v11 = vpop.f32.mrf.mxu1 }
 0x20d   :  { %v2123_v32 = vpop.f32.mrf.mxu0 }
 0x20e   :  { %2748 = vst.msk [vmem:[%s4780_s3 + $0x3c] sm:$0xf] %vm2732_vm2, %v3101_v1  ;;  %v2502_v60 = vmax.f32 %v2353_v5, 0.0  ;;  %v2124_v7 = vadd.f32 %v2123_v32, %v4250_v53  ;;  %v2355_v6 = vpop.f32.mrf.mxu1 }
 0x20f   :  { %v2125_v22 = vpop.f32.mrf.mxu0 }
 0x210   :  { %v3102_v49 = vpack.c.bf16 %v2502_v60, %v2502_v60  ;;  %v2356_v31 = vadd.f32 %v2355_v6, %v2124_v7  ;;  %v3201_v15 = vpop.f32.mrf.mxu1 }
 0x211   :  { %v2128_v39 = vpop.f32.mrf.mxu0 }
 0x212   :  { %2749 = vst.msk [vmem:[%s4780_s3 + $0x40] sm:$0xf] %vm2732_vm2, %v3102_v49  ;;  %v2503_v10 = vmax.f32 %v2356_v31, 0.0  ;;  %v2129_v4 = vadd.f32 %v2128_v39, %v4256_v61  ;;  %v2360_v26 = vpop.f32.mrf.mxu1 }
 0x213   :  { %v2130_v30 = vpop.f32.mrf.mxu0 }
 0x214   :  { %v3103_v0 = vpack.c.bf16 %v2503_v10, %v2503_v10  ;;  %v2361_v33 = vadd.f32 %v2360_v26, %v2129_v4  ;;  %v3204_v46 = vpop.f32.mrf.mxu1 }
 0x215   :  { %v2131_v53 = vpop.f32.mrf.mxu0 }
 0x216   :  { %2750 = vst.msk [vmem:[%s4780_s3 + $0x44] sm:$0xf] %vm2732_vm2, %v3103_v0  ;;  %v2504_v42 = vmax.f32 %v2361_v33, 0.0  ;;  %v2132_v24 = vadd.f32 %v2131_v53, %v4268_v9  ;;  %v2363_v14 = vpop.f32.mrf.mxu1 }
 0x217   :  { %v2133_v58 = vpop.f32.mrf.mxu0 }
 0x218   :  { %v3104_v16 = vpack.c.bf16 %v2504_v42, %v2504_v42  ;;  %v2364_v52 = vadd.f32 %v2363_v14, %v2132_v24  ;;  %v3205_v35 = vpop.f32.mrf.mxu1 }
 0x219   :  { %v2136_v61 = vpop.f32.mrf.mxu0 }
 0x21a   :  { %2751 = vst.msk [vmem:[%s4780_s3 + $0x48] sm:$0xf] %vm2732_vm2, %v3104_v16  ;;  %v2505_v41 = vmax.f32 %v2364_v52, 0.0  ;;  %v2137_v43 = vadd.f32 %v2136_v61, %v4274_v18  ;;  %v2368_v50 = vpop.f32.mrf.mxu1 }
 0x21b   :  { %v2138_v21 = vpop.f32.mrf.mxu0 }
 0x21c   :  { %v3105_v40 = vpack.c.bf16 %v2505_v41, %v2505_v41  ;;  %v2369_v56 = vadd.f32 %v2368_v50, %v2137_v43  ;;  %v3208_v57 = vpop.f32.mrf.mxu1 }
 0x21d   :  { %v2139_v9 = vpop.f32.mrf.mxu0 }
 0x21e   :  { %2752 = vst.msk [vmem:[%s4780_s3 + $0x4c] sm:$0xf] %vm2732_vm2, %v3105_v40  ;;  %v2506_v25 = vmax.f32 %v2369_v56, 0.0  ;;  %v2140_v1 = vadd.f32 %v2139_v9, %v4286_v29  ;;  %v2371_v5 = vpop.f32.mrf.mxu1 }
 0x21f   :  { %v2141_v11 = vpop.f32.mrf.mxu0 }
 0x220   :  { %v3106_v32 = vpack.c.bf16 %v2506_v25, %v2506_v25  ;;  %v2372_v60 = vadd.f32 %v2371_v5, %v2140_v1  ;;  %v3209_v7 = vpop.f32.mrf.mxu1 }
 0x221   :  { %v2144_v18 = vpop.f32.mrf.mxu0 }
 0x222   :  { %2753 = vst.msk [vmem:[%s4780_s3 + $0x50] sm:$0xf] %vm2732_vm2, %v3106_v32  ;;  %v2507_v6 = vmax.f32 %v2372_v60, 0.0  ;;  %v2145_v22 = vadd.f32 %v2144_v18, %v4292_v38  ;;  %v2376_v49 = vpop.f32.mrf.mxu1 }
 0x223   :  { %v2146_v31 = vpop.f32.mrf.mxu0 }
 0x224   :  { %v3107_v15 = vpack.c.bf16 %v2507_v6, %v2507_v6  ;;  %v2377_v39 = vadd.f32 %v2376_v49, %v2145_v22  ;;  %v3212_v10 = vpop.f32.mrf.mxu1 }
 0x225   :  { %v2147_v29 = vpop.f32.mrf.mxu0 }
 0x226   :  { %2754 = vst.msk [vmem:[%s4780_s3 + $0x54] sm:$0xf] %vm2732_vm2, %v3107_v15  ;;  %v2508_v4 = vmax.f32 %v2377_v39, 0.0  ;;  %v2148_v26 = vadd.f32 %v2147_v29, %v4304_v54  ;;  %v2379_v30 = vpop.f32.mrf.mxu1 }
 0x227   :  { %v2149_v0 = vpop.f32.mrf.mxu0 }
 0x228   :  { %v3108_v33 = vpack.c.bf16 %v2508_v4, %v2508_v4  ;;  %v2380_v46 = vadd.f32 %v2379_v30, %v2148_v26  ;;  %v3213_v53 = vpop.f32.mrf.mxu1 }
 0x229   :  { %v2152_v38 = vpop.f32.mrf.mxu0 }
 0x22a   :  { %2755 = vst.msk [vmem:[%s4780_s3 + $0x58] sm:$0xf] %vm2732_vm2, %v3108_v33  ;;  %v2509_v42 = vmax.f32 %v2380_v46, 0.0  ;;  %v2153_v24 = vadd.f32 %v2152_v38, %v4310_v63  ;;  %v2384_v14 = vpop.f32.mrf.mxu1 }
 0x22b   :  { %v2154_v58 = vpop.f32.mrf.mxu0 }
 0x22c   :  { %v3109_v16 = vpack.c.bf16 %v2509_v42, %v2509_v42  ;;  %v2385_v52 = vadd.f32 %v2384_v14, %v2153_v24  ;;  %v3216_v35 = vpop.f32.mrf.mxu1 }
 0x22d   :  { %v2155_v54 = vpop.f32.mrf.mxu0 }
 0x22e   :  { %2756 = vst.msk [vmem:[%s4780_s3 + $0x5c] sm:$0xf] %vm2732_vm2, %v3109_v16  ;;  %v2510_v61 = vmax.f32 %v2385_v52, 0.0  ;;  %v2156_v41 = vadd.f32 %v2155_v54, %v4322_v13  ;;  %v2387_v43 = vpop.f32.mrf.mxu1 }
 0x22f   :  { %v2157_v50 = vpop.f32.mrf.mxu0 }
 0x230   :  { %v3110_v21 = vpack.c.bf16 %v2510_v61, %v2510_v61  ;;  %v2388_v40 = vadd.f32 %v2387_v43, %v2156_v41  ;;  %v3217_v56 = vpop.f32.mrf.mxu1 }
 0x231   :  { %v2160_v63 = vpop.f32.mrf.mxu0 }
 0x232   :  { %2757 = vst.msk [vmem:[%s4780_s3 + $0x60] sm:$0xf] %vm2732_vm2, %v3110_v21  ;;  %v2511_v57 = vmax.f32 %v2388_v40, 0.0  ;;  %v2161_v9 = vadd.f32 %v2160_v63, %v4328_v23  ;;  %v2392_v25 = vpop.f32.mrf.mxu1 }
 0x233   :  { %v2162_v1 = vpop.f32.mrf.mxu0 }
 0x234   :  { %v3111_v5 = vpack.c.bf16 %v2511_v57, %v2511_v57  ;;  %v2393_v11 = vadd.f32 %v2392_v25, %v2161_v9  ;;  %v3220_v32 = vpop.f32.mrf.mxu1 }
 0x235   :  { %v2163_v13 = vpop.f32.mrf.mxu0 }
 0x236   :  { %2758 = vst.msk [vmem:[%s4780_s3 + $0x64] sm:$0xf] %vm2732_vm2, %v3111_v5  ;;  %v2512_v60 = vmax.f32 %v2393_v11, 0.0  ;;  %v2164_v7 = vadd.f32 %v2163_v13, %v4340_v37  ;;  %v2395_v18 = vpop.f32.mrf.mxu1 }
 0x237   :  { %v2165_v6 = vpop.f32.mrf.mxu0 }
 0x238   :  { %v3112_v22 = vpack.c.bf16 %v2512_v60, %v2512_v60  ;;  %v2396_v49 = vadd.f32 %v2395_v18, %v2164_v7  ;;  %v3221_v31 = vpop.f32.mrf.mxu1 }
 0x239   :  { %v2168_v23 = vpop.f32.mrf.mxu0 }
 0x23a   :  { %2759 = vst.msk [vmem:[%s4780_s3 + $0x68] sm:$0xf] %vm2732_vm2, %v3112_v22  ;;  %v2513_v15 = vmax.f32 %v2396_v49, 0.0  ;;  %v2169_v39 = vadd.f32 %v2168_v23, %v4346_v48  ;;  %v2400_v10 = vpop.f32.mrf.mxu1 }
 0x23b   :  { %v2170_v29 = vpop.f32.mrf.mxu0 }
 0x23c   :  { %v3113_v4 = vpack.c.bf16 %v2513_v15, %v2513_v15  ;;  %v2401_v26 = vadd.f32 %v2400_v10, %v2169_v39  ;;  %v3224_v30 = vpop.f32.mrf.mxu1 }
 0x23d   :  { %v2171_v37 = vpop.f32.mrf.mxu0 }
 0x23e   :  { %2760 = vst.msk [vmem:[%s4780_s3 + $0x6c] sm:$0xf] %vm2732_vm2, %v3113_v4  ;;  %v2514_v0 = vmax.f32 %v2401_v26, 0.0  ;;  %v2172_v33 = vadd.f32 %v2171_v37, %v4358_v3  ;;  %v2403_v46 = vpop.f32.mrf.mxu1 }
 0x23f   :  { %v2173_v53 = vpop.f32.mrf.mxu0 }
 0x240   :  { %v3114_v38 = vpack.c.bf16 %v2514_v0, %v2514_v0  ;;  %v2404_v42 = vadd.f32 %v2403_v46, %v2172_v33  ;;  %v3225_v24 = vpop.f32.mrf.mxu1 }
 0x241   :  { %v2176_v48 = vpop.f32.mrf.mxu0 }
 0x242   :  { %2761 = vst.msk [vmem:[%s4780_s3 + $0x70] sm:$0xf] %vm2732_vm2, %v3114_v38  ;;  %v2515_v14 = vmax.f32 %v2404_v42, 0.0  ;;  %v2177_v58 = vadd.f32 %v2176_v48, %v4364_v12  ;;  %v2408_v16 = vpop.f32.mrf.mxu1 }
 0x243   :  { %v2178_v52 = vpop.f32.mrf.mxu0 }
 0x244   :  { %v3115_v35 = vpack.c.bf16 %v2515_v14, %v2515_v14  ;;  %v2409_v54 = vadd.f32 %v2408_v16, %v2177_v58  ;;  %v3228_v61 = vpop.f32.mrf.mxu1 }
 0x245   :  { %v2179_v3 = vpop.f32.mrf.mxu0 }
 0x246   :  { %2762 = vst.msk [vmem:[%s4780_s3 + $0x74] sm:$0xf] %vm2732_vm2, %v3115_v35  ;;  %v2516_v41 = vmax.f32 %v2409_v54, 0.0  ;;  %v2180_v43 = vadd.f32 %v2179_v3, %v4376_v28  ;;  %v2411_v50 = vpop.f32.mrf.mxu1 }
 0x247   :  { %v2181_v21 = vpop.f32.mrf.mxu0 }
 0x248   :  { %v3116_v40 = vpack.c.bf16 %v2516_v41, %v2516_v41  ;;  %v2412_v56 = vadd.f32 %v2411_v50, %v2180_v43  ;;  %v3229_v63 = vpop.f32.mrf.mxu1 }
 0x249   :  { %v2184_v12 = vpop.f32.mrf.mxu0 }
 0x24a   :  { %2763 = vst.msk [vmem:[%s4780_s3 + $0x78] sm:$0xf] %vm2732_vm2, %v3116_v40  ;;  %v2517_v57 = vmax.f32 %v2412_v56, 0.0  ;;  %v2185_v9 = vadd.f32 %v2184_v12, %v4382_v44  ;;  %v2416_v25 = vpop.f32.mrf.mxu1 }
 0x24b   :  { %v2186_v1 = vpop.f32.mrf.mxu0 }
 0x24c   :  { %v3117_v5 = vpack.c.bf16 %v2517_v57, %v2517_v57  ;;  %v2417_v11 = vadd.f32 %v2416_v25, %v2185_v9  ;;  %v3232_v32 = vpop.f32.mrf.mxu1 }
 0x24d   :  { %v2187_v28 = vpop.f32.mrf.mxu0 }
 0x24e   :  { %2764 = vst.msk [vmem:[%s4780_s3 + $0x7c] sm:$0xf] %vm2732_vm2, %v3117_v5  ;;  %v2518_v13 = vmax.f32 %v2417_v11, 0.0  ;;  %v2188_v60 = vadd.f32 %v2187_v28, %v4394_v59  ;;  %v2419_v7 = vpop.f32.mrf.mxu1 }
 0x24f   :  { %v2189_v18 = vpop.f32.mrf.mxu0 }
 0x250   :  { %v3118_v6 = vpack.c.bf16 %v2518_v13, %v2518_v13  ;;  %v2420_v22 = vadd.f32 %v2419_v7, %v2188_v60  ;;  %v3233_v49 = vpop.f32.mrf.mxu1 }
 0x251   :  { %v2192_v44 = vpop.f32.mrf.mxu0 }
 0x252   :  { %2765 = vst.msk [vmem:[%s4780_s3 + $0x80] sm:$0xf] %vm2732_vm2, %v3118_v6  ;;  %v2519_v31 = vmax.f32 %v2420_v22, 0.0  ;;  %v2193_v23 = vadd.f32 %v2192_v44, %v4400_v8  ;;  %v2424_v15 = vpop.f32.mrf.mxu1 }
 0x253   :  { %v2194_v39 = vpop.f32.mrf.mxu0 }
 0x254   :  { %v3119_v10 = vpack.c.bf16 %v2519_v31, %v2519_v31  ;;  %v2425_v29 = vadd.f32 %v2424_v15, %v2193_v23  ;;  %v3236_v4 = vpop.f32.mrf.mxu1 }
 0x255   :  { %v2195_v59 = vpop.f32.mrf.mxu0 }
 0x256   :  { %2766 = vst.msk [vmem:[%s4780_s3 + $0x84] sm:$0xf] %vm2732_vm2, %v3119_v10  ;;  %v2520_v26 = vmax.f32 %v2425_v29, 0.0  ;;  %v2196_v30 = vadd.f32 %v2195_v59, %v4412_v27  ;;  %v2427_v37 = vpop.f32.mrf.mxu1 }
 0x257   :  { %v2197_v0 = vpop.f32.mrf.mxu0 }
 0x258   :  { %v3120_v33 = vpack.c.bf16 %v2520_v26, %v2520_v26  ;;  %v2428_v46 = vadd.f32 %v2427_v37, %v2196_v30  ;;  %v3237_v53 = vpop.f32.mrf.mxu1 }
 0x259   :  { %v2200_v8 = vpop.f32.mrf.mxu0 }
 0x25a   :  { %2767 = vst.msk [vmem:[%s4780_s3 + $0x88] sm:$0xf] %vm2732_vm2, %v3120_v33  ;;  %v2521_v38 = vmax.f32 %v2428_v46, 0.0  ;;  %v2201_v42 = vadd.f32 %v2200_v8, %v4418_v45  ;;  %v2432_v24 = vpop.f32.mrf.mxu1 }
 0x25b   :  { %v2202_v48 = vpop.f32.mrf.mxu0 }
 0x25c   :  { %v3121_v14 = vpack.c.bf16 %v2521_v38, %v2521_v38  ;;  %v2433_v58 = vadd.f32 %v2432_v24, %v2201_v42  ;;  %v3240_v16 = vpop.f32.mrf.mxu1 }
 0x25d   :  { %v2203_v27 = vpop.f32.mrf.mxu0 }
 0x25e   :  { %2768 = vst.msk [vmem:[%s4780_s3 + $0x8c] sm:$0xf] %vm2732_vm2, %v3121_v14  ;;  %v2522_v52 = vmax.f32 %v2433_v58, 0.0  ;;  %v2204_v35 = vadd.f32 %v2203_v27, %v4430_v2  ;;  %v2435_v54 = vpop.f32.mrf.mxu1 }
 0x25f   :  { %v2205_v61 = vpop.f32.mrf.mxu0 }
 0x260   :  { %v3122_v3 = vpack.c.bf16 %v2522_v52, %v2522_v52  ;;  %v2436_v41 = vadd.f32 %v2435_v54, %v2204_v35  ;;  %v3241_v43 = vpop.f32.mrf.mxu1 }
 0x261   :  { %v2208_v45 = vpop.f32.mrf.mxu0 }
 0x262   :  { %2769 = vst.msk [vmem:[%s4780_s3 + $0x90] sm:$0xf] %vm2732_vm2, %v3122_v3  ;;  %v2523_v50 = vmax.f32 %v2436_v41, 0.0  ;;  %v2209_v21 = vadd.f32 %v2208_v45, %v4436_v17  ;;  %v2440_v40 = vpop.f32.mrf.mxu1 }
 0x263   :  { %v2210_v56 = vpop.f32.mrf.mxu0 }
 0x264   :  { %v3123_v63 = vpack.c.bf16 %v2523_v50, %v2523_v50  ;;  %v2441_v12 = vadd.f32 %v2440_v40, %v2209_v21  ;;  %v3244_v57 = vpop.f32.mrf.mxu1  ;;  %v4783_v56 = vld [vmem:[#allocation2_spill] sm:$0xff] }
 0x265   :  { %v2211_v2 = vpop.f32.mrf.mxu0 }
 0x266   :  { %2770 = vst.msk [vmem:[%s4780_s3 + $0x94] sm:$0xf] %vm2732_vm2, %v3123_v63  ;;  %v2524_v9 = vmax.f32 %v2441_v12, 0.0  ;;  %v2212_v25 = vadd.f32 %v2211_v2, %v4448_v36  ;;  %v2443_v1 = vpop.f32.mrf.mxu1 }
 0x267   :  { %v2213_v5 = vpop.f32.mrf.mxu0 }
 0x268   :  { %v3124_v11 = vpack.c.bf16 %v2524_v9, %v2524_v9  ;;  %v2444_v32 = vadd.f32 %v2443_v1, %v2212_v25  ;;  %v3245_v28 = vpop.f32.mrf.mxu1 }
 0x269   :  { %v2216_v17 = vpop.f32.mrf.mxu0 }
 0x26a   :  { %2771 = vst.msk [vmem:[%s4780_s3 + $0x98] sm:$0xf] %vm2732_vm2, %v3124_v11  ;;  %v2525_v13 = vmax.f32 %v2444_v32, 0.0  ;;  %v2217_v60 = vadd.f32 %v2216_v17, %v4454_v55  ;;  %v2448_v7 = vpop.f32.mrf.mxu1 }
 0x26b   :  { %v2218_v18 = vpop.f32.mrf.mxu0 }
 0x26c   :  { %v3125_v6 = vpack.c.bf16 %v2525_v13, %v2525_v13  ;;  %v2449_v22 = vadd.f32 %v2448_v7, %v2217_v60  ;;  %v3248_v49 = vpop.f32.mrf.mxu1  ;;  %v4784_v18 = vld [vmem:[#allocation3_spill] sm:$0xff] }
 0x26d   :  { %v2219_v36 = vpop.f32.mrf.mxu0 }
 0x26e   :  { %2772 = vst.msk [vmem:[%s4780_s3 + $0x9c] sm:$0xf] %vm2732_vm2, %v3125_v6  ;;  %v2526_v44 = vmax.f32 %v2449_v22, 0.0  ;;  %v2220_v31 = vadd.f32 %v2219_v36, %v4466_v19  ;;  %v2451_v23 = vpop.f32.mrf.mxu1 }
 0x26f   :  { %v2221_v15 = vpop.f32.mrf.mxu0 }
 0x270   :  { %v3126_v39 = vpack.c.bf16 %v2526_v44, %v2526_v44  ;;  %v2452_v10 = vadd.f32 %v2451_v23, %v2220_v31  ;;  %v3249_v29 = vpop.f32.mrf.mxu1 }
 0x271   :  { %v2224_v55 = vpop.f32.mrf.mxu0 }
 0x272   :  { %2773 = vst.msk [vmem:[%s4780_s3 + $0xa0] sm:$0xf] %vm2732_vm2, %v3126_v39  ;;  %v2527_v4 = vmax.f32 %v2452_v10, 0.0  ;;  %v2225_v59 = vadd.f32 %v2224_v55, %v4472_v34  ;;  %v2456_v26 = vpop.f32.mrf.mxu1 }
 0x273   :  { %v2226_v30 = vpop.f32.mrf.mxu0 }
 0x274   :  { %v3127_v37 = vpack.c.bf16 %v2527_v4, %v2527_v4  ;;  %v2457_v0 = vadd.f32 %v2456_v26, %v2225_v59  ;;  %v3252_v33 = vpop.f32.mrf.mxu1 }
 0x275   :  { %v2227_v19 = vpop.f32.mrf.mxu0 }
 0x276   :  { %2774 = vst.msk [vmem:[%s4780_s3 + $0xa4] sm:$0xf] %vm2732_vm2, %v3127_v37  ;;  %v2528_v46 = vmax.f32 %v2457_v0, 0.0  ;;  %v2228_v53 = vadd.f32 %v2227_v19, %v4484_v62  ;;  %v2459_v8 = vpop.f32.mrf.mxu1 }
 0x277   :  { %v2229_v38 = vpop.f32.mrf.mxu0 }
 0x278   :  { %v3128_v42 = vpack.c.bf16 %v2528_v46, %v2528_v46  ;;  %v2460_v24 = vadd.f32 %v2459_v8, %v2228_v53  ;;  %v3253_v48 = vpop.f32.mrf.mxu1 }
 0x279   :  { %v2232_v34 = vpop.f32.mrf.mxu0 }
 0x27a   :  { %2775 = vst.msk [vmem:[%s4780_s3 + $0xa8] sm:$0xf] %vm2732_vm2, %v3128_v42  ;;  %v2529_v14 = vmax.f32 %v2460_v24, 0.0  ;;  %v2233_v58 = vadd.f32 %v2232_v34, %v4490_v20  ;;  %v2464_v16 = vpop.f32.mrf.mxu1 }
 0x27b   :  { %v2234_v27 = vpop.f32.mrf.mxu0 }
 0x27c   :  { %v3129_v52 = vpack.c.bf16 %v2529_v14, %v2529_v14  ;;  %v2465_v35 = vadd.f32 %v2464_v16, %v2233_v58  ;;  %v3256_v54 = vpop.f32.mrf.mxu1 }
 0x27d   :  { %v2235_v62 = vpop.f32.mrf.mxu0 }
 0x27e   :  { %2776 = vst.msk [vmem:[%s4780_s3 + $0xac] sm:$0xf] %vm2732_vm2, %v3129_v52  ;;  %v2530_v61 = vmax.f32 %v2465_v35, 0.0  ;;  %v2236_v3 = vadd.f32 %v2235_v62, %v4502_v51  ;;  %v2467_v41 = vpop.f32.mrf.mxu1 }
 0x27f   :  { %v2237_v43 = vpop.f32.mrf.mxu0 }
 0x280   :  { %v3130_v45 = vpack.c.bf16 %v2530_v61, %v2530_v61  ;;  %v2468_v50 = vadd.f32 %v2467_v41, %v2236_v3  ;;  %v3257_v21 = vpop.f32.mrf.mxu1 }
 0x281   :  { %v2240_v20 = vpop.f32.mrf.mxu0 }
 0x282   :  { %2777 = vst.msk [vmem:[%s4780_s3 + $0xb0] sm:$0xf] %vm2732_vm2, %v3130_v45  ;;  %v2531_v40 = vmax.f32 %v2468_v50, 0.0  ;;  %v2241_v63 = vadd.f32 %v2240_v20, %v4783_v56  ;;  %v2472_v12 = vpop.f32.mrf.mxu1 }
 0x283   :  { %v2242_v57 = vpop.f32.mrf.mxu0 }
 0x284   :  { %v3131_v2 = vpack.c.bf16 %v2531_v40, %v2531_v40  ;;  %v2473_v9 = vadd.f32 %v2472_v12, %v2241_v63  ;;  %v3260_v25 = vpop.f32.mrf.mxu1 }
 0x285   :  { %v2243_v51 = vpop.f32.mrf.mxu0 }
 0x286   :  { %2778 = vst.msk [vmem:[%s4780_s3 + $0xb4] sm:$0xf] %vm2732_vm2, %v3131_v2  ;;  %v2532_v1 = vmax.f32 %v2473_v9, 0.0  ;;  %v2244_v5 = vadd.f32 %v2243_v51, %v4520_v47  ;;  %v2475_v11 = vpop.f32.mrf.mxu1 }
 0x287   :  { %v2245_v32 = vpop.f32.mrf.mxu0 }
 0x288   :  { %v3132_v28 = vpack.c.bf16 %v2532_v1, %v2532_v1  ;;  %v2476_v17 = vadd.f32 %v2475_v11, %v2244_v5  ;;  %v3261_v13 = vpop.f32.mrf.mxu1 }
 0x289   :  { %v2248_v60 = vpop.f32.mrf.mxu0 }
 0x28a   :  { %2779 = vst.msk [vmem:[%s4780_s3 + $0xb8] sm:$0xf] %vm2732_vm2, %v3132_v28  ;;  %v2533_v7 = vmax.f32 %v2476_v17, 0.0  ;;  %v2249_v6 = vadd.f32 %v2248_v60, %v4784_v18  ;;  %v2480_v22 = vpop.f32.mrf.mxu1 }
 0x28b   :  { %v2250_v49 = vpop.f32.mrf.mxu0 }
 0x28c   :  { %v3133_v36 = vpack.c.bf16 %v2533_v7, %v2533_v7  ;;  %v2481_v44 = vadd.f32 %v2480_v22, %v2249_v6  ;;  %v3264_v31 = vpop.f32.mrf.mxu1 }
 0x28d   :  { %v2251_v47 = vpop.f32.mrf.mxu0 }
 0x28e   :  { %2780 = vst.msk [vmem:[%s4780_s3 + $0xbc] sm:$0xf] %vm2732_vm2, %v3133_v36  ;;  %v2534_v23 = vmax.f32 %v2481_v44, 0.0  ;;  %v2483_v15 = vpop.f32.mrf.mxu1 }
 0x28f   :  { %v2252_v39 = vpop.f32.mrf.mxu0 }
 0x290   :  { %v3134_v10 = vpack.c.bf16 %v2534_v23, %v2534_v23  ;;  %v3265_v29 = vpop.f32.mrf.mxu1 }
 0x292   :  { %2781 = vst.msk [vmem:[%s4780_s3 + $0xc0] sm:$0xf] %vm2732_vm2, %v3134_v10 }

// kernel: mnist_cnn_forward.9
= control target key start
LH: loop header
LB: loop body
LE: loop exit
PB: predicated region body
PF: predicated region fallthrough
CT: control target
= control target key end

     0   :  { %v420_v35 = vlaneseq  ;;  %v4376_v36 = vmov 1966171168   ;;  %s5727_s0 = inlined_call_operand.vmem [shape: bf16[2,3136], index: 0, kind: input, shape index: {}]   ;;  %s5728_s1 = inlined_call_operand.vmem [shape: bf16[3136,256], index: 1, kind: input, shape index: {}]   ;;  %s5729_s2 = inlined_call_operand.vmem [shape: f32[1,256], index: 2, kind: input, shape index: {}]   ;;  %s5730_s3 = inlined_call_operand.vmem [shape: bf16[256,10], index: 3, kind: input, shape index: {}]   ;;  %s5731_s4 = inlined_call_operand.vmem [shape: f32[1,10], index: 4, kind: input, shape index: {}]   ;;  %s5732_s5 = inlined_call_operand.hbm [shape: f32[2,10], index: 5, kind: output, shape index: {}]  }
   0x1   :  { %v3747_v0 = vld [vmem:[%s5728_s1 + $0x74] ss:$8 sps:$4 sm:$0xff]   ;;  %v3749_v1 = vld [vmem:[%s5728_s1 + $0x70] ss:$8 sps:$4 sm:$0xff]   ;;  %v3753_v4 = vld [vmem:[%s5728_s1 + $0x64] ss:$8 sps:$4 sm:$0xff]   ;;  %v436_v37 = vunpack.c.l.s4 %v4376_v36 }
   0x2   :  { %2583 = vmatprep.subr.bf16.mxu0 %v3747_v0  ;;  %v3750_v2 = vld [vmem:[%s5728_s1 + $0x174] ss:$8 sps:$4 sm:$0xff]   ;;  %v3752_v3 = vld [vmem:[%s5728_s1 + $0x170] ss:$8 sps:$4 sm:$0xff]   ;;  %v3755_v5 = vld [vmem:[%s5728_s1 + $0x60] ss:$8 sps:$4 sm:$0xff]  }
   0x3   :  { %2584 = vmatpush1.bf16.msra.mxu0 %v3749_v1  ;;  %2624 = vmatprep.subr.bf16.mxu1 %v3750_v2  ;;  %v3756_v6 = vld [vmem:[%s5728_s1 + $0x164] ss:$8 sps:$4 sm:$0xff]   ;;  %v3758_v7 = vld [vmem:[%s5728_s1 + $0x160] ss:$8 sps:$4 sm:$0xff]   ;;  %v3759_v8 = vld [vmem:[%s5728_s1 + $0x54] ss:$8 sps:$4 sm:$0xff]   ;;  %v437_v43 = vunpack.c.0.s8 %v436_v37 }
   0x4   :  { %2625 = vmatpush1.bf16.msra.mxu1 %v3752_v3  ;;  %2585 = vmatprep.subr.bf16.mxu0 %v3753_v4  ;;  %v3761_v9 = vld [vmem:[%s5728_s1 + $0x50] ss:$8 sps:$4 sm:$0xff]   ;;  %v3762_v10 = vld [vmem:[%s5728_s1 + $0x154] ss:$8 sps:$4 sm:$0xff]   ;;  %v3765_v11 = vld [vmem:[%s5728_s1 + $0x44] ss:$8 sps:$4 sm:$0xff]  }
   0x5   :  { %2626 = vmatprep.subr.bf16.mxu1 %v3756_v6  ;;  %v3764_v12 = vld [vmem:[%s5728_s1 + $0x150] ss:$8 sps:$4 sm:$0xff]   ;;  %v3768_v13 = vld [vmem:[%s5728_s1 + $0x144] ss:$8 sps:$4 sm:$0xff]   ;;  %v3767_v14 = vld [vmem:[%s5728_s1 + $0x40] ss:$8 sps:$4 sm:$0xff]  }
   0x6   :  { %v3771_v15 = vld [vmem:[%s5728_s1 + $0x34] ss:$8 sps:$4 sm:$0xff]   ;;  %v3770_v16 = vld [vmem:[%s5728_s1 + $0x140] ss:$8 sps:$4 sm:$0xff]   ;;  %v3773_v18 = vld [vmem:[%s5728_s1 + $0x30] ss:$8 sps:$4 sm:$0xff]  }
   0x7   :  { %2586 = vmatpush1.bf16.msra.mxu0 %v3755_v5  ;;  %v3774_v17 = vld [vmem:[%s5728_s1 + $0x134] ss:$8 sps:$4 sm:$0xff]   ;;  %v3777_v19 = vld [vmem:[%s5728_s1 + $0x24] ss:$8 sps:$4 sm:$0xff]   ;;  %v3776_v20 = vld [vmem:[%s5728_s1 + $0x130] ss:$8 sps:$4 sm:$0xff]  }
   0x8   :  { %2587 = vmatprep.subr.bf16.mxu0 %v3759_v8  ;;  %2627 = vmatpush1.bf16.msra.mxu1 %v3758_v7  ;;  %v3780_v21 = vld [vmem:[%s5728_s1 + $0x124] ss:$8 sps:$4 sm:$0xff]   ;;  %v3779_v22 = vld [vmem:[%s5728_s1 + $0x20] ss:$8 sps:$4 sm:$0xff]   ;;  %v3783_v23 = vld [vmem:[%s5728_s1 + $0x14] ss:$8 sps:$4 sm:$0xff]  }
   0x9   :  { %2628 = vmatprep.subr.bf16.mxu1 %v3762_v10  ;;  %v3782_v24 = vld [vmem:[%s5728_s1 + $0x120] ss:$8 sps:$4 sm:$0xff]   ;;  %v3786_v25 = vld [vmem:[%s5728_s1 + $0x114] ss:$8 sps:$4 sm:$0xff]   ;;  %v3785_v26 = vld [vmem:[%s5728_s1 + $0x10] ss:$8 sps:$4 sm:$0xff]  }
   0xa   :  { %v3789_v27 = vld [vmem:[%s5728_s1 + $0x4] ss:$8 sps:$4 sm:$0xff]   ;;  %v3788_v28 = vld [vmem:[%s5728_s1 + $0x110] ss:$8 sps:$4 sm:$0xff]   ;;  %v3791_v30 = vld [vmem:[%s5728_s1] ss:$8 sps:$4 sm:$0xff]  }
   0xb   :  { %2588 = vmatpush1.bf16.msra.mxu0 %v3761_v9  ;;  %v3792_v29 = vld [vmem:[%s5728_s1 + $0x104] ss:$8 sps:$4 sm:$0xff]   ;;  %v3795_v31 = vld [vmem:[%s5728_s1 + $0xf4] ss:$8 sps:$4 sm:$0xff]   ;;  %v3794_v32 = vld [vmem:[%s5728_s1 + $0x100] ss:$8 sps:$4 sm:$0xff]  }
   0xc   :  { %2589 = vmatprep.subr.bf16.mxu0 %v3765_v11  ;;  %2629 = vmatpush1.bf16.msra.mxu1 %v3764_v12  ;;  %v3798_v33 = vld [vmem:[%s5728_s1 + $0x1f4] ss:$8 sps:$4 sm:$0xff]   ;;  %v3797_v34 = vld [vmem:[%s5728_s1 + $0xf0] ss:$8 sps:$4 sm:$0xff]   ;;  %v3801_v38 = vld [vmem:[%s5728_s1 + $0xe4] ss:$8 sps:$4 sm:$0xff]  }
   0xd   :  { %2630 = vmatprep.subr.bf16.mxu1 %v3768_v13  ;;  %v3800_v39 = vld [vmem:[%s5728_s1 + $0x1f0] ss:$8 sps:$4 sm:$0xff]   ;;  %v3804_v40 = vld [vmem:[%s5728_s1 + $0x1e4] ss:$8 sps:$4 sm:$0xff]   ;;  %v3803_v41 = vld [vmem:[%s5728_s1 + $0xe0] ss:$8 sps:$4 sm:$0xff]  }
   0xe   :  { %v4526_v42 = vshrl.u32 %v420_v35, 7  ;;  %v3807_v44 = vld [vmem:[%s5728_s1 + $0xd4] ss:$8 sps:$4 sm:$0xff]   ;;  %v3806_v45 = vld [vmem:[%s5728_s1 + $0x1e0] ss:$8 sps:$4 sm:$0xff]  }
   0xf   :  { %2590 = vmatpush1.bf16.msra.mxu0 %v3767_v14  ;;  %v3810_v46 = vld [vmem:[%s5728_s1 + $0x1d4] ss:$8 sps:$4 sm:$0xff]   ;;  %v3809_v47 = vld [vmem:[%s5728_s1 + $0xd0] ss:$8 sps:$4 sm:$0xff]   ;;  %v3813_v49 = vld [vmem:[%s5728_s1 + $0xc4] ss:$8 sps:$4 sm:$0xff]  }
  0x10   :  { %2591 = vmatprep.subr.bf16.mxu0 %v3771_v15  ;;  %2631 = vmatpush1.bf16.msra.mxu1 %v3770_v16  ;;  %v4541_v48 = vsub.s32 %v437_v43, %v4526_v42  ;;  %v3812_v50 = vld [vmem:[%s5728_s1 + $0x1d0] ss:$8 sps:$4 sm:$0xff]   ;;  %v3816_v51 = vld [vmem:[%s5728_s1 + $0x1c4] ss:$8 sps:$4 sm:$0xff]   ;;  %v3815_v53 = vld [vmem:[%s5728_s1 + $0xc0] ss:$8 sps:$4 sm:$0xff]  }
  0x11   :  { %2632 = vmatprep.subr.bf16.mxu1 %v3774_v17  ;;  %v22_v52 = vld [vmem:[%s5727_s0] sm:$0xff]  ;;  %v3819_v55 = vld [vmem:[%s5728_s1 + $0xb4] ss:$8 sps:$4 sm:$0xff]   ;;  %v3821_v59 = vld [vmem:[%s5728_s1 + $0xb0] ss:$8 sps:$4 sm:$0xff]  }
  0x12   :  { %v441_v54 = vrot.slane %v22_v52, %v4541_v48  ;;  %v3818_v56 = vld [vmem:[%s5728_s1 + $0x1c0] ss:$8 sps:$4 sm:$0xff]   ;;  %v3822_v58 = vld [vmem:[%s5728_s1 + $0x1b4] ss:$8 sps:$4 sm:$0xff]   ;;  %v3825_v61 = vld [vmem:[%s5728_s1 + $0xa4] ss:$8 sps:$4 sm:$0xff]   ;;  %v434_v63 = vcombine.high %v22_v52, %v22_v52 }
  0x13   :  { %2592 = vmatpush1.bf16.msra.mxu0 %v3773_v18  ;;  %v3824_v62 = vld [vmem:[%s5728_s1 + $0x1b0] ss:$8 sps:$4 sm:$0xff]   ;;  %v3828_v1 = vld [vmem:[%s5728_s1 + $0x1a4] ss:$8 sps:$4 sm:$0xff]   ;;  %v3827_v2 = vld [vmem:[%s5728_s1 + $0xa0] ss:$8 sps:$4 sm:$0xff]  }
  0x14   :  { %2593 = vmatprep.subr.bf16.mxu0 %v3777_v19  ;;  %2633 = vmatpush1.bf16.msra.mxu1 %v3776_v20  ;;  %v449_v57 = vcombine.high %v441_v54, %v441_v54  ;;  %v3831_v3 = vld [vmem:[%s5728_s1 + $0x94] ss:$8 sps:$4 sm:$0xff]   ;;  %v3830_v4 = vld [vmem:[%s5728_s1 + $0x1a0] ss:$8 sps:$4 sm:$0xff]   ;;  %v4591_v5 = vrot.slane %v434_v63, %v4541_v48  ;;  %v3833_v7 = vld [vmem:[%s5728_s1 + $0x90] ss:$8 sps:$4 sm:$0xff]   ;;  %v457_v13 = vrot.slane %v441_v54, %v4541_v48 }
  0x15   :  { %2634 = vmatprep.subr.bf16.mxu1 %v3780_v21  ;;  %v3834_v6 = vld [vmem:[%s5728_s1 + $0x194] ss:$8 sps:$4 sm:$0xff]   ;;  %v3837_v8 = vld [vmem:[%s5728_s1 + $0x84] ss:$8 sps:$4 sm:$0xff]   ;;  %v3836_v9 = vld [vmem:[%s5728_s1 + $0x190] ss:$8 sps:$4 sm:$0xff]  }
  0x16   :  { %v471_v60 = vrot.slane %v449_v57, %v4541_v48  ;;  %v450_v10 = vcombine.high %v4591_v5, %v4591_v5  ;;  %v3840_v11 = vld [vmem:[%s5728_s1 + $0x184] ss:$8 sps:$4 sm:$0xff]   ;;  %v3839_v12 = vld [vmem:[%s5728_s1 + $0x80] ss:$8 sps:$4 sm:$0xff]   ;;  %v3846_v14 = vld [vmem:[%s5728_s1 + $0x274] ss:$8 sps:$4 sm:$0xff]   ;;  %v479_v19 = vcombine.high %v457_v13, %v457_v13 }
  0x17   :  { %2594 = vmatpush1.bf16.msra.mxu0 %v3779_v22  ;;  %v3843_v15 = vld [vmem:[%s5728_s1 + $0x180] ss:$8 sps:$4 sm:$0xff]   ;;  %v3849_v17 = vld [vmem:[%s5728_s1 + $0x374] ss:$8 sps:$4 sm:$0xff]   ;;  %v3844_v18 = vld [vmem:[%s5728_s1 + $0x270] ss:$8 sps:$4 sm:$0xff]  }
  0x18   :  { %2595 = vmatprep.subr.bf16.mxu0 %v3783_v23  ;;  %2635 = vmatpush1.bf16.msra.mxu1 %v3782_v24  ;;  %v481_v0 = vcombine.high %v471_v60, %v471_v60  ;;  %v478_v16 = vrot.slane %v450_v10, %v4541_v48  ;;  %v3852_v20 = vld [vmem:[%s5728_s1 + $0x264] ss:$8 sps:$4 sm:$0xff]   ;;  %v3847_v21 = vld [vmem:[%s5728_s1 + $0x370] ss:$8 sps:$4 sm:$0xff]   ;;  %v3850_v24 = vld [vmem:[%s5728_s1 + $0x260] ss:$8 sps:$4 sm:$0xff]  }
  0x19   :  { %2636 = vmatprep.subr.bf16.mxu1 %v3786_v25  ;;  %2615 = vmatprep.mubr.bf16.mxu0 %v471_v60  ;;  %v3855_v23 = vld [vmem:[%s5728_s1 + $0x364] ss:$8 sps:$4 sm:$0xff]   ;;  %v3858_v25 = vld [vmem:[%s5728_s1 + $0x254] ss:$8 sps:$4 sm:$0xff]   ;;  %v3868_v36 = vld [vmem:[%s5728_s1 + $0x230] ss:$8 sps:$4 sm:$0xff]  }
  0x1a   :  { %2656 = vmatprep.mubr.bf16.mxu1 %v481_v0  ;;  %v482_v22 = vcombine.high %v478_v16, %v478_v16  ;;  %v3873_v35 = vld [vmem:[%s5728_s1 + $0x334] ss:$8 sps:$4 sm:$0xff]   ;;  %v3876_v37 = vld [vmem:[%s5728_s1 + $0x224] ss:$8 sps:$4 sm:$0xff]   ;;  %v3877_v43 = vld [vmem:[%s5728_s1 + $0x320] ss:$8 sps:$4 sm:$0xff]  }
  0x1b   :  { %2596 = vmatpush1.bf16.msra.mxu0 %v3785_v26  ;;  %v3853_v26 = vld [vmem:[%s5728_s1 + $0x360] ss:$8 sps:$4 sm:$0xff]   ;;  %v3892_v54 = vld [vmem:[%s5728_s1 + $0x2f0] ss:$8 sps:$4 sm:$0xff]   ;;  %v3903_v57 = vld [vmem:[%s5728_s1 + $0x3e4] ss:$8 sps:$4 sm:$0xff]  }
  0x1c   :  { %2597 = vmatprep.subr.bf16.mxu0 %v3789_v27  ;;  %2637 = vmatpush1.bf16.msra.mxu1 %v3788_v28  ;;  %v3861_v27 = vld [vmem:[%s5728_s1 + $0x354] ss:$8 sps:$4 sm:$0xff]   ;;  %v3856_v28 = vld [vmem:[%s5728_s1 + $0x250] ss:$8 sps:$4 sm:$0xff]   ;;  %v3889_v52 = vld [vmem:[%s5728_s1 + $0x300] ss:$8 sps:$4 sm:$0xff]  }
  0x1d   :  { %2638 = vmatprep.subr.bf16.mxu1 %v3792_v29  ;;  %v3864_v29 = vld [vmem:[%s5728_s1 + $0x244] ss:$8 sps:$4 sm:$0xff]   ;;  %v3901_v60 = vld [vmem:[%s5728_s1 + $0x3e0] ss:$8 sps:$4 sm:$0xff]   ;;  %v3907_v0 = vld [vmem:[%s5728_s1 + $0x3d0] ss:$8 sps:$4 sm:$0xff]  }
  0x1e   :  { %v3912_v63 = vld [vmem:[%s5728_s1 + $0x2c4] ss:$8 sps:$4 sm:$0xff]  }
  0x1f   :  { %2598 = vmatpush1.bf16.msra.mxu0 %v3791_v30  ;;  %v3859_v30 = vld [vmem:[%s5728_s1 + $0x350] ss:$8 sps:$4 sm:$0xff]   ;;  %v3927_v10 = vld [vmem:[%s5728_s1 + $0x3a4] ss:$8 sps:$4 sm:$0xff]  }
  0x20   :  { %2599 = vmatprep.subr.bf16.mxu0 %v3795_v31  ;;  %2639 = vmatpush1.bf16.msra.mxu1 %v3794_v32  ;;  %v3867_v31 = vld [vmem:[%s5728_s1 + $0x344] ss:$8 sps:$4 sm:$0xff]   ;;  %v3862_v32 = vld [vmem:[%s5728_s1 + $0x240] ss:$8 sps:$4 sm:$0xff]  }
  0x21   :  { %2640 = vmatprep.subr.bf16.mxu1 %v3798_v33  ;;  %v3870_v33 = vld [vmem:[%s5728_s1 + $0x234] ss:$8 sps:$4 sm:$0xff]  }
  0x23   :  { %2600 = vmatpush2.bf16.msra.mxu0 %v3797_v34  ;;  %v3865_v34 = vld [vmem:[%s5728_s1 + $0x340] ss:$8 sps:$4 sm:$0xff]  }
  0x24   :  { %2601 = vmatprep.subr.bf16.mxu0 %v3801_v38  ;;  %2641 = vmatpush2.bf16.msra.mxu1 %v3800_v39  ;;  %v3871_v38 = vld [vmem:[%s5728_s1 + $0x330] ss:$8 sps:$4 sm:$0xff]   ;;  %v3879_v39 = vld [vmem:[%s5728_s1 + $0x324] ss:$8 sps:$4 sm:$0xff]  }
  0x25   :  { %2642 = vmatprep.subr.bf16.mxu1 %v3804_v40  ;;  %v3874_v40 = vld [vmem:[%s5728_s1 + $0x220] ss:$8 sps:$4 sm:$0xff]  }
  0x27   :  { %2602 = vmatpush2.bf16.msra.mxu0 %v3803_v41  ;;  %v3882_v41 = vld [vmem:[%s5728_s1 + $0x214] ss:$8 sps:$4 sm:$0xff]  }
  0x28   :  { %2603 = vmatprep.subr.bf16.mxu0 %v3807_v44  ;;  %2643 = vmatpush2.bf16.msra.mxu1 %v3806_v45  ;;  %v3885_v44 = vld [vmem:[%s5728_s1 + $0x314] ss:$8 sps:$4 sm:$0xff]   ;;  %v3880_v45 = vld [vmem:[%s5728_s1 + $0x210] ss:$8 sps:$4 sm:$0xff]  }
  0x29   :  { %2644 = vmatprep.subr.bf16.mxu1 %v3810_v46  ;;  %v3888_v46 = vld [vmem:[%s5728_s1 + $0x204] ss:$8 sps:$4 sm:$0xff]  }
  0x2b   :  { %2604 = vmatpush2.bf16.msra.mxu0 %v3809_v47  ;;  %v3883_v47 = vld [vmem:[%s5728_s1 + $0x310] ss:$8 sps:$4 sm:$0xff]  }
  0x2c   :  { %2605 = vmatprep.subr.bf16.mxu0 %v3813_v49  ;;  %2645 = vmatpush2.bf16.msra.mxu1 %v3812_v50  ;;  %v3891_v49 = vld [vmem:[%s5728_s1 + $0x304] ss:$8 sps:$4 sm:$0xff]   ;;  %v3886_v50 = vld [vmem:[%s5728_s1 + $0x200] ss:$8 sps:$4 sm:$0xff]  }
  0x2d   :  { %2646 = vmatprep.subr.bf16.mxu1 %v3816_v51  ;;  %v3894_v51 = vld [vmem:[%s5728_s1 + $0x2f4] ss:$8 sps:$4 sm:$0xff]  }
  0x2f   :  { %2606 = vmatpush2.bf16.msra.mxu0 %v3815_v53  ;;  %v3897_v53 = vld [vmem:[%s5728_s1 + $0x3f4] ss:$8 sps:$4 sm:$0xff]  }
  0x30   :  { %2607 = vmatprep.subr.bf16.mxu0 %v3819_v55  ;;  %2647 = vmatpush2.bf16.msra.mxu1 %v3818_v56  ;;  %v3900_v55 = vld [vmem:[%s5728_s1 + $0x2e4] ss:$8 sps:$4 sm:$0xff]   ;;  %v3895_v56 = vld [vmem:[%s5728_s1 + $0x3f0] ss:$8 sps:$4 sm:$0xff]  }
  0x31   :  { %2648 = vmatprep.subr.bf16.mxu1 %v3822_v58  ;;  %v3898_v58 = vld [vmem:[%s5728_s1 + $0x2e0] ss:$8 sps:$4 sm:$0xff]  }
  0x33   :  { %2608 = vmatpush2.bf16.msra.mxu0 %v3821_v59  ;;  %v3906_v59 = vld [vmem:[%s5728_s1 + $0x2d4] ss:$8 sps:$4 sm:$0xff]  }
  0x34   :  { %2609 = vmatprep.subr.bf16.mxu0 %v3825_v61  ;;  %2649 = vmatpush2.bf16.msra.mxu1 %v3824_v62  ;;  %v3909_v61 = vld [vmem:[%s5728_s1 + $0x3d4] ss:$8 sps:$4 sm:$0xff]   ;;  %v3904_v62 = vld [vmem:[%s5728_s1 + $0x2d0] ss:$8 sps:$4 sm:$0xff]  }
  0x35   :  { %2650 = vmatprep.subr.bf16.mxu1 %v3828_v1  ;;  %v3915_v1 = vld [vmem:[%s5728_s1 + $0x3c4] ss:$8 sps:$4 sm:$0xff]  }
  0x37   :  { %2610 = vmatpush2.bf16.msra.mxu0 %v3827_v2  ;;  %v3910_v2 = vld [vmem:[%s5728_s1 + $0x2c0] ss:$8 sps:$4 sm:$0xff]  }
  0x38   :  { %2611 = vmatprep.subr.bf16.mxu0 %v3831_v3  ;;  %2651 = vmatpush2.bf16.msra.mxu1 %v3830_v4  ;;  %v3918_v3 = vld [vmem:[%s5728_s1 + $0x2b4] ss:$8 sps:$4 sm:$0xff]   ;;  %v3913_v4 = vld [vmem:[%s5728_s1 + $0x3c0] ss:$8 sps:$4 sm:$0xff]  }
  0x39   :  { %2652 = vmatprep.subr.bf16.mxu1 %v3834_v6  ;;  %v3921_v6 = vld [vmem:[%s5728_s1 + $0x3b4] ss:$8 sps:$4 sm:$0xff]  }
  0x3b   :  { %2612 = vmatpush2.bf16.msra.mxu0 %v3833_v7  ;;  %v3916_v7 = vld [vmem:[%s5728_s1 + $0x2b0] ss:$8 sps:$4 sm:$0xff]  }
  0x3c   :  { %2613 = vmatprep.subr.bf16.mxu0 %v3837_v8  ;;  %2653 = vmatpush2.bf16.msra.mxu1 %v3836_v9  ;;  %v3924_v8 = vld [vmem:[%s5728_s1 + $0x2a4] ss:$8 sps:$4 sm:$0xff]   ;;  %v3919_v9 = vld [vmem:[%s5728_s1 + $0x3b0] ss:$8 sps:$4 sm:$0xff]  }
  0x3d   :  { %2654 = vmatprep.subr.bf16.mxu1 %v3840_v11  ;;  %v3922_v11 = vld [vmem:[%s5728_s1 + $0x2a0] ss:$8 sps:$4 sm:$0xff]  }
  0x3f   :  { %2614 = vmatpush2.bf16.msra.mxu0 %v3839_v12  ;;  %v3930_v12 = vld [vmem:[%s5728_s1 + $0x294] ss:$8 sps:$4 sm:$0xff]  }
  0x40   :  { %2665 = vmatprep.subr.bf16.mxu0 %v3846_v14  ;;  %2655 = vmatpush2.bf16.msra.mxu1 %v3843_v15  ;;  %v3933_v14 = vld [vmem:[%s5728_s1 + $0x394] ss:$8 sps:$4 sm:$0xff]   ;;  %v3928_v15 = vld [vmem:[%s5728_s1 + $0x290] ss:$8 sps:$4 sm:$0xff]  }
  0x41   :  { %2706 = vmatprep.subr.bf16.mxu1 %v3849_v17  ;;  %v3931_v17 = vld [vmem:[%s5728_s1 + $0x390] ss:$8 sps:$4 sm:$0xff]  }
  0x42   :  { %2616 = vmatmul.mubr.bf16.vlgmr.msra.gmra.mxu0 %v457_v13  ;;  %v3925_v13 = vld [vmem:[%s5728_s1 + $0x3a0] ss:$8 sps:$4 sm:$0xff]  }
  0x43   :  { %2666 = vmatpush1.bf16.msra.mxu0 %v3844_v18  ;;  %2697 = vmatprep.mubr.bf16.mxu0 %v478_v16  ;;  %v3936_v16 = vld [vmem:[%s5728_s1 + $0x284] ss:$8 sps:$4 sm:$0xff]  }
  0x44   :  { %2657 = vmatmul.mubr.bf16.vlgmr.msra.gmra.mxu1 %v479_v19  ;;  %2667 = vmatprep.subr.bf16.mxu0 %v3852_v20  ;;  %v3939_v18 = vld [vmem:[%s5728_s1 + $0x384] ss:$8 sps:$4 sm:$0xff]   ;;  %v3934_v19 = vld [vmem:[%s5728_s1 + $0x280] ss:$8 sps:$4 sm:$0xff]   ;;  %v464_v20 = vrot.slane %v4591_v5, %v4541_v48 }
  0x45   :  { %2707 = vmatpush1.bf16.msra.mxu1 %v3847_v21  ;;  %2738 = vmatprep.mubr.bf16.mxu1 %v482_v22  ;;  %v3942_v21 = vld [vmem:[%s5728_s1 + $0x474] ss:$8 sps:$4 sm:$0xff]   ;;  %v3937_v22 = vld [vmem:[%s5728_s1 + $0x380] ss:$8 sps:$4 sm:$0xff]  }
  0x46   :  { %2708 = vmatprep.subr.bf16.mxu1 %v3855_v23  ;;  %v3945_v23 = vld [vmem:[%s5728_s1 + $0x574] ss:$8 sps:$4 sm:$0xff]   ;;  %v480_v5 = vcombine.high %v464_v20, %v464_v20 }
  0x47   :  { %2668 = vmatpush1.bf16.msra.mxu0 %v3850_v24  ;;  %v3940_v24 = vld [vmem:[%s5728_s1 + $0x470] ss:$8 sps:$4 sm:$0xff]  }
  0x48   :  { %2669 = vmatprep.subr.bf16.mxu0 %v3858_v25  ;;  %v3948_v25 = vld [vmem:[%s5728_s1 + $0x464] ss:$8 sps:$4 sm:$0xff]  }
  0x49   :  { %2709 = vmatpush1.bf16.msra.mxu1 %v3853_v26  ;;  %v4827_v26 = vld [vmem:[%s5727_s0 + $0x8] sm:$0xff] }
  0x4a   :  { %2710 = vmatprep.subr.bf16.mxu1 %v3861_v27  ;;  %v3943_v27 = vld [vmem:[%s5728_s1 + $0x570] ss:$8 sps:$4 sm:$0xff]  }
  0x4b   :  { %2670 = vmatpush1.bf16.msra.mxu0 %v3856_v28  ;;  %v4834_v28 = vrot.slane %v4827_v26, %v4541_v48 }
  0x4c   :  { %2671 = vmatprep.subr.bf16.mxu0 %v3864_v29  ;;  %v3951_v29 = vld [vmem:[%s5728_s1 + $0x564] ss:$8 sps:$4 sm:$0xff]  }
  0x4d   :  { %2711 = vmatpush1.bf16.msra.mxu1 %v3859_v30  ;;  %v3946_v30 = vld [vmem:[%s5728_s1 + $0x460] ss:$8 sps:$4 sm:$0xff]  }
  0x4e   :  { %2712 = vmatprep.subr.bf16.mxu1 %v3867_v31  ;;  %v498_v31 = vcombine.high %v4834_v28, %v4834_v28 }
  0x4f   :  { %2672 = vmatpush1.bf16.msra.mxu0 %v3862_v32  ;;  %v3954_v32 = vld [vmem:[%s5728_s1 + $0x454] ss:$8 sps:$4 sm:$0xff]  }
  0x50   :  { %2673 = vmatprep.subr.bf16.mxu0 %v3870_v33  ;;  %v3949_v33 = vld [vmem:[%s5728_s1 + $0x560] ss:$8 sps:$4 sm:$0xff]  }
  0x51   :  { %2713 = vmatpush1.bf16.msra.mxu1 %v3865_v34  ;;  %v520_v34 = vrot.slane %v498_v31, %v4541_v48  ;;  %v4030_v31 = vld [vmem:[%s5728_s1 + $0x480] ss:$8 sps:$4 sm:$0xff]  }
  0x52   :  { %2714 = vmatprep.subr.bf16.mxu1 %v3873_v35  ;;  %v3957_v35 = vld [vmem:[%s5728_s1 + $0x554] ss:$8 sps:$4 sm:$0xff]  }
  0x53   :  { %2674 = vmatpush1.bf16.msra.mxu0 %v3868_v36  ;;  %v3952_v36 = vld [vmem:[%s5728_s1 + $0x450] ss:$8 sps:$4 sm:$0xff]  }
  0x54   :  { %2675 = vmatprep.subr.bf16.mxu0 %v3876_v37  ;;  %v530_v37 = vcombine.high %v520_v34, %v520_v34 }
  0x55   :  { %2715 = vmatpush1.bf16.msra.mxu1 %v3871_v38  ;;  %v3960_v38 = vld [vmem:[%s5728_s1 + $0x444] ss:$8 sps:$4 sm:$0xff]  }
  0x56   :  { %2716 = vmatprep.subr.bf16.mxu1 %v3879_v39  ;;  %v3955_v39 = vld [vmem:[%s5728_s1 + $0x550] ss:$8 sps:$4 sm:$0xff]  }
  0x57   :  { %2676 = vmatpush1.bf16.msra.mxu0 %v3874_v40  ;;  %v3963_v40 = vld [vmem:[%s5728_s1 + $0x544] ss:$8 sps:$4 sm:$0xff]  }
  0x58   :  { %2677 = vmatprep.subr.bf16.mxu0 %v3882_v41  ;;  %v3958_v41 = vld [vmem:[%s5728_s1 + $0x440] ss:$8 sps:$4 sm:$0xff]  }
  0x59   :  { %2717 = vmatpush1.bf16.msra.mxu1 %v3877_v43  ;;  %v3966_v43 = vld [vmem:[%s5728_s1 + $0x434] ss:$8 sps:$4 sm:$0xff]  }
  0x5a   :  { %2718 = vmatprep.subr.bf16.mxu1 %v3885_v44  ;;  %v3961_v44 = vld [vmem:[%s5728_s1 + $0x540] ss:$8 sps:$4 sm:$0xff]  }
  0x5b   :  { %2678 = vmatpush1.bf16.msra.mxu0 %v3880_v45  ;;  %v3969_v45 = vld [vmem:[%s5728_s1 + $0x534] ss:$8 sps:$4 sm:$0xff]  }
  0x5c   :  { %2679 = vmatprep.subr.bf16.mxu0 %v3888_v46  ;;  %v3964_v46 = vld [vmem:[%s5728_s1 + $0x430] ss:$8 sps:$4 sm:$0xff]  }
  0x5d   :  { %2719 = vmatpush1.bf16.msra.mxu1 %v3883_v47  ;;  %v3972_v47 = vld [vmem:[%s5728_s1 + $0x424] ss:$8 sps:$4 sm:$0xff]  }
  0x5e   :  { %2720 = vmatprep.subr.bf16.mxu1 %v3891_v49  ;;  %v3967_v49 = vld [vmem:[%s5728_s1 + $0x530] ss:$8 sps:$4 sm:$0xff]  }
  0x5f   :  { %2680 = vmatpush1.bf16.msra.mxu0 %v3886_v50  ;;  %v3975_v50 = vld [vmem:[%s5728_s1 + $0x524] ss:$8 sps:$4 sm:$0xff]  }
  0x60   :  { %2681 = vmatprep.subr.bf16.mxu0 %v3894_v51  ;;  %v3970_v51 = vld [vmem:[%s5728_s1 + $0x420] ss:$8 sps:$4 sm:$0xff]  }
  0x61   :  { %2721 = vmatpush1.bf16.msra.mxu1 %v3889_v52  ;;  %v3978_v52 = vld [vmem:[%s5728_s1 + $0x414] ss:$8 sps:$4 sm:$0xff]  }
  0x62   :  { %2722 = vmatprep.subr.bf16.mxu1 %v3897_v53  ;;  %v3973_v53 = vld [vmem:[%s5728_s1 + $0x520] ss:$8 sps:$4 sm:$0xff]  }
  0x63   :  { %2682 = vmatpush2.bf16.msra.mxu0 %v3892_v54  ;;  %v3981_v54 = vld [vmem:[%s5728_s1 + $0x514] ss:$8 sps:$4 sm:$0xff]  }
  0x64   :  { %2683 = vmatprep.subr.bf16.mxu0 %v3900_v55  ;;  %v3976_v55 = vld [vmem:[%s5728_s1 + $0x410] ss:$8 sps:$4 sm:$0xff]  }
  0x65   :  { %2723 = vmatpush2.bf16.msra.mxu1 %v3895_v56  ;;  %v3984_v56 = vld [vmem:[%s5728_s1 + $0x404] ss:$8 sps:$4 sm:$0xff]  }
  0x66   :  { %2724 = vmatprep.subr.bf16.mxu1 %v3903_v57  ;;  %v3979_v57 = vld [vmem:[%s5728_s1 + $0x510] ss:$8 sps:$4 sm:$0xff]  }
  0x67   :  { %2684 = vmatpush2.bf16.msra.mxu0 %v3898_v58  ;;  %v3987_v58 = vld [vmem:[%s5728_s1 + $0x504] ss:$8 sps:$4 sm:$0xff]  }
  0x68   :  { %2685 = vmatprep.subr.bf16.mxu0 %v3906_v59  ;;  %v3982_v59 = vld [vmem:[%s5728_s1 + $0x400] ss:$8 sps:$4 sm:$0xff]  }
  0x69   :  { %2725 = vmatpush2.bf16.msra.mxu1 %v3901_v60  ;;  %v3990_v60 = vld [vmem:[%s5728_s1 + $0x4f4] ss:$8 sps:$4 sm:$0xff]  }
  0x6a   :  { %2726 = vmatprep.subr.bf16.mxu1 %v3909_v61  ;;  %v3985_v61 = vld [vmem:[%s5728_s1 + $0x500] ss:$8 sps:$4 sm:$0xff]  }
  0x6b   :  { %2686 = vmatpush2.bf16.msra.mxu0 %v3904_v62  ;;  %v3993_v62 = vld [vmem:[%s5728_s1 + $0x5f4] ss:$8 sps:$4 sm:$0xff]  }
  0x6c   :  { %2687 = vmatprep.subr.bf16.mxu0 %v3912_v63  ;;  %v3988_v63 = vld [vmem:[%s5728_s1 + $0x4f0] ss:$8 sps:$4 sm:$0xff]  }
  0x6d   :  { %2727 = vmatpush2.bf16.msra.mxu1 %v3907_v0  ;;  %v3996_v0 = vld [vmem:[%s5728_s1 + $0x4e4] ss:$8 sps:$4 sm:$0xff]  }
  0x6e   :  { %2728 = vmatprep.subr.bf16.mxu1 %v3915_v1  ;;  %v3991_v1 = vld [vmem:[%s5728_s1 + $0x5f0] ss:$8 sps:$4 sm:$0xff]  }
  0x6f   :  { %2688 = vmatpush2.bf16.msra.mxu0 %v3910_v2  ;;  %v3999_v2 = vld [vmem:[%s5728_s1 + $0x5e4] ss:$8 sps:$4 sm:$0xff]  }
  0x70   :  { %2689 = vmatprep.subr.bf16.mxu0 %v3918_v3  ;;  %v3994_v3 = vld [vmem:[%s5728_s1 + $0x4e0] ss:$8 sps:$4 sm:$0xff]  }
  0x71   :  { %2729 = vmatpush2.bf16.msra.mxu1 %v3913_v4  ;;  %v4002_v4 = vld [vmem:[%s5728_s1 + $0x4d4] ss:$8 sps:$4 sm:$0xff]  }
  0x72   :  { %2730 = vmatprep.subr.bf16.mxu1 %v3921_v6  ;;  %v3997_v6 = vld [vmem:[%s5728_s1 + $0x5e0] ss:$8 sps:$4 sm:$0xff]  }
  0x73   :  { %2690 = vmatpush2.bf16.msra.mxu0 %v3916_v7  ;;  %v4005_v7 = vld [vmem:[%s5728_s1 + $0x5d4] ss:$8 sps:$4 sm:$0xff]  }
  0x74   :  { %2691 = vmatprep.subr.bf16.mxu0 %v3924_v8  ;;  %v4000_v8 = vld [vmem:[%s5728_s1 + $0x4d0] ss:$8 sps:$4 sm:$0xff]  }
  0x75   :  { %2731 = vmatpush2.bf16.msra.mxu1 %v3919_v9  ;;  %v4008_v9 = vld [vmem:[%s5728_s1 + $0x4c4] ss:$8 sps:$4 sm:$0xff]  }
  0x76   :  { %2732 = vmatprep.subr.bf16.mxu1 %v3927_v10  ;;  %v4003_v10 = vld [vmem:[%s5728_s1 + $0x5d0] ss:$8 sps:$4 sm:$0xff]  }
  0x77   :  { %2692 = vmatpush2.bf16.msra.mxu0 %v3922_v11  ;;  %v4011_v11 = vld [vmem:[%s5728_s1 + $0x5c4] ss:$8 sps:$4 sm:$0xff]  }
  0x78   :  { %2693 = vmatprep.subr.bf16.mxu0 %v3930_v12  ;;  %v4006_v12 = vld [vmem:[%s5728_s1 + $0x4c0] ss:$8 sps:$4 sm:$0xff]  }
  0x79   :  { %2733 = vmatpush2.bf16.msra.mxu1 %v3925_v13  ;;  %v4014_v13 = vld [vmem:[%s5728_s1 + $0x4b4] ss:$8 sps:$4 sm:$0xff]  }
  0x7a   :  { %2734 = vmatprep.subr.bf16.mxu1 %v3933_v14  ;;  %v4009_v14 = vld [vmem:[%s5728_s1 + $0x5c0] ss:$8 sps:$4 sm:$0xff]  }
  0x7b   :  { %2694 = vmatpush2.bf16.msra.mxu0 %v3928_v15  ;;  %v4017_v15 = vld [vmem:[%s5728_s1 + $0x5b4] ss:$8 sps:$4 sm:$0xff]  }
  0x7c   :  { %2695 = vmatprep.subr.bf16.mxu0 %v3936_v16  ;;  %v4012_v16 = vld [vmem:[%s5728_s1 + $0x4b0] ss:$8 sps:$4 sm:$0xff]  }
  0x7d   :  { %2735 = vmatpush2.bf16.msra.mxu1 %v3931_v17  ;;  %v4020_v17 = vld [vmem:[%s5728_s1 + $0x4a4] ss:$8 sps:$4 sm:$0xff]  }
  0x7e   :  { %2736 = vmatprep.subr.bf16.mxu1 %v3939_v18  ;;  %v4015_v18 = vld [vmem:[%s5728_s1 + $0x5b0] ss:$8 sps:$4 sm:$0xff]  }
  0x7f   :  { %2696 = vmatpush2.bf16.msra.mxu0 %v3934_v19  ;;  %v483_v19 = vcombine.high %v4827_v26, %v4827_v26  ;;  %v4032_v26 = vld [vmem:[%s5728_s1 + $0x484] ss:$8 sps:$4 sm:$0xff]  }
  0x80   :  { %2747 = vmatprep.subr.bf16.mxu0 %v3942_v21  ;;  %v4018_v21 = vld [vmem:[%s5728_s1 + $0x4a0] ss:$8 sps:$4 sm:$0xff]  }
  0x81   :  { %2737 = vmatpush2.bf16.msra.mxu1 %v3937_v22  ;;  %v4026_v22 = vld [vmem:[%s5728_s1 + $0x494] ss:$8 sps:$4 sm:$0xff]  }
  0x82   :  { %2698 = vmatmul.mubr.bf16.vlgmr.msra.gmra.mxu0 %v464_v20  ;;  %2788 = vmatprep.subr.bf16.mxu1 %v3945_v23  ;;  %v4023_v20 = vld [vmem:[%s5728_s1 + $0x5a4] ss:$8 sps:$4 sm:$0xff]   ;;  %v4021_v23 = vld [vmem:[%s5728_s1 + $0x5a0] ss:$8 sps:$4 sm:$0xff]  }
  0x83   :  { %2748 = vmatpush1.bf16.msra.mxu0 %v3940_v24  ;;  %2779 = vmatprep.mubr.bf16.mxu0 %v520_v34  ;;  %v4998_v24 = vrot.slane %v483_v19, %v4541_v48  ;;  %v4033_v34 = vld [vmem:[%s5728_s1 + $0x580] ss:$8 sps:$4 sm:$0xff]   ;;  %v4099_v19 = vld [vmem:[%s5728_s1 + $0x7d0] ss:$8 sps:$4 sm:$0xff]  }
  0x84   :  { %2739 = vmatmul.mubr.bf16.vlgmr.msra.gmra.mxu1 %v480_v5  ;;  %2749 = vmatprep.subr.bf16.mxu0 %v3948_v25  ;;  %v4029_v5 = vld [vmem:[%s5728_s1 + $0x594] ss:$8 sps:$4 sm:$0xff]   ;;  %v4024_v25 = vld [vmem:[%s5728_s1 + $0x490] ss:$8 sps:$4 sm:$0xff]  }
  0x85   :  { %2789 = vmatpush1.bf16.msra.mxu1 %v3943_v27  ;;  %2820 = vmatprep.mubr.bf16.mxu1 %v530_v37  ;;  %v4027_v27 = vld [vmem:[%s5728_s1 + $0x590] ss:$8 sps:$4 sm:$0xff]  }
  0x86   :  { %2790 = vmatprep.subr.bf16.mxu1 %v3951_v29  ;;  %v499_v29 = vcombine.high %v4998_v24, %v4998_v24 }
  0x87   :  { %2750 = vmatpush1.bf16.msra.mxu0 %v3946_v30  ;;  %v4035_v30 = vld [vmem:[%s5728_s1 + $0x584] ss:$8 sps:$4 sm:$0xff]  }
  0x88   :  { %2751 = vmatprep.subr.bf16.mxu0 %v3954_v32  ;;  %v506_v32 = vrot.slane %v4834_v28, %v4541_v48  ;;  %v4036_v28 = vld [vmem:[%s5728_s1 + $0x670] ss:$8 sps:$4 sm:$0xff]  }
  0x89   :  { %2791 = vmatpush1.bf16.msra.mxu1 %v3949_v33  ;;  %v4038_v33 = vld [vmem:[%s5728_s1 + $0x674] ss:$8 sps:$4 sm:$0xff]  }
  0x8a   :  { %2792 = vmatprep.subr.bf16.mxu1 %v3957_v35  ;;  %v527_v35 = vrot.slane %v499_v29, %v4541_v48  ;;  %v528_v37 = vcombine.high %v506_v32, %v506_v32  ;;  %v4119_v29 = vld [vmem:[%s5728_s1 + $0x7a4] ss:$8 sps:$4 sm:$0xff]  }
  0x8b   :  { %2752 = vmatpush1.bf16.msra.mxu0 %v3952_v36  ;;  %v4041_v36 = vld [vmem:[%s5728_s1 + $0x774] ss:$8 sps:$4 sm:$0xff]  }
  0x8c   :  { %2753 = vmatprep.subr.bf16.mxu0 %v3960_v38  ;;  %v4044_v38 = vld [vmem:[%s5728_s1 + $0x664] ss:$8 sps:$4 sm:$0xff]  }
  0x8d   :  { %2793 = vmatpush1.bf16.msra.mxu1 %v3955_v39  ;;  %v4039_v39 = vld [vmem:[%s5728_s1 + $0x770] ss:$8 sps:$4 sm:$0xff]  }
  0x8e   :  { %2794 = vmatprep.subr.bf16.mxu1 %v3963_v40  ;;  %v531_v40 = vcombine.high %v527_v35, %v527_v35 }
  0x8f   :  { %2754 = vmatpush1.bf16.msra.mxu0 %v3958_v41  ;;  %v4047_v41 = vld [vmem:[%s5728_s1 + $0x764] ss:$8 sps:$4 sm:$0xff]  }
  0x90   :  { %2755 = vmatprep.subr.bf16.mxu0 %v3966_v43  ;;  %v4042_v43 = vld [vmem:[%s5728_s1 + $0x660] ss:$8 sps:$4 sm:$0xff]  }
  0x91   :  { %2795 = vmatpush1.bf16.msra.mxu1 %v3961_v44  ;;  %v4050_v44 = vld [vmem:[%s5728_s1 + $0x654] ss:$8 sps:$4 sm:$0xff]  }
  0x92   :  { %2796 = vmatprep.subr.bf16.mxu1 %v3969_v45  ;;  %v4045_v45 = vld [vmem:[%s5728_s1 + $0x760] ss:$8 sps:$4 sm:$0xff]  }
  0x93   :  { %2756 = vmatpush1.bf16.msra.mxu0 %v3964_v46  ;;  %v4053_v46 = vld [vmem:[%s5728_s1 + $0x754] ss:$8 sps:$4 sm:$0xff]  }
  0x94   :  { %2757 = vmatprep.subr.bf16.mxu0 %v3972_v47  ;;  %v4048_v47 = vld [vmem:[%s5728_s1 + $0x650] ss:$8 sps:$4 sm:$0xff]  }
  0x95   :  { %2797 = vmatpush1.bf16.msra.mxu1 %v3967_v49  ;;  %v4056_v49 = vld [vmem:[%s5728_s1 + $0x644] ss:$8 sps:$4 sm:$0xff]  }
  0x96   :  { %2798 = vmatprep.subr.bf16.mxu1 %v3975_v50  ;;  %v4051_v50 = vld [vmem:[%s5728_s1 + $0x750] ss:$8 sps:$4 sm:$0xff]  }
  0x97   :  { %2758 = vmatpush1.bf16.msra.mxu0 %v3970_v51  ;;  %v4059_v51 = vld [vmem:[%s5728_s1 + $0x744] ss:$8 sps:$4 sm:$0xff]  }
  0x98   :  { %2759 = vmatprep.subr.bf16.mxu0 %v3978_v52  ;;  %v4054_v52 = vld [vmem:[%s5728_s1 + $0x640] ss:$8 sps:$4 sm:$0xff]  }
  0x99   :  { %2799 = vmatpush1.bf16.msra.mxu1 %v3973_v53  ;;  %v4062_v53 = vld [vmem:[%s5728_s1 + $0x634] ss:$8 sps:$4 sm:$0xff]  }
  0x9a   :  { %2800 = vmatprep.subr.bf16.mxu1 %v3981_v54  ;;  %v4057_v54 = vld [vmem:[%s5728_s1 + $0x740] ss:$8 sps:$4 sm:$0xff]  }
  0x9b   :  { %2760 = vmatpush1.bf16.msra.mxu0 %v3976_v55  ;;  %v4065_v55 = vld [vmem:[%s5728_s1 + $0x734] ss:$8 sps:$4 sm:$0xff]  }
  0x9c   :  { %2761 = vmatprep.subr.bf16.mxu0 %v3984_v56  ;;  %v4060_v56 = vld [vmem:[%s5728_s1 + $0x630] ss:$8 sps:$4 sm:$0xff]  }
  0x9d   :  { %2801 = vmatpush1.bf16.msra.mxu1 %v3979_v57  ;;  %v4068_v57 = vld [vmem:[%s5728_s1 + $0x624] ss:$8 sps:$4 sm:$0xff]  }
  0x9e   :  { %2802 = vmatprep.subr.bf16.mxu1 %v3987_v58  ;;  %v4063_v58 = vld [vmem:[%s5728_s1 + $0x730] ss:$8 sps:$4 sm:$0xff]  }
  0x9f   :  { %2762 = vmatpush1.bf16.msra.mxu0 %v3982_v59  ;;  %v4071_v59 = vld [vmem:[%s5728_s1 + $0x724] ss:$8 sps:$4 sm:$0xff]  }
  0xa0   :  { %2763 = vmatprep.subr.bf16.mxu0 %v3990_v60  ;;  %v4066_v60 = vld [vmem:[%s5728_s1 + $0x620] ss:$8 sps:$4 sm:$0xff]  }
  0xa1   :  { %2803 = vmatpush1.bf16.msra.mxu1 %v3985_v61  ;;  %v4074_v61 = vld [vmem:[%s5728_s1 + $0x614] ss:$8 sps:$4 sm:$0xff]  }
  0xa2   :  { %2804 = vmatprep.subr.bf16.mxu1 %v3993_v62  ;;  %v4069_v62 = vld [vmem:[%s5728_s1 + $0x720] ss:$8 sps:$4 sm:$0xff]  }
  0xa3   :  { %2764 = vmatpush2.bf16.msra.mxu0 %v3988_v63  ;;  %v4077_v63 = vld [vmem:[%s5728_s1 + $0x714] ss:$8 sps:$4 sm:$0xff]  }
  0xa4   :  { %2765 = vmatprep.subr.bf16.mxu0 %v3996_v0  ;;  %v4072_v0 = vld [vmem:[%s5728_s1 + $0x610] ss:$8 sps:$4 sm:$0xff]  }
  0xa5   :  { %2805 = vmatpush2.bf16.msra.mxu1 %v3991_v1  ;;  %v4080_v1 = vld [vmem:[%s5728_s1 + $0x604] ss:$8 sps:$4 sm:$0xff]  }
  0xa6   :  { %2806 = vmatprep.subr.bf16.mxu1 %v3999_v2  ;;  %v4075_v2 = vld [vmem:[%s5728_s1 + $0x710] ss:$8 sps:$4 sm:$0xff]  }
  0xa7   :  { %2766 = vmatpush2.bf16.msra.mxu0 %v3994_v3  ;;  %v4083_v3 = vld [vmem:[%s5728_s1 + $0x704] ss:$8 sps:$4 sm:$0xff]  }
  0xa8   :  { %2767 = vmatprep.subr.bf16.mxu0 %v4002_v4  ;;  %v4078_v4 = vld [vmem:[%s5728_s1 + $0x600] ss:$8 sps:$4 sm:$0xff]  }
  0xa9   :  { %2807 = vmatpush2.bf16.msra.mxu1 %v3997_v6  ;;  %v4086_v6 = vld [vmem:[%s5728_s1 + $0x6f4] ss:$8 sps:$4 sm:$0xff]  }
  0xaa   :  { %2808 = vmatprep.subr.bf16.mxu1 %v4005_v7  ;;  %v4081_v7 = vld [vmem:[%s5728_s1 + $0x700] ss:$8 sps:$4 sm:$0xff]  }
  0xab   :  { %2768 = vmatpush2.bf16.msra.mxu0 %v4000_v8  ;;  %v4089_v8 = vld [vmem:[%s5728_s1 + $0x7f4] ss:$8 sps:$4 sm:$0xff]  }
  0xac   :  { %2769 = vmatprep.subr.bf16.mxu0 %v4008_v9  ;;  %v4084_v9 = vld [vmem:[%s5728_s1 + $0x6f0] ss:$8 sps:$4 sm:$0xff]  }
  0xad   :  { %2809 = vmatpush2.bf16.msra.mxu1 %v4003_v10  ;;  %v4092_v10 = vld [vmem:[%s5728_s1 + $0x6e4] ss:$8 sps:$4 sm:$0xff]  }
  0xae   :  { %2810 = vmatprep.subr.bf16.mxu1 %v4011_v11  ;;  %v4087_v11 = vld [vmem:[%s5728_s1 + $0x7f0] ss:$8 sps:$4 sm:$0xff]  }
  0xaf   :  { %2770 = vmatpush2.bf16.msra.mxu0 %v4006_v12  ;;  %v4095_v12 = vld [vmem:[%s5728_s1 + $0x7e4] ss:$8 sps:$4 sm:$0xff]  }
  0xb0   :  { %2771 = vmatprep.subr.bf16.mxu0 %v4014_v13  ;;  %v4090_v13 = vld [vmem:[%s5728_s1 + $0x6e0] ss:$8 sps:$4 sm:$0xff]  }
  0xb1   :  { %2811 = vmatpush2.bf16.msra.mxu1 %v4009_v14  ;;  %v4098_v14 = vld [vmem:[%s5728_s1 + $0x6d4] ss:$8 sps:$4 sm:$0xff]  }
  0xb2   :  { %2812 = vmatprep.subr.bf16.mxu1 %v4017_v15  ;;  %v4093_v15 = vld [vmem:[%s5728_s1 + $0x7e0] ss:$8 sps:$4 sm:$0xff]  }
  0xb3   :  { %2772 = vmatpush2.bf16.msra.mxu0 %v4012_v16  ;;  %v4101_v16 = vld [vmem:[%s5728_s1 + $0x7d4] ss:$8 sps:$4 sm:$0xff]  }
  0xb4   :  { %2773 = vmatprep.subr.bf16.mxu0 %v4020_v17  ;;  %v4096_v17 = vld [vmem:[%s5728_s1 + $0x6d0] ss:$8 sps:$4 sm:$0xff]  }
  0xb5   :  { %2813 = vmatpush2.bf16.msra.mxu1 %v4015_v18  ;;  %v4104_v18 = vld [vmem:[%s5728_s1 + $0x6c4] ss:$8 sps:$4 sm:$0xff]  }
  0xb6   :  { %2814 = vmatprep.subr.bf16.mxu1 %v4023_v20  ;;  %v4107_v20 = vld [vmem:[%s5728_s1 + $0x7c4] ss:$8 sps:$4 sm:$0xff]  }
  0xb7   :  { %2774 = vmatpush2.bf16.msra.mxu0 %v4018_v21  ;;  %v4102_v21 = vld [vmem:[%s5728_s1 + $0x6c0] ss:$8 sps:$4 sm:$0xff]  }
  0xb8   :  { %2775 = vmatprep.subr.bf16.mxu0 %v4026_v22  ;;  %v4110_v22 = vld [vmem:[%s5728_s1 + $0x6b4] ss:$8 sps:$4 sm:$0xff]  }
  0xb9   :  { %2815 = vmatpush2.bf16.msra.mxu1 %v4021_v23  ;;  %v4105_v23 = vld [vmem:[%s5728_s1 + $0x7c0] ss:$8 sps:$4 sm:$0xff]  }
  0xba   :  { %2816 = vmatprep.subr.bf16.mxu1 %v4029_v5  ;;  %v4113_v5 = vld [vmem:[%s5728_s1 + $0x7b4] ss:$8 sps:$4 sm:$0xff]  }
  0xbb   :  { %2776 = vmatpush2.bf16.msra.mxu0 %v4024_v25  ;;  %v4108_v25 = vld [vmem:[%s5728_s1 + $0x6b0] ss:$8 sps:$4 sm:$0xff]  }
  0xbc   :  { %2777 = vmatprep.subr.bf16.mxu0 %v4032_v26  ;;  %v4116_v26 = vld [vmem:[%s5728_s1 + $0x6a4] ss:$8 sps:$4 sm:$0xff]  }
  0xbd   :  { %2817 = vmatpush2.bf16.msra.mxu1 %v4027_v27  ;;  %v4111_v27 = vld [vmem:[%s5728_s1 + $0x7b0] ss:$8 sps:$4 sm:$0xff]  }
  0xbe   :  { %2818 = vmatprep.subr.bf16.mxu1 %v4035_v30  ;;  %v5191_v30 = vld [vmem:[%s5727_s0 + $0x10] sm:$0xff] }
  0xbf   :  { %2778 = vmatpush2.bf16.msra.mxu0 %v4030_v31  ;;  %v4114_v31 = vld [vmem:[%s5728_s1 + $0x6a0] ss:$8 sps:$4 sm:$0xff]  }
  0xc0   :  { %2829 = vmatprep.subr.bf16.mxu0 %v4038_v33  ;;  %v4117_v33 = vld [vmem:[%s5728_s1 + $0x7a0] ss:$8 sps:$4 sm:$0xff]  }
  0xc1   :  { %2819 = vmatpush2.bf16.msra.mxu1 %v4033_v34  ;;  %v5204_v34 = vrot.slane %v5191_v30, %v4541_v48 }
  0xc2   :  { %2780 = vmatmul.mubr.bf16.vlgmr.msra.gmra.mxu0 %v506_v32  ;;  %2870 = vmatprep.subr.bf16.mxu1 %v4041_v36  ;;  %v4122_v32 = vld [vmem:[%s5728_s1 + $0x694] ss:$8 sps:$4 sm:$0xff]   ;;  %v4120_v36 = vld [vmem:[%s5728_s1 + $0x690] ss:$8 sps:$4 sm:$0xff]  }
  0xc3   :  { %2830 = vmatpush1.bf16.msra.mxu0 %v4036_v28  ;;  %2861 = vmatprep.mubr.bf16.mxu0 %v527_v35  ;;  %v4125_v35 = vld [vmem:[%s5728_s1 + $0x794] ss:$8 sps:$4 sm:$0xff]   ;;  %v4128_v28 = vld [vmem:[%s5728_s1 + $0x684] ss:$8 sps:$4 sm:$0xff]  }
  0xc4   :  { %2821 = vmatmul.mubr.bf16.vlgmr.msra.gmra.mxu1 %v528_v37  ;;  %2831 = vmatprep.subr.bf16.mxu0 %v4044_v38  ;;  %v4123_v37 = vld [vmem:[%s5728_s1 + $0x790] ss:$8 sps:$4 sm:$0xff]   ;;  %v547_v38 = vcombine.high %v5204_v34, %v5204_v34 }
  0xc5   :  { %2871 = vmatpush1.bf16.msra.mxu1 %v4039_v39  ;;  %2902 = vmatprep.mubr.bf16.mxu1 %v531_v40  ;;  %v4131_v39 = vld [vmem:[%s5728_s1 + $0x784] ss:$8 sps:$4 sm:$0xff]   ;;  %v4126_v40 = vld [vmem:[%s5728_s1 + $0x680] ss:$8 sps:$4 sm:$0xff]  }
  0xc6   :  { %2872 = vmatprep.subr.bf16.mxu1 %v4047_v41  ;;  %v418_v41 = vld [vmem:[%s5729_s2] sm:$0x3] }
  0xc7   :  { %2832 = vmatpush1.bf16.msra.mxu0 %v4042_v43  ;;  %v422_v43 = vsub.s32 0, %v4526_v42 }
  0xc8   :  { %2833 = vmatprep.subr.bf16.mxu0 %v4050_v44  ;;  %v513_v44 = vrot.slane %v4998_v24, %v4541_v48 }
  0xc9   :  { %2873 = vmatpush1.bf16.msra.mxu1 %v4045_v45  ;;  %v4135_v45 = vld [vmem:[%s5728_s1 + $0x874] ss:$8 sps:$4 sm:$0xff]   ;;  %v423_v24 = vrot.slane %v418_v41, %v422_v43 }
  0xca   :  { %2874 = vmatprep.subr.bf16.mxu1 %v4053_v46  ;;  %v4129_v46 = vld [vmem:[%s5728_s1 + $0x780] ss:$8 sps:$4 sm:$0xff]  }
  0xcb   :  { %2834 = vmatpush1.bf16.msra.mxu0 %v4048_v47  ;;  %v426_v47 = vsub.s32 1, %v4526_v42 }
  0xcc   :  { %2835 = vmatprep.subr.bf16.mxu0 %v4056_v49  ;;  %v569_v49 = vrot.slane %v547_v38, %v4541_v48 }
  0xcd   :  { %2875 = vmatpush1.bf16.msra.mxu1 %v4051_v50  ;;  %v4138_v50 = vld [vmem:[%s5728_s1 + $0x974] ss:$8 sps:$4 sm:$0xff]   ;;  %v427_v42 = vrot.slane %v418_v41, %v426_v47 }
  0xce   :  { %2876 = vmatprep.subr.bf16.mxu1 %v4059_v51  ;;  %v4133_v51 = vld [vmem:[%s5728_s1 + $0x870] ss:$8 sps:$4 sm:$0xff]  }
  0xcf   :  { %2836 = vmatpush1.bf16.msra.mxu0 %v4054_v52  ;;  %v529_v52 = vcombine.high %v513_v44, %v513_v44 }
  0xd0   :  { %2837 = vmatprep.subr.bf16.mxu0 %v4062_v53  ;;  %v4141_v53 = vld [vmem:[%s5728_s1 + $0x864] ss:$8 sps:$4 sm:$0xff]  }
  0xd1   :  { %2877 = vmatpush1.bf16.msra.mxu1 %v4057_v54  ;;  %v4136_v54 = vld [vmem:[%s5728_s1 + $0x970] ss:$8 sps:$4 sm:$0xff]  }
  0xd2   :  { %2878 = vmatprep.subr.bf16.mxu1 %v4065_v55  ;;  %v579_v55 = vcombine.high %v569_v49, %v569_v49 }
  0xd3   :  { %2838 = vmatpush1.bf16.msra.mxu0 %v4060_v56 }
  0xd4   :  { %2839 = vmatprep.subr.bf16.mxu0 %v4068_v57  ;;  %v4139_v57 = vld [vmem:[%s5728_s1 + $0x860] ss:$8 sps:$4 sm:$0xff]  }
  0xd5   :  { %2879 = vmatpush1.bf16.msra.mxu1 %v4063_v58  ;;  %v4144_v58 = vld [vmem:[%s5728_s1 + $0x964] ss:$8 sps:$4 sm:$0xff]  }
  0xd6   :  { %2880 = vmatprep.subr.bf16.mxu1 %v4071_v59 }
  0xd7   :  { %2840 = vmatpush1.bf16.msra.mxu0 %v4066_v60  ;;  %v4142_v60 = vld [vmem:[%s5728_s1 + $0x960] ss:$8 sps:$4 sm:$0xff]  }
  0xd8   :  { %2841 = vmatprep.subr.bf16.mxu0 %v4074_v61 }
  0xd9   :  { %2881 = vmatpush1.bf16.msra.mxu1 %v4069_v62 }
  0xda   :  { %2882 = vmatprep.subr.bf16.mxu1 %v4077_v63  ;;  %v4147_v63 = vld [vmem:[%s5728_s1 + $0x854] ss:$8 sps:$4 sm:$0xff]  }
  0xdb   :  { %2842 = vmatpush1.bf16.msra.mxu0 %v4072_v0 }
  0xdc   :  { %2843 = vmatprep.subr.bf16.mxu0 %v4080_v1 }
  0xdd   :  { %2883 = vmatpush1.bf16.msra.mxu1 %v4075_v2  ;;  %v4145_v2 = vld [vmem:[%s5728_s1 + $0x850] ss:$8 sps:$4 sm:$0xff]  }
  0xde   :  { %2884 = vmatprep.subr.bf16.mxu1 %v4083_v3  ;;  %v4150_v3 = vld [vmem:[%s5728_s1 + $0x954] ss:$8 sps:$4 sm:$0xff]  }
  0xdf   :  { %2844 = vmatpush1.bf16.msra.mxu0 %v4078_v4 }
  0xe0   :  { %2845 = vmatprep.subr.bf16.mxu0 %v4086_v6 }
  0xe1   :  { %2885 = vmatpush1.bf16.msra.mxu1 %v4081_v7 }
  0xe2   :  { %2886 = vmatprep.subr.bf16.mxu1 %v4089_v8  ;;  %v4148_v8 = vld [vmem:[%s5728_s1 + $0x950] ss:$8 sps:$4 sm:$0xff]  }
  0xe3   :  { %2846 = vmatpush2.bf16.msra.mxu0 %v4084_v9 }
  0xe4   :  { %2847 = vmatprep.subr.bf16.mxu0 %v4092_v10  ;;  %v4153_v10 = vld [vmem:[%s5728_s1 + $0x844] ss:$8 sps:$4 sm:$0xff]  }
  0xe5   :  { %2887 = vmatpush2.bf16.msra.mxu1 %v4087_v11 }
  0xe6   :  { %2888 = vmatprep.subr.bf16.mxu1 %v4095_v12  ;;  %v4156_v12 = vld [vmem:[%s5728_s1 + $0x944] ss:$8 sps:$4 sm:$0xff]  }
  0xe7   :  { %2848 = vmatpush2.bf16.msra.mxu0 %v4090_v13  ;;  %v4151_v13 = vld [vmem:[%s5728_s1 + $0x840] ss:$8 sps:$4 sm:$0xff]  }
  0xe8   :  { %2849 = vmatprep.subr.bf16.mxu0 %v4098_v14 }
  0xe9   :  { %2889 = vmatpush2.bf16.msra.mxu1 %v4093_v15  ;;  %v4154_v15 = vld [vmem:[%s5728_s1 + $0x940] ss:$8 sps:$4 sm:$0xff]  }
  0xea   :  { %2890 = vmatprep.subr.bf16.mxu1 %v4101_v16  ;;  %v4159_v16 = vld [vmem:[%s5728_s1 + $0x834] ss:$8 sps:$4 sm:$0xff]  }
  0xeb   :  { %2850 = vmatpush2.bf16.msra.mxu0 %v4096_v17  ;;  %v4162_v17 = vld [vmem:[%s5728_s1 + $0x934] ss:$8 sps:$4 sm:$0xff]  }
  0xec   :  { %2851 = vmatprep.subr.bf16.mxu0 %v4104_v18  ;;  %v4157_v18 = vld [vmem:[%s5728_s1 + $0x830] ss:$8 sps:$4 sm:$0xff]  }
  0xed   :  { %2891 = vmatpush2.bf16.msra.mxu1 %v4099_v19  ;;  %v4160_v19 = vld [vmem:[%s5728_s1 + $0x930] ss:$8 sps:$4 sm:$0xff]  }
  0xee   :  { %2892 = vmatprep.subr.bf16.mxu1 %v4107_v20  ;;  %v4165_v20 = vld [vmem:[%s5728_s1 + $0x824] ss:$8 sps:$4 sm:$0xff]  }
  0xef   :  { %2852 = vmatpush2.bf16.msra.mxu0 %v4102_v21  ;;  %v4168_v21 = vld [vmem:[%s5728_s1 + $0x924] ss:$8 sps:$4 sm:$0xff]  }
  0xf0   :  { %2853 = vmatprep.subr.bf16.mxu0 %v4110_v22 }
  0xf1   :  { %2893 = vmatpush2.bf16.msra.mxu1 %v4105_v23 }
  0xf2   :  { %2894 = vmatprep.subr.bf16.mxu1 %v4113_v5 }
  0xf3   :  { %2854 = vmatpush2.bf16.msra.mxu0 %v4108_v25 }
  0xf4   :  { %2855 = vmatprep.subr.bf16.mxu0 %v4116_v26 }
  0xf5   :  { %2895 = vmatpush2.bf16.msra.mxu1 %v4111_v27 }
  0xf6   :  { %2896 = vmatprep.subr.bf16.mxu1 %v4119_v29 }
  0xf7   :  { %2856 = vmatpush2.bf16.msra.mxu0 %v4114_v31 }
  0xf8   :  { %2857 = vmatprep.subr.bf16.mxu0 %v4122_v32 }
  0xf9   :  { %2897 = vmatpush2.bf16.msra.mxu1 %v4117_v33 }
  0xfa   :  { %2898 = vmatprep.subr.bf16.mxu1 %v4125_v35 }
  0xfb   :  { %2858 = vmatpush2.bf16.msra.mxu0 %v4120_v36 }
  0xfc   :  { %2859 = vmatprep.subr.bf16.mxu0 %v4128_v28 }
  0xfd   :  { %2899 = vmatpush2.bf16.msra.mxu1 %v4123_v37 }
  0xfe   :  { %2900 = vmatprep.subr.bf16.mxu1 %v4131_v39 }
  0xff   :  { %2860 = vmatpush2.bf16.msra.mxu0 %v4126_v40 }
 0x100   :  { %2911 = vmatprep.subr.bf16.mxu0 %v4135_v45 }
 0x101   :  { %2901 = vmatpush2.bf16.msra.mxu1 %v4129_v46 }
 0x102   :  { %v2617_v56 = vpop.f32.mrf.mxu0  ;;  %2862 = vmatmul.mubr.bf16.vlgmr.msra.gmra.mxu0 %v513_v44  ;;  %2952 = vmatprep.subr.bf16.mxu1 %v4138_v50 }
 0x103   :  { %v2618_v59 = vadd.f32 %v2617_v56, %v423_v24  ;;  %2912 = vmatpush1.bf16.msra.mxu0 %v4133_v51  ;;  %2943 = vmatprep.mubr.bf16.mxu0 %v569_v49 }
 0x104   :  { %v2619_v61 = vpop.f32.mrf.mxu0  ;;  %v2658_v62 = vpop.f32.mrf.mxu1  ;;  %2903 = vmatmul.mubr.bf16.vlgmr.msra.gmra.mxu1 %v529_v52  ;;  %2913 = vmatprep.subr.bf16.mxu0 %v4141_v53 }
 0x105   :  { %v2620_v0 = vadd.f32 %v2619_v61, %v427_v42  ;;  %v5264_v1 = vadd.f32 %v2658_v62, %v2618_v59  ;;  %2953 = vmatpush1.bf16.msra.mxu1 %v4136_v54  ;;  %2984 = vmatprep.mubr.bf16.mxu1 %v579_v55 }
 0x106   :  { %v2621_v4 = vpop.f32.mrf.mxu0  ;;  %v2660_v6 = vpop.f32.mrf.mxu1  ;;  %2954 = vmatprep.subr.bf16.mxu1 %v4144_v58 }
 0x107   :  { %v5272_v7 = vadd.f32 %v2660_v6, %v2620_v0  ;;  %2914 = vmatpush1.bf16.msra.mxu0 %v4139_v57 }
 0x108   :  { %v2622_v9 = vpop.f32.mrf.mxu0  ;;  %2915 = vmatprep.subr.bf16.mxu0 %v4147_v63  ;;  %v2662_v11 = vpop.f32.mrf.mxu1 }
 0x109   :  { %2955 = vmatpush1.bf16.msra.mxu1 %v4142_v60 }
 0x10a   :  { %2956 = vmatprep.subr.bf16.mxu1 %v4150_v3  ;;  %v2663_v14 = vpop.f32.mrf.mxu1 }
 0x10b   :  { %2916 = vmatpush1.bf16.msra.mxu0 %v4145_v2 }
 0x10c   :  { %2917 = vmatprep.subr.bf16.mxu0 %v4153_v10 }
 0x10d   :  { %2957 = vmatpush1.bf16.msra.mxu1 %v4148_v8 }
 0x10e   :  { %2958 = vmatprep.subr.bf16.mxu1 %v4156_v12 }
 0x10f   :  { %2918 = vmatpush1.bf16.msra.mxu0 %v4151_v13 }
 0x110   :  { %2919 = vmatprep.subr.bf16.mxu0 %v4159_v16 }
 0x111   :  { %2959 = vmatpush1.bf16.msra.mxu1 %v4154_v15 }
 0x112   :  { %2960 = vmatprep.subr.bf16.mxu1 %v4162_v17 }
 0x113   :  { %10 = vsyncpa [#allocation3], 0  ;;  %2920 = vmatpush1.bf16.msra.mxu0 %v4157_v18  ;;  %v4163_v22 = vld [vmem:[%s5728_s1 + $0x820] ss:$8 sps:$4 sm:$0xff]   ;;  %v4171_v23 = vld [vmem:[%s5728_s1 + $0x814] ss:$8 sps:$4 sm:$0xff]   ;;  %v532_v55 = vcombine.high %v5191_v30, %v5191_v30  ;;  %v555_v4 = vrot.slane %v5204_v34, %v4541_v48 }
 0x114   :  { %2921 = vmatprep.subr.bf16.mxu0 %v4165_v20  ;;  %v4166_v5 = vld [vmem:[%s5728_s1 + $0x920] ss:$8 sps:$4 sm:$0xff]   ;;  %v4174_v25 = vld [vmem:[%s5728_s1 + $0x914] ss:$8 sps:$4 sm:$0xff]   ;;  %v4169_v26 = vld [vmem:[%s5728_s1 + $0x810] ss:$8 sps:$4 sm:$0xff]  }
 0x115   :  { %2961 = vmatpush1.bf16.msra.mxu1 %v4160_v19  ;;  %v4177_v27 = vld [vmem:[%s5728_s1 + $0x804] ss:$8 sps:$4 sm:$0xff]   ;;  %v4172_v29 = vld [vmem:[%s5728_s1 + $0x910] ss:$8 sps:$4 sm:$0xff]   ;;  %v4175_v32 = vld [vmem:[%s5728_s1 + $0x800] ss:$8 sps:$4 sm:$0xff]   ;;  %v5415_v59 = vrot.slane %v532_v55, %v4541_v48  ;;  %v577_v11 = vcombine.high %v555_v4, %v555_v4 }
 0x116   :  { %2962 = vmatprep.subr.bf16.mxu1 %v4168_v21  ;;  %v4180_v31 = vld [vmem:[%s5728_s1 + $0x904] ss:$8 sps:$4 sm:$0xff]   ;;  %v4183_v33 = vld [vmem:[%s5728_s1 + $0x8f4] ss:$8 sps:$4 sm:$0xff]   ;;  %v4178_v35 = vld [vmem:[%s5728_s1 + $0x900] ss:$8 sps:$4 sm:$0xff]  }
 0x117   :  { %2922 = vmatpush1.bf16.msra.mxu0 %v4163_v22  ;;  %v4186_v36 = vld [vmem:[%s5728_s1 + $0x9f4] ss:$8 sps:$4 sm:$0xff]   ;;  %v4181_v28 = vld [vmem:[%s5728_s1 + $0x8f0] ss:$8 sps:$4 sm:$0xff]   ;;  %v4189_v37 = vld [vmem:[%s5728_s1 + $0x8e4] ss:$8 sps:$4 sm:$0xff]   ;;  %v548_v0 = vcombine.high %v5415_v59, %v5415_v59 }
 0x118   :  { %2923 = vmatprep.subr.bf16.mxu0 %v4171_v23  ;;  %v4184_v38 = vld [vmem:[%s5728_s1 + $0x9f0] ss:$8 sps:$4 sm:$0xff]   ;;  %v4192_v39 = vld [vmem:[%s5728_s1 + $0x9e4] ss:$8 sps:$4 sm:$0xff]   ;;  %v4187_v40 = vld [vmem:[%s5728_s1 + $0x8e0] ss:$8 sps:$4 sm:$0xff]  }
 0x119   :  { %2963 = vmatpush1.bf16.msra.mxu1 %v4166_v5  ;;  %v4195_v41 = vld [vmem:[%s5728_s1 + $0x8d4] ss:$8 sps:$4 sm:$0xff]   ;;  %v4190_v43 = vld [vmem:[%s5728_s1 + $0x9e0] ss:$8 sps:$4 sm:$0xff]   ;;  %v4193_v45 = vld [vmem:[%s5728_s1 + $0x8d0] ss:$8 sps:$4 sm:$0xff]   ;;  %v576_v9 = vrot.slane %v548_v0, %v4541_v48 }
 0x11a   :  { %2964 = vmatprep.subr.bf16.mxu1 %v4174_v25  ;;  %v4198_v44 = vld [vmem:[%s5728_s1 + $0x9d4] ss:$8 sps:$4 sm:$0xff]   ;;  %v4201_v46 = vld [vmem:[%s5728_s1 + $0x8c4] ss:$8 sps:$4 sm:$0xff]   ;;  %v4196_v47 = vld [vmem:[%s5728_s1 + $0x9d0] ss:$8 sps:$4 sm:$0xff]  }
 0x11b   :  { %2924 = vmatpush1.bf16.msra.mxu0 %v4169_v26  ;;  %v4204_v49 = vld [vmem:[%s5728_s1 + $0x9c4] ss:$8 sps:$4 sm:$0xff]   ;;  %v4199_v50 = vld [vmem:[%s5728_s1 + $0x8c0] ss:$8 sps:$4 sm:$0xff]   ;;  %v4207_v24 = vld [vmem:[%s5728_s1 + $0x8b4] ss:$8 sps:$4 sm:$0xff]   ;;  %v580_v14 = vcombine.high %v576_v9, %v576_v9 }
 0x11c   :  { %2925 = vmatprep.subr.bf16.mxu0 %v4177_v27  ;;  %v4202_v51 = vld [vmem:[%s5728_s1 + $0x9c0] ss:$8 sps:$4 sm:$0xff]   ;;  %v4210_v52 = vld [vmem:[%s5728_s1 + $0x9b4] ss:$8 sps:$4 sm:$0xff]   ;;  %v4205_v53 = vld [vmem:[%s5728_s1 + $0x8b0] ss:$8 sps:$4 sm:$0xff]  }
 0x11d   :  { %2965 = vmatpush1.bf16.msra.mxu1 %v4172_v29  ;;  %v4213_v42 = vld [vmem:[%s5728_s1 + $0x8a4] ss:$8 sps:$4 sm:$0xff]   ;;  %v4208_v54 = vld [vmem:[%s5728_s1 + $0x9b0] ss:$8 sps:$4 sm:$0xff]   ;;  %v4211_v57 = vld [vmem:[%s5728_s1 + $0x8a0] ss:$8 sps:$4 sm:$0xff]  }
 0x11e   :  { %2966 = vmatprep.subr.bf16.mxu1 %v4180_v31  ;;  %v4216_v56 = vld [vmem:[%s5728_s1 + $0x9a4] ss:$8 sps:$4 sm:$0xff]   ;;  %v4219_v58 = vld [vmem:[%s5728_s1 + $0x894] ss:$8 sps:$4 sm:$0xff]   ;;  %v4214_v30 = vld [vmem:[%s5728_s1 + $0x9a0] ss:$8 sps:$4 sm:$0xff]  }
 0x11f   :  { %2926 = vmatpush1.bf16.msra.mxu0 %v4175_v32  ;;  %v4222_v60 = vld [vmem:[%s5728_s1 + $0x994] ss:$8 sps:$4 sm:$0xff]   ;;  %v4217_v61 = vld [vmem:[%s5728_s1 + $0x890] ss:$8 sps:$4 sm:$0xff]   ;;  %v4225_v62 = vld [vmem:[%s5728_s1 + $0x884] ss:$8 sps:$4 sm:$0xff]  }
 0x120   :  { %2927 = vmatprep.subr.bf16.mxu0 %v4183_v33  ;;  %v4220_v63 = vld [vmem:[%s5728_s1 + $0x990] ss:$8 sps:$4 sm:$0xff]   ;;  %v4228_v2 = vld [vmem:[%s5728_s1 + $0x984] ss:$8 sps:$4 sm:$0xff]   ;;  %v4223_v3 = vld [vmem:[%s5728_s1 + $0x880] ss:$8 sps:$4 sm:$0xff]  }
 0x121   :  { %2967 = vmatpush1.bf16.msra.mxu1 %v4178_v35  ;;  %v4231_v6 = vld [vmem:[%s5728_s1 + $0xa74] ss:$8 sps:$4 sm:$0xff]   ;;  %v4226_v8 = vld [vmem:[%s5728_s1 + $0x980] ss:$8 sps:$4 sm:$0xff]   ;;  %v4229_v34 = vld [vmem:[%s5728_s1 + $0xa70] ss:$8 sps:$4 sm:$0xff]  }
 0x122   :  { %2968 = vmatprep.subr.bf16.mxu1 %v4186_v36  ;;  %v4234_v10 = vld [vmem:[%s5728_s1 + $0xb74] ss:$8 sps:$4 sm:$0xff]   ;;  %v4237_v12 = vld [vmem:[%s5728_s1 + $0xa64] ss:$8 sps:$4 sm:$0xff]   ;;  %v4232_v13 = vld [vmem:[%s5728_s1 + $0xb70] ss:$8 sps:$4 sm:$0xff]  }
 0x123   :  { %2928 = vmatpush2.bf16.msra.mxu0 %v4181_v28  ;;  %v4240_v16 = vld [vmem:[%s5728_s1 + $0xb64] ss:$8 sps:$4 sm:$0xff]   ;;  %v4235_v18 = vld [vmem:[%s5728_s1 + $0xa60] ss:$8 sps:$4 sm:$0xff]   ;;  %v4243_v21 = vld [vmem:[%s5728_s1 + $0xa54] ss:$8 sps:$4 sm:$0xff]  }
 0x124   :  { %2929 = vmatprep.subr.bf16.mxu0 %v4189_v37  ;;  %v4246_v26 = vld [vmem:[%s5728_s1 + $0xb54] ss:$8 sps:$4 sm:$0xff]   ;;  %v4249_v31 = vld [vmem:[%s5728_s1 + $0xa44] ss:$8 sps:$4 sm:$0xff]   ;;  %v4244_v33 = vld [vmem:[%s5728_s1 + $0xb50] ss:$8 sps:$4 sm:$0xff]  }
 0x125   :  { %2969 = vmatpush2.bf16.msra.mxu1 %v4184_v38  ;;  %v4252_v35 = vld [vmem:[%s5728_s1 + $0xb44] ss:$8 sps:$4 sm:$0xff]   ;;  %v4247_v28 = vld [vmem:[%s5728_s1 + $0xa40] ss:$8 sps:$4 sm:$0xff]   ;;  %v4255_v37 = vld [vmem:[%s5728_s1 + $0xa34] ss:$8 sps:$4 sm:$0xff]  }
 0x126   :  { %2970 = vmatprep.subr.bf16.mxu1 %v4192_v39  ;;  %v4250_v38 = vld [vmem:[%s5728_s1 + $0xb40] ss:$8 sps:$4 sm:$0xff]   ;;  %v4258_v39 = vld [vmem:[%s5728_s1 + $0xb34] ss:$8 sps:$4 sm:$0xff]   ;;  %v4289_v0 = vld [vmem:[%s5728_s1 + $0xad0] ss:$8 sps:$4 sm:$0xff]  }
 0x127   :  { %2930 = vmatpush2.bf16.msra.mxu0 %v4187_v40  ;;  %v4253_v40 = vld [vmem:[%s5728_s1 + $0xa30] ss:$8 sps:$4 sm:$0xff]   ;;  %v4282_v55 = vld [vmem:[%s5728_s1 + $0xbf4] ss:$8 sps:$4 sm:$0xff]   ;;  %vm2579_vm0 = vcmask 523264   ;;  %s4378_s6 = smov [#allocation2]  }
 0x128   :  { %2931 = vmatprep.subr.bf16.mxu0 %v4195_v41  ;;  %v4261_v41 = vld [vmem:[%s5728_s1 + $0xa24] ss:$8 sps:$4 sm:$0xff]   ;;  %s3303_s7 = sshll.u32 %s4378_s6, 4  ;;  %vm3295_vm1 = vcmask 74752   ;;  %s3304_s7 = int_to_ptr.vmem [resolvable:$true] %s3303_s7 }
 0x129   :  { %2971 = vmatpush2.bf16.msra.mxu1 %v4190_v43  ;;  %v4256_v43 = vld [vmem:[%s5728_s1 + $0xb30] ss:$8 sps:$4 sm:$0xff]   ;;  %s4354_s8 = scalar_lea.vmem %s3304_s7, 32  ;;  %p4359_p1 = scmp.lt.s32.totalorder %s3304_s7, %s3304_s7 }
 0x12a   :  { %2972 = vmatprep.subr.bf16.mxu1 %v4198_v44  ;;  %v4264_v44 = vld [vmem:[%s5728_s1 + $0xb24] ss:$8 sps:$4 sm:$0xff]   ;;  %p4355_p0 = scmp.ne.s32.totalorder %s3304_s7, %s4354_s8  ;;  %p4360_p2 = scmp.lt.s32.totalorder %s4354_s8, %s4354_s8 }
 0x12b   :  { %2932 = vmatpush2.bf16.msra.mxu0 %v4193_v45  ;;  %v4259_v45 = vld [vmem:[%s5728_s1 + $0xa20] ss:$8 sps:$4 sm:$0xff]  }
 0x12c   :  { %2933 = vmatprep.subr.bf16.mxu0 %v4201_v46  ;;  %v4267_v46 = vld [vmem:[%s5728_s1 + $0xa14] ss:$8 sps:$4 sm:$0xff]   ;;  %p4361_p3 = por %p4360_p2, %p4359_p1 }
 0x12d   :  { %2973 = vmatpush2.bf16.msra.mxu1 %v4196_v47  ;;  %v4262_v47 = vld [vmem:[%s5728_s1 + $0xb20] ss:$8 sps:$4 sm:$0xff]  }
 0x12e   :  { %2974 = vmatprep.subr.bf16.mxu1 %v4204_v49  ;;  %v4270_v49 = vld [vmem:[%s5728_s1 + $0xb14] ss:$8 sps:$4 sm:$0xff]   ;;  %p4362_p4 = pnand %p4361_p3, %p4355_p0 }
 0x12f   :  { %2934 = vmatpush2.bf16.msra.mxu0 %v4199_v50  ;;  %v4265_v50 = vld [vmem:[%s5728_s1 + $0xa10] ss:$8 sps:$4 sm:$0xff]  }
 0x130   :  { %2935 = vmatprep.subr.bf16.mxu0 %v4207_v24  ;;  %v4273_v24 = vld [vmem:[%s5728_s1 + $0xa04] ss:$8 sps:$4 sm:$0xff]  }
 0x131   :  { %2975 = vmatpush2.bf16.msra.mxu1 %v4202_v51  ;;  %v4268_v51 = vld [vmem:[%s5728_s1 + $0xb10] ss:$8 sps:$4 sm:$0xff]  }
 0x132   :  { %2976 = vmatprep.subr.bf16.mxu1 %v4210_v52  ;;  %v4276_v52 = vld [vmem:[%s5728_s1 + $0xb04] ss:$8 sps:$4 sm:$0xff]  }
 0x133   :  { %2936 = vmatpush2.bf16.msra.mxu0 %v4205_v53  ;;  %v4271_v53 = vld [vmem:[%s5728_s1 + $0xa00] ss:$8 sps:$4 sm:$0xff]  }
 0x134   :  { %2937 = vmatprep.subr.bf16.mxu0 %v4213_v42  ;;  %v4279_v42 = vld [vmem:[%s5728_s1 + $0xaf4] ss:$8 sps:$4 sm:$0xff]  }
 0x135   :  { %2977 = vmatpush2.bf16.msra.mxu1 %v4208_v54  ;;  %v4274_v54 = vld [vmem:[%s5728_s1 + $0xb00] ss:$8 sps:$4 sm:$0xff]  }
 0x136   :  { %2978 = vmatprep.subr.bf16.mxu1 %v4216_v56  ;;  %v4277_v56 = vld [vmem:[%s5728_s1 + $0xaf0] ss:$8 sps:$4 sm:$0xff]  }
 0x137   :  { %2938 = vmatpush2.bf16.msra.mxu0 %v4211_v57  ;;  %v4285_v57 = vld [vmem:[%s5728_s1 + $0xae4] ss:$8 sps:$4 sm:$0xff]  }
 0x138   :  { %2939 = vmatprep.subr.bf16.mxu0 %v4219_v58  ;;  %v4280_v58 = vld [vmem:[%s5728_s1 + $0xbf0] ss:$8 sps:$4 sm:$0xff]  }
 0x139   :  { %2979 = vmatpush2.bf16.msra.mxu1 %v4214_v30  ;;  %v4288_v30 = vld [vmem:[%s5728_s1 + $0xbe4] ss:$8 sps:$4 sm:$0xff]  }
 0x13a   :  { %2980 = vmatprep.subr.bf16.mxu1 %v4222_v60  ;;  %v4283_v60 = vld [vmem:[%s5728_s1 + $0xae0] ss:$8 sps:$4 sm:$0xff]  }
 0x13b   :  { %2940 = vmatpush2.bf16.msra.mxu0 %v4217_v61  ;;  %v4291_v61 = vld [vmem:[%s5728_s1 + $0xad4] ss:$8 sps:$4 sm:$0xff]  }
 0x13c   :  { %2941 = vmatprep.subr.bf16.mxu0 %v4225_v62  ;;  %v4286_v62 = vld [vmem:[%s5728_s1 + $0xbe0] ss:$8 sps:$4 sm:$0xff]  }
 0x13d   :  { %2981 = vmatpush2.bf16.msra.mxu1 %v4220_v63  ;;  %v4294_v63 = vld [vmem:[%s5728_s1 + $0xbd4] ss:$8 sps:$4 sm:$0xff]  }
 0x13e   :  { %2982 = vmatprep.subr.bf16.mxu1 %v4228_v2  ;;  %v4297_v2 = vld [vmem:[%s5728_s1 + $0xac4] ss:$8 sps:$4 sm:$0xff]  }
 0x13f   :  { %2942 = vmatpush2.bf16.msra.mxu0 %v4223_v3  ;;  %v4292_v3 = vld [vmem:[%s5728_s1 + $0xbd0] ss:$8 sps:$4 sm:$0xff]  }
 0x140   :  { %2993 = vmatprep.subr.bf16.mxu0 %v4231_v6  ;;  %v4295_v6 = vld [vmem:[%s5728_s1 + $0xac0] ss:$8 sps:$4 sm:$0xff]  }
 0x141   :  { %2983 = vmatpush2.bf16.msra.mxu1 %v4226_v8  ;;  %v4303_v8 = vld [vmem:[%s5728_s1 + $0xab4] ss:$8 sps:$4 sm:$0xff]  }
 0x142   :  { %v2699_v15 = vpop.f32.mrf.mxu0  ;;  %2944 = vmatmul.mubr.bf16.vlgmr.msra.gmra.mxu0 %v555_v4  ;;  %3034 = vmatprep.subr.bf16.mxu1 %v4234_v10  ;;  %v4300_v4 = vld [vmem:[%s5728_s1 + $0xbc4] ss:$8 sps:$4 sm:$0xff]   ;;  %v4306_v10 = vld [vmem:[%s5728_s1 + $0xbb4] ss:$8 sps:$4 sm:$0xff]  }
 0x143   :  { %v2700_v17 = vadd.f32 %v2699_v15, %v5264_v1  ;;  %2994 = vmatpush1.bf16.msra.mxu0 %v4229_v34  ;;  %3025 = vmatprep.mubr.bf16.mxu0 %v576_v9  ;;  %v4238_v1 = vld [vmem:[%s5728_s1 + $0xb60] ss:$8 sps:$4 sm:$0xff]   ;;  %v4301_v34 = vld [vmem:[%s5728_s1 + $0xab0] ss:$8 sps:$4 sm:$0xff]   ;;  %v4315_v15 = vld [vmem:[%s5728_s1 + $0xa94] ss:$8 sps:$4 sm:$0xff]  }
 0x144   :  { %v2701_v19 = vpop.f32.mrf.mxu0  ;;  %v2740_v20 = vpop.f32.mrf.mxu1  ;;  %2985 = vmatmul.mubr.bf16.vlgmr.msra.gmra.mxu1 %v577_v11  ;;  %2995 = vmatprep.subr.bf16.mxu0 %v4237_v12  ;;  %v4298_v9 = vld [vmem:[%s5728_s1 + $0xbc0] ss:$8 sps:$4 sm:$0xff]   ;;  %v4309_v11 = vld [vmem:[%s5728_s1 + $0xaa4] ss:$8 sps:$4 sm:$0xff]   ;;  %v4304_v12 = vld [vmem:[%s5728_s1 + $0xbb0] ss:$8 sps:$4 sm:$0xff]  }
 0x145   :  { %v2702_v22 = vadd.f32 %v2701_v19, %v5272_v7  ;;  %v5469_v23 = vadd.f32 %v2740_v20, %v2700_v17  ;;  %3035 = vmatpush1.bf16.msra.mxu1 %v4232_v13  ;;  %3066 = vmatprep.mubr.bf16.mxu1 %v580_v14  ;;  %v4241_v7 = vld [vmem:[%s5728_s1 + $0xa50] ss:$8 sps:$4 sm:$0xff]   ;;  %v4312_v13 = vld [vmem:[%s5728_s1 + $0xba4] ss:$8 sps:$4 sm:$0xff]   ;;  %v4307_v14 = vld [vmem:[%s5728_s1 + $0xaa0] ss:$8 sps:$4 sm:$0xff]  }
 0x146   :  { %v2703_v5 = vpop.f32.mrf.mxu0  ;;  %v2742_v25 = vpop.f32.mrf.mxu1  ;;  %3036 = vmatprep.subr.bf16.mxu1 %v4240_v16  ;;  %v4310_v16 = vld [vmem:[%s5728_s1 + $0xba0] ss:$8 sps:$4 sm:$0xff]   ;;  %v4318_v17 = vld [vmem:[%s5728_s1 + $0xb94] ss:$8 sps:$4 sm:$0xff]   ;;  %v4321_v19 = vld [vmem:[%s5728_s1 + $0xa84] ss:$8 sps:$4 sm:$0xff]  }
 0x147   :  { %v5477_v27 = vadd.f32 %v2742_v25, %v2702_v22  ;;  %2996 = vmatpush1.bf16.msra.mxu0 %v4235_v18  ;;  %v4313_v18 = vld [vmem:[%s5728_s1 + $0xa90] ss:$8 sps:$4 sm:$0xff]   ;;  %v4319_v22 = vld [vmem:[%s5728_s1 + $0xa80] ss:$8 sps:$4 sm:$0xff]   ;;  %v4328_v5 = vld [vmem:[%s5728_s1 + $0xc34] ss:$8 sps:$4 sm:$0xff]  }
 0x148   :  { %v2704_v29 = vpop.f32.mrf.mxu0  ;;  %2997 = vmatprep.subr.bf16.mxu0 %v4243_v21  ;;  %v2744_v32 = vpop.f32.mrf.mxu1  ;;  %v4316_v20 = vld [vmem:[%s5728_s1 + $0xb90] ss:$8 sps:$4 sm:$0xff]   ;;  %v4324_v21 = vld [vmem:[%s5728_s1 + $0xb84] ss:$8 sps:$4 sm:$0xff]   ;;  %v4322_v25 = vld [vmem:[%s5728_s1 + $0xb80] ss:$8 sps:$4 sm:$0xff]  }
 0x149   :  { %3037 = vmatpush1.bf16.msra.mxu1 %v4238_v1  ;;  %v562_v1 = vrot.slane %v5415_v59, %v4541_v48  ;;  %v4331_v59 = vld [vmem:[%s5728_s1 + $0xc24] ss:$8 sps:$4 sm:$0xff]   ;;  %v4329_v32 = vld [vmem:[%s5728_s1 + $0xc20] ss:$8 sps:$4 sm:$0xff]  }
 0x14a   :  { %3038 = vmatprep.subr.bf16.mxu1 %v4246_v26  ;;  %v2745_v36 = vpop.f32.mrf.mxu1  ;;  %v4326_v26 = vld [vmem:[%s5728_s1 + $0xc30] ss:$8 sps:$4 sm:$0xff]  }
 0x14b   :  { %2998 = vmatpush1.bf16.msra.mxu0 %v4241_v7  ;;  %v578_v7 = vcombine.high %v562_v1, %v562_v1 }
 0x14c   :  { %2999 = vmatprep.subr.bf16.mxu0 %v4249_v31 }
 0x14d   :  { %3039 = vmatpush1.bf16.msra.mxu1 %v4244_v33  ;;  %v4377_v33 = vmov 0  }
 0x14e   :  { %3040 = vmatprep.subr.bf16.mxu1 %v4252_v35 }
 0x14f   :  { %3000 = vmatpush1.bf16.msra.mxu0 %v4247_v28  ;;  %v4334_v28 = vld [vmem:[%s5728_s1 + $0xc14] ss:$8 sps:$4 sm:$0xff]  }
 0x150   :  { %3001 = vmatprep.subr.bf16.mxu0 %v4255_v37 }
 0x151   :  { %3041 = vmatpush1.bf16.msra.mxu1 %v4250_v38 }
 0x152   :  { %3042 = vmatprep.subr.bf16.mxu1 %v4258_v39 }
 0x153   :  { %3002 = vmatpush1.bf16.msra.mxu0 %v4253_v40 }
 0x154   :  { %3003 = vmatprep.subr.bf16.mxu0 %v4261_v41  ;;  %v4332_v41 = vld [vmem:[%s5728_s1 + $0xc10] ss:$8 sps:$4 sm:$0xff]  }
 0x155   :  { %3043 = vmatpush1.bf16.msra.mxu1 %v4256_v43 }
 0x156   :  { %3044 = vmatprep.subr.bf16.mxu1 %v4264_v44  ;;  %v4337_v44 = vld [vmem:[%s5728_s1 + $0xc04] ss:$8 sps:$4 sm:$0xff]  }
 0x157   :  { %3004 = vmatpush1.bf16.msra.mxu0 %v4259_v45 }
 0x158   :  { %3005 = vmatprep.subr.bf16.mxu0 %v4267_v46 }
 0x159   :  { %3045 = vmatpush1.bf16.msra.mxu1 %v4262_v47  ;;  %v4339_v47 = vld [vmem:[%s5730_s3 + $0x38] sm:$0xff]  }
 0x15a   :  { %3046 = vmatprep.subr.bf16.mxu1 %v4270_v49  ;;  %v4340_v49 = vld [vmem:[%s5730_s3 + $0x70] sm:$0xff]  }
 0x15b   :  { %3006 = vmatpush1.bf16.msra.mxu0 %v4265_v50  ;;  %v4335_v50 = vld [vmem:[%s5728_s1 + $0xc00] ss:$8 sps:$4 sm:$0xff]  }
 0x15c   :  { %3007 = vmatprep.subr.bf16.mxu0 %v4273_v24  ;;  %v3311_v24 = vld.sshfl [vmem:[%s5727_s0 + $0x18] sm:$0x1 pattern:$0x75316420] }
 0x15d   :  { %3047 = vmatpush1.bf16.msra.mxu1 %v4268_v51  ;;  %v4341_v51 = vld [vmem:[%s5730_s3 + $0x30] sm:$0xff]  }
 0x15e   :  { %3048 = vmatprep.subr.bf16.mxu1 %v4276_v52  ;;  %v594_v52 = vrot.slane %v3311_v24, %v4541_v48 }
 0x15f   :  { %3008 = vmatpush1.bf16.msra.mxu0 %v4271_v53 }
 0x160   :  { %3009 = vmatprep.subr.bf16.mxu0 %v4279_v42  ;;  %v4342_v42 = vld [vmem:[%s5730_s3 + $0x68] sm:$0xff]  }
 0x161   :  { %3049 = vmatpush1.bf16.msra.mxu1 %v4274_v54 }
 0x162   :  { %3050 = vmatprep.subr.bf16.mxu1 %v4282_v55  ;;  %v4343_v55 = vld [vmem:[%s5730_s3 + $0x28] sm:$0xff]  }
 0x163   :  { %3010 = vmatpush2.bf16.msra.mxu0 %v4277_v56 }
 0x164   :  { %3011 = vmatprep.subr.bf16.mxu0 %v4285_v57 }
 0x165   :  { %3051 = vmatpush2.bf16.msra.mxu1 %v4280_v58 }
 0x166   :  { %3052 = vmatprep.subr.bf16.mxu1 %v4288_v30 }
 0x167   :  { %3012 = vmatpush2.bf16.msra.mxu0 %v4283_v60 }
 0x168   :  { %3013 = vmatprep.subr.bf16.mxu0 %v4291_v61  ;;  %v4344_v61 = vld [vmem:[%s5730_s3 + $0x60] sm:$0xff]  }
 0x169   :  { %3053 = vmatpush2.bf16.msra.mxu1 %v4286_v62 }
 0x16a   :  { %3054 = vmatprep.subr.bf16.mxu1 %v4294_v63  ;;  %v4345_v63 = vld [vmem:[%s5730_s3 + $0x20] sm:$0xff]  }
 0x16b   :  { %3014 = vmatpush2.bf16.msra.mxu0 %v4289_v0 }
 0x16c   :  { %3015 = vmatprep.subr.bf16.mxu0 %v4297_v2 }
 0x16d   :  { %3055 = vmatpush2.bf16.msra.mxu1 %v4292_v3  ;;  %v4346_v3 = vld [vmem:[%s5730_s3 + $0x58] sm:$0xff]  }
 0x16e   :  { %3056 = vmatprep.subr.bf16.mxu1 %v4300_v4  ;;  %v4347_v4 = vld [vmem:[%s5730_s3 + $0x18] sm:$0xff]  }
 0x16f   :  { %3016 = vmatpush2.bf16.msra.mxu0 %v4295_v6 }
 0x170   :  { %3017 = vmatprep.subr.bf16.mxu0 %v4303_v8  ;;  %v4348_v8 = vld [vmem:[%s5730_s3 + $0x50] sm:$0xff]  }
 0x171   :  { %3057 = vmatpush2.bf16.msra.mxu1 %v4298_v9  ;;  %v4349_v9 = vld [vmem:[%s5730_s3 + $0x10] sm:$0xff]  }
 0x172   :  { %3058 = vmatprep.subr.bf16.mxu1 %v4306_v10  ;;  %v4350_v10 = vld [vmem:[%s5730_s3 + $0x48] sm:$0xff]  }
 0x173   :  { %3018 = vmatpush2.bf16.msra.mxu0 %v4301_v34  ;;  %v4351_v34 = vld [vmem:[%s5730_s3 + $0x8] sm:$0xff]  }
 0x174   :  { %3019 = vmatprep.subr.bf16.mxu0 %v4309_v11  ;;  %v4352_v11 = vld [vmem:[%s5730_s3 + $0x40] sm:$0xff]  }
 0x175   :  { %3059 = vmatpush2.bf16.msra.mxu1 %v4304_v12  ;;  %v4353_v12 = vld [vmem:[%s5730_s3] sm:$0xff]  }
 0x176   :  { %3060 = vmatprep.subr.bf16.mxu1 %v4312_v13 }
 0x177   :  { %3020 = vmatpush2.bf16.msra.mxu0 %v4307_v14 }
 0x178   :  { %3021 = vmatprep.subr.bf16.mxu0 %v4315_v15 }
 0x179   :  { %3061 = vmatpush2.bf16.msra.mxu1 %v4310_v16 }
 0x17a   :  { %3062 = vmatprep.subr.bf16.mxu1 %v4318_v17 }
 0x17b   :  { %3022 = vmatpush2.bf16.msra.mxu0 %v4313_v18 }
 0x17c   :  { %3023 = vmatprep.subr.bf16.mxu0 %v4321_v19 }
 0x17d   :  { %3063 = vmatpush2.bf16.msra.mxu1 %v4316_v20 }
 0x17e   :  { %3064 = vmatprep.subr.bf16.mxu1 %v4324_v21 }
 0x17f   :  { %3024 = vmatpush2.bf16.msra.mxu0 %v4319_v22 }
 0x180   :  { %3083 = vmatprep.subr.bf16.mxu0 %v4328_v5 }
 0x181   :  { %3065 = vmatpush2.bf16.msra.mxu1 %v4322_v25 }
 0x182   :  { %v2781_v29 = vpop.f32.mrf.mxu0  ;;  %3026 = vmatmul.mubr.bf16.vlgmr.msra.gmra.mxu0 %v562_v1 }
 0x183   :  { %v2782_v31 = vadd.f32 %v2781_v29, %v5469_v23  ;;  %3084 = vmatpush1.bf16.msra.mxu0 %v4326_v26  ;;  %3107 = vmatprep.mubr.bf16.mxu0 %v4377_v33 }
 0x184   :  { %v2783_v35 = vpop.f32.mrf.mxu0  ;;  %v2822_v36 = vpop.f32.mrf.mxu1  ;;  %3067 = vmatmul.mubr.bf16.vlgmr.msra.gmra.mxu1 %v578_v7  ;;  %3085 = vmatprep.subr.bf16.mxu0 %v4331_v59 }
 0x185   :  { %v2784_v37 = vadd.f32 %v2783_v35, %v5477_v27  ;;  %v2823_v38 = vadd.f32 %v2822_v36, %v2782_v31  ;;  %v4338_v27 = vld [vmem:[%s5730_s3 + $0x78] sm:$0xff]  }
 0x186   :  { %v2785_v39 = vpop.f32.mrf.mxu0  ;;  %v2824_v23 = vpop.f32.mrf.mxu1  ;;  %3722 = vmatprep.subr.bf16.mxu1 %v4338_v27 }
 0x187   :  { %v2825_v40 = vadd.f32 %v2824_v23, %v2784_v37  ;;  %3086 = vmatpush1.bf16.msra.mxu0 %v4329_v32  ;;  %3723 = vmatpush3.bf16.msra.mxu1 %v4339_v47 }
 0x188   :  { %v2786_v43 = vpop.f32.mrf.mxu0  ;;  %3087 = vmatprep.subr.bf16.mxu0 %v4334_v28  ;;  %v2826_v45 = vpop.f32.mrf.mxu1  ;;  %3724 = vmatprep.subr.bf16.mxu1 %v4340_v49  ;;  %v3705_v49 = vld [vmem:[%s5731_s4] ss:$0 sm:$0xff] }
 0x18a   :  { %v2827_v46 = vpop.f32.mrf.mxu1 }
 0x18b   :  { %3088 = vmatpush1.bf16.msra.mxu0 %v4332_v41  ;;  %3725 = vmatpush3.bf16.msra.mxu1 %v4341_v51 }
 0x18c   :  { %3089 = vmatprep.subr.bf16.mxu0 %v4337_v44  ;;  %3726 = vmatprep.subr.bf16.mxu1 %v4342_v42 }
 0x18f   :  { %3090 = vmatpush1.bf16.msra.mxu0 %v4335_v50  ;;  %3727 = vmatpush3.bf16.msra.mxu1 %v4343_v55 }
 0x190   :  { %3728 = vmatprep.subr.bf16.mxu1 %v4344_v61 }
 0x192   :  { %3704 = vmatmul.mubr.msk.bf16.vlgmr.msra.gmra.mxu0 %vm2579_vm0, %v594_v52 }
 0x193   :  { %3729 = vmatpush3.bf16.msra.mxu1 %v4345_v63 }
 0x194   :  { %3730 = vmatprep.subr.bf16.mxu1 %v4346_v3 }
 0x197   :  { %3731 = vmatpush3.bf16.msra.mxu1 %v4347_v4 }
 0x198   :  { %3732 = vmatprep.subr.bf16.mxu1 %v4348_v8 }
 0x19b   :  { %3733 = vmatpush3.bf16.msra.mxu1 %v4349_v9 }
 0x19c   :  { %3734 = vmatprep.subr.bf16.mxu1 %v4350_v10 }
 0x19f   :  { %3735 = vmatpush3.bf16.msra.mxu1 %v4351_v34 }
 0x1a0   :  { %3736 = vmatprep.subr.bf16.mxu1 %v4352_v11 }
 0x1a3   :  { %3737 = vmatpush3.bf16.msra.mxu1 %v4353_v12 }
 0x1c2   :  { %v2863_v53 = vpop.f32.mrf.mxu0 }
 0x1c3   :  { %v2864_v54 = vadd.f32 %v2863_v53, %v2823_v38 }
 0x1c4   :  { %v2865_v56 = vpop.f32.mrf.mxu0  ;;  %v2904_v57 = vpop.f32.mrf.mxu1 }
 0x1c5   :  { %v2866_v58 = vadd.f32 %v2865_v56, %v2825_v40  ;;  %v2905_v48 = vadd.f32 %v2904_v57, %v2864_v54 }
 0x1c6   :  { %v2867_v30 = vpop.f32.mrf.mxu0  ;;  %v2906_v60 = vpop.f32.mrf.mxu1 }
 0x1c7   :  { %v2907_v62 = vadd.f32 %v2906_v60, %v2866_v58 }
 0x1c8   :  { %v2868_v0 = vpop.f32.mrf.mxu0  ;;  %v2908_v2 = vpop.f32.mrf.mxu1 }
 0x1ca   :  { %v2909_v6 = vpop.f32.mrf.mxu1 }
 0x202   :  { %v2945_v13 = vpop.f32.mrf.mxu0 }
 0x203   :  { %v2946_v14 = vadd.f32 %v2945_v13, %v2905_v48 }
 0x204   :  { %v2947_v15 = vpop.f32.mrf.mxu0  ;;  %v2986_v16 = vpop.f32.mrf.mxu1 }
 0x205   :  { %v2948_v17 = vadd.f32 %v2947_v15, %v2907_v62  ;;  %v2987_v18 = vadd.f32 %v2986_v16, %v2946_v14 }
 0x206   :  { %v2949_v19 = vpop.f32.mrf.mxu0  ;;  %v2988_v20 = vpop.f32.mrf.mxu1 }
 0x207   :  { %v2989_v21 = vadd.f32 %v2988_v20, %v2948_v17 }
 0x208   :  { %v2950_v22 = vpop.f32.mrf.mxu0  ;;  %v2990_v1 = vpop.f32.mrf.mxu1 }
 0x20a   :  { %v2991_v5 = vpop.f32.mrf.mxu1 }
 0x242   :  { %v3027_v25 = vpop.f32.mrf.mxu0 }
 0x243   :  { %v3028_v35 = vadd.f32 %v3027_v25, %v2987_v18 }
 0x244   :  { %v3029_v26 = vpop.f32.mrf.mxu0  ;;  %v3068_v7 = vpop.f32.mrf.mxu1 }
 0x245   :  { %v3030_v36 = vadd.f32 %v3029_v26, %v2989_v21  ;;  %v3069_v28 = vadd.f32 %v3068_v7, %v3028_v35 }
 0x246   :  { %v3031_v59 = vpop.f32.mrf.mxu0  ;;  %v3070_v29 = vpop.f32.mrf.mxu1 }
 0x247   :  { %v3071_v38 = vadd.f32 %v3070_v29, %v3030_v36 }
 0x248   :  { %v3032_v31 = vpop.f32.mrf.mxu0  ;;  %v3072_v32 = vpop.f32.mrf.mxu1 }
 0x24a   :  { %v3073_v33 = vpop.f32.mrf.mxu1 }
 0x252   :  { %v3109_v37 = vpop.f32.mrf.mxu0 }
 0x253   :  { %v3110_v39 = vadd.f32 %v3109_v37, %v3069_v28 }
 0x254   :  { %v3111_v23 = vpop.f32.mrf.mxu0 }
 0x255   :  { %v3112_v40 = vadd.f32 %v3111_v23, %v3071_v38  ;;  %v3116_v41 = vmax.f32 %v3110_v39, 0.0 }
 0x256   :  { %v3113_v43 = vpop.f32.mrf.mxu0 }
 0x257   :  { %v3117_v44 = vmax.f32 %v3112_v40, 0.0  ;;  %v3118_v27 = vpack.c.bf16 %v3116_v41, %v3116_v41 }
 0x258   :  { %v3114_v45 = vpop.f32.mrf.mxu0 }
 0x259   :  { %v3119_v46 = vpack.c.bf16 %v3117_v44, %v3117_v44 }
 0x25b   :  { %3287 = vmatprep.mubr.bf16.mxu1 %v3119_v46 }
 0x25c   :  { %3288 = vmatmul.mubr.bf16.vlgmr.msra.gmra.mxu1 %v3118_v27 }
 0x31c   :  { %v3738_v47 = vpop.f32.mrf.mxu1 }
 0x31e   :  { %v3739_v50 = vpop.f32.mrf.mxu1 }
 0x31f   :  { %v3740_v24 = vadd.f32 %v3739_v50, %v3738_v47 }
 0x320   :  { %v3741_v51 = vpop.f32.mrf.mxu1 }
 0x321   :  { %v3290_v52 = vadd.f32 %v3740_v24, %v3705_v49 }
 0x322   :  { %v3742_v53 = vpop.f32.mrf.mxu1 }
 0x323   :  { %3296 = vst.msk [vmem:[#allocation2] sm:$0x3] %vm3295_vm1, %v3290_v52 }
 0x324   :  { %4365 = shalt.err (!%p4362_p4)
}
 0x325   :  { %3306 = dma.vmem_to_hbm [thread:$0]  %s3304_s7, 32, %s5732_s5, [#allocation3]  }
 0x326   :  { %4374 = dma.done.wait [#allocation3], 32  }
 0x327   :  { %4375 = vsyncadd [#allocation3], 4294967264 }
 0x328   :  { %3310 = vsyncpa [#allocation3], 1 }

</bundles_post_ra>
